<compile_context>
chip_gen: v7x
topology: tpu7x:2x2x1
jax: 0.10.0
libtpu: 0.0.40
codegen_flags: <defaults>
</compile_context>

<pallas_src>
import functools
import re

import jax
import jax.numpy as jnp
from jax import lax
from jax.experimental import pallas as pl
from jax.experimental.pallas import tpu as pltpu

FEATURE_DIM = 17 * 4   # 68
HIDDEN_DIM = 128
HEAD_DIM = 32


def _round_up(v, m):
    return ((v + m - 1) // m) * m


def _tpu_generation():
    try:
        kind = jax.devices()[0].device_kind.lower()
    except Exception:
        return 0
    m = re.search(r"tpu[\s_-]*v?(\d+)", kind) or re.search(r"v(\d+)", kind)
    return int(m.group(1)) if m else 0


def _chip_config():
    """Per-generation VMEM budget + compute-path selection."""
    gen = _tpu_generation()
    if gen >= 7:     # v7x: 64 MiB VMEM/TC, 256-deep MXU, bf16 VPU/EUP, 2 TCs
        return dict(vmem_limit=48 << 20, budget=40 << 20,
                    wide_mxu=True, bf16_gates=True)
    if gen == 6:     # v6e: 128 MiB VMEM, 256-deep MXU, bf16 VPU/EUP
        return dict(vmem_limit=100 << 20, budget=88 << 20,
                    wide_mxu=True, bf16_gates=True)
    if gen in (4, 5):  # v4 / v5e / v5p: 128 MiB VMEM, 128-deep MXU, f32 VPU/EUP
        return dict(vmem_limit=100 << 20, budget=88 << 20,
                    wide_mxu=False, bf16_gates=False)
    # Unknown chip: don't touch the scoped-VMEM limit, stay under 16 MiB default.
    return dict(vmem_limit=None, budget=12 << 20,
                wide_mxu=True, bf16_gates=True)


def _pick_b_tile(B, T, budget_bytes):
    """Largest batch tile whose VMEM footprint (which scales with T) fits."""
    H = HIDDEN_DIM
    # per batch-row bytes: bf16 gx scratch (T, 8H) + double-buffered bf16 x (T, 128)
    per_row = T * (8 * H * 2 + 2 * 128 * 2)
    fixed = 6 << 20   # resident (double-buffered) weights + loop temporaries headroom
    bt = max(16, (budget_bytes - fixed) // per_row)
    bt = int(min(bt, 256, _round_up(B, 16)))
    bt = max(16, (bt // 16) * 16)
    # Keep >= 2 batch tiles when possible so v7x megacore gets both TCs busy.
    if _round_up(B, bt) // bt < 2 and bt >= 32:
        bt = max(16, ((bt // 2) // 16) * 16)
    return bt


def _bilstm_head_kernel(x_ref,            # (T, Bt, Dp)   bf16, time-major
                        w_ih_ref,         # (Dp, 8H)      bf16  [fwd | bwd]
                        b_ih_ref,         # (1, 8H)       f32   folded biases
                        whh_ref,          # (2H, 8H)      bf16  block-diagonal [fwd|bwd]
                        w1_ref, b1_ref,   # (2H, 128) bf16, (1, 128) f32
                        w2_ref, b2_ref,   # (1, 128) f32,   (1, 1)  f32
                        out_ref,          # (Bt, 1)       f32
                        gx_ref,           # scratch (T*Bt, 8H) bf16
                        *, wide_mxu, bf16_gates):
    T, B, Dp = x_ref.shape
    H = whh_ref.shape[0] // 2
    gate_dt = jnp.bfloat16 if bf16_gates else jnp.float32

    # ---- hoisted input projection: one big MXU matmul for all T, both dirs ----
    x2d = x_ref[...].reshape(T * B, Dp)                                   # bf16
    gx = jnp.dot(x2d, w_ih_ref[...], preferred_element_type=jnp.float32)
    gx_ref[...] = (gx + b_ih_ref[...]).astype(jnp.bfloat16)   # biases folded once

    if wide_mxu:
        whh_blk = whh_ref[...]                                 # (2H, 8H) K=256 dot
    else:
        whh_f = whh_ref[0:H, 0:4 * H]                          # (H, 4H) K=128 dots
        whh_b = whh_ref[H:2 * H, 4 * H:8 * H]

    def sig(v):      # sigmoid(x) = 0.5*tanh(0.5x) + 0.5 : one EUP op + VPU FMA
        return jnp.tanh(v * 0.5) * 0.5 + 0.5

    def gate_math(g, c):
        # transcendentals in bf16 on v6e/v7x (bf16 EUP path), f32 on v5e/v4;
        # cell state accumulation stays f32.
        g = g.astype(gate_dt)
        i = sig(g[:, 0 * H:1 * H])
        f = sig(g[:, 1 * H:2 * H])
        cand = jnp.tanh(g[:, 2 * H:3 * H])
        o = sig(g[:, 3 * H:4 * H])
        c_new = f * c + i * cand                     # promotes to f32 via c
        h_new = o * jnp.tanh(c_new.astype(gate_dt))  # gate_dt carry
        return h_new, c_new

    def step(t, carry):
        h_f, c_f, h_b, c_b = carry
        rf = pl.multiple_of(t * B, B)                # fwd rows for time t
        rb = pl.multiple_of((T - 1 - t) * B, B)      # bwd rows for time T-1-t
        if wide_mxu:
            # one block-diagonal K=256 matmul feeds both directions
            hcat = jnp.concatenate([h_f, h_b], axis=1).astype(jnp.bfloat16)
            g_all = jnp.dot(hcat, whh_blk, preferred_element_type=jnp.float32)
            g_f = g_all[:, :4 * H] + gx_ref[pl.ds(rf, B), :4 * H]
            g_b = g_all[:, 4 * H:] + gx_ref[pl.ds(rb, B), 4 * H:]
        else:
            # two K=128 dots (better on 128-deep MXUs); they overlap each
            # other's gate math in the scheduled loop body
            g_f = gx_ref[pl.ds(rf, B), :4 * H] + jnp.dot(
                h_f.astype(jnp.bfloat16), whh_f,
                preferred_element_type=jnp.float32)
            g_b = gx_ref[pl.ds(rb, B), 4 * H:] + jnp.dot(
                h_b.astype(jnp.bfloat16), whh_b,
                preferred_element_type=jnp.float32)
        h_f, c_f = gate_math(g_f, c_f)
        h_b, c_b = gate_math(g_b, c_b)
        return h_f, c_f, h_b, c_b

    zeros_h = jnp.zeros((B, H), gate_dt)
    zeros_c = jnp.zeros((B, H), jnp.float32)
    unroll = True if T <= 16 else 4
    h_f, _, h_b, _ = lax.fori_loop(0, T, step,
                                   (zeros_h, zeros_c, zeros_h, zeros_c),
                                   unroll=unroll)

    # ---- head: Linear(2H->32)+ReLU+Dropout(eval)+Linear(32->1) ----
    h_cat = jnp.concatenate([h_f, h_b], axis=1).astype(jnp.bfloat16)      # (Bt, 2H)
    z1 = jnp.maximum(
        jnp.dot(h_cat, w1_ref[...], preferred_element_type=jnp.float32)
        + b1_ref[...], 0.0)                                               # (Bt, 128)
    # Linear(32->1) as VPU multiply + lane reduction (padded cols of z1/w2 are 0);
    # stores only the single useful column per sample.
    out_ref[...] = jnp.sum(z1 * w2_ref[...], axis=1, keepdims=True) + b2_ref[...]


def bilstm_classifier_forward(x, params, b_tile=None):
    """x: (B, T, D) float32, batch_first like PyTorch.  Returns (B,) float32."""
    B, T, D = x.shape
    H = params["w_hh_f"].shape[1]
    cfg = _chip_config()
    D_pad = _round_up(max(D, 128), 128)            # lane-align feature dim (68 -> 128)
    if b_tile is None:
        b_tile = _pick_b_tile(B, T, cfg["budget"])
    B_pad = _round_up(B, b_tile)

    # TODO(synk): for very large B*T, move this transpose/pad/cast pre-pass into
    # the kernel (batch-major x block + in-kernel pad) to avoid an extra HBM
    # round-trip of x; negligible at small sizes.
    x_tm = jnp.transpose(x, (1, 0, 2))                                    # (T, B, D)
    x_tm = jnp.pad(x_tm, ((0, 0), (0, B_pad - B), (0, D_pad - D))).astype(jnp.bfloat16)

    # input weights for both directions combined -> (D_pad, 8H), bf16
    w_ih = jnp.concatenate([params["w_ih_f"].T, params["w_ih_b"].T], axis=1)
    w_ih = jnp.pad(w_ih, ((0, D_pad - D), (0, 0))).astype(jnp.bfloat16)
    # biases folded (b_ih + b_hh) per direction, added once to the hoisted gates
    b_ih = jnp.concatenate([params["b_ih_f"] + params["b_hh_f"],
                            params["b_ih_b"] + params["b_hh_b"]]).reshape(1, -1)

    # block-diagonal recurrent weight (2H, 8H): [[Whh_f, 0], [0, Whh_b]]
    zero_blk = jnp.zeros((H, 4 * H), jnp.float32)
    whh = jnp.concatenate([
        jnp.concatenate([params["w_hh_f"].T, zero_blk], axis=1),
        jnp.concatenate([zero_blk, params["w_hh_b"].T], axis=1)],
        axis=0).astype(jnp.bfloat16)

    # head: 128-wide hidden layer (zero padded cols are exact), 1-wide output
    w1 = jnp.pad(params["w1"].T, ((0, 0), (0, 128 - HEAD_DIM))).astype(jnp.bfloat16)
    b1 = jnp.pad(params["b1"], (0, 128 - HEAD_DIM)).reshape(1, -1)
    w2 = jnp.pad(params["w2"], ((0, 0), (0, 128 - HEAD_DIM)))            # (1, 128) f32
    b2 = params["b2"].reshape(1, 1)

    kernel = functools.partial(_bilstm_head_kernel,
                               wide_mxu=cfg["wide_mxu"],
                               bf16_gates=cfg["bf16_gates"])
    const = lambda b: (0, 0)   # weights resident across grid steps
    cp_kwargs = dict(dimension_semantics=("parallel",))
    if cfg["vmem_limit"] is not None:
        cp_kwargs["vmem_limit_bytes"] = cfg["vmem_limit"]

    out = pl.pallas_call(
        kernel,
        out_shape=jax.ShapeDtypeStruct((B_pad, 1), jnp.float32),
        grid_spec=pltpu.PrefetchScalarGridSpec(
            num_scalar_prefetch=0,
            grid=(B_pad // b_tile,),
            in_specs=[
                pl.BlockSpec((T, b_tile, D_pad), lambda b: (0, b, 0)),   # x tile
                pl.BlockSpec((D_pad, 8 * H), const),
                pl.BlockSpec((1, 8 * H), const),
                pl.BlockSpec((2 * H, 8 * H), const),
                pl.BlockSpec((2 * H, 128), const),
                pl.BlockSpec((1, 128), const),
                pl.BlockSpec((1, 128), const),
                pl.BlockSpec((1, 1), const),
            ],
            out_specs=pl.BlockSpec((b_tile, 1), lambda b: (b, 0)),
            scratch_shapes=[pltpu.VMEM((T * b_tile, 8 * H), jnp.bfloat16)],
        ),
        compiler_params=pltpu.CompilerParams(**cp_kwargs),
    )(x_tm, w_ih, b_ih, whh, w1, b1, w2, b2)
    return out[:B, 0]


def init_params(key, input_dim=FEATURE_DIM, hidden_dim=HIDDEN_DIM):
    """Deterministic init mimicking PyTorch's U(-1/sqrt(H), 1/sqrt(H))."""
    keys = jax.random.split(key, 12)
    k = 1.0 / jnp.sqrt(hidden_dim)
    u = lambda kk, shape, bound: jax.random.uniform(
        kk, shape, jnp.float32, -bound, bound)
    kh = 1.0 / jnp.sqrt(2 * hidden_dim)
    k32 = 1.0 / jnp.sqrt(HEAD_DIM)
    return {
        # forward direction LSTM weights (PyTorch layout: (4H, in))
        "w_ih_f": u(keys[0], (4 * hidden_dim, input_dim), k),
        "w_hh_f": u(keys[1], (4 * hidden_dim, hidden_dim), k),
        "b_ih_f": u(keys[2], (4 * hidden_dim,), k),
        "b_hh_f": u(keys[3], (4 * hidden_dim,), k),
        # backward direction
        "w_ih_b": u(keys[4], (4 * hidden_dim, input_dim), k),
        "w_hh_b": u(keys[5], (4 * hidden_dim, hidden_dim), k),
        "b_ih_b": u(keys[6], (4 * hidden_dim,), k),
        "b_hh_b": u(keys[7], (4 * hidden_dim,), k),
        # head: Linear(2H, 32), Linear(32, 1)   (PyTorch layout: (out, in))
        "w1": u(keys[8], (HEAD_DIM, 2 * hidden_dim), kh),
        "b1": u(keys[9], (HEAD_DIM,), kh),
        "w2": u(keys[10], (1, HEAD_DIM), k32),
        "b2": u(keys[11], (1,), k32),
    }


def _reference_forward(x, p):
    """Pure-JAX f32 reference of the PyTorch forward (eval mode)."""
    H = p["w_hh_f"].shape[1]
    B = x.shape[0]

    def run(xs, w_ih, w_hh, b_ih, b_hh):
        def step(carry, x_t):
            h, c = carry
            g = x_t @ w_ih.T + b_ih + h @ w_hh.T + b_hh
            i = jax.nn.sigmoid(g[:, 0 * H:1 * H])
            f = jax.nn.sigmoid(g[:, 1 * H:2 * H])
            gg = jnp.tanh(g[:, 2 * H:3 * H])
            o = jax.nn.sigmoid(g[:, 3 * H:4 * H])
            c = f * c + i * gg
            h = o * jnp.tanh(c)
            return (h, c), None
        (h, _), _ = lax.scan(step, (jnp.zeros((B, H)), jnp.zeros((B, H))),
                             jnp.transpose(xs, (1, 0, 2)))
        return h

    h_fwd = run(x, p["w_ih_f"], p["w_hh_f"], p["b_ih_f"], p["b_hh_f"])
    h_bwd = run(x[:, ::-1], p["w_ih_b"], p["w_hh_b"], p["b_ih_b"], p["b_hh_b"])
    h_cat = jnp.concatenate([h_fwd, h_bwd], axis=1)
    z = jnp.maximum(h_cat @ p["w1"].T + p["b1"], 0.0)
    return (z @ p["w2"].T + p["b2"]).reshape(-1)


if __name__ == "__main__":
    key = jax.random.PRNGKey(0)
    k_x, k_p = jax.random.split(key)

    B, T, D = 2, 8, FEATURE_DIM
    x = jax.random.normal(k_x, (B, T, D), jnp.float32)
    params = init_params(k_p, input_dim=D, hidden_dim=HIDDEN_DIM)

    out = bilstm_classifier_forward(x, params)
    out = jax.block_until_ready(out)

    ref = _reference_forward(x, params)
    assert out.shape == (B,)
    # Tolerance accounts for bf16 MXU operands and (on v6e/v7x) bf16 gate
    # nonlinearities; cell state stays f32.  Observed |err| is O(1e-3..5e-3).
    assert jnp.allclose(out, ref, rtol=3e-2, atol=3e-2), (out, ref)

    print("KERNEL_OK")
</pallas_src>

<mosaic_0001>
module attributes {stable_mosaic.version = 11 : i64} {
  func.func @_bilstm_head_kernel(%arg0: i32, %arg1: memref<8x16x128xbf16, #tpu.memory_space<vmem>>, %arg2: memref<128x1024xbf16, #tpu.memory_space<vmem>>, %arg3: memref<1x1024xf32, #tpu.memory_space<vmem>>, %arg4: memref<256x1024xbf16, #tpu.memory_space<vmem>>, %arg5: memref<256x128xbf16, #tpu.memory_space<vmem>>, %arg6: memref<1x128xf32, #tpu.memory_space<vmem>>, %arg7: memref<1x128xf32, #tpu.memory_space<vmem>>, %arg8: memref<1x1xf32, #tpu.memory_space<vmem>>, %arg9: memref<16x1xf32, #tpu.memory_space<vmem>>, %arg10: memref<128x1024xbf16, #tpu.memory_space<vmem>>) attributes {dimension_semantics = [#tpu.dimension_semantics<parallel>], iteration_bounds = array<i64: 1>, scalar_prefetch = 0 : i64, scratch_operands = 1 : i64, tpu.core_type = #tpu.core_type<tc>, window_params = [{transform_indices = @transform_0, window_bounds = array<i64: 8, 16, 128>}, {pipeline_mode = #tpu.pipeline_mode<synchronous>, transform_indices = @transform_1, window_bounds = array<i64: 128, 1024>}, {pipeline_mode = #tpu.pipeline_mode<synchronous>, transform_indices = @transform_2, window_bounds = array<i64: 1, 1024>}, {pipeline_mode = #tpu.pipeline_mode<synchronous>, transform_indices = @transform_3, window_bounds = array<i64: 256, 1024>}, {pipeline_mode = #tpu.pipeline_mode<synchronous>, transform_indices = @transform_4, window_bounds = array<i64: 256, 128>}, {pipeline_mode = #tpu.pipeline_mode<synchronous>, transform_indices = @transform_5, window_bounds = array<i64: 1, 128>}, {pipeline_mode = #tpu.pipeline_mode<synchronous>, transform_indices = @transform_6, window_bounds = array<i64: 1, 128>}, {pipeline_mode = #tpu.pipeline_mode<synchronous>, transform_indices = @transform_7, window_bounds = array<i64: 1, 1>}, {transform_indices = @transform_8, window_bounds = array<i64: 16, 1>}]} {
    %c0 = arith.constant 0 : index
    %c0_0 = arith.constant 0 : index
    %c0_1 = arith.constant 0 : index
    %0 = vector.load %arg1[%c0, %c0_0, %c0_1] : memref<8x16x128xbf16, #tpu.memory_space<vmem>>, vector<8x16x128xbf16>
    %1 = vector.shape_cast %0 : vector<8x16x128xbf16> to vector<128x128xbf16>
    %c0_2 = arith.constant 0 : index
    %c0_3 = arith.constant 0 : index
    %2 = vector.load %arg2[%c0_2, %c0_3] : memref<128x1024xbf16, #tpu.memory_space<vmem>>, vector<128x1024xbf16>
    %cst = arith.constant dense<0.000000e+00> : vector<128x1024xf32>
    %3 = tpu.matmul %1, %2, %cst {dimension_numbers = #tpu.dot_dimension_numbers<[1], [0], [0], [1], [0, 0, 1, 1], [], []>} : vector<128x128xbf16>, vector<128x1024xbf16>, vector<128x1024xf32> -> vector<128x1024xf32>
    %c0_4 = arith.constant 0 : index
    %c0_5 = arith.constant 0 : index
    %4 = vector.load %arg3[%c0_4, %c0_5] : memref<1x1024xf32, #tpu.memory_space<vmem>>, vector<1x1024xf32>
    %5 = vector.broadcast %4 : vector<1x1024xf32> to vector<128x1024xf32>
    %6 = arith.addf %3, %5 : vector<128x1024xf32>
    %7 = arith.truncf %6 : vector<128x1024xf32> to vector<128x1024xbf16>
    %c0_6 = arith.constant 0 : index
    %c0_7 = arith.constant 0 : index
    %8 = vector.load %arg10[%c0_6, %c0_7] : memref<128x1024xbf16, #tpu.memory_space<vmem>>, vector<128x1024xbf16>
    tpu.vector_store %arg10[%c0_6, %c0_7], %7 {strides = array<i32>} : memref<128x1024xbf16, #tpu.memory_space<vmem>>, vector<128x1024xbf16>,
    %c0_8 = arith.constant 0 : index
    %c0_9 = arith.constant 0 : index
    %9 = vector.load %arg4[%c0_8, %c0_9] : memref<256x1024xbf16, #tpu.memory_space<vmem>>, vector<256x1024xbf16>
    %cst_10 = arith.constant 0.000000e+00 : bf16
    %10 = vector.broadcast %cst_10 : bf16 to vector<16x128xbf16>
    %cst_11 = arith.constant 0.000000e+00 : f32
    %11 = vector.broadcast %cst_11 : f32 to vector<16x128xf32>
    %c0_i32 = arith.constant 0 : i32
    %c16_i32 = arith.constant 16 : i32
    %12 = arith.muli %c0_i32, %c16_i32 : i32
    %13 = tpu.assume_multiple %12, 16 : i32
    %c7_i32 = arith.constant 7 : i32
    %14 = arith.subi %c7_i32, %c0_i32 : i32
    %c16_i32_12 = arith.constant 16 : i32
    %15 = arith.muli %14, %c16_i32_12 : i32
    %16 = tpu.assume_multiple %15, 16 : i32
    %17 = tpu.concatenate %10, %10 in 1 : vector<16x128xbf16>, vector<16x128xbf16> -> vector<16x256xbf16>
    %cst_13 = arith.constant dense<0.000000e+00> : vector<16x1024xf32>
    %18 = tpu.matmul %17, %9, %cst_13 {dimension_numbers = #tpu.dot_dimension_numbers<[1], [0], [0], [1], [0, 0, 1, 1], [], []>} : vector<16x256xbf16>, vector<256x1024xbf16>, vector<16x1024xf32> -> vector<16x1024xf32>
    %19 = vector.extract_strided_slice %18 {offsets = [0, 0], sizes = [16, 512], strides = [1, 1]} : vector<16x1024xf32> to vector<16x512xf32>
    %20 = arith.index_cast %13 : i32 to index
    %c0_14 = arith.constant 0 : index
    %21 = vector.load %arg10[%20, %c0_14] : memref<128x1024xbf16, #tpu.memory_space<vmem>>, vector<16x512xbf16>
    %22 = arith.extf %21 : vector<16x512xbf16> to vector<16x512xf32>
    %23 = arith.addf %19, %22 : vector<16x512xf32>
    %24 = vector.extract_strided_slice %18 {offsets = [0, 512], sizes = [16, 512], strides = [1, 1]} : vector<16x1024xf32> to vector<16x512xf32>
    %25 = arith.index_cast %16 : i32 to index
    %c512 = arith.constant 512 : index
    %26 = vector.load %arg10[%25, %c512] : memref<128x1024xbf16, #tpu.memory_space<vmem>>, vector<16x512xbf16>
    %27 = arith.extf %26 : vector<16x512xbf16> to vector<16x512xf32>
    %28 = arith.addf %24, %27 : vector<16x512xf32>
    %29 = arith.truncf %23 : vector<16x512xf32> to vector<16x512xbf16>
    %30 = vector.extract_strided_slice %29 {offsets = [0, 0], sizes = [16, 128], strides = [1, 1]} : vector<16x512xbf16> to vector<16x128xbf16>
    %cst_15 = arith.constant 5.000000e-01 : bf16
    %31 = vector.broadcast %cst_15 : bf16 to vector<16x128xbf16>
    %32 = arith.mulf %30, %31 : vector<16x128xbf16>
    %33 = math.tanh %32 : vector<16x128xbf16>
    %cst_16 = arith.constant 5.000000e-01 : bf16
    %34 = vector.broadcast %cst_16 : bf16 to vector<16x128xbf16>
    %35 = arith.mulf %33, %34 : vector<16x128xbf16>
    %cst_17 = arith.constant 5.000000e-01 : bf16
    %36 = vector.broadcast %cst_17 : bf16 to vector<16x128xbf16>
    %37 = arith.addf %35, %36 : vector<16x128xbf16>
    %38 = vector.extract_strided_slice %29 {offsets = [0, 128], sizes = [16, 128], strides = [1, 1]} : vector<16x512xbf16> to vector<16x128xbf16>
    %cst_18 = arith.constant 5.000000e-01 : bf16
    %39 = vector.broadcast %cst_18 : bf16 to vector<16x128xbf16>
    %40 = arith.mulf %38, %39 : vector<16x128xbf16>
    %41 = math.tanh %40 : vector<16x128xbf16>
    %cst_19 = arith.constant 5.000000e-01 : bf16
    %42 = vector.broadcast %cst_19 : bf16 to vector<16x128xbf16>
    %43 = arith.mulf %41, %42 : vector<16x128xbf16>
    %cst_20 = arith.constant 5.000000e-01 : bf16
    %44 = vector.broadcast %cst_20 : bf16 to vector<16x128xbf16>
    %45 = arith.addf %43, %44 : vector<16x128xbf16>
    %46 = vector.extract_strided_slice %29 {offsets = [0, 256], sizes = [16, 128], strides = [1, 1]} : vector<16x512xbf16> to vector<16x128xbf16>
    %47 = math.tanh %46 : vector<16x128xbf16>
    %48 = vector.extract_strided_slice %29 {offsets = [0, 384], sizes = [16, 128], strides = [1, 1]} : vector<16x512xbf16> to vector<16x128xbf16>
    %cst_21 = arith.constant 5.000000e-01 : bf16
    %49 = vector.broadcast %cst_21 : bf16 to vector<16x128xbf16>
    %50 = arith.mulf %48, %49 : vector<16x128xbf16>
    %51 = math.tanh %50 : vector<16x128xbf16>
    %cst_22 = arith.constant 5.000000e-01 : bf16
    %52 = vector.broadcast %cst_22 : bf16 to vector<16x128xbf16>
    %53 = arith.mulf %51, %52 : vector<16x128xbf16>
    %cst_23 = arith.constant 5.000000e-01 : bf16
    %54 = vector.broadcast %cst_23 : bf16 to vector<16x128xbf16>
    %55 = arith.addf %53, %54 : vector<16x128xbf16>
    %56 = arith.extf %45 : vector<16x128xbf16> to vector<16x128xf32>
    %57 = arith.mulf %56, %11 : vector<16x128xf32>
    %58 = arith.mulf %37, %47 : vector<16x128xbf16>
    %59 = arith.extf %58 : vector<16x128xbf16> to vector<16x128xf32>
    %60 = arith.addf %57, %59 : vector<16x128xf32>
    %61 = arith.truncf %60 : vector<16x128xf32> to vector<16x128xbf16>
    %62 = math.tanh %61 : vector<16x128xbf16>
    %63 = arith.mulf %55, %62 : vector<16x128xbf16>
    %64 = arith.truncf %28 : vector<16x512xf32> to vector<16x512xbf16>
    %65 = vector.extract_strided_slice %64 {offsets = [0, 0], sizes = [16, 128], strides = [1, 1]} : vector<16x512xbf16> to vector<16x128xbf16>
    %cst_24 = arith.constant 5.000000e-01 : bf16
    %66 = vector.broadcast %cst_24 : bf16 to vector<16x128xbf16>
    %67 = arith.mulf %65, %66 : vector<16x128xbf16>
    %68 = math.tanh %67 : vector<16x128xbf16>
    %cst_25 = arith.constant 5.000000e-01 : bf16
    %69 = vector.broadcast %cst_25 : bf16 to vector<16x128xbf16>
    %70 = arith.mulf %68, %69 : vector<16x128xbf16>
    %cst_26 = arith.constant 5.000000e-01 : bf16
    %71 = vector.broadcast %cst_26 : bf16 to vector<16x128xbf16>
    %72 = arith.addf %70, %71 : vector<16x128xbf16>
    %73 = vector.extract_strided_slice %64 {offsets = [0, 128], sizes = [16, 128], strides = [1, 1]} : vector<16x512xbf16> to vector<16x128xbf16>
    %cst_27 = arith.constant 5.000000e-01 : bf16
    %74 = vector.broadcast %cst_27 : bf16 to vector<16x128xbf16>
    %75 = arith.mulf %73, %74 : vector<16x128xbf16>
    %76 = math.tanh %75 : vector<16x128xbf16>
    %cst_28 = arith.constant 5.000000e-01 : bf16
    %77 = vector.broadcast %cst_28 : bf16 to vector<16x128xbf16>
    %78 = arith.mulf %76, %77 : vector<16x128xbf16>
    %cst_29 = arith.constant 5.000000e-01 : bf16
    %79 = vector.broadcast %cst_29 : bf16 to vector<16x128xbf16>
    %80 = arith.addf %78, %79 : vector<16x128xbf16>
    %81 = vector.extract_strided_slice %64 {offsets = [0, 256], sizes = [16, 128], strides = [1, 1]} : vector<16x512xbf16> to vector<16x128xbf16>
    %82 = math.tanh %81 : vector<16x128xbf16>
    %83 = vector.extract_strided_slice %64 {offsets = [0, 384], sizes = [16, 128], strides = [1, 1]} : vector<16x512xbf16> to vector<16x128xbf16>
    %cst_30 = arith.constant 5.000000e-01 : bf16
    %84 = vector.broadcast %cst_30 : bf16 to vector<16x128xbf16>
    %85 = arith.mulf %83, %84 : vector<16x128xbf16>
    %86 = math.tanh %85 : vector<16x128xbf16>
    %cst_31 = arith.constant 5.000000e-01 : bf16
    %87 = vector.broadcast %cst_31 : bf16 to vector<16x128xbf16>
    %88 = arith.mulf %86, %87 : vector<16x128xbf16>
    %cst_32 = arith.constant 5.000000e-01 : bf16
    %89 = vector.broadcast %cst_32 : bf16 to vector<16x128xbf16>
    %90 = arith.addf %88, %89 : vector<16x128xbf16>
    %91 = arith.extf %80 : vector<16x128xbf16> to vector<16x128xf32>
    %92 = arith.mulf %91, %11 : vector<16x128xf32>
    %93 = arith.mulf %72, %82 : vector<16x128xbf16>
    %94 = arith.extf %93 : vector<16x128xbf16> to vector<16x128xf32>
    %95 = arith.addf %92, %94 : vector<16x128xf32>
    %96 = arith.truncf %95 : vector<16x128xf32> to vector<16x128xbf16>
    %97 = math.tanh %96 : vector<16x128xbf16>
    %98 = arith.mulf %90, %97 : vector<16x128xbf16>
    %c1_i32 = arith.constant 1 : i32
    %c16_i32_33 = arith.constant 16 : i32
    %99 = arith.muli %c1_i32, %c16_i32_33 : i32
    %100 = tpu.assume_multiple %99, 16 : i32
    %c7_i32_34 = arith.constant 7 : i32
    %101 = arith.subi %c7_i32_34, %c1_i32 : i32
    %c16_i32_35 = arith.constant 16 : i32
    %102 = arith.muli %101, %c16_i32_35 : i32
    %103 = tpu.assume_multiple %102, 16 : i32
    %104 = tpu.concatenate %63, %98 in 1 : vector<16x128xbf16>, vector<16x128xbf16> -> vector<16x256xbf16>
    %cst_36 = arith.constant dense<0.000000e+00> : vector<16x1024xf32>
    %105 = tpu.matmul %104, %9, %cst_36 {dimension_numbers = #tpu.dot_dimension_numbers<[1], [0], [0], [1], [0, 0, 1, 1], [], []>} : vector<16x256xbf16>, vector<256x1024xbf16>, vector<16x1024xf32> -> vector<16x1024xf32>
    %106 = vector.extract_strided_slice %105 {offsets = [0, 0], sizes = [16, 512], strides = [1, 1]} : vector<16x1024xf32> to vector<16x512xf32>
    %107 = arith.index_cast %100 : i32 to index
    %c0_37 = arith.constant 0 : index
    %108 = vector.load %arg10[%107, %c0_37] : memref<128x1024xbf16, #tpu.memory_space<vmem>>, vector<16x512xbf16>
    %109 = arith.extf %108 : vector<16x512xbf16> to vector<16x512xf32>
    %110 = arith.addf %106, %109 : vector<16x512xf32>
    %111 = vector.extract_strided_slice %105 {offsets = [0, 512], sizes = [16, 512], strides = [1, 1]} : vector<16x1024xf32> to vector<16x512xf32>
    %112 = arith.index_cast %103 : i32 to index
    %c512_38 = arith.constant 512 : index
    %113 = vector.load %arg10[%112, %c512_38] : memref<128x1024xbf16, #tpu.memory_space<vmem>>, vector<16x512xbf16>
    %114 = arith.extf %113 : vector<16x512xbf16> to vector<16x512xf32>
    %115 = arith.addf %111, %114 : vector<16x512xf32>
    %116 = arith.truncf %110 : vector<16x512xf32> to vector<16x512xbf16>
    %117 = vector.extract_strided_slice %116 {offsets = [0, 0], sizes = [16, 128], strides = [1, 1]} : vector<16x512xbf16> to vector<16x128xbf16>
    %cst_39 = arith.constant 5.000000e-01 : bf16
    %118 = vector.broadcast %cst_39 : bf16 to vector<16x128xbf16>
    %119 = arith.mulf %117, %118 : vector<16x128xbf16>
    %120 = math.tanh %119 : vector<16x128xbf16>
    %cst_40 = arith.constant 5.000000e-01 : bf16
    %121 = vector.broadcast %cst_40 : bf16 to vector<16x128xbf16>
    %122 = arith.mulf %120, %121 : vector<16x128xbf16>
    %cst_41 = arith.constant 5.000000e-01 : bf16
    %123 = vector.broadcast %cst_41 : bf16 to vector<16x128xbf16>
    %124 = arith.addf %122, %123 : vector<16x128xbf16>
    %125 = vector.extract_strided_slice %116 {offsets = [0, 128], sizes = [16, 128], strides = [1, 1]} : vector<16x512xbf16> to vector<16x128xbf16>
    %cst_42 = arith.constant 5.000000e-01 : bf16
    %126 = vector.broadcast %cst_42 : bf16 to vector<16x128xbf16>
    %127 = arith.mulf %125, %126 : vector<16x128xbf16>
    %128 = math.tanh %127 : vector<16x128xbf16>
    %cst_43 = arith.constant 5.000000e-01 : bf16
    %129 = vector.broadcast %cst_43 : bf16 to vector<16x128xbf16>
    %130 = arith.mulf %128, %129 : vector<16x128xbf16>
    %cst_44 = arith.constant 5.000000e-01 : bf16
    %131 = vector.broadcast %cst_44 : bf16 to vector<16x128xbf16>
    %132 = arith.addf %130, %131 : vector<16x128xbf16>
    %133 = vector.extract_strided_slice %116 {offsets = [0, 256], sizes = [16, 128], strides = [1, 1]} : vector<16x512xbf16> to vector<16x128xbf16>
    %134 = math.tanh %133 : vector<16x128xbf16>
    %135 = vector.extract_strided_slice %116 {offsets = [0, 384], sizes = [16, 128], strides = [1, 1]} : vector<16x512xbf16> to vector<16x128xbf16>
    %cst_45 = arith.constant 5.000000e-01 : bf16
    %136 = vector.broadcast %cst_45 : bf16 to vector<16x128xbf16>
    %137 = arith.mulf %135, %136 : vector<16x128xbf16>
    %138 = math.tanh %137 : vector<16x128xbf16>
    %cst_46 = arith.constant 5.000000e-01 : bf16
    %139 = vector.broadcast %cst_46 : bf16 to vector<16x128xbf16>
    %140 = arith.mulf %138, %139 : vector<16x128xbf16>
    %cst_47 = arith.constant 5.000000e-01 : bf16
    %141 = vector.broadcast %cst_47 : bf16 to vector<16x128xbf16>
    %142 = arith.addf %140, %141 : vector<16x128xbf16>
    %143 = arith.extf %132 : vector<16x128xbf16> to vector<16x128xf32>
    %144 = arith.mulf %143, %60 : vector<16x128xf32>
    %145 = arith.mulf %124, %134 : vector<16x128xbf16>
    %146 = arith.extf %145 : vector<16x128xbf16> to vector<16x128xf32>
    %147 = arith.addf %144, %146 : vector<16x128xf32>
    %148 = arith.truncf %147 : vector<16x128xf32> to vector<16x128xbf16>
    %149 = math.tanh %148 : vector<16x128xbf16>
    %150 = arith.mulf %142, %149 : vector<16x128xbf16>
    %151 = arith.truncf %115 : vector<16x512xf32> to vector<16x512xbf16>
    %152 = vector.extract_strided_slice %151 {offsets = [0, 0], sizes = [16, 128], strides = [1, 1]} : vector<16x512xbf16> to vector<16x128xbf16>
    %cst_48 = arith.constant 5.000000e-01 : bf16
    %153 = vector.broadcast %cst_48 : bf16 to vector<16x128xbf16>
    %154 = arith.mulf %152, %153 : vector<16x128xbf16>
    %155 = math.tanh %154 : vector<16x128xbf16>
    %cst_49 = arith.constant 5.000000e-01 : bf16
    %156 = vector.broadcast %cst_49 : bf16 to vector<16x128xbf16>
    %157 = arith.mulf %155, %156 : vector<16x128xbf16>
    %cst_50 = arith.constant 5.000000e-01 : bf16
    %158 = vector.broadcast %cst_50 : bf16 to vector<16x128xbf16>
    %159 = arith.addf %157, %158 : vector<16x128xbf16>
    %160 = vector.extract_strided_slice %151 {offsets = [0, 128], sizes = [16, 128], strides = [1, 1]} : vector<16x512xbf16> to vector<16x128xbf16>
    %cst_51 = arith.constant 5.000000e-01 : bf16
    %161 = vector.broadcast %cst_51 : bf16 to vector<16x128xbf16>
    %162 = arith.mulf %160, %161 : vector<16x128xbf16>
    %163 = math.tanh %162 : vector<16x128xbf16>
    %cst_52 = arith.constant 5.000000e-01 : bf16
    %164 = vector.broadcast %cst_52 : bf16 to vector<16x128xbf16>
    %165 = arith.mulf %163, %164 : vector<16x128xbf16>
    %cst_53 = arith.constant 5.000000e-01 : bf16
    %166 = vector.broadcast %cst_53 : bf16 to vector<16x128xbf16>
    %167 = arith.addf %165, %166 : vector<16x128xbf16>
    %168 = vector.extract_strided_slice %151 {offsets = [0, 256], sizes = [16, 128], strides = [1, 1]} : vector<16x512xbf16> to vector<16x128xbf16>
    %169 = math.tanh %168 : vector<16x128xbf16>
    %170 = vector.extract_strided_slice %151 {offsets = [0, 384], sizes = [16, 128], strides = [1, 1]} : vector<16x512xbf16> to vector<16x128xbf16>
    %cst_54 = arith.constant 5.000000e-01 : bf16
    %171 = vector.broadcast %cst_54 : bf16 to vector<16x128xbf16>
    %172 = arith.mulf %170, %171 : vector<16x128xbf16>
    %173 = math.tanh %172 : vector<16x128xbf16>
    %cst_55 = arith.constant 5.000000e-01 : bf16
    %174 = vector.broadcast %cst_55 : bf16 to vector<16x128xbf16>
    %175 = arith.mulf %173, %174 : vector<16x128xbf16>
    %cst_56 = arith.constant 5.000000e-01 : bf16
    %176 = vector.broadcast %cst_56 : bf16 to vector<16x128xbf16>
    %177 = arith.addf %175, %176 : vector<16x128xbf16>
    %178 = arith.extf %167 : vector<16x128xbf16> to vector<16x128xf32>
    %179 = arith.mulf %178, %95 : vector<16x128xf32>
    %180 = arith.mulf %159, %169 : vector<16x128xbf16>
    %181 = arith.extf %180 : vector<16x128xbf16> to vector<16x128xf32>
    %182 = arith.addf %179, %181 : vector<16x128xf32>
    %183 = arith.truncf %182 : vector<16x128xf32> to vector<16x128xbf16>
    %184 = math.tanh %183 : vector<16x128xbf16>
    %185 = arith.mulf %177, %184 : vector<16x128xbf16>
    %c2_i32 = arith.constant 2 : i32
    %c16_i32_57 = arith.constant 16 : i32
    %186 = arith.muli %c2_i32, %c16_i32_57 : i32
    %187 = tpu.assume_multiple %186, 16 : i32
    %c7_i32_58 = arith.constant 7 : i32
    %188 = arith.subi %c7_i32_58, %c2_i32 : i32
    %c16_i32_59 = arith.constant 16 : i32
    %189 = arith.muli %188, %c16_i32_59 : i32
    %190 = tpu.assume_multiple %189, 16 : i32
    %191 = tpu.concatenate %150, %185 in 1 : vector<16x128xbf16>, vector<16x128xbf16> -> vector<16x256xbf16>
    %cst_60 = arith.constant dense<0.000000e+00> : vector<16x1024xf32>
    %192 = tpu.matmul %191, %9, %cst_60 {dimension_numbers = #tpu.dot_dimension_numbers<[1], [0], [0], [1], [0, 0, 1, 1], [], []>} : vector<16x256xbf16>, vector<256x1024xbf16>, vector<16x1024xf32> -> vector<16x1024xf32>
    %193 = vector.extract_strided_slice %192 {offsets = [0, 0], sizes = [16, 512], strides = [1, 1]} : vector<16x1024xf32> to vector<16x512xf32>
    %194 = arith.index_cast %187 : i32 to index
    %c0_61 = arith.constant 0 : index
    %195 = vector.load %arg10[%194, %c0_61] : memref<128x1024xbf16, #tpu.memory_space<vmem>>, vector<16x512xbf16>
    %196 = arith.extf %195 : vector<16x512xbf16> to vector<16x512xf32>
    %197 = arith.addf %193, %196 : vector<16x512xf32>
    %198 = vector.extract_strided_slice %192 {offsets = [0, 512], sizes = [16, 512], strides = [1, 1]} : vector<16x1024xf32> to vector<16x512xf32>
    %199 = arith.index_cast %190 : i32 to index
    %c512_62 = arith.constant 512 : index
    %200 = vector.load %arg10[%199, %c512_62] : memref<128x1024xbf16, #tpu.memory_space<vmem>>, vector<16x512xbf16>
    %201 = arith.extf %200 : vector<16x512xbf16> to vector<16x512xf32>
    %202 = arith.addf %198, %201 : vector<16x512xf32>
    %203 = arith.truncf %197 : vector<16x512xf32> to vector<16x512xbf16>
    %204 = vector.extract_strided_slice %203 {offsets = [0, 0], sizes = [16, 128], strides = [1, 1]} : vector<16x512xbf16> to vector<16x128xbf16>
    %cst_63 = arith.constant 5.000000e-01 : bf16
    %205 = vector.broadcast %cst_63 : bf16 to vector<16x128xbf16>
    %206 = arith.mulf %204, %205 : vector<16x128xbf16>
    %207 = math.tanh %206 : vector<16x128xbf16>
    %cst_64 = arith.constant 5.000000e-01 : bf16
    %208 = vector.broadcast %cst_64 : bf16 to vector<16x128xbf16>
    %209 = arith.mulf %207, %208 : vector<16x128xbf16>
    %cst_65 = arith.constant 5.000000e-01 : bf16
    %210 = vector.broadcast %cst_65 : bf16 to vector<16x128xbf16>
    %211 = arith.addf %209, %210 : vector<16x128xbf16>
    %212 = vector.extract_strided_slice %203 {offsets = [0, 128], sizes = [16, 128], strides = [1, 1]} : vector<16x512xbf16> to vector<16x128xbf16>
    %cst_66 = arith.constant 5.000000e-01 : bf16
    %213 = vector.broadcast %cst_66 : bf16 to vector<16x128xbf16>
    %214 = arith.mulf %212, %213 : vector<16x128xbf16>
    %215 = math.tanh %214 : vector<16x128xbf16>
    %cst_67 = arith.constant 5.000000e-01 : bf16
    %216 = vector.broadcast %cst_67 : bf16 to vector<16x128xbf16>
    %217 = arith.mulf %215, %216 : vector<16x128xbf16>
    %cst_68 = arith.constant 5.000000e-01 : bf16
    %218 = vector.broadcast %cst_68 : bf16 to vector<16x128xbf16>
    %219 = arith.addf %217, %218 : vector<16x128xbf16>
    %220 = vector.extract_strided_slice %203 {offsets = [0, 256], sizes = [16, 128], strides = [1, 1]} : vector<16x512xbf16> to vector<16x128xbf16>
    %221 = math.tanh %220 : vector<16x128xbf16>
    %222 = vector.extract_strided_slice %203 {offsets = [0, 384], sizes = [16, 128], strides = [1, 1]} : vector<16x512xbf16> to vector<16x128xbf16>
    %cst_69 = arith.constant 5.000000e-01 : bf16
    %223 = vector.broadcast %cst_69 : bf16 to vector<16x128xbf16>
    %224 = arith.mulf %222, %223 : vector<16x128xbf16>
    %225 = math.tanh %224 : vector<16x128xbf16>
    %cst_70 = arith.constant 5.000000e-01 : bf16
    %226 = vector.broadcast %cst_70 : bf16 to vector<16x128xbf16>
    %227 = arith.mulf %225, %226 : vector<16x128xbf16>
    %cst_71 = arith.constant 5.000000e-01 : bf16
    %228 = vector.broadcast %cst_71 : bf16 to vector<16x128xbf16>
    %229 = arith.addf %227, %228 : vector<16x128xbf16>
    %230 = arith.extf %219 : vector<16x128xbf16> to vector<16x128xf32>
    %231 = arith.mulf %230, %147 : vector<16x128xf32>
    %232 = arith.mulf %211, %221 : vector<16x128xbf16>
    %233 = arith.extf %232 : vector<16x128xbf16> to vector<16x128xf32>
    %234 = arith.addf %231, %233 : vector<16x128xf32>
    %235 = arith.truncf %234 : vector<16x128xf32> to vector<16x128xbf16>
    %236 = math.tanh %235 : vector<16x128xbf16>
    %237 = arith.mulf %229, %236 : vector<16x128xbf16>
    %238 = arith.truncf %202 : vector<16x512xf32> to vector<16x512xbf16>
    %239 = vector.extract_strided_slice %238 {offsets = [0, 0], sizes = [16, 128], strides = [1, 1]} : vector<16x512xbf16> to vector<16x128xbf16>
    %cst_72 = arith.constant 5.000000e-01 : bf16
    %240 = vector.broadcast %cst_72 : bf16 to vector<16x128xbf16>
    %241 = arith.mulf %239, %240 : vector<16x128xbf16>
    %242 = math.tanh %241 : vector<16x128xbf16>
    %cst_73 = arith.constant 5.000000e-01 : bf16
    %243 = vector.broadcast %cst_73 : bf16 to vector<16x128xbf16>
    %244 = arith.mulf %242, %243 : vector<16x128xbf16>
    %cst_74 = arith.constant 5.000000e-01 : bf16
    %245 = vector.broadcast %cst_74 : bf16 to vector<16x128xbf16>
    %246 = arith.addf %244, %245 : vector<16x128xbf16>
    %247 = vector.extract_strided_slice %238 {offsets = [0, 128], sizes = [16, 128], strides = [1, 1]} : vector<16x512xbf16> to vector<16x128xbf16>
    %cst_75 = arith.constant 5.000000e-01 : bf16
    %248 = vector.broadcast %cst_75 : bf16 to vector<16x128xbf16>
    %249 = arith.mulf %247, %248 : vector<16x128xbf16>
    %250 = math.tanh %249 : vector<16x128xbf16>
    %cst_76 = arith.constant 5.000000e-01 : bf16
    %251 = vector.broadcast %cst_76 : bf16 to vector<16x128xbf16>
    %252 = arith.mulf %250, %251 : vector<16x128xbf16>
    %cst_77 = arith.constant 5.000000e-01 : bf16
    %253 = vector.broadcast %cst_77 : bf16 to vector<16x128xbf16>
    %254 = arith.addf %252, %253 : vector<16x128xbf16>
    %255 = vector.extract_strided_slice %238 {offsets = [0, 256], sizes = [16, 128], strides = [1, 1]} : vector<16x512xbf16> to vector<16x128xbf16>
    %256 = math.tanh %255 : vector<16x128xbf16>
    %257 = vector.extract_strided_slice %238 {offsets = [0, 384], sizes = [16, 128], strides = [1, 1]} : vector<16x512xbf16> to vector<16x128xbf16>
    %cst_78 = arith.constant 5.000000e-01 : bf16
    %258 = vector.broadcast %cst_78 : bf16 to vector<16x128xbf16>
    %259 = arith.mulf %257, %258 : vector<16x128xbf16>
    %260 = math.tanh %259 : vector<16x128xbf16>
    %cst_79 = arith.constant 5.000000e-01 : bf16
    %261 = vector.broadcast %cst_79 : bf16 to vector<16x128xbf16>
    %262 = arith.mulf %260, %261 : vector<16x128xbf16>
    %cst_80 = arith.constant 5.000000e-01 : bf16
    %263 = vector.broadcast %cst_80 : bf16 to vector<16x128xbf16>
    %264 = arith.addf %262, %263 : vector<16x128xbf16>
    %265 = arith.extf %254 : vector<16x128xbf16> to vector<16x128xf32>
    %266 = arith.mulf %265, %182 : vector<16x128xf32>
    %267 = arith.mulf %246, %256 : vector<16x128xbf16>
    %268 = arith.extf %267 : vector<16x128xbf16> to vector<16x128xf32>
    %269 = arith.addf %266, %268 : vector<16x128xf32>
    %270 = arith.truncf %269 : vector<16x128xf32> to vector<16x128xbf16>
    %271 = math.tanh %270 : vector<16x128xbf16>
    %272 = arith.mulf %264, %271 : vector<16x128xbf16>
    %c3_i32 = arith.constant 3 : i32
    %c16_i32_81 = arith.constant 16 : i32
    %273 = arith.muli %c3_i32, %c16_i32_81 : i32
    %274 = tpu.assume_multiple %273, 16 : i32
    %c7_i32_82 = arith.constant 7 : i32
    %275 = arith.subi %c7_i32_82, %c3_i32 : i32
    %c16_i32_83 = arith.constant 16 : i32
    %276 = arith.muli %275, %c16_i32_83 : i32
    %277 = tpu.assume_multiple %276, 16 : i32
    %278 = tpu.concatenate %237, %272 in 1 : vector<16x128xbf16>, vector<16x128xbf16> -> vector<16x256xbf16>
    %cst_84 = arith.constant dense<0.000000e+00> : vector<16x1024xf32>
    %279 = tpu.matmul %278, %9, %cst_84 {dimension_numbers = #tpu.dot_dimension_numbers<[1], [0], [0], [1], [0, 0, 1, 1], [], []>} : vector<16x256xbf16>, vector<256x1024xbf16>, vector<16x1024xf32> -> vector<16x1024xf32>
    %280 = vector.extract_strided_slice %279 {offsets = [0, 0], sizes = [16, 512], strides = [1, 1]} : vector<16x1024xf32> to vector<16x512xf32>
    %281 = arith.index_cast %274 : i32 to index
    %c0_85 = arith.constant 0 : index
    %282 = vector.load %arg10[%281, %c0_85] : memref<128x1024xbf16, #tpu.memory_space<vmem>>, vector<16x512xbf16>
    %283 = arith.extf %282 : vector<16x512xbf16> to vector<16x512xf32>
    %284 = arith.addf %280, %283 : vector<16x512xf32>
    %285 = vector.extract_strided_slice %279 {offsets = [0, 512], sizes = [16, 512], strides = [1, 1]} : vector<16x1024xf32> to vector<16x512xf32>
    %286 = arith.index_cast %277 : i32 to index
    %c512_86 = arith.constant 512 : index
    %287 = vector.load %arg10[%286, %c512_86] : memref<128x1024xbf16, #tpu.memory_space<vmem>>, vector<16x512xbf16>
    %288 = arith.extf %287 : vector<16x512xbf16> to vector<16x512xf32>
    %289 = arith.addf %285, %288 : vector<16x512xf32>
    %290 = arith.truncf %284 : vector<16x512xf32> to vector<16x512xbf16>
    %291 = vector.extract_strided_slice %290 {offsets = [0, 0], sizes = [16, 128], strides = [1, 1]} : vector<16x512xbf16> to vector<16x128xbf16>
    %cst_87 = arith.constant 5.000000e-01 : bf16
    %292 = vector.broadcast %cst_87 : bf16 to vector<16x128xbf16>
    %293 = arith.mulf %291, %292 : vector<16x128xbf16>
    %294 = math.tanh %293 : vector<16x128xbf16>
    %cst_88 = arith.constant 5.000000e-01 : bf16
    %295 = vector.broadcast %cst_88 : bf16 to vector<16x128xbf16>
    %296 = arith.mulf %294, %295 : vector<16x128xbf16>
    %cst_89 = arith.constant 5.000000e-01 : bf16
    %297 = vector.broadcast %cst_89 : bf16 to vector<16x128xbf16>
    %298 = arith.addf %296, %297 : vector<16x128xbf16>
    %299 = vector.extract_strided_slice %290 {offsets = [0, 128], sizes = [16, 128], strides = [1, 1]} : vector<16x512xbf16> to vector<16x128xbf16>
    %cst_90 = arith.constant 5.000000e-01 : bf16
    %300 = vector.broadcast %cst_90 : bf16 to vector<16x128xbf16>
    %301 = arith.mulf %299, %300 : vector<16x128xbf16>
    %302 = math.tanh %301 : vector<16x128xbf16>
    %cst_91 = arith.constant 5.000000e-01 : bf16
    %303 = vector.broadcast %cst_91 : bf16 to vector<16x128xbf16>
    %304 = arith.mulf %302, %303 : vector<16x128xbf16>
    %cst_92 = arith.constant 5.000000e-01 : bf16
    %305 = vector.broadcast %cst_92 : bf16 to vector<16x128xbf16>
    %306 = arith.addf %304, %305 : vector<16x128xbf16>
    %307 = vector.extract_strided_slice %290 {offsets = [0, 256], sizes = [16, 128], strides = [1, 1]} : vector<16x512xbf16> to vector<16x128xbf16>
    %308 = math.tanh %307 : vector<16x128xbf16>
    %309 = vector.extract_strided_slice %290 {offsets = [0, 384], sizes = [16, 128], strides = [1, 1]} : vector<16x512xbf16> to vector<16x128xbf16>
    %cst_93 = arith.constant 5.000000e-01 : bf16
    %310 = vector.broadcast %cst_93 : bf16 to vector<16x128xbf16>
    %311 = arith.mulf %309, %310 : vector<16x128xbf16>
    %312 = math.tanh %311 : vector<16x128xbf16>
    %cst_94 = arith.constant 5.000000e-01 : bf16
    %313 = vector.broadcast %cst_94 : bf16 to vector<16x128xbf16>
    %314 = arith.mulf %312, %313 : vector<16x128xbf16>
    %cst_95 = arith.constant 5.000000e-01 : bf16
    %315 = vector.broadcast %cst_95 : bf16 to vector<16x128xbf16>
    %316 = arith.addf %314, %315 : vector<16x128xbf16>
    %317 = arith.extf %306 : vector<16x128xbf16> to vector<16x128xf32>
    %318 = arith.mulf %317, %234 : vector<16x128xf32>
    %319 = arith.mulf %298, %308 : vector<16x128xbf16>
    %320 = arith.extf %319 : vector<16x128xbf16> to vector<16x128xf32>
    %321 = arith.addf %318, %320 : vector<16x128xf32>
    %322 = arith.truncf %321 : vector<16x128xf32> to vector<16x128xbf16>
    %323 = math.tanh %322 : vector<16x128xbf16>
    %324 = arith.mulf %316, %323 : vector<16x128xbf16>
    %325 = arith.truncf %289 : vector<16x512xf32> to vector<16x512xbf16>
    %326 = vector.extract_strided_slice %325 {offsets = [0, 0], sizes = [16, 128], strides = [1, 1]} : vector<16x512xbf16> to vector<16x128xbf16>
    %cst_96 = arith.constant 5.000000e-01 : bf16
    %327 = vector.broadcast %cst_96 : bf16 to vector<16x128xbf16>
    %328 = arith.mulf %326, %327 : vector<16x128xbf16>
    %329 = math.tanh %328 : vector<16x128xbf16>
    %cst_97 = arith.constant 5.000000e-01 : bf16
    %330 = vector.broadcast %cst_97 : bf16 to vector<16x128xbf16>
    %331 = arith.mulf %329, %330 : vector<16x128xbf16>
    %cst_98 = arith.constant 5.000000e-01 : bf16
    %332 = vector.broadcast %cst_98 : bf16 to vector<16x128xbf16>
    %333 = arith.addf %331, %332 : vector<16x128xbf16>
    %334 = vector.extract_strided_slice %325 {offsets = [0, 128], sizes = [16, 128], strides = [1, 1]} : vector<16x512xbf16> to vector<16x128xbf16>
    %cst_99 = arith.constant 5.000000e-01 : bf16
    %335 = vector.broadcast %cst_99 : bf16 to vector<16x128xbf16>
    %336 = arith.mulf %334, %335 : vector<16x128xbf16>
    %337 = math.tanh %336 : vector<16x128xbf16>
    %cst_100 = arith.constant 5.000000e-01 : bf16
    %338 = vector.broadcast %cst_100 : bf16 to vector<16x128xbf16>
    %339 = arith.mulf %337, %338 : vector<16x128xbf16>
    %cst_101 = arith.constant 5.000000e-01 : bf16
    %340 = vector.broadcast %cst_101 : bf16 to vector<16x128xbf16>
    %341 = arith.addf %339, %340 : vector<16x128xbf16>
    %342 = vector.extract_strided_slice %325 {offsets = [0, 256], sizes = [16, 128], strides = [1, 1]} : vector<16x512xbf16> to vector<16x128xbf16>
    %343 = math.tanh %342 : vector<16x128xbf16>
    %344 = vector.extract_strided_slice %325 {offsets = [0, 384], sizes = [16, 128], strides = [1, 1]} : vector<16x512xbf16> to vector<16x128xbf16>
    %cst_102 = arith.constant 5.000000e-01 : bf16
    %345 = vector.broadcast %cst_102 : bf16 to vector<16x128xbf16>
    %346 = arith.mulf %344, %345 : vector<16x128xbf16>
    %347 = math.tanh %346 : vector<16x128xbf16>
    %cst_103 = arith.constant 5.000000e-01 : bf16
    %348 = vector.broadcast %cst_103 : bf16 to vector<16x128xbf16>
    %349 = arith.mulf %347, %348 : vector<16x128xbf16>
    %cst_104 = arith.constant 5.000000e-01 : bf16
    %350 = vector.broadcast %cst_104 : bf16 to vector<16x128xbf16>
    %351 = arith.addf %349, %350 : vector<16x128xbf16>
    %352 = arith.extf %341 : vector<16x128xbf16> to vector<16x128xf32>
    %353 = arith.mulf %352, %269 : vector<16x128xf32>
    %354 = arith.mulf %333, %343 : vector<16x128xbf16>
    %355 = arith.extf %354 : vector<16x128xbf16> to vector<16x128xf32>
    %356 = arith.addf %353, %355 : vector<16x128xf32>
    %357 = arith.truncf %356 : vector<16x128xf32> to vector<16x128xbf16>
    %358 = math.tanh %357 : vector<16x128xbf16>
    %359 = arith.mulf %351, %358 : vector<16x128xbf16>
    %c4_i32 = arith.constant 4 : i32
    %c16_i32_105 = arith.constant 16 : i32
    %360 = arith.muli %c4_i32, %c16_i32_105 : i32
    %361 = tpu.assume_multiple %360, 16 : i32
    %c7_i32_106 = arith.constant 7 : i32
    %362 = arith.subi %c7_i32_106, %c4_i32 : i32
    %c16_i32_107 = arith.constant 16 : i32
    %363 = arith.muli %362, %c16_i32_107 : i32
    %364 = tpu.assume_multiple %363, 16 : i32
    %365 = tpu.concatenate %324, %359 in 1 : vector<16x128xbf16>, vector<16x128xbf16> -> vector<16x256xbf16>
    %cst_108 = arith.constant dense<0.000000e+00> : vector<16x1024xf32>
    %366 = tpu.matmul %365, %9, %cst_108 {dimension_numbers = #tpu.dot_dimension_numbers<[1], [0], [0], [1], [0, 0, 1, 1], [], []>} : vector<16x256xbf16>, vector<256x1024xbf16>, vector<16x1024xf32> -> vector<16x1024xf32>
    %367 = vector.extract_strided_slice %366 {offsets = [0, 0], sizes = [16, 512], strides = [1, 1]} : vector<16x1024xf32> to vector<16x512xf32>
    %368 = arith.index_cast %361 : i32 to index
    %c0_109 = arith.constant 0 : index
    %369 = vector.load %arg10[%368, %c0_109] : memref<128x1024xbf16, #tpu.memory_space<vmem>>, vector<16x512xbf16>
    %370 = arith.extf %369 : vector<16x512xbf16> to vector<16x512xf32>
    %371 = arith.addf %367, %370 : vector<16x512xf32>
    %372 = vector.extract_strided_slice %366 {offsets = [0, 512], sizes = [16, 512], strides = [1, 1]} : vector<16x1024xf32> to vector<16x512xf32>
    %373 = arith.index_cast %364 : i32 to index
    %c512_110 = arith.constant 512 : index
    %374 = vector.load %arg10[%373, %c512_110] : memref<128x1024xbf16, #tpu.memory_space<vmem>>, vector<16x512xbf16>
    %375 = arith.extf %374 : vector<16x512xbf16> to vector<16x512xf32>
    %376 = arith.addf %372, %375 : vector<16x512xf32>
    %377 = arith.truncf %371 : vector<16x512xf32> to vector<16x512xbf16>
    %378 = vector.extract_strided_slice %377 {offsets = [0, 0], sizes = [16, 128], strides = [1, 1]} : vector<16x512xbf16> to vector<16x128xbf16>
    %cst_111 = arith.constant 5.000000e-01 : bf16
    %379 = vector.broadcast %cst_111 : bf16 to vector<16x128xbf16>
    %380 = arith.mulf %378, %379 : vector<16x128xbf16>
    %381 = math.tanh %380 : vector<16x128xbf16>
    %cst_112 = arith.constant 5.000000e-01 : bf16
    %382 = vector.broadcast %cst_112 : bf16 to vector<16x128xbf16>
    %383 = arith.mulf %381, %382 : vector<16x128xbf16>
    %cst_113 = arith.constant 5.000000e-01 : bf16
    %384 = vector.broadcast %cst_113 : bf16 to vector<16x128xbf16>
    %385 = arith.addf %383, %384 : vector<16x128xbf16>
    %386 = vector.extract_strided_slice %377 {offsets = [0, 128], sizes = [16, 128], strides = [1, 1]} : vector<16x512xbf16> to vector<16x128xbf16>
    %cst_114 = arith.constant 5.000000e-01 : bf16
    %387 = vector.broadcast %cst_114 : bf16 to vector<16x128xbf16>
    %388 = arith.mulf %386, %387 : vector<16x128xbf16>
    %389 = math.tanh %388 : vector<16x128xbf16>
    %cst_115 = arith.constant 5.000000e-01 : bf16
    %390 = vector.broadcast %cst_115 : bf16 to vector<16x128xbf16>
    %391 = arith.mulf %389, %390 : vector<16x128xbf16>
    %cst_116 = arith.constant 5.000000e-01 : bf16
    %392 = vector.broadcast %cst_116 : bf16 to vector<16x128xbf16>
    %393 = arith.addf %391, %392 : vector<16x128xbf16>
    %394 = vector.extract_strided_slice %377 {offsets = [0, 256], sizes = [16, 128], strides = [1, 1]} : vector<16x512xbf16> to vector<16x128xbf16>
    %395 = math.tanh %394 : vector<16x128xbf16>
    %396 = vector.extract_strided_slice %377 {offsets = [0, 384], sizes = [16, 128], strides = [1, 1]} : vector<16x512xbf16> to vector<16x128xbf16>
    %cst_117 = arith.constant 5.000000e-01 : bf16
    %397 = vector.broadcast %cst_117 : bf16 to vector<16x128xbf16>
    %398 = arith.mulf %396, %397 : vector<16x128xbf16>
    %399 = math.tanh %398 : vector<16x128xbf16>
    %cst_118 = arith.constant 5.000000e-01 : bf16
    %400 = vector.broadcast %cst_118 : bf16 to vector<16x128xbf16>
    %401 = arith.mulf %399, %400 : vector<16x128xbf16>
    %cst_119 = arith.constant 5.000000e-01 : bf16
    %402 = vector.broadcast %cst_119 : bf16 to vector<16x128xbf16>
    %403 = arith.addf %401, %402 : vector<16x128xbf16>
    %404 = arith.extf %393 : vector<16x128xbf16> to vector<16x128xf32>
    %405 = arith.mulf %404, %321 : vector<16x128xf32>
    %406 = arith.mulf %385, %395 : vector<16x128xbf16>
    %407 = arith.extf %406 : vector<16x128xbf16> to vector<16x128xf32>
    %408 = arith.addf %405, %407 : vector<16x128xf32>
    %409 = arith.truncf %408 : vector<16x128xf32> to vector<16x128xbf16>
    %410 = math.tanh %409 : vector<16x128xbf16>
    %411 = arith.mulf %403, %410 : vector<16x128xbf16>
    %412 = arith.truncf %376 : vector<16x512xf32> to vector<16x512xbf16>
    %413 = vector.extract_strided_slice %412 {offsets = [0, 0], sizes = [16, 128], strides = [1, 1]} : vector<16x512xbf16> to vector<16x128xbf16>
    %cst_120 = arith.constant 5.000000e-01 : bf16
    %414 = vector.broadcast %cst_120 : bf16 to vector<16x128xbf16>
    %415 = arith.mulf %413, %414 : vector<16x128xbf16>
    %416 = math.tanh %415 : vector<16x128xbf16>
    %cst_121 = arith.constant 5.000000e-01 : bf16
    %417 = vector.broadcast %cst_121 : bf16 to vector<16x128xbf16>
    %418 = arith.mulf %416, %417 : vector<16x128xbf16>
    %cst_122 = arith.constant 5.000000e-01 : bf16
    %419 = vector.broadcast %cst_122 : bf16 to vector<16x128xbf16>
    %420 = arith.addf %418, %419 : vector<16x128xbf16>
    %421 = vector.extract_strided_slice %412 {offsets = [0, 128], sizes = [16, 128], strides = [1, 1]} : vector<16x512xbf16> to vector<16x128xbf16>
    %cst_123 = arith.constant 5.000000e-01 : bf16
    %422 = vector.broadcast %cst_123 : bf16 to vector<16x128xbf16>
    %423 = arith.mulf %421, %422 : vector<16x128xbf16>
    %424 = math.tanh %423 : vector<16x128xbf16>
    %cst_124 = arith.constant 5.000000e-01 : bf16
    %425 = vector.broadcast %cst_124 : bf16 to vector<16x128xbf16>
    %426 = arith.mulf %424, %425 : vector<16x128xbf16>
    %cst_125 = arith.constant 5.000000e-01 : bf16
    %427 = vector.broadcast %cst_125 : bf16 to vector<16x128xbf16>
    %428 = arith.addf %426, %427 : vector<16x128xbf16>
    %429 = vector.extract_strided_slice %412 {offsets = [0, 256], sizes = [16, 128], strides = [1, 1]} : vector<16x512xbf16> to vector<16x128xbf16>
    %430 = math.tanh %429 : vector<16x128xbf16>
    %431 = vector.extract_strided_slice %412 {offsets = [0, 384], sizes = [16, 128], strides = [1, 1]} : vector<16x512xbf16> to vector<16x128xbf16>
    %cst_126 = arith.constant 5.000000e-01 : bf16
    %432 = vector.broadcast %cst_126 : bf16 to vector<16x128xbf16>
    %433 = arith.mulf %431, %432 : vector<16x128xbf16>
    %434 = math.tanh %433 : vector<16x128xbf16>
    %cst_127 = arith.constant 5.000000e-01 : bf16
    %435 = vector.broadcast %cst_127 : bf16 to vector<16x128xbf16>
    %436 = arith.mulf %434, %435 : vector<16x128xbf16>
    %cst_128 = arith.constant 5.000000e-01 : bf16
    %437 = vector.broadcast %cst_128 : bf16 to vector<16x128xbf16>
    %438 = arith.addf %436, %437 : vector<16x128xbf16>
    %439 = arith.extf %428 : vector<16x128xbf16> to vector<16x128xf32>
    %440 = arith.mulf %439, %356 : vector<16x128xf32>
    %441 = arith.mulf %420, %430 : vector<16x128xbf16>
    %442 = arith.extf %441 : vector<16x128xbf16> to vector<16x128xf32>
    %443 = arith.addf %440, %442 : vector<16x128xf32>
    %444 = arith.truncf %443 : vector<16x128xf32> to vector<16x128xbf16>
    %445 = math.tanh %444 : vector<16x128xbf16>
    %446 = arith.mulf %438, %445 : vector<16x128xbf16>
    %c5_i32 = arith.constant 5 : i32
    %c16_i32_129 = arith.constant 16 : i32
    %447 = arith.muli %c5_i32, %c16_i32_129 : i32
    %448 = tpu.assume_multiple %447, 16 : i32
    %c7_i32_130 = arith.constant 7 : i32
    %449 = arith.subi %c7_i32_130, %c5_i32 : i32
    %c16_i32_131 = arith.constant 16 : i32
    %450 = arith.muli %449, %c16_i32_131 : i32
    %451 = tpu.assume_multiple %450, 16 : i32
    %452 = tpu.concatenate %411, %446 in 1 : vector<16x128xbf16>, vector<16x128xbf16> -> vector<16x256xbf16>
    %cst_132 = arith.constant dense<0.000000e+00> : vector<16x1024xf32>
    %453 = tpu.matmul %452, %9, %cst_132 {dimension_numbers = #tpu.dot_dimension_numbers<[1], [0], [0], [1], [0, 0, 1, 1], [], []>} : vector<16x256xbf16>, vector<256x1024xbf16>, vector<16x1024xf32> -> vector<16x1024xf32>
    %454 = vector.extract_strided_slice %453 {offsets = [0, 0], sizes = [16, 512], strides = [1, 1]} : vector<16x1024xf32> to vector<16x512xf32>
    %455 = arith.index_cast %448 : i32 to index
    %c0_133 = arith.constant 0 : index
    %456 = vector.load %arg10[%455, %c0_133] : memref<128x1024xbf16, #tpu.memory_space<vmem>>, vector<16x512xbf16>
    %457 = arith.extf %456 : vector<16x512xbf16> to vector<16x512xf32>
    %458 = arith.addf %454, %457 : vector<16x512xf32>
    %459 = vector.extract_strided_slice %453 {offsets = [0, 512], sizes = [16, 512], strides = [1, 1]} : vector<16x1024xf32> to vector<16x512xf32>
    %460 = arith.index_cast %451 : i32 to index
    %c512_134 = arith.constant 512 : index
    %461 = vector.load %arg10[%460, %c512_134] : memref<128x1024xbf16, #tpu.memory_space<vmem>>, vector<16x512xbf16>
    %462 = arith.extf %461 : vector<16x512xbf16> to vector<16x512xf32>
    %463 = arith.addf %459, %462 : vector<16x512xf32>
    %464 = arith.truncf %458 : vector<16x512xf32> to vector<16x512xbf16>
    %465 = vector.extract_strided_slice %464 {offsets = [0, 0], sizes = [16, 128], strides = [1, 1]} : vector<16x512xbf16> to vector<16x128xbf16>
    %cst_135 = arith.constant 5.000000e-01 : bf16
    %466 = vector.broadcast %cst_135 : bf16 to vector<16x128xbf16>
    %467 = arith.mulf %465, %466 : vector<16x128xbf16>
    %468 = math.tanh %467 : vector<16x128xbf16>
    %cst_136 = arith.constant 5.000000e-01 : bf16
    %469 = vector.broadcast %cst_136 : bf16 to vector<16x128xbf16>
    %470 = arith.mulf %468, %469 : vector<16x128xbf16>
    %cst_137 = arith.constant 5.000000e-01 : bf16
    %471 = vector.broadcast %cst_137 : bf16 to vector<16x128xbf16>
    %472 = arith.addf %470, %471 : vector<16x128xbf16>
    %473 = vector.extract_strided_slice %464 {offsets = [0, 128], sizes = [16, 128], strides = [1, 1]} : vector<16x512xbf16> to vector<16x128xbf16>
    %cst_138 = arith.constant 5.000000e-01 : bf16
    %474 = vector.broadcast %cst_138 : bf16 to vector<16x128xbf16>
    %475 = arith.mulf %473, %474 : vector<16x128xbf16>
    %476 = math.tanh %475 : vector<16x128xbf16>
    %cst_139 = arith.constant 5.000000e-01 : bf16
    %477 = vector.broadcast %cst_139 : bf16 to vector<16x128xbf16>
    %478 = arith.mulf %476, %477 : vector<16x128xbf16>
    %cst_140 = arith.constant 5.000000e-01 : bf16
    %479 = vector.broadcast %cst_140 : bf16 to vector<16x128xbf16>
    %480 = arith.addf %478, %479 : vector<16x128xbf16>
    %481 = vector.extract_strided_slice %464 {offsets = [0, 256], sizes = [16, 128], strides = [1, 1]} : vector<16x512xbf16> to vector<16x128xbf16>
    %482 = math.tanh %481 : vector<16x128xbf16>
    %483 = vector.extract_strided_slice %464 {offsets = [0, 384], sizes = [16, 128], strides = [1, 1]} : vector<16x512xbf16> to vector<16x128xbf16>
    %cst_141 = arith.constant 5.000000e-01 : bf16
    %484 = vector.broadcast %cst_141 : bf16 to vector<16x128xbf16>
    %485 = arith.mulf %483, %484 : vector<16x128xbf16>
    %486 = math.tanh %485 : vector<16x128xbf16>
    %cst_142 = arith.constant 5.000000e-01 : bf16
    %487 = vector.broadcast %cst_142 : bf16 to vector<16x128xbf16>
    %488 = arith.mulf %486, %487 : vector<16x128xbf16>
    %cst_143 = arith.constant 5.000000e-01 : bf16
    %489 = vector.broadcast %cst_143 : bf16 to vector<16x128xbf16>
    %490 = arith.addf %488, %489 : vector<16x128xbf16>
    %491 = arith.extf %480 : vector<16x128xbf16> to vector<16x128xf32>
    %492 = arith.mulf %491, %408 : vector<16x128xf32>
    %493 = arith.mulf %472, %482 : vector<16x128xbf16>
    %494 = arith.extf %493 : vector<16x128xbf16> to vector<16x128xf32>
    %495 = arith.addf %492, %494 : vector<16x128xf32>
    %496 = arith.truncf %495 : vector<16x128xf32> to vector<16x128xbf16>
    %497 = math.tanh %496 : vector<16x128xbf16>
    %498 = arith.mulf %490, %497 : vector<16x128xbf16>
    %499 = arith.truncf %463 : vector<16x512xf32> to vector<16x512xbf16>
    %500 = vector.extract_strided_slice %499 {offsets = [0, 0], sizes = [16, 128], strides = [1, 1]} : vector<16x512xbf16> to vector<16x128xbf16>
    %cst_144 = arith.constant 5.000000e-01 : bf16
    %501 = vector.broadcast %cst_144 : bf16 to vector<16x128xbf16>
    %502 = arith.mulf %500, %501 : vector<16x128xbf16>
    %503 = math.tanh %502 : vector<16x128xbf16>
    %cst_145 = arith.constant 5.000000e-01 : bf16
    %504 = vector.broadcast %cst_145 : bf16 to vector<16x128xbf16>
    %505 = arith.mulf %503, %504 : vector<16x128xbf16>
    %cst_146 = arith.constant 5.000000e-01 : bf16
    %506 = vector.broadcast %cst_146 : bf16 to vector<16x128xbf16>
    %507 = arith.addf %505, %506 : vector<16x128xbf16>
    %508 = vector.extract_strided_slice %499 {offsets = [0, 128], sizes = [16, 128], strides = [1, 1]} : vector<16x512xbf16> to vector<16x128xbf16>
    %cst_147 = arith.constant 5.000000e-01 : bf16
    %509 = vector.broadcast %cst_147 : bf16 to vector<16x128xbf16>
    %510 = arith.mulf %508, %509 : vector<16x128xbf16>
    %511 = math.tanh %510 : vector<16x128xbf16>
    %cst_148 = arith.constant 5.000000e-01 : bf16
    %512 = vector.broadcast %cst_148 : bf16 to vector<16x128xbf16>
    %513 = arith.mulf %511, %512 : vector<16x128xbf16>
    %cst_149 = arith.constant 5.000000e-01 : bf16
    %514 = vector.broadcast %cst_149 : bf16 to vector<16x128xbf16>
    %515 = arith.addf %513, %514 : vector<16x128xbf16>
    %516 = vector.extract_strided_slice %499 {offsets = [0, 256], sizes = [16, 128], strides = [1, 1]} : vector<16x512xbf16> to vector<16x128xbf16>
    %517 = math.tanh %516 : vector<16x128xbf16>
    %518 = vector.extract_strided_slice %499 {offsets = [0, 384], sizes = [16, 128], strides = [1, 1]} : vector<16x512xbf16> to vector<16x128xbf16>
    %cst_150 = arith.constant 5.000000e-01 : bf16
    %519 = vector.broadcast %cst_150 : bf16 to vector<16x128xbf16>
    %520 = arith.mulf %518, %519 : vector<16x128xbf16>
    %521 = math.tanh %520 : vector<16x128xbf16>
    %cst_151 = arith.constant 5.000000e-01 : bf16
    %522 = vector.broadcast %cst_151 : bf16 to vector<16x128xbf16>
    %523 = arith.mulf %521, %522 : vector<16x128xbf16>
    %cst_152 = arith.constant 5.000000e-01 : bf16
    %524 = vector.broadcast %cst_152 : bf16 to vector<16x128xbf16>
    %525 = arith.addf %523, %524 : vector<16x128xbf16>
    %526 = arith.extf %515 : vector<16x128xbf16> to vector<16x128xf32>
    %527 = arith.mulf %526, %443 : vector<16x128xf32>
    %528 = arith.mulf %507, %517 : vector<16x128xbf16>
    %529 = arith.extf %528 : vector<16x128xbf16> to vector<16x128xf32>
    %530 = arith.addf %527, %529 : vector<16x128xf32>
    %531 = arith.truncf %530 : vector<16x128xf32> to vector<16x128xbf16>
    %532 = math.tanh %531 : vector<16x128xbf16>
    %533 = arith.mulf %525, %532 : vector<16x128xbf16>
    %c6_i32 = arith.constant 6 : i32
    %c16_i32_153 = arith.constant 16 : i32
    %534 = arith.muli %c6_i32, %c16_i32_153 : i32
    %535 = tpu.assume_multiple %534, 16 : i32
    %c7_i32_154 = arith.constant 7 : i32
    %536 = arith.subi %c7_i32_154, %c6_i32 : i32
    %c16_i32_155 = arith.constant 16 : i32
    %537 = arith.muli %536, %c16_i32_155 : i32
    %538 = tpu.assume_multiple %537, 16 : i32
    %539 = tpu.concatenate %498, %533 in 1 : vector<16x128xbf16>, vector<16x128xbf16> -> vector<16x256xbf16>
    %cst_156 = arith.constant dense<0.000000e+00> : vector<16x1024xf32>
    %540 = tpu.matmul %539, %9, %cst_156 {dimension_numbers = #tpu.dot_dimension_numbers<[1], [0], [0], [1], [0, 0, 1, 1], [], []>} : vector<16x256xbf16>, vector<256x1024xbf16>, vector<16x1024xf32> -> vector<16x1024xf32>
    %541 = vector.extract_strided_slice %540 {offsets = [0, 0], sizes = [16, 512], strides = [1, 1]} : vector<16x1024xf32> to vector<16x512xf32>
    %542 = arith.index_cast %535 : i32 to index
    %c0_157 = arith.constant 0 : index
    %543 = vector.load %arg10[%542, %c0_157] : memref<128x1024xbf16, #tpu.memory_space<vmem>>, vector<16x512xbf16>
    %544 = arith.extf %543 : vector<16x512xbf16> to vector<16x512xf32>
    %545 = arith.addf %541, %544 : vector<16x512xf32>
    %546 = vector.extract_strided_slice %540 {offsets = [0, 512], sizes = [16, 512], strides = [1, 1]} : vector<16x1024xf32> to vector<16x512xf32>
    %547 = arith.index_cast %538 : i32 to index
    %c512_158 = arith.constant 512 : index
    %548 = vector.load %arg10[%547, %c512_158] : memref<128x1024xbf16, #tpu.memory_space<vmem>>, vector<16x512xbf16>
    %549 = arith.extf %548 : vector<16x512xbf16> to vector<16x512xf32>
    %550 = arith.addf %546, %549 : vector<16x512xf32>
    %551 = arith.truncf %545 : vector<16x512xf32> to vector<16x512xbf16>
    %552 = vector.extract_strided_slice %551 {offsets = [0, 0], sizes = [16, 128], strides = [1, 1]} : vector<16x512xbf16> to vector<16x128xbf16>
    %cst_159 = arith.constant 5.000000e-01 : bf16
    %553 = vector.broadcast %cst_159 : bf16 to vector<16x128xbf16>
    %554 = arith.mulf %552, %553 : vector<16x128xbf16>
    %555 = math.tanh %554 : vector<16x128xbf16>
    %cst_160 = arith.constant 5.000000e-01 : bf16
    %556 = vector.broadcast %cst_160 : bf16 to vector<16x128xbf16>
    %557 = arith.mulf %555, %556 : vector<16x128xbf16>
    %cst_161 = arith.constant 5.000000e-01 : bf16
    %558 = vector.broadcast %cst_161 : bf16 to vector<16x128xbf16>
    %559 = arith.addf %557, %558 : vector<16x128xbf16>
    %560 = vector.extract_strided_slice %551 {offsets = [0, 128], sizes = [16, 128], strides = [1, 1]} : vector<16x512xbf16> to vector<16x128xbf16>
    %cst_162 = arith.constant 5.000000e-01 : bf16
    %561 = vector.broadcast %cst_162 : bf16 to vector<16x128xbf16>
    %562 = arith.mulf %560, %561 : vector<16x128xbf16>
    %563 = math.tanh %562 : vector<16x128xbf16>
    %cst_163 = arith.constant 5.000000e-01 : bf16
    %564 = vector.broadcast %cst_163 : bf16 to vector<16x128xbf16>
    %565 = arith.mulf %563, %564 : vector<16x128xbf16>
    %cst_164 = arith.constant 5.000000e-01 : bf16
    %566 = vector.broadcast %cst_164 : bf16 to vector<16x128xbf16>
    %567 = arith.addf %565, %566 : vector<16x128xbf16>
    %568 = vector.extract_strided_slice %551 {offsets = [0, 256], sizes = [16, 128], strides = [1, 1]} : vector<16x512xbf16> to vector<16x128xbf16>
    %569 = math.tanh %568 : vector<16x128xbf16>
    %570 = vector.extract_strided_slice %551 {offsets = [0, 384], sizes = [16, 128], strides = [1, 1]} : vector<16x512xbf16> to vector<16x128xbf16>
    %cst_165 = arith.constant 5.000000e-01 : bf16
    %571 = vector.broadcast %cst_165 : bf16 to vector<16x128xbf16>
    %572 = arith.mulf %570, %571 : vector<16x128xbf16>
    %573 = math.tanh %572 : vector<16x128xbf16>
    %cst_166 = arith.constant 5.000000e-01 : bf16
    %574 = vector.broadcast %cst_166 : bf16 to vector<16x128xbf16>
    %575 = arith.mulf %573, %574 : vector<16x128xbf16>
    %cst_167 = arith.constant 5.000000e-01 : bf16
    %576 = vector.broadcast %cst_167 : bf16 to vector<16x128xbf16>
    %577 = arith.addf %575, %576 : vector<16x128xbf16>
    %578 = arith.extf %567 : vector<16x128xbf16> to vector<16x128xf32>
    %579 = arith.mulf %578, %495 : vector<16x128xf32>
    %580 = arith.mulf %559, %569 : vector<16x128xbf16>
    %581 = arith.extf %580 : vector<16x128xbf16> to vector<16x128xf32>
    %582 = arith.addf %579, %581 : vector<16x128xf32>
    %583 = arith.truncf %582 : vector<16x128xf32> to vector<16x128xbf16>
    %584 = math.tanh %583 : vector<16x128xbf16>
    %585 = arith.mulf %577, %584 : vector<16x128xbf16>
    %586 = arith.truncf %550 : vector<16x512xf32> to vector<16x512xbf16>
    %587 = vector.extract_strided_slice %586 {offsets = [0, 0], sizes = [16, 128], strides = [1, 1]} : vector<16x512xbf16> to vector<16x128xbf16>
    %cst_168 = arith.constant 5.000000e-01 : bf16
    %588 = vector.broadcast %cst_168 : bf16 to vector<16x128xbf16>
    %589 = arith.mulf %587, %588 : vector<16x128xbf16>
    %590 = math.tanh %589 : vector<16x128xbf16>
    %cst_169 = arith.constant 5.000000e-01 : bf16
    %591 = vector.broadcast %cst_169 : bf16 to vector<16x128xbf16>
    %592 = arith.mulf %590, %591 : vector<16x128xbf16>
    %cst_170 = arith.constant 5.000000e-01 : bf16
    %593 = vector.broadcast %cst_170 : bf16 to vector<16x128xbf16>
    %594 = arith.addf %592, %593 : vector<16x128xbf16>
    %595 = vector.extract_strided_slice %586 {offsets = [0, 128], sizes = [16, 128], strides = [1, 1]} : vector<16x512xbf16> to vector<16x128xbf16>
    %cst_171 = arith.constant 5.000000e-01 : bf16
    %596 = vector.broadcast %cst_171 : bf16 to vector<16x128xbf16>
    %597 = arith.mulf %595, %596 : vector<16x128xbf16>
    %598 = math.tanh %597 : vector<16x128xbf16>
    %cst_172 = arith.constant 5.000000e-01 : bf16
    %599 = vector.broadcast %cst_172 : bf16 to vector<16x128xbf16>
    %600 = arith.mulf %598, %599 : vector<16x128xbf16>
    %cst_173 = arith.constant 5.000000e-01 : bf16
    %601 = vector.broadcast %cst_173 : bf16 to vector<16x128xbf16>
    %602 = arith.addf %600, %601 : vector<16x128xbf16>
    %603 = vector.extract_strided_slice %586 {offsets = [0, 256], sizes = [16, 128], strides = [1, 1]} : vector<16x512xbf16> to vector<16x128xbf16>
    %604 = math.tanh %603 : vector<16x128xbf16>
    %605 = vector.extract_strided_slice %586 {offsets = [0, 384], sizes = [16, 128], strides = [1, 1]} : vector<16x512xbf16> to vector<16x128xbf16>
    %cst_174 = arith.constant 5.000000e-01 : bf16
    %606 = vector.broadcast %cst_174 : bf16 to vector<16x128xbf16>
    %607 = arith.mulf %605, %606 : vector<16x128xbf16>
    %608 = math.tanh %607 : vector<16x128xbf16>
    %cst_175 = arith.constant 5.000000e-01 : bf16
    %609 = vector.broadcast %cst_175 : bf16 to vector<16x128xbf16>
    %610 = arith.mulf %608, %609 : vector<16x128xbf16>
    %cst_176 = arith.constant 5.000000e-01 : bf16
    %611 = vector.broadcast %cst_176 : bf16 to vector<16x128xbf16>
    %612 = arith.addf %610, %611 : vector<16x128xbf16>
    %613 = arith.extf %602 : vector<16x128xbf16> to vector<16x128xf32>
    %614 = arith.mulf %613, %530 : vector<16x128xf32>
    %615 = arith.mulf %594, %604 : vector<16x128xbf16>
    %616 = arith.extf %615 : vector<16x128xbf16> to vector<16x128xf32>
    %617 = arith.addf %614, %616 : vector<16x128xf32>
    %618 = arith.truncf %617 : vector<16x128xf32> to vector<16x128xbf16>
    %619 = math.tanh %618 : vector<16x128xbf16>
    %620 = arith.mulf %612, %619 : vector<16x128xbf16>
    %c7_i32_177 = arith.constant 7 : i32
    %c16_i32_178 = arith.constant 16 : i32
    %621 = arith.muli %c7_i32_177, %c16_i32_178 : i32
    %622 = tpu.assume_multiple %621, 16 : i32
    %c7_i32_179 = arith.constant 7 : i32
    %623 = arith.subi %c7_i32_179, %c7_i32_177 : i32
    %c16_i32_180 = arith.constant 16 : i32
    %624 = arith.muli %623, %c16_i32_180 : i32
    %625 = tpu.assume_multiple %624, 16 : i32
    %626 = tpu.concatenate %585, %620 in 1 : vector<16x128xbf16>, vector<16x128xbf16> -> vector<16x256xbf16>
    %cst_181 = arith.constant dense<0.000000e+00> : vector<16x1024xf32>
    %627 = tpu.matmul %626, %9, %cst_181 {dimension_numbers = #tpu.dot_dimension_numbers<[1], [0], [0], [1], [0, 0, 1, 1], [], []>} : vector<16x256xbf16>, vector<256x1024xbf16>, vector<16x1024xf32> -> vector<16x1024xf32>
    %628 = vector.extract_strided_slice %627 {offsets = [0, 0], sizes = [16, 512], strides = [1, 1]} : vector<16x1024xf32> to vector<16x512xf32>
    %629 = arith.index_cast %622 : i32 to index
    %c0_182 = arith.constant 0 : index
    %630 = vector.load %arg10[%629, %c0_182] : memref<128x1024xbf16, #tpu.memory_space<vmem>>, vector<16x512xbf16>
    %631 = arith.extf %630 : vector<16x512xbf16> to vector<16x512xf32>
    %632 = arith.addf %628, %631 : vector<16x512xf32>
    %633 = vector.extract_strided_slice %627 {offsets = [0, 512], sizes = [16, 512], strides = [1, 1]} : vector<16x1024xf32> to vector<16x512xf32>
    %634 = arith.index_cast %625 : i32 to index
    %c512_183 = arith.constant 512 : index
    %635 = vector.load %arg10[%634, %c512_183] : memref<128x1024xbf16, #tpu.memory_space<vmem>>, vector<16x512xbf16>
    %636 = arith.extf %635 : vector<16x512xbf16> to vector<16x512xf32>
    %637 = arith.addf %633, %636 : vector<16x512xf32>
    %638 = arith.truncf %632 : vector<16x512xf32> to vector<16x512xbf16>
    %639 = vector.extract_strided_slice %638 {offsets = [0, 0], sizes = [16, 128], strides = [1, 1]} : vector<16x512xbf16> to vector<16x128xbf16>
    %cst_184 = arith.constant 5.000000e-01 : bf16
    %640 = vector.broadcast %cst_184 : bf16 to vector<16x128xbf16>
    %641 = arith.mulf %639, %640 : vector<16x128xbf16>
    %642 = math.tanh %641 : vector<16x128xbf16>
    %cst_185 = arith.constant 5.000000e-01 : bf16
    %643 = vector.broadcast %cst_185 : bf16 to vector<16x128xbf16>
    %644 = arith.mulf %642, %643 : vector<16x128xbf16>
    %cst_186 = arith.constant 5.000000e-01 : bf16
    %645 = vector.broadcast %cst_186 : bf16 to vector<16x128xbf16>
    %646 = arith.addf %644, %645 : vector<16x128xbf16>
    %647 = vector.extract_strided_slice %638 {offsets = [0, 128], sizes = [16, 128], strides = [1, 1]} : vector<16x512xbf16> to vector<16x128xbf16>
    %cst_187 = arith.constant 5.000000e-01 : bf16
    %648 = vector.broadcast %cst_187 : bf16 to vector<16x128xbf16>
    %649 = arith.mulf %647, %648 : vector<16x128xbf16>
    %650 = math.tanh %649 : vector<16x128xbf16>
    %cst_188 = arith.constant 5.000000e-01 : bf16
    %651 = vector.broadcast %cst_188 : bf16 to vector<16x128xbf16>
    %652 = arith.mulf %650, %651 : vector<16x128xbf16>
    %cst_189 = arith.constant 5.000000e-01 : bf16
    %653 = vector.broadcast %cst_189 : bf16 to vector<16x128xbf16>
    %654 = arith.addf %652, %653 : vector<16x128xbf16>
    %655 = vector.extract_strided_slice %638 {offsets = [0, 256], sizes = [16, 128], strides = [1, 1]} : vector<16x512xbf16> to vector<16x128xbf16>
    %656 = math.tanh %655 : vector<16x128xbf16>
    %657 = vector.extract_strided_slice %638 {offsets = [0, 384], sizes = [16, 128], strides = [1, 1]} : vector<16x512xbf16> to vector<16x128xbf16>
    %cst_190 = arith.constant 5.000000e-01 : bf16
    %658 = vector.broadcast %cst_190 : bf16 to vector<16x128xbf16>
    %659 = arith.mulf %657, %658 : vector<16x128xbf16>
    %660 = math.tanh %659 : vector<16x128xbf16>
    %cst_191 = arith.constant 5.000000e-01 : bf16
    %661 = vector.broadcast %cst_191 : bf16 to vector<16x128xbf16>
    %662 = arith.mulf %660, %661 : vector<16x128xbf16>
    %cst_192 = arith.constant 5.000000e-01 : bf16
    %663 = vector.broadcast %cst_192 : bf16 to vector<16x128xbf16>
    %664 = arith.addf %662, %663 : vector<16x128xbf16>
    %665 = arith.extf %654 : vector<16x128xbf16> to vector<16x128xf32>
    %666 = arith.mulf %665, %582 : vector<16x128xf32>
    %667 = arith.mulf %646, %656 : vector<16x128xbf16>
    %668 = arith.extf %667 : vector<16x128xbf16> to vector<16x128xf32>
    %669 = arith.addf %666, %668 : vector<16x128xf32>
    %670 = arith.truncf %669 : vector<16x128xf32> to vector<16x128xbf16>
    %671 = math.tanh %670 : vector<16x128xbf16>
    %672 = arith.mulf %664, %671 : vector<16x128xbf16>
    %673 = arith.truncf %637 : vector<16x512xf32> to vector<16x512xbf16>
    %674 = vector.extract_strided_slice %673 {offsets = [0, 0], sizes = [16, 128], strides = [1, 1]} : vector<16x512xbf16> to vector<16x128xbf16>
    %cst_193 = arith.constant 5.000000e-01 : bf16
    %675 = vector.broadcast %cst_193 : bf16 to vector<16x128xbf16>
    %676 = arith.mulf %674, %675 : vector<16x128xbf16>
    %677 = math.tanh %676 : vector<16x128xbf16>
    %cst_194 = arith.constant 5.000000e-01 : bf16
    %678 = vector.broadcast %cst_194 : bf16 to vector<16x128xbf16>
    %679 = arith.mulf %677, %678 : vector<16x128xbf16>
    %cst_195 = arith.constant 5.000000e-01 : bf16
    %680 = vector.broadcast %cst_195 : bf16 to vector<16x128xbf16>
    %681 = arith.addf %679, %680 : vector<16x128xbf16>
    %682 = vector.extract_strided_slice %673 {offsets = [0, 128], sizes = [16, 128], strides = [1, 1]} : vector<16x512xbf16> to vector<16x128xbf16>
    %cst_196 = arith.constant 5.000000e-01 : bf16
    %683 = vector.broadcast %cst_196 : bf16 to vector<16x128xbf16>
    %684 = arith.mulf %682, %683 : vector<16x128xbf16>
    %685 = math.tanh %684 : vector<16x128xbf16>
    %cst_197 = arith.constant 5.000000e-01 : bf16
    %686 = vector.broadcast %cst_197 : bf16 to vector<16x128xbf16>
    %687 = arith.mulf %685, %686 : vector<16x128xbf16>
    %cst_198 = arith.constant 5.000000e-01 : bf16
    %688 = vector.broadcast %cst_198 : bf16 to vector<16x128xbf16>
    %689 = arith.addf %687, %688 : vector<16x128xbf16>
    %690 = vector.extract_strided_slice %673 {offsets = [0, 256], sizes = [16, 128], strides = [1, 1]} : vector<16x512xbf16> to vector<16x128xbf16>
    %691 = math.tanh %690 : vector<16x128xbf16>
    %692 = vector.extract_strided_slice %673 {offsets = [0, 384], sizes = [16, 128], strides = [1, 1]} : vector<16x512xbf16> to vector<16x128xbf16>
    %cst_199 = arith.constant 5.000000e-01 : bf16
    %693 = vector.broadcast %cst_199 : bf16 to vector<16x128xbf16>
    %694 = arith.mulf %692, %693 : vector<16x128xbf16>
    %695 = math.tanh %694 : vector<16x128xbf16>
    %cst_200 = arith.constant 5.000000e-01 : bf16
    %696 = vector.broadcast %cst_200 : bf16 to vector<16x128xbf16>
    %697 = arith.mulf %695, %696 : vector<16x128xbf16>
    %cst_201 = arith.constant 5.000000e-01 : bf16
    %698 = vector.broadcast %cst_201 : bf16 to vector<16x128xbf16>
    %699 = arith.addf %697, %698 : vector<16x128xbf16>
    %700 = arith.extf %689 : vector<16x128xbf16> to vector<16x128xf32>
    %701 = arith.mulf %700, %617 : vector<16x128xf32>
    %702 = arith.mulf %681, %691 : vector<16x128xbf16>
    %703 = arith.extf %702 : vector<16x128xbf16> to vector<16x128xf32>
    %704 = arith.addf %701, %703 : vector<16x128xf32>
    %705 = arith.truncf %704 : vector<16x128xf32> to vector<16x128xbf16>
    %706 = math.tanh %705 : vector<16x128xbf16>
    %707 = arith.mulf %699, %706 : vector<16x128xbf16>
    %c8_i32 = arith.constant 8 : i32
    %708 = tpu.concatenate %672, %707 in 1 : vector<16x128xbf16>, vector<16x128xbf16> -> vector<16x256xbf16>
    %c0_202 = arith.constant 0 : index
    %c0_203 = arith.constant 0 : index
    %709 = vector.load %arg5[%c0_202, %c0_203] : memref<256x128xbf16, #tpu.memory_space<vmem>>, vector<256x128xbf16>
    %cst_204 = arith.constant dense<0.000000e+00> : vector<16x128xf32>
    %710 = tpu.matmul %708, %709, %cst_204 {dimension_numbers = #tpu.dot_dimension_numbers<[1], [0], [0], [1], [0, 0, 1, 1], [], []>} : vector<16x256xbf16>, vector<256x128xbf16>, vector<16x128xf32> -> vector<16x128xf32>
    %c0_205 = arith.constant 0 : index
    %c0_206 = arith.constant 0 : index
    %711 = vector.load %arg6[%c0_205, %c0_206] : memref<1x128xf32, #tpu.memory_space<vmem>>, vector<1x128xf32>
    %712 = vector.broadcast %711 : vector<1x128xf32> to vector<16x128xf32>
    %713 = arith.addf %710, %712 : vector<16x128xf32>
    %cst_207 = arith.constant 0.000000e+00 : f32
    %714 = vector.broadcast %cst_207 : f32 to vector<16x128xf32>
    %715 = arith.maximumf %713, %714 : vector<16x128xf32>
    %c0_208 = arith.constant 0 : index
    %c0_209 = arith.constant 0 : index
    %716 = vector.load %arg7[%c0_208, %c0_209] : memref<1x128xf32, #tpu.memory_space<vmem>>, vector<1x128xf32>
    %717 = vector.broadcast %716 : vector<1x128xf32> to vector<16x128xf32>
    %718 = arith.mulf %715, %717 : vector<16x128xf32>
    %cst_210 = arith.constant dense<0.000000e+00> : vector<16xf32>
    %719 = vector.multi_reduction <add>, %718, %cst_210 [1] : vector<16x128xf32> to vector<16xf32>
    %720 = vector.shape_cast %719 : vector<16xf32> to vector<16x1xf32>
    %c0_211 = arith.constant 0 : index
    %c0_212 = arith.constant 0 : index
    %721 = vector.load %arg8[%c0_211, %c0_212] : memref<1x1xf32, #tpu.memory_space<vmem>>, vector<1x1xf32>
    %722 = vector.broadcast %721 : vector<1x1xf32> to vector<16x1xf32>
    %723 = arith.addf %720, %722 : vector<16x1xf32>
    %c0_213 = arith.constant 0 : index
    %c0_214 = arith.constant 0 : index
    %724 = vector.load %arg9[%c0_213, %c0_214] : memref<16x1xf32, #tpu.memory_space<vmem>>, vector<16x1xf32>
    tpu.vector_store %arg9[%c0_213, %c0_214], %723 {strides = array<i32>} : memref<16x1xf32, #tpu.memory_space<vmem>>, vector<16x1xf32>,
    return
  }
  func.func @transform_0(%arg0: i32) -> (i32, i32, i32) {
    %c0_i32 = arith.constant 0 : i32
    %c0_i32_0 = arith.constant 0 : i32
    %c0_i32_1 = arith.constant 0 : i32
    return %c0_i32, %arg0, %c0_i32_0 : i32, i32, i32
  }
  func.func @transform_1(%arg0: i32) -> (i32, i32) {
    %c0_i32 = arith.constant 0 : i32
    %c0_i32_0 = arith.constant 0 : i32
    %c0_i32_1 = arith.constant 0 : i32
    return %c0_i32, %c0_i32_0 : i32, i32
  }
  func.func @transform_2(%arg0: i32) -> (i32, i32) {
    %c0_i32 = arith.constant 0 : i32
    %c0_i32_0 = arith.constant 0 : i32
    %c0_i32_1 = arith.constant 0 : i32
    return %c0_i32, %c0_i32_0 : i32, i32
  }
  func.func @transform_3(%arg0: i32) -> (i32, i32) {
    %c0_i32 = arith.constant 0 : i32
    %c0_i32_0 = arith.constant 0 : i32
    %c0_i32_1 = arith.constant 0 : i32
    return %c0_i32, %c0_i32_0 : i32, i32
  }
  func.func @transform_4(%arg0: i32) -> (i32, i32) {
    %c0_i32 = arith.constant 0 : i32
    %c0_i32_0 = arith.constant 0 : i32
    %c0_i32_1 = arith.constant 0 : i32
    return %c0_i32, %c0_i32_0 : i32, i32
  }
  func.func @transform_5(%arg0: i32) -> (i32, i32) {
    %c0_i32 = arith.constant 0 : i32
    %c0_i32_0 = arith.constant 0 : i32
    %c0_i32_1 = arith.constant 0 : i32
    return %c0_i32, %c0_i32_0 : i32, i32
  }
  func.func @transform_6(%arg0: i32) -> (i32, i32) {
    %c0_i32 = arith.constant 0 : i32
    %c0_i32_0 = arith.constant 0 : i32
    %c0_i32_1 = arith.constant 0 : i32
    return %c0_i32, %c0_i32_0 : i32, i32
  }
  func.func @transform_7(%arg0: i32) -> (i32, i32) {
    %c0_i32 = arith.constant 0 : i32
    %c0_i32_0 = arith.constant 0 : i32
    %c0_i32_1 = arith.constant 0 : i32
    return %c0_i32, %c0_i32_0 : i32, i32
  }
  func.func @transform_8(%arg0: i32) -> (i32, i32) {
    %c0_i32 = arith.constant 0 : i32
    %c0_i32_0 = arith.constant 0 : i32
    return %arg0, %c0_i32 : i32, i32
  }
}

</mosaic_0001>

<bundles_post_ra>
// kernel: tpu_custom_call.1
= control target key start
LH: loop header
LB: loop body
LE: loop exit
PB: predicated region body
PF: predicated region fallthrough
CT: control target
= control target key end

     0   :  { %s6978_s0 = inlined_call_operand.hbm [shape: bf16[8,16,128], index: 0, kind: input, shape index: {}]   ;;  %s6979_s1 = inlined_call_operand.hbm [shape: bf16[128,1024], index: 1, kind: input, shape index: {}]   ;;  %s6980_s2 = inlined_call_operand.vmem [shape: f32[1,1024], index: 2, kind: input, shape index: {}]   ;;  %s6981_s3 = inlined_call_operand.hbm [shape: bf16[256,1024], index: 3, kind: input, shape index: {}]   ;;  %s6982_s4 = inlined_call_operand.hbm [shape: bf16[256,128], index: 4, kind: input, shape index: {}]   ;;  %s6983_s5 = inlined_call_operand.vmem [shape: f32[1,128], index: 5, kind: input, shape index: {}]   ;;  %s6984_s6 = inlined_call_operand.vmem [shape: f32[1,128], index: 6, kind: input, shape index: {}]   ;;  %s6985_s7 = inlined_call_operand.<no memory space> [shape: f32[1,1], index: 7, kind: input, shape index: {}]   ;;  %s6986_s8 = inlined_call_operand.vmem [shape: f32[16,1], index: 8, kind: output, shape index: {}]  }
   0x1   :  { %v13_v0 = vstv %s6985_s7 }
   0x2   :  { %14 = vst [vmem:[#allocation3] sm:$0x1] %v13_v0 }
   0x3   :  { %15 = vsyncpa [#allocation5], 0 }
   0x4   :  { %16 = vsyncpa [#allocation7], 0 }
   0x5   :  { %17 = vsyncpa [#allocation10], 0  ;;  %s4855_s29 = smov [#allocation6]   ;;  %s4761_s11 = scalar_lea.hbm %s6979_s1, 8192 }
   0x6   :  { %s35_s30 = sshll.u32 %s4855_s29, 4  ;;  %p4762_p0 = scmp.ne.s32.totalorder %s6979_s1, %s4761_s11  ;;  %s36_s30 = int_to_ptr.vmem [resolvable:$true] %s35_s30 }
   0x7   :  { %p4765_p1 = scmp.lt.u32.totalorder %s4761_s11, %s6979_s1 }
   0x9   :  { %p4767_p2 = pnand %p4765_p1, %p4762_p0 }
   0xb   :  { %4770 = shalt.err (!%p4767_p2)
}
   0xc   :  { %s4771_s7 = scalar_lea.vmem %s36_s30, 8192  ;;  %p4776_p4 = scmp.lt.s32.totalorder %s36_s30, %s36_s30 }
   0xd   :  { %p4772_p3 = scmp.ne.s32.totalorder %s36_s30, %s4771_s7  ;;  %p4777_p5 = scmp.lt.s32.totalorder %s4771_s7, %s4771_s7 }
   0xf   :  { %p4778_p6 = por %p4777_p5, %p4776_p4 }
  0x11   :  { %p4779_p7 = pnand %p4778_p6, %p4772_p3 }
  0x13   :  { %4782 = shalt.err (!%p4779_p7)
}
  0x14   :  { %s4856_s16 = smov 512   ;;  %s4857_s17 = smov 32  }
  0x15   :  { %41 = dma.hbm_to_vmem [thread:$0]  %s6979_s1, 8192, %s36_s30, [#allocation7], %s4856_s16, %s4856_s16, %s4857_s17  }
  0x16   :  { %s4858_s20 = smov [#allocation4]   ;;  %s4783_s24 = scalar_lea.hbm %s6978_s0, 1024 }
  0x17   :  { %s23_s21 = sshll.u32 %s4858_s20, 4  ;;  %p4784_p8 = scmp.ne.s32.totalorder %s6978_s0, %s4783_s24  ;;  %s24_s21 = int_to_ptr.vmem [resolvable:$true] %s23_s21 }
  0x18   :  { %p4787_p9 = scmp.lt.u32.totalorder %s4783_s24, %s6978_s0 }
  0x1a   :  { %p4789_p10 = pnand %p4787_p9, %p4784_p8 }
  0x1c   :  { %4792 = shalt.err (!%p4789_p10)
}
  0x1d   :  { %s4793_s29 = scalar_lea.vmem %s24_s21, 1024  ;;  %p4798_p12 = scmp.lt.s32.totalorder %s24_s21, %s24_s21 }
  0x1e   :  { %p4794_p11 = scmp.ne.s32.totalorder %s24_s21, %s4793_s29  ;;  %p4799_p13 = scmp.lt.s32.totalorder %s4793_s29, %s4793_s29 }
  0x20   :  { %p4800_p0 = por %p4799_p13, %p4798_p12 }
  0x22   :  { %p4801_p1 = pnand %p4800_p0, %p4794_p11 }
  0x24   :  { %4804 = shalt.err (!%p4801_p1)
}
  0x25   :  { %s4859_s1 = smov 64   ;;  %s4860_s30 = smov 4  }
  0x26   :  { %29 = dma.hbm_to_vmem [thread:$0]  %s6978_s0, 1024, %s24_s21, [#allocation5], %s4859_s1, %s4859_s1, %s4860_s30  }
  0x27   :  { %s4861_s11 = smov [#allocation8]   ;;  %s4862_s13 = smov [#allocation9]  }
  0x28   :  { %s49_s12 = sshll.u32 %s4861_s11, 4  ;;  %s61_s14 = sshll.u32 %s4862_s13, 4  ;;  %s50_s12 = int_to_ptr.vmem [resolvable:$true] %s49_s12  ;;  %s4942_s14 = int_to_ptr.vmem [resolvable:$true] %s61_s14 }
  0x29   :  { %s4805_s18 = scalar_lea.hbm %s6981_s3, 16384 }
  0x2a   :  { %p4806_p2 = scmp.ne.s32.totalorder %s6981_s3, %s4805_s18  ;;  %p4809_p3 = scmp.lt.u32.totalorder %s4805_s18, %s6981_s3 }
  0x2c   :  { %p4811_p4 = pnand %p4809_p3, %p4806_p2 }
  0x2e   :  { %4814 = shalt.err (!%p4811_p4)
}
  0x2f   :  { %s4815_s0 = scalar_lea.vmem %s50_s12, 16384  ;;  %p4820_p6 = scmp.lt.s32.totalorder %s50_s12, %s50_s12 }
  0x30   :  { %p4816_p5 = scmp.ne.s32.totalorder %s50_s12, %s4815_s0  ;;  %p4821_p7 = scmp.lt.s32.totalorder %s4815_s0, %s4815_s0 }
  0x32   :  { %p4822_p8 = por %p4821_p7, %p4820_p6 }
  0x34   :  { %p4823_p9 = pnand %p4822_p8, %p4816_p5 }
  0x36   :  { %4826 = shalt.err (!%p4823_p9)
}
  0x37   :  { %55 = dma.hbm_to_vmem [thread:$0]  %s6981_s3, 16384, %s50_s12, [#allocation7], %s4856_s16, %s4856_s16, %s4857_s17  }
  0x38   :  { %s4827_s27 = scalar_lea.hbm %s6982_s4, 2048 }
  0x39   :  { %p4828_p10 = scmp.ne.s32.totalorder %s6982_s4, %s4827_s27  ;;  %p4831_p11 = scmp.lt.u32.totalorder %s4827_s27, %s6982_s4 }
  0x3b   :  { %p4833_p12 = pnand %p4831_p11, %p4828_p10 }
  0x3d   :  { %4836 = shalt.err (!%p4833_p12)
}
  0x3e   :  { %s4837_s11 = scalar_lea.vmem %s4942_s14, 2048  ;;  %p4842_p0 = scmp.lt.s32.totalorder %s4942_s14, %s4942_s14 }
  0x3f   :  { %p4838_p13 = scmp.ne.s32.totalorder %s4942_s14, %s4837_s11  ;;  %p4843_p1 = scmp.lt.s32.totalorder %s4837_s11, %s4837_s11 }
  0x41   :  { %p4844_p2 = por %p4843_p1, %p4842_p0 }
  0x43   :  { %p4845_p3 = pnand %p4844_p2, %p4838_p13 }
  0x45   :  { %4848 = shalt.err (!%p4845_p3)
}
  0x46   :  { %67 = dma.hbm_to_vmem [thread:$0]  %s6982_s4, 2048, %s4942_s14, [#allocation10], %s4859_s1, %s4859_s1, %s4860_s30  }
  0x47   :  { %4849 = dma.done.wait [#allocation5], 1024  }
  0x48   :  { %4850 = vsyncadd [#allocation5], 4294966272 }
  0x49   :  { %4851 = dma.done.wait [#allocation7], 24576  }
  0x4a   :  { %4852 = vsyncadd [#allocation7], 4294942720 }
  0x4b   :  { %4853 = dma.done.wait [#allocation10], 2048  }
  0x4c   :  { %4854 = vsyncadd [#allocation10], 4294965248  ;;  %v6991_v1 = vmov 0   ;;  %v104_v2 = vld [vmem:[#allocation6] sm:$0xff]  ;;  %v105_v4 = vld [vmem:[#allocation6 + $0x8] sm:$0xff]  ;;  %vm4310_vm0 = vcmask 7168  }
  0x4d   :  { %610 = vmatprep.mubr.bf16.mxu0 %v6991_v1  ;;  %723 = vmatprep.mubr.bf16.mxu1 %v6991_v1  ;;  %v108_v3 = vld [vmem:[#allocation6 + $0x20] sm:$0xff]  ;;  %v109_v6 = vld [vmem:[#allocation6 + $0x28] sm:$0xff]  ;;  %v106_v0 = vld [vmem:[#allocation6 + $0x10] sm:$0xff] }
  0x4e   :  { %v4336_v5 = vcombine.high %v104_v2, %v108_v3  ;;  %v4335_v7 = vcombine.low %v104_v2, %v108_v3  ;;  %v112_v8 = vld [vmem:[#allocation6 + $0x40] sm:$0xff]  ;;  %v4338_v10 = vcombine.high %v105_v4, %v109_v6  ;;  %v4337_v11 = vcombine.low %v105_v4, %v109_v6  ;;  %v113_v13 = vld [vmem:[#allocation6 + $0x48] sm:$0xff]  ;;  %v110_v2 = vld [vmem:[#allocation6 + $0x30] sm:$0xff] }
  0x4f   :  { %v116_v9 = vld [vmem:[#allocation6 + $0x60] sm:$0xff]  ;;  %v117_v14 = vld [vmem:[#allocation6 + $0x68] sm:$0xff]  ;;  %v107_v3 = vld [vmem:[#allocation6 + $0x18] sm:$0xff] }
  0x50   :  { %v4344_v12 = vcombine.high %v112_v8, %v116_v9  ;;  %v120_v15 = vld [vmem:[#allocation6 + $0x80] sm:$0xff]  ;;  %578 = vmatprep.subr.bf16.mxu0 %v4336_v5  ;;  %v4346_v16 = vcombine.high %v113_v13, %v117_v14  ;;  %v121_v18 = vld [vmem:[#allocation6 + $0x88] sm:$0xff]  ;;  %691 = vmatprep.subr.bf16.mxu1 %v4338_v10  ;;  %v4343_v20 = vcombine.low %v112_v8, %v116_v9  ;;  %v111_v4 = vld [vmem:[#allocation6 + $0x38] sm:$0xff] }
  0x51   :  { %v124_v17 = vld [vmem:[#allocation6 + $0xa0] sm:$0xff]  ;;  %v125_v19 = vld [vmem:[#allocation6 + $0xa8] sm:$0xff]  ;;  %579 = vmatpush1.bf16.msra.mxu0 %v4335_v7  ;;  %692 = vmatpush1.bf16.msra.mxu1 %v4337_v11  ;;  %v4345_v21 = vcombine.low %v113_v13, %v117_v14  ;;  %v4340_v7 = vcombine.high %v106_v0, %v110_v2  ;;  %v4342_v8 = vcombine.high %v107_v3, %v111_v4  ;;  %v114_v10 = vld [vmem:[#allocation6 + $0x50] sm:$0xff] }
  0x52   :  { %580 = vmatprep.subr.bf16.mxu0 %v4344_v12  ;;  %v4352_v22 = vcombine.high %v120_v15, %v124_v17  ;;  %693 = vmatprep.subr.bf16.mxu1 %v4346_v16  ;;  %v4354_v23 = vcombine.high %v121_v18, %v125_v19  ;;  %v128_v24 = vld [vmem:[#allocation6 + $0xc0] sm:$0xff]  ;;  %v129_v26 = vld [vmem:[#allocation6 + $0xc8] sm:$0xff]  ;;  %v4351_v28 = vcombine.low %v120_v15, %v124_v17  ;;  %v118_v11 = vld [vmem:[#allocation6 + $0x70] sm:$0xff] }
  0x53   :  { %v132_v25 = vld [vmem:[#allocation6 + $0xe0] sm:$0xff]  ;;  %v133_v27 = vld [vmem:[#allocation6 + $0xe8] sm:$0xff]  ;;  %v4353_v29 = vcombine.low %v121_v18, %v125_v19  ;;  %v4339_v12 = vcombine.low %v106_v0, %v110_v2  ;;  %v115_v13 = vld [vmem:[#allocation6 + $0x58] sm:$0xff]  ;;  %v4341_v15 = vcombine.low %v107_v3, %v111_v4  ;;  %v4348_v16 = vcombine.high %v114_v10, %v118_v11 }
  0x54   :  { %v4360_v30 = vcombine.high %v128_v24, %v132_v25  ;;  %v4362_v31 = vcombine.high %v129_v26, %v133_v27  ;;  %v136_v32 = vld [vmem:[#allocation6 + $0x100] sm:$0xff]  ;;  %v137_v34 = vld [vmem:[#allocation6 + $0x108] sm:$0xff]  ;;  %v4359_v36 = vcombine.low %v128_v24, %v132_v25  ;;  %v4361_v37 = vcombine.low %v129_v26, %v133_v27  ;;  %v119_v14 = vld [vmem:[#allocation6 + $0x78] sm:$0xff] }
  0x55   :  { %581 = vmatpush1.bf16.msra.mxu0 %v4343_v20  ;;  %694 = vmatpush1.bf16.msra.mxu1 %v4345_v21  ;;  %v140_v33 = vld [vmem:[#allocation6 + $0x120] sm:$0xff]  ;;  %v141_v35 = vld [vmem:[#allocation6 + $0x128] sm:$0xff]  ;;  %v122_v17 = vld [vmem:[#allocation6 + $0x90] sm:$0xff]  ;;  %v4350_v19 = vcombine.high %v115_v13, %v119_v14  ;;  %v4347_v20 = vcombine.low %v114_v10, %v118_v11  ;;  %v4349_v24 = vcombine.low %v115_v13, %v119_v14 }
  0x56   :  { %582 = vmatprep.subr.bf16.mxu0 %v4352_v22  ;;  %695 = vmatprep.subr.bf16.mxu1 %v4354_v23  ;;  %v4368_v38 = vcombine.high %v136_v32, %v140_v33  ;;  %v4370_v39 = vcombine.high %v137_v34, %v141_v35  ;;  %v144_v40 = vld [vmem:[#allocation6 + $0x140] sm:$0xff]  ;;  %v145_v42 = vld [vmem:[#allocation6 + $0x148] sm:$0xff]  ;;  %v4367_v44 = vcombine.low %v136_v32, %v140_v33  ;;  %v126_v18 = vld [vmem:[#allocation6 + $0xb0] sm:$0xff] }
  0x57   :  { %v148_v41 = vld [vmem:[#allocation6 + $0x160] sm:$0xff]  ;;  %v149_v43 = vld [vmem:[#allocation6 + $0x168] sm:$0xff]  ;;  %v4369_v45 = vcombine.low %v137_v34, %v141_v35  ;;  %v123_v21 = vld [vmem:[#allocation6 + $0x98] sm:$0xff]  ;;  %v4356_v23 = vcombine.high %v122_v17, %v126_v18 }
  0x58   :  { %v4376_v46 = vcombine.high %v144_v40, %v148_v41  ;;  %v4378_v47 = vcombine.high %v145_v42, %v149_v43  ;;  %v152_v48 = vld [vmem:[#allocation6 + $0x180] sm:$0xff]  ;;  %v153_v50 = vld [vmem:[#allocation6 + $0x188] sm:$0xff]  ;;  %v4375_v52 = vcombine.low %v144_v40, %v148_v41  ;;  %v4377_v53 = vcombine.low %v145_v42, %v149_v43  ;;  %v127_v22 = vld [vmem:[#allocation6 + $0xb8] sm:$0xff] }
  0x59   :  { %583 = vmatpush1.bf16.msra.mxu0 %v4351_v28  ;;  %696 = vmatpush1.bf16.msra.mxu1 %v4353_v29  ;;  %v156_v49 = vld [vmem:[#allocation6 + $0x1a0] sm:$0xff]  ;;  %v157_v51 = vld [vmem:[#allocation6 + $0x1a8] sm:$0xff]  ;;  %v4358_v26 = vcombine.high %v123_v21, %v127_v22  ;;  %v130_v27 = vld [vmem:[#allocation6 + $0xd0] sm:$0xff]  ;;  %v4357_v32 = vcombine.low %v123_v21, %v127_v22 }
  0x5a   :  { %584 = vmatprep.subr.bf16.mxu0 %v4360_v30  ;;  %697 = vmatprep.subr.bf16.mxu1 %v4362_v31  ;;  %v4384_v54 = vcombine.high %v152_v48, %v156_v49  ;;  %v160_v55 = vld [vmem:[#allocation6 + $0x1c0] sm:$0xff]  ;;  %v4386_v56 = vcombine.high %v153_v50, %v157_v51  ;;  %v161_v58 = vld [vmem:[#allocation6 + $0x1c8] sm:$0xff]  ;;  %v4383_v60 = vcombine.low %v152_v48, %v156_v49  ;;  %v134_v28 = vld [vmem:[#allocation6 + $0xf0] sm:$0xff] }
  0x5b   :  { %v164_v57 = vld [vmem:[#allocation6 + $0x1e0] sm:$0xff]  ;;  %v165_v59 = vld [vmem:[#allocation6 + $0x1e8] sm:$0xff]  ;;  %v4385_v61 = vcombine.low %v153_v50, %v157_v51  ;;  %v131_v29 = vld [vmem:[#allocation6 + $0xd8] sm:$0xff]  ;;  %v4355_v31 = vcombine.low %v122_v17, %v126_v18  ;;  %v4364_v33 = vcombine.high %v130_v27, %v134_v28 }
  0x5c   :  { %v4392_v62 = vcombine.high %v160_v55, %v164_v57  ;;  %v4394_v63 = vcombine.high %v161_v58, %v165_v59  ;;  %v4391_v5 = vcombine.low %v160_v55, %v164_v57  ;;  %v4393_v6 = vcombine.low %v161_v58, %v165_v59  ;;  %v4981_v9 = vld [vmem:[#allocation4] sm:$0xff]   ;;  %v4987_v25 = vld [vmem:[#allocation4 + $0x8] sm:$0xff]   ;;  %v135_v30 = vld [vmem:[#allocation6 + $0xf8] sm:$0xff] }
  0x5d   :  { %585 = vmatpush1.bf16.msra.mxu0 %v4359_v36  ;;  %698 = vmatpush1.bf16.msra.mxu1 %v4361_v37  ;;  %v4366_v34 = vcombine.high %v131_v29, %v135_v30  ;;  %v138_v35 = vld [vmem:[#allocation6 + $0x110] sm:$0xff]  ;;  %v139_v37 = vld [vmem:[#allocation6 + $0x118] sm:$0xff]  ;;  %v4365_v40 = vcombine.low %v131_v29, %v135_v30  ;;  %v1163_v10 = vld [vmem:[#allocation8 + $0x28] sm:$0xff] }
  0x5e   :  { %586 = vmatprep.subr.bf16.mxu0 %v4368_v38  ;;  %699 = vmatprep.subr.bf16.mxu1 %v4370_v39  ;;  %v142_v36 = vld [vmem:[#allocation6 + $0x130] sm:$0xff]  ;;  %v143_v38 = vld [vmem:[#allocation6 + $0x138] sm:$0xff]  ;;  %v4363_v39 = vcombine.low %v130_v27, %v134_v28  ;;  %v1167_v21 = vld [vmem:[#allocation8 + $0x48] sm:$0xff] }
  0x5f   :  { %v4372_v41 = vcombine.high %v138_v35, %v142_v36  ;;  %v4993_v42 = vld [vmem:[#allocation4 + $0x10] sm:$0xff]   ;;  %v4374_v43 = vcombine.high %v139_v37, %v143_v38  ;;  %v4371_v48 = vcombine.low %v138_v35, %v142_v36  ;;  %v4373_v49 = vcombine.low %v139_v37, %v143_v38  ;;  %v159_v55 = vld [vmem:[#allocation6 + $0x1b8] sm:$0xff]  ;;  %v1171_v22 = vld [vmem:[#allocation8 + $0x68] sm:$0xff] }
  0x60   :  { %v4999_v59 = vld [vmem:[#allocation4 + $0x18] sm:$0xff]   ;;  %v5023_v17 = vld [vmem:[#allocation4 + $0x30] sm:$0xff]   ;;  %v5041_v27 = vcombine.high %v1167_v21, %v1171_v22  ;;  %v1174_v28 = vld [vmem:[#allocation8 + $0x80] sm:$0xff] }
  0x61   :  { %587 = vmatpush1.bf16.msra.mxu0 %v4367_v44  ;;  %700 = vmatpush1.bf16.msra.mxu1 %v4369_v45  ;;  %v146_v44 = vld [vmem:[#allocation6 + $0x150] sm:$0xff]  ;;  %v167_v0 = vld [vmem:[#allocation6 + $0x1f8] sm:$0xff]  ;;  %v1178_v29 = vld [vmem:[#allocation8 + $0xa0] sm:$0xff] }
  0x62   :  { %588 = vmatprep.subr.bf16.mxu0 %v4376_v46  ;;  %701 = vmatprep.subr.bf16.mxu1 %v4378_v47  ;;  %v150_v45 = vld [vmem:[#allocation6 + $0x170] sm:$0xff]  ;;  %v147_v46 = vld [vmem:[#allocation6 + $0x158] sm:$0xff]  ;;  %7317 = vst [vmem:[#allocation19_spill] sm:$0xff] %v5041_v27  ;;  %v1175_v30 = vld [vmem:[#allocation8 + $0x88] sm:$0xff] }
  0x63   :  { %v151_v47 = vld [vmem:[#allocation6 + $0x178] sm:$0xff]  ;;  %v4380_v50 = vcombine.high %v146_v44, %v150_v45  ;;  %v1182_v36 = vld [vmem:[#allocation8 + $0xc0] sm:$0xff]  ;;  %v1183_v37 = vld [vmem:[#allocation8 + $0xc8] sm:$0xff] }
  0x64   :  { %v4382_v51 = vcombine.high %v147_v46, %v151_v47  ;;  %v4381_v57 = vcombine.low %v147_v46, %v151_v47  ;;  %v5029_v18 = vld [vmem:[#allocation4 + $0x38] sm:$0xff]   ;;  %v1187_v38 = vld [vmem:[#allocation8 + $0xe8] sm:$0xff] }
  0x65   :  { %589 = vmatpush1.bf16.msra.mxu0 %v4375_v52  ;;  %702 = vmatpush1.bf16.msra.mxu1 %v4377_v53  ;;  %v154_v52 = vld [vmem:[#allocation6 + $0x190] sm:$0xff]  ;;  %v1191_v46 = vld [vmem:[#allocation8 + $0x108] sm:$0xff] }
  0x66   :  { %590 = vmatprep.subr.bf16.mxu0 %v4384_v54  ;;  %703 = vmatprep.subr.bf16.mxu1 %v4386_v56  ;;  %v158_v53 = vld [vmem:[#allocation6 + $0x1b0] sm:$0xff]  ;;  %v155_v54 = vld [vmem:[#allocation6 + $0x198] sm:$0xff]  ;;  %v4379_v56 = vcombine.low %v146_v44, %v150_v45  ;;  %v1190_v44 = vld [vmem:[#allocation8 + $0x100] sm:$0xff] }
  0x67   :  { %v4388_v58 = vcombine.high %v154_v52, %v158_v53  ;;  %v4387_v2 = vcombine.low %v154_v52, %v158_v53  ;;  %v4389_v3 = vcombine.low %v155_v54, %v159_v55  ;;  %v1194_v45 = vld [vmem:[#allocation8 + $0x120] sm:$0xff]  ;;  %v1195_v47 = vld [vmem:[#allocation8 + $0x128] sm:$0xff] }
  0x68   :  { %v1198_v52 = vld [vmem:[#allocation8 + $0x140] sm:$0xff]  ;;  %v1199_v53 = vld [vmem:[#allocation8 + $0x148] sm:$0xff] }
  0x69   :  { %591 = vmatpush1.bf16.msra.mxu0 %v4383_v60  ;;  %704 = vmatpush1.bf16.msra.mxu1 %v4385_v61  ;;  %v4390_v60 = vcombine.high %v155_v54, %v159_v55  ;;  %v162_v61 = vld [vmem:[#allocation6 + $0x1d0] sm:$0xff]  ;;  %v1203_v54 = vld [vmem:[#allocation8 + $0x168] sm:$0xff]  ;;  %v5088_v55 = vcombine.low %v1190_v44, %v1194_v45 }
  0x6a   :  { %592 = vmatprep.subr.bf16.mxu0 %v4392_v62  ;;  %705 = vmatprep.subr.bf16.mxu1 %v4394_v63  ;;  %v166_v62 = vld [vmem:[#allocation6 + $0x1f0] sm:$0xff]  ;;  %v163_v63 = vld [vmem:[#allocation6 + $0x1d8] sm:$0xff] }
  0x6b   :  { %v4396_v4 = vcombine.high %v162_v61, %v166_v62  ;;  %v4395_v11 = vcombine.low %v162_v61, %v166_v62  ;;  %v4397_v13 = vcombine.low %v163_v63, %v167_v0  ;;  %7330 = vst [vmem:[#allocation32_spill] sm:$0xff] %v5088_v55  ;;  %v1210_v61 = vld [vmem:[#allocation8 + $0x1a0] sm:$0xff]  ;;  %v1207_v62 = vld [vmem:[#allocation8 + $0x188] sm:$0xff] }
  0x6d   :  { %593 = vmatpush1.bf16.msra.mxu0 %v4391_v5  ;;  %706 = vmatpush1.bf16.msra.mxu1 %v4393_v6  ;;  %v1158_v5 = vld [vmem:[#allocation8] sm:$0xff]  ;;  %v4398_v6 = vcombine.high %v163_v63, %v167_v0  ;;  %v1211_v63 = vld [vmem:[#allocation8 + $0x1a8] sm:$0xff] }
  0x6e   :  { %804 = vmatprep.subr.bf16.mxu0 %v4340_v7  ;;  %917 = vmatprep.subr.bf16.mxu1 %v4342_v8  ;;  %v1162_v7 = vld [vmem:[#allocation8 + $0x20] sm:$0xff]  ;;  %v1159_v8 = vld [vmem:[#allocation8 + $0x8] sm:$0xff] }
  0x6f   :  { %v5007_v14 = vcombine.high %v1158_v5, %v1162_v7 }
  0x70   :  { %611 = vmatmul.mubr.bf16.vlgmr.msra.gmra.mrb[0].mxu0 %v4981_v9  ;;  %724 = vmatmul.mubr.bf16.vlgmr.msra.gmra.mrb[0].mxu1 %v4981_v9 }
  0x71   :  { %805 = vmatpush1.bf16.msra.mxu0 %v4339_v12  ;;  %620 = vmatprep.mubr.bf16.mxu0 %v6991_v1  ;;  %v5005_v12 = vld [vmem:[#allocation4 + $0x20] sm:$0xff]   ;;  %7312 = vst [vmem:[#allocation14_spill] sm:$0xff] %v5007_v14 }
  0x72   :  { %733 = vmatprep.mubr.bf16.mxu1 %v6991_v1  ;;  %806 = vmatprep.subr.bf16.mxu0 %v4348_v16  ;;  %v5017_v16 = vld [vmem:[#allocation4 + $0x28] sm:$0xff]  }
  0x73   :  { %918 = vmatpush1.bf16.msra.mxu1 %v4341_v15  ;;  %v5009_v15 = vcombine.high %v1159_v8, %v1163_v10 }
  0x74   :  { %919 = vmatprep.subr.bf16.mxu1 %v4350_v19  ;;  %v1166_v19 = vld [vmem:[#allocation8 + $0x40] sm:$0xff] }
  0x75   :  { %807 = vmatpush1.bf16.msra.mxu0 %v4347_v20  ;;  %7313 = vst [vmem:[#allocation15_spill] sm:$0xff] %v5009_v15  ;;  %v1170_v20 = vld [vmem:[#allocation8 + $0x60] sm:$0xff] }
  0x76   :  { %808 = vmatprep.subr.bf16.mxu0 %v4356_v23  ;;  %v5035_v23 = vcombine.low %v1158_v5, %v1162_v7  ;;  %v1214_v5 = vld [vmem:[#allocation8 + $0x1c0] sm:$0xff]  ;;  %v1219_v7 = vld [vmem:[#allocation8 + $0x1e8] sm:$0xff] }
  0x77   :  { %920 = vmatpush1.bf16.msra.mxu1 %v4349_v24  ;;  %v5037_v24 = vcombine.low %v1159_v8, %v1163_v10  ;;  %v5120_v10 = vcombine.low %v1207_v62, %v1211_v63 }
  0x78   :  { %621 = vmatmul.mubr.bf16.gmra.mrb[4].mxu0 %v4987_v25  ;;  %921 = vmatprep.subr.bf16.mxu1 %v4358_v26  ;;  %7314 = vst [vmem:[#allocation16_spill] sm:$0xff] %v5035_v23  ;;  %v5039_v26 = vcombine.high %v1166_v19, %v1170_v20 }
  0x79   :  { %734 = vmatmul.mubr.bf16.gmra.mrb[4].mxu1 %v4987_v25  ;;  %630 = vmatprep.mubr.bf16.mxu0 %v6991_v1  ;;  %7315 = vst [vmem:[#allocation17_spill] sm:$0xff] %v5037_v24  ;;  %7339 = vst [vmem:[#allocation41_spill] sm:$0xff] %v5120_v10 }
  0x7a   :  { %743 = vmatprep.mubr.bf16.mxu1 %v6991_v1  ;;  %809 = vmatpush1.bf16.msra.mxu0 %v4355_v31  ;;  %7316 = vst [vmem:[#allocation18_spill] sm:$0xff] %v5039_v26  ;;  %v1179_v31 = vld [vmem:[#allocation8 + $0xa8] sm:$0xff] }
  0x7b   :  { %810 = vmatprep.subr.bf16.mxu0 %v4364_v33  ;;  %922 = vmatpush1.bf16.msra.mxu1 %v4357_v32  ;;  %v5046_v32 = vcombine.low %v1166_v19, %v1170_v20  ;;  %v5050_v33 = vcombine.low %v1167_v21, %v1171_v22  ;;  %v5056_v35 = vcombine.high %v1175_v30, %v1179_v31  ;;  %v1222_v19 = vld [vmem:[#allocation8 + $0x200] sm:$0xff]  ;;  %v1223_v21 = vld [vmem:[#allocation8 + $0x208] sm:$0xff] }
  0x7c   :  { %923 = vmatprep.subr.bf16.mxu1 %v4366_v34  ;;  %v5052_v34 = vcombine.high %v1174_v28, %v1178_v29  ;;  %v1226_v20 = vld [vmem:[#allocation8 + $0x220] sm:$0xff]  ;;  %v1227_v22 = vld [vmem:[#allocation8 + $0x228] sm:$0xff] }
  0x7d   :  { %7318 = vst [vmem:[#allocation20_spill] sm:$0xff] %v5046_v32  ;;  %7319 = vst [vmem:[#allocation21_spill] sm:$0xff] %v5050_v33 }
  0x7e   :  { %811 = vmatpush1.bf16.msra.mxu0 %v4363_v39  ;;  %7320 = vst [vmem:[#allocation22_spill] sm:$0xff] %v5052_v34  ;;  %7321 = vst [vmem:[#allocation23_spill] sm:$0xff] %v5056_v35  ;;  %v5060_v39 = vcombine.low %v1174_v28, %v1178_v29 }
  0x7f   :  { %812 = vmatprep.subr.bf16.mxu0 %v4372_v41  ;;  %924 = vmatpush1.bf16.msra.mxu1 %v4365_v40  ;;  %v5064_v40 = vcombine.low %v1175_v30, %v1179_v31  ;;  %v5136_v30 = vcombine.high %v1222_v19, %v1226_v20  ;;  %v5140_v31 = vcombine.high %v1223_v21, %v1227_v22 }
  0x80   :  { %631 = vmatmul.mubr.bf16.gmra.mrb[8].mxu0 %v4993_v42  ;;  %925 = vmatprep.subr.bf16.mxu1 %v4374_v43  ;;  %7322 = vst [vmem:[#allocation24_spill] sm:$0xff] %v5060_v39  ;;  %v5069_v43 = vcombine.high %v1183_v37, %v1187_v38 }
  0x81   :  { %744 = vmatmul.mubr.bf16.gmra.mrb[8].mxu1 %v4993_v42  ;;  %640 = vmatprep.mubr.bf16.mxu0 %v6991_v1  ;;  %7323 = vst [vmem:[#allocation25_spill] sm:$0xff] %v5064_v40  ;;  %7344 = vst [vmem:[#allocation46_spill] sm:$0xff] %v5136_v30 }
  0x82   :  { %753 = vmatprep.mubr.bf16.mxu1 %v6991_v1  ;;  %813 = vmatpush1.bf16.msra.mxu0 %v4371_v48  ;;  %7325 = vst [vmem:[#allocation27_spill] sm:$0xff] %v5069_v43  ;;  %7345 = vst [vmem:[#allocation47_spill] sm:$0xff] %v5140_v31 }
  0x83   :  { %814 = vmatprep.subr.bf16.mxu0 %v4380_v50  ;;  %926 = vmatpush1.bf16.msra.mxu1 %v4373_v49  ;;  %v5078_v49 = vcombine.low %v1183_v37, %v1187_v38  ;;  %v5080_v50 = vcombine.high %v1190_v44, %v1194_v45  ;;  %v1235_v37 = vld [vmem:[#allocation8 + $0x268] sm:$0xff]  ;;  %v5144_v38 = vcombine.low %v1222_v19, %v1226_v20 }
  0x84   :  { %927 = vmatprep.subr.bf16.mxu1 %v4382_v51  ;;  %v5084_v51 = vcombine.high %v1191_v46, %v1195_v47  ;;  %v5148_v44 = vcombine.low %v1223_v21, %v1227_v22  ;;  %v1254_v21 = vld [vmem:[#allocation8 + $0x300] sm:$0xff] }
  0x85   :  { %7327 = vst [vmem:[#allocation29_spill] sm:$0xff] %v5078_v49  ;;  %7328 = vst [vmem:[#allocation30_spill] sm:$0xff] %v5080_v50  ;;  %v1258_v22 = vld [vmem:[#allocation8 + $0x320] sm:$0xff] }
  0x86   :  { %815 = vmatpush1.bf16.msra.mxu0 %v4379_v56  ;;  %7329 = vst [vmem:[#allocation31_spill] sm:$0xff] %v5084_v51  ;;  %v5092_v56 = vcombine.low %v1191_v46, %v1195_v47  ;;  %7346 = vst [vmem:[#allocation48_spill] sm:$0xff] %v5144_v38  ;;  %v1238_v47 = vld [vmem:[#allocation8 + $0x280] sm:$0xff] }
  0x87   :  { %816 = vmatprep.subr.bf16.mxu0 %v4388_v58  ;;  %928 = vmatpush1.bf16.msra.mxu1 %v4381_v57  ;;  %v5097_v58 = vcombine.high %v1199_v53, %v1203_v54  ;;  %7347 = vst [vmem:[#allocation49_spill] sm:$0xff] %v5148_v44 }
  0x88   :  { %641 = vmatmul.mubr.bf16.gmra.mrb[12].mxu0 %v4999_v59  ;;  %929 = vmatprep.subr.bf16.mxu1 %v4390_v60  ;;  %7331 = vst [vmem:[#allocation33_spill] sm:$0xff] %v5092_v56  ;;  %v1206_v60 = vld [vmem:[#allocation8 + $0x180] sm:$0xff] }
  0x89   :  { %754 = vmatmul.mubr.bf16.gmra.mrb[12].mxu1 %v4999_v59  ;;  %650 = vmatprep.mubr.bf16.mxu0 %v6991_v1  ;;  %7333 = vst [vmem:[#allocation35_spill] sm:$0xff] %v5097_v58  ;;  %v5116_v8 = vcombine.low %v1206_v60, %v1210_v61 }
  0x8a   :  { %763 = vmatprep.mubr.bf16.mxu1 %v6991_v1  ;;  %817 = vmatpush1.bf16.msra.mxu0 %v4387_v2  ;;  %v5106_v2 = vcombine.low %v1199_v53, %v1203_v54  ;;  %v1243_v53 = vld [vmem:[#allocation8 + $0x2a8] sm:$0xff] }
  0x8b   :  { %818 = vmatprep.subr.bf16.mxu0 %v4396_v4  ;;  %930 = vmatpush1.bf16.msra.mxu1 %v4389_v3  ;;  %v5108_v3 = vcombine.high %v1206_v60, %v1210_v61  ;;  %v5112_v4 = vcombine.high %v1207_v62, %v1211_v63  ;;  %7338 = vst [vmem:[#allocation40_spill] sm:$0xff] %v5116_v8  ;;  %v1246_v63 = vld [vmem:[#allocation8 + $0x2c0] sm:$0xff] }
  0x8c   :  { %931 = vmatprep.subr.bf16.mxu1 %v4398_v6  ;;  %7335 = vst [vmem:[#allocation37_spill] sm:$0xff] %v5106_v2  ;;  %v1215_v6 = vld [vmem:[#allocation8 + $0x1c8] sm:$0xff] }
  0x8d   :  { %7336 = vst [vmem:[#allocation38_spill] sm:$0xff] %v5108_v3  ;;  %7337 = vst [vmem:[#allocation39_spill] sm:$0xff] %v5112_v4  ;;  %v5134_v29 = vcombine.low %v1215_v6, %v1219_v7 }
  0x8e   :  { %819 = vmatpush1.bf16.msra.mxu0 %v4395_v11 }
  0x8f   :  { %932 = vmatpush1.bf16.msra.mxu1 %v4397_v13  ;;  %1926 = vmatprep.subr.bf16.mxu0 %v5007_v14  ;;  %v5125_v13 = vcombine.high %v1215_v6, %v1219_v7  ;;  %7343 = vst [vmem:[#allocation45_spill] sm:$0xff] %v5134_v29 }
  0x90   :  { %651 = vmatmul.mubr.bf16.gmra.mrb[16].mxu0 %v5005_v12  ;;  %1969 = vmatprep.subr.bf16.mxu1 %v5009_v15 }
  0x91   :  { %764 = vmatmul.mubr.bf16.gmra.mrb[16].mxu1 %v5005_v12  ;;  %660 = vmatprep.mubr.bf16.mxu0 %v6991_v1  ;;  %7341 = vst [vmem:[#allocation43_spill] sm:$0xff] %v5125_v13 }
  0x92   :  { %773 = vmatprep.mubr.bf16.mxu1 %v6991_v1 }
  0x98   :  { %661 = vmatmul.mubr.bf16.gmra.mrb[20].mxu0 %v5017_v16 }
  0x99   :  { %774 = vmatmul.mubr.bf16.gmra.mrb[20].mxu1 %v5017_v16  ;;  %670 = vmatprep.mubr.bf16.mxu0 %v6991_v1 }
  0x9a   :  { %783 = vmatprep.mubr.bf16.mxu1 %v6991_v1 }
  0xa0   :  { %671 = vmatmul.mubr.bf16.gmra.mrb[24].mxu0 %v5023_v17 }
  0xa1   :  { %784 = vmatmul.mubr.bf16.gmra.mrb[24].mxu1 %v5023_v17  ;;  %680 = vmatprep.mubr.bf16.mxu0 %v6991_v1 }
  0xa2   :  { %793 = vmatprep.mubr.bf16.mxu1 %v6991_v1 }
  0xa8   :  { %681 = vmatmul.mubr.bf16.gmra.mrb[28].mxu0 %v5029_v18 }
  0xa9   :  { %794 = vmatmul.mubr.bf16.gmra.mrb[28].mxu1 %v5029_v18  ;;  %836 = vmatprep.mubr.bf16.mxu0 %v6991_v1 }
  0xaa   :  { %949 = vmatprep.mubr.bf16.mxu1 %v6991_v1 }
  0xb0   :  { %837 = vmatmul.mubr.bf16.vlgmr.msra.gmra.mrb[32].mxu0 %v4981_v9 }
  0xb1   :  { %950 = vmatmul.mubr.bf16.vlgmr.msra.gmra.mrb[32].mxu1 %v4981_v9  ;;  %1927 = vmatpush1.bf16.msra.mxu0 %v5035_v23  ;;  %v1186_v9 = vld [vmem:[#allocation8 + $0xe0] sm:$0xff] }
  0xb2   :  { %1970 = vmatpush1.bf16.msra.mxu1 %v5037_v24  ;;  %1928 = vmatprep.subr.bf16.mxu0 %v5039_v26  ;;  %v5066_v41 = vcombine.high %v1182_v36, %v1186_v9  ;;  %v5074_v48 = vcombine.low %v1182_v36, %v1186_v9  ;;  %v1230_v36 = vld [vmem:[#allocation8 + $0x240] sm:$0xff]  ;;  %v1231_v9 = vld [vmem:[#allocation8 + $0x248] sm:$0xff] }
  0xb3   :  { %1971 = vmatprep.subr.bf16.mxu1 %v5041_v27  ;;  %846 = vmatprep.mubr.bf16.mxu0 %v6991_v1  ;;  %v5153_v46 = vcombine.high %v1231_v9, %v1235_v37  ;;  %v5162_v60 = vcombine.low %v1231_v9, %v1235_v37 }
  0xb4   :  { %959 = vmatprep.mubr.bf16.mxu1 %v6991_v1  ;;  %7324 = vst [vmem:[#allocation26_spill] sm:$0xff] %v5066_v41  ;;  %7326 = vst [vmem:[#allocation28_spill] sm:$0xff] %v5074_v48 }
  0xb5   :  { %1929 = vmatpush1.bf16.msra.mxu0 %v5046_v32  ;;  %7349 = vst [vmem:[#allocation51_spill] sm:$0xff] %v5153_v46  ;;  %7351 = vst [vmem:[#allocation53_spill] sm:$0xff] %v5162_v60 }
  0xb6   :  { %1972 = vmatpush1.bf16.msra.mxu1 %v5050_v33  ;;  %1930 = vmatprep.subr.bf16.mxu0 %v5052_v34 }
  0xb7   :  { %1973 = vmatprep.subr.bf16.mxu1 %v5056_v35 }
  0xb8   :  { %847 = vmatmul.mubr.bf16.gmra.mrb[36].mxu0 %v4987_v25 }
  0xb9   :  { %960 = vmatmul.mubr.bf16.gmra.mrb[36].mxu1 %v4987_v25  ;;  %1931 = vmatpush1.bf16.msra.mxu0 %v5060_v39  ;;  %v1202_v25 = vld [vmem:[#allocation8 + $0x160] sm:$0xff] }
  0xba   :  { %1974 = vmatpush1.bf16.msra.mxu1 %v5064_v40  ;;  %1932 = vmatprep.subr.bf16.mxu0 %v5066_v41  ;;  %v5094_v57 = vcombine.high %v1198_v52, %v1202_v25  ;;  %v5102_v0 = vcombine.low %v1198_v52, %v1202_v25  ;;  %v1242_v52 = vld [vmem:[#allocation8 + $0x2a0] sm:$0xff]  ;;  %v1239_v25 = vld [vmem:[#allocation8 + $0x288] sm:$0xff] }
  0xbb   :  { %1975 = vmatprep.subr.bf16.mxu1 %v5069_v43  ;;  %856 = vmatprep.mubr.bf16.mxu0 %v6991_v1  ;;  %v5164_v61 = vcombine.high %v1238_v47, %v1242_v52  ;;  %v5168_v62 = vcombine.high %v1239_v25, %v1243_v53  ;;  %v5172_v6 = vcombine.low %v1238_v47, %v1242_v52 }
  0xbc   :  { %969 = vmatprep.mubr.bf16.mxu1 %v6991_v1  ;;  %7332 = vst [vmem:[#allocation34_spill] sm:$0xff] %v5094_v57  ;;  %7334 = vst [vmem:[#allocation36_spill] sm:$0xff] %v5102_v0  ;;  %v5176_v7 = vcombine.low %v1239_v25, %v1243_v53  ;;  %v5192_v47 = vcombine.high %v1254_v21, %v1258_v22  ;;  %v1262_v25 = vld [vmem:[#allocation8 + $0x340] sm:$0xff]  ;;  %v1263_v53 = vld [vmem:[#allocation8 + $0x348] sm:$0xff] }
  0xbd   :  { %1933 = vmatpush1.bf16.msra.mxu0 %v5074_v48  ;;  %7352 = vst [vmem:[#allocation54_spill] sm:$0xff] %v5164_v61  ;;  %7353 = vst [vmem:[#allocation55_spill] sm:$0xff] %v5168_v62 }
  0xbe   :  { %1976 = vmatpush1.bf16.msra.mxu1 %v5078_v49  ;;  %1934 = vmatprep.subr.bf16.mxu0 %v5080_v50  ;;  %7354 = vst [vmem:[#allocation56_spill] sm:$0xff] %v5172_v6  ;;  %7355 = vst [vmem:[#allocation57_spill] sm:$0xff] %v5176_v7 }
  0xbf   :  { %1977 = vmatprep.subr.bf16.mxu1 %v5084_v51  ;;  %7360 = vst [vmem:[#allocation62_spill] sm:$0xff] %v5192_v47 }
  0xc0   :  { %857 = vmatmul.mubr.bf16.gmra.mrb[40].mxu0 %v4993_v42 }
  0xc1   :  { %970 = vmatmul.mubr.bf16.gmra.mrb[40].mxu1 %v4993_v42  ;;  %1935 = vmatpush1.bf16.msra.mxu0 %v5088_v55  ;;  %v1218_v42 = vld [vmem:[#allocation8 + $0x1e0] sm:$0xff] }
  0xc2   :  { %1978 = vmatpush1.bf16.msra.mxu1 %v5092_v56  ;;  %1936 = vmatprep.subr.bf16.mxu0 %v5094_v57  ;;  %v5122_v11 = vcombine.high %v1214_v5, %v1218_v42  ;;  %v5130_v28 = vcombine.low %v1214_v5, %v1218_v42  ;;  %v1247_v5 = vld [vmem:[#allocation8 + $0x2c8] sm:$0xff] }
  0xc3   :  { %1979 = vmatprep.subr.bf16.mxu1 %v5097_v58  ;;  %866 = vmatprep.mubr.bf16.mxu0 %v6991_v1  ;;  %v1251_v42 = vld [vmem:[#allocation8 + $0x2e8] sm:$0xff] }
  0xc4   :  { %979 = vmatprep.mubr.bf16.mxu1 %v6991_v1  ;;  %7340 = vst [vmem:[#allocation42_spill] sm:$0xff] %v5122_v11  ;;  %7342 = vst [vmem:[#allocation44_spill] sm:$0xff] %v5130_v28  ;;  %v5181_v20 = vcombine.high %v1247_v5, %v1251_v42  ;;  %v5190_v37 = vcombine.low %v1247_v5, %v1251_v42 }
  0xc5   :  { %1937 = vmatpush1.bf16.msra.mxu0 %v5102_v0 }
  0xc6   :  { %1980 = vmatpush1.bf16.msra.mxu1 %v5106_v2  ;;  %1938 = vmatprep.subr.bf16.mxu0 %v5108_v3  ;;  %7357 = vst [vmem:[#allocation59_spill] sm:$0xff] %v5181_v20  ;;  %7359 = vst [vmem:[#allocation61_spill] sm:$0xff] %v5190_v37 }
  0xc7   :  { %1981 = vmatprep.subr.bf16.mxu1 %v5112_v4 }
  0xc8   :  { %867 = vmatmul.mubr.bf16.gmra.mrb[44].mxu0 %v4999_v59 }
  0xc9   :  { %980 = vmatmul.mubr.bf16.gmra.mrb[44].mxu1 %v4999_v59  ;;  %1939 = vmatpush1.bf16.msra.mxu0 %v5116_v8  ;;  %v1234_v59 = vld [vmem:[#allocation8 + $0x260] sm:$0xff] }
  0xca   :  { %1982 = vmatpush1.bf16.msra.mxu1 %v5120_v10  ;;  %1940 = vmatprep.subr.bf16.mxu0 %v5122_v11  ;;  %v5150_v45 = vcombine.high %v1230_v36, %v1234_v59  ;;  %v5158_v54 = vcombine.low %v1230_v36, %v1234_v59  ;;  %v1255_v36 = vld [vmem:[#allocation8 + $0x308] sm:$0xff] }
  0xcb   :  { %1983 = vmatprep.subr.bf16.mxu1 %v5125_v13  ;;  %876 = vmatprep.mubr.bf16.mxu0 %v6991_v1  ;;  %v1259_v59 = vld [vmem:[#allocation8 + $0x328] sm:$0xff] }
  0xcc   :  { %989 = vmatprep.mubr.bf16.mxu1 %v6991_v1  ;;  %7348 = vst [vmem:[#allocation50_spill] sm:$0xff] %v5150_v45  ;;  %7350 = vst [vmem:[#allocation52_spill] sm:$0xff] %v5158_v54  ;;  %v5196_v52 = vcombine.high %v1255_v36, %v1259_v59  ;;  %v5204_v5 = vcombine.low %v1255_v36, %v1259_v59  ;;  %v7369_v59 = vmov 0  }
  0xcd   :  { %1941 = vmatpush1.bf16.msra.mxu0 %v5130_v28 }
  0xce   :  { %1984 = vmatpush1.bf16.msra.mxu1 %v5134_v29  ;;  %1942 = vmatprep.subr.bf16.mxu0 %v5136_v30  ;;  %7361 = vst [vmem:[#allocation63_spill] sm:$0xff] %v5196_v52  ;;  %7363 = vst [vmem:[#allocation65_spill] sm:$0xff] %v5204_v5 }
  0xcf   :  { %1985 = vmatprep.subr.bf16.mxu1 %v5140_v31 }
  0xd0   :  { %877 = vmatmul.mubr.bf16.gmra.mrb[48].mxu0 %v5005_v12 }
  0xd1   :  { %990 = vmatmul.mubr.bf16.gmra.mrb[48].mxu1 %v5005_v12  ;;  %1943 = vmatpush1.bf16.msra.mxu0 %v5144_v38  ;;  %v1250_v12 = vld [vmem:[#allocation8 + $0x2e0] sm:$0xff] }
  0xd2   :  { %1986 = vmatpush1.bf16.msra.mxu1 %v5148_v44  ;;  %1944 = vmatprep.subr.bf16.mxu0 %v5150_v45  ;;  %v5178_v19 = vcombine.high %v1246_v63, %v1250_v12  ;;  %v5186_v9 = vcombine.low %v1246_v63, %v1250_v12  ;;  %v1267_v63 = vld [vmem:[#allocation8 + $0x368] sm:$0xff]  ;;  %v5200_v12 = vcombine.low %v1254_v21, %v1258_v22 }
  0xd3   :  { %1987 = vmatprep.subr.bf16.mxu1 %v5153_v46  ;;  %886 = vmatprep.mubr.bf16.mxu0 %v6991_v1  ;;  %v5218_v22 = vcombine.low %v1263_v53, %v1267_v63 }
  0xd4   :  { %999 = vmatprep.mubr.bf16.mxu1 %v6991_v1  ;;  %7356 = vst [vmem:[#allocation58_spill] sm:$0xff] %v5178_v19  ;;  %7358 = vst [vmem:[#allocation60_spill] sm:$0xff] %v5186_v9 }
  0xd5   :  { %1945 = vmatpush1.bf16.msra.mxu0 %v5158_v54  ;;  %7362 = vst [vmem:[#allocation64_spill] sm:$0xff] %v5200_v12  ;;  %7367 = vst [vmem:[#allocation69_spill] sm:$0xff] %v5218_v22 }
  0xd6   :  { %1988 = vmatpush1.bf16.msra.mxu1 %v5162_v60  ;;  %1946 = vmatprep.subr.bf16.mxu0 %v5164_v61 }
  0xd7   :  { %1989 = vmatprep.subr.bf16.mxu1 %v5168_v62 }
  0xd8   :  { %887 = vmatmul.mubr.bf16.gmra.mrb[52].mxu0 %v5017_v16 }
  0xd9   :  { %1000 = vmatmul.mubr.bf16.gmra.mrb[52].mxu1 %v5017_v16  ;;  %1947 = vmatpush1.bf16.msra.mxu0 %v5172_v6  ;;  %v1266_v16 = vld [vmem:[#allocation8 + $0x360] sm:$0xff] }
  0xda   :  { %1990 = vmatpush1.bf16.msra.mxu1 %v5176_v7  ;;  %1948 = vmatprep.subr.bf16.mxu0 %v5178_v19  ;;  %v5206_v42 = vcombine.high %v1262_v25, %v1266_v16  ;;  %v1270_v19 = vld [vmem:[#allocation8 + $0x380] sm:$0xff]  ;;  %v1271_v7 = vld [vmem:[#allocation8 + $0x388] sm:$0xff]  ;;  %v5214_v21 = vcombine.low %v1262_v25, %v1266_v16 }
  0xdb   :  { %1991 = vmatprep.subr.bf16.mxu1 %v5181_v20  ;;  %896 = vmatprep.mubr.bf16.mxu0 %v6991_v1  ;;  %v5209_v20 = vcombine.high %v1263_v53, %v1267_v63  ;;  %v1279_v25 = vld [vmem:[#allocation8 + $0x3c8] sm:$0xff] }
  0xdc   :  { %1009 = vmatprep.mubr.bf16.mxu1 %v6991_v1  ;;  %7364 = vst [vmem:[#allocation66_spill] sm:$0xff] %v5206_v42  ;;  %v1274_v1 = vld [vmem:[#allocation8 + $0x3a0] sm:$0xff]  ;;  %7366 = vst [vmem:[#allocation68_spill] sm:$0xff] %v5214_v21  ;;  %v1283_v16 = vld [vmem:[#allocation8 + $0x3e8] sm:$0xff] }
  0xdd   :  { %1949 = vmatpush1.bf16.msra.mxu0 %v5186_v9  ;;  %7365 = vst [vmem:[#allocation67_spill] sm:$0xff] %v5209_v20  ;;  %v1275_v9 = vld [vmem:[#allocation8 + $0x3a8] sm:$0xff]  ;;  %v5220_v36 = vcombine.high %v1270_v19, %v1274_v1 }
  0xde   :  { %1992 = vmatpush1.bf16.msra.mxu1 %v5190_v37  ;;  %1950 = vmatprep.subr.bf16.mxu0 %v5192_v47  ;;  %v1278_v47 = vld [vmem:[#allocation8 + $0x3c0] sm:$0xff]  ;;  %v5232_v53 = vcombine.low %v1271_v7, %v1275_v9  ;;  %v1161_v37 = vld [vmem:[#allocation8 + $0x18] sm:$0xff] }
  0xdf   :  { %1993 = vmatprep.subr.bf16.mxu1 %v5196_v52  ;;  %7368 = vst [vmem:[#allocation70_spill] sm:$0xff] %v5220_v36  ;;  %v5224_v52 = vcombine.high %v1271_v7, %v1275_v9  ;;  %v5246_v7 = vcombine.low %v1279_v25, %v1283_v16 }
  0xe0   :  { %897 = vmatmul.mubr.bf16.gmra.mrb[56].mxu0 %v5023_v17  ;;  %7372 = vst [vmem:[#allocation73_spill] sm:$0xff] %v5232_v53 }
  0xe1   :  { %1010 = vmatmul.mubr.bf16.gmra.mrb[56].mxu1 %v5023_v17  ;;  %1951 = vmatpush1.bf16.msra.mxu0 %v5200_v12  ;;  %7370 = vst [vmem:[#allocation71_spill] sm:$0xff] %v5224_v52  ;;  %v1282_v17 = vld [vmem:[#allocation8 + $0x3e0] sm:$0xff]  ;;  %v1164_v12 = vld [vmem:[#allocation8 + $0x30] sm:$0xff]  ;;  %7376 = vst [vmem:[#allocation77_spill] sm:$0xff] %v5246_v7 }
  0xe2   :  { %1994 = vmatpush1.bf16.msra.mxu1 %v5204_v5  ;;  %1952 = vmatprep.subr.bf16.mxu0 %v5206_v42  ;;  %v5228_v5 = vcombine.low %v1270_v19, %v1274_v1  ;;  %v5234_v63 = vcombine.high %v1278_v47, %v1282_v17  ;;  %v1160_v42 = vld [vmem:[#allocation8 + $0x10] sm:$0xff]  ;;  %v5242_v1 = vcombine.low %v1278_v47, %v1282_v17  ;;  %v1169_v47 = vld [vmem:[#allocation8 + $0x58] sm:$0xff] }
  0xe3   :  { %1995 = vmatprep.subr.bf16.mxu1 %v5209_v20  ;;  %906 = vmatprep.mubr.bf16.mxu0 %v7369_v59  ;;  %v5237_v20 = vcombine.high %v1279_v25, %v1283_v16  ;;  %v5248_v19 = vcombine.high %v1160_v42, %v1164_v12  ;;  %v1173_v17 = vld [vmem:[#allocation8 + $0x78] sm:$0xff] }
  0xe4   :  { %1019 = vmatprep.mubr.bf16.mxu1 %v7369_v59  ;;  %7371 = vst [vmem:[#allocation72_spill] sm:$0xff] %v5228_v5  ;;  %7373 = vst [vmem:[#allocation74_spill] sm:$0xff] %v5234_v63 }
  0xe5   :  { %1953 = vmatpush1.bf16.msra.mxu0 %v5214_v21  ;;  %7374 = vst [vmem:[#allocation75_spill] sm:$0xff] %v5237_v20  ;;  %v1165_v21 = vld [vmem:[#allocation8 + $0x38] sm:$0xff]  ;;  %7375 = vst [vmem:[#allocation76_spill] sm:$0xff] %v5242_v1 }
  0xe6   :  { %1996 = vmatpush1.bf16.msra.mxu1 %v5218_v22  ;;  %1954 = vmatprep.subr.bf16.mxu0 %v5220_v36  ;;  %7377 = vst [vmem:[#allocation78_spill] sm:$0xff] %v5248_v19  ;;  %v5252_v9 = vcombine.high %v1161_v37, %v1165_v21  ;;  %v5260_v25 = vcombine.low %v1161_v37, %v1165_v21  ;;  %v1177_v36 = vld [vmem:[#allocation8 + $0x98] sm:$0xff] }
  0xe7   :  { %1997 = vmatprep.subr.bf16.mxu1 %v5224_v52  ;;  %v1168_v52 = vld [vmem:[#allocation8 + $0x50] sm:$0xff]  ;;  %v5274_v37 = vcombine.low %v1169_v47, %v1173_v17  ;;  %v1197_v22 = vld [vmem:[#allocation8 + $0x138] sm:$0xff] }
  0xe8   :  { %907 = vmatmul.mubr.bf16.gmra.mrb[60].mxu0 %v5029_v18  ;;  %7378 = vst [vmem:[#allocation79_spill] sm:$0xff] %v5252_v9  ;;  %7380 = vst [vmem:[#allocation81_spill] sm:$0xff] %v5260_v25 }
  0xe9   :  { %1020 = vmatmul.mubr.bf16.gmra.mrb[60].mxu1 %v5029_v18  ;;  %1955 = vmatpush1.bf16.msra.mxu0 %v5228_v5  ;;  %v1172_v18 = vld [vmem:[#allocation8 + $0x70] sm:$0xff]  ;;  %7384 = vst [vmem:[#allocation85_spill] sm:$0xff] %v5274_v37 }
  0xea   :  { %1998 = vmatpush1.bf16.msra.mxu1 %v5232_v53  ;;  %1956 = vmatprep.subr.bf16.mxu0 %v5234_v63  ;;  %v5256_v53 = vcombine.low %v1160_v42, %v1164_v12  ;;  %v5262_v16 = vcombine.high %v1168_v52, %v1172_v18  ;;  %v1176_v63 = vld [vmem:[#allocation8 + $0x90] sm:$0xff]  ;;  %v5270_v12 = vcombine.low %v1168_v52, %v1172_v18 }
  0xeb   :  { %1999 = vmatprep.subr.bf16.mxu1 %v5237_v20  ;;  %1958 = vmatprep.mubr.bf16.mxu0 %v7369_v59  ;;  %v5265_v20 = vcombine.high %v1169_v47, %v1173_v17  ;;  %v1180_v5 = vld [vmem:[#allocation8 + $0xb0] sm:$0xff] }
  0xec   :  { %2001 = vmatprep.mubr.bf16.mxu1 %v7369_v59  ;;  %7379 = vst [vmem:[#allocation80_spill] sm:$0xff] %v5256_v53  ;;  %7381 = vst [vmem:[#allocation82_spill] sm:$0xff] %v5262_v16  ;;  %v5276_v42 = vcombine.high %v1176_v63, %v1180_v5  ;;  %v5284_v52 = vcombine.low %v1176_v63, %v1180_v5 }
  0xed   :  { %1957 = vmatpush1.bf16.msra.mxu0 %v5242_v1  ;;  %7382 = vst [vmem:[#allocation83_spill] sm:$0xff] %v5265_v20  ;;  %v1181_v1 = vld [vmem:[#allocation8 + $0xb8] sm:$0xff]  ;;  %7383 = vst [vmem:[#allocation84_spill] sm:$0xff] %v5270_v12 }
  0xee   :  { %2000 = vmatpush1.bf16.msra.mxu1 %v5246_v7  ;;  %2012 = vmatprep.subr.bf16.mxu0 %v5248_v19  ;;  %7385 = vst [vmem:[#allocation86_spill] sm:$0xff] %v5276_v42  ;;  %v5279_v21 = vcombine.high %v1177_v36, %v1181_v1  ;;  %v1188_v19 = vld [vmem:[#allocation8 + $0xf0] sm:$0xff]  ;;  %v1185_v7 = vld [vmem:[#allocation8 + $0xd8] sm:$0xff]  ;;  %7387 = vst [vmem:[#allocation88_spill] sm:$0xff] %v5284_v52  ;;  %v5288_v18 = vcombine.low %v1177_v36, %v1181_v1 }
  0xef   :  { %2055 = vmatprep.subr.bf16.mxu1 %v5252_v9  ;;  %v1184_v9 = vld [vmem:[#allocation8 + $0xd0] sm:$0xff] }
  0xf0   :  { %1959 = vmatmul.mubr.bf16.vlgmr.msra.gmra.mrb[64].mxu0 %v7369_v59  ;;  %7386 = vst [vmem:[#allocation87_spill] sm:$0xff] %v5279_v21  ;;  %7388 = vst [vmem:[#allocation89_spill] sm:$0xff] %v5288_v18  ;;  %v5290_v47 = vcombine.high %v1184_v9, %v1188_v19  ;;  %v5296_v5 = vcombine.low %v1184_v9, %v1188_v19 }
  0xf1   :  { %2002 = vmatmul.mubr.bf16.vlgmr.msra.gmra.mrb[64].mxu1 %v7369_v59  ;;  %2013 = vmatpush1.bf16.msra.mxu0 %v5256_v53  ;;  %v1189_v53 = vld [vmem:[#allocation8 + $0xf8] sm:$0xff] }
  0xf2   :  { %2056 = vmatpush1.bf16.msra.mxu1 %v5260_v25  ;;  %2014 = vmatprep.subr.bf16.mxu0 %v5262_v16  ;;  %7389 = vst [vmem:[#allocation90_spill] sm:$0xff] %v5290_v47  ;;  %v5293_v17 = vcombine.high %v1185_v7, %v1189_v53  ;;  %v1196_v16 = vld [vmem:[#allocation8 + $0x130] sm:$0xff]  ;;  %v1193_v25 = vld [vmem:[#allocation8 + $0x118] sm:$0xff]  ;;  %7391 = vst [vmem:[#allocation92_spill] sm:$0xff] %v5296_v5  ;;  %v5300_v36 = vcombine.low %v1185_v7, %v1189_v53 }
  0xf3   :  { %2057 = vmatprep.subr.bf16.mxu1 %v5265_v20  ;;  %2044 = vmatprep.mubr.bf16.mxu0 %v7369_v59  ;;  %v1192_v20 = vld [vmem:[#allocation8 + $0x110] sm:$0xff]  ;;  %v5305_v1 = vcombine.high %v1193_v25, %v1197_v22  ;;  %v5312_v53 = vcombine.low %v1193_v25, %v1197_v22 }
  0xf4   :  { %2087 = vmatprep.mubr.bf16.mxu1 %v7369_v59  ;;  %7390 = vst [vmem:[#allocation91_spill] sm:$0xff] %v5293_v17  ;;  %7392 = vst [vmem:[#allocation93_spill] sm:$0xff] %v5300_v36  ;;  %v5302_v63 = vcombine.high %v1192_v20, %v1196_v16  ;;  %v5308_v19 = vcombine.low %v1192_v20, %v1196_v16 }
  0xf5   :  { %2015 = vmatpush1.bf16.msra.mxu0 %v5270_v12  ;;  %7394 = vst [vmem:[#allocation95_spill] sm:$0xff] %v5305_v1  ;;  %v1205_v12 = vld [vmem:[#allocation8 + $0x178] sm:$0xff]  ;;  %7396 = vst [vmem:[#allocation97_spill] sm:$0xff] %v5312_v53 }
  0xf6   :  { %2058 = vmatpush1.bf16.msra.mxu1 %v5274_v37  ;;  %2016 = vmatprep.subr.bf16.mxu0 %v5276_v42  ;;  %7393 = vst [vmem:[#allocation94_spill] sm:$0xff] %v5302_v63  ;;  %v1204_v42 = vld [vmem:[#allocation8 + $0x170] sm:$0xff]  ;;  %v1201_v37 = vld [vmem:[#allocation8 + $0x158] sm:$0xff]  ;;  %7395 = vst [vmem:[#allocation96_spill] sm:$0xff] %v5308_v19 }
  0xf7   :  { %2059 = vmatprep.subr.bf16.mxu1 %v5279_v21  ;;  %v1200_v21 = vld [vmem:[#allocation8 + $0x150] sm:$0xff]  ;;  %v5317_v9 = vcombine.high %v1201_v37, %v1205_v12  ;;  %v5324_v22 = vcombine.low %v1201_v37, %v1205_v12 }
  0xf8   :  { %v5314_v7 = vcombine.high %v1200_v21, %v1204_v42  ;;  %v5320_v20 = vcombine.low %v1200_v21, %v1204_v42 }
  0xf9   :  { %2017 = vmatpush1.bf16.msra.mxu0 %v5284_v52  ;;  %7398 = vst [vmem:[#allocation99_spill] sm:$0xff] %v5317_v9  ;;  %v1213_v52 = vld [vmem:[#allocation8 + $0x1b8] sm:$0xff]  ;;  %7400 = vst [vmem:[#allocation101_spill] sm:$0xff] %v5324_v22 }
  0xfa   :  { %2060 = vmatpush1.bf16.msra.mxu1 %v5288_v18  ;;  %2018 = vmatprep.subr.bf16.mxu0 %v5290_v47  ;;  %7397 = vst [vmem:[#allocation98_spill] sm:$0xff] %v5314_v7  ;;  %v1212_v47 = vld [vmem:[#allocation8 + $0x1b0] sm:$0xff]  ;;  %v1209_v18 = vld [vmem:[#allocation8 + $0x198] sm:$0xff]  ;;  %7399 = vst [vmem:[#allocation100_spill] sm:$0xff] %v5320_v20 }
  0xfb   :  { %2061 = vmatprep.subr.bf16.mxu1 %v5293_v17  ;;  %v1208_v17 = vld [vmem:[#allocation8 + $0x190] sm:$0xff]  ;;  %v5329_v16 = vcombine.high %v1209_v18, %v1213_v52  ;;  %v5336_v12 = vcombine.low %v1209_v18, %v1213_v52 }
  0xfc   :  { %v5326_v25 = vcombine.high %v1208_v17, %v1212_v47  ;;  %v5332_v42 = vcombine.low %v1208_v17, %v1212_v47 }
  0xfd   :  { %2019 = vmatpush1.bf16.msra.mxu0 %v5296_v5  ;;  %7402 = vst [vmem:[#allocation103_spill] sm:$0xff] %v5329_v16  ;;  %v1221_v5 = vld [vmem:[#allocation8 + $0x1f8] sm:$0xff]  ;;  %7404 = vst [vmem:[#allocation105_spill] sm:$0xff] %v5336_v12 }
  0xfe   :  { %2062 = vmatpush1.bf16.msra.mxu1 %v5300_v36  ;;  %2020 = vmatprep.subr.bf16.mxu0 %v5302_v63  ;;  %7401 = vst [vmem:[#allocation102_spill] sm:$0xff] %v5326_v25  ;;  %v1220_v63 = vld [vmem:[#allocation8 + $0x1f0] sm:$0xff]  ;;  %v1217_v36 = vld [vmem:[#allocation8 + $0x1d8] sm:$0xff]  ;;  %7403 = vst [vmem:[#allocation104_spill] sm:$0xff] %v5332_v42 }
  0xff   :  { %2063 = vmatprep.subr.bf16.mxu1 %v5305_v1  ;;  %v1216_v1 = vld [vmem:[#allocation8 + $0x1d0] sm:$0xff]  ;;  %v5341_v21 = vcombine.high %v1217_v36, %v1221_v5  ;;  %v5348_v52 = vcombine.low %v1217_v36, %v1221_v5 }
 0x100   :  { %v5338_v37 = vcombine.high %v1216_v1, %v1220_v63  ;;  %v5344_v47 = vcombine.low %v1216_v1, %v1220_v63 }
 0x101   :  { %2021 = vmatpush1.bf16.msra.mxu0 %v5308_v19  ;;  %7406 = vst [vmem:[#allocation107_spill] sm:$0xff] %v5341_v21  ;;  %v1229_v19 = vld [vmem:[#allocation8 + $0x238] sm:$0xff]  ;;  %7408 = vst [vmem:[#allocation109_spill] sm:$0xff] %v5348_v52 }
 0x102   :  { %2064 = vmatpush1.bf16.msra.mxu1 %v5312_v53  ;;  %2022 = vmatprep.subr.bf16.mxu0 %v5314_v7  ;;  %7405 = vst [vmem:[#allocation106_spill] sm:$0xff] %v5338_v37  ;;  %v1228_v7 = vld [vmem:[#allocation8 + $0x230] sm:$0xff]  ;;  %v1225_v53 = vld [vmem:[#allocation8 + $0x218] sm:$0xff]  ;;  %7407 = vst [vmem:[#allocation108_spill] sm:$0xff] %v5344_v47 }
 0x103   :  { %2065 = vmatprep.subr.bf16.mxu1 %v5317_v9  ;;  %v1224_v9 = vld [vmem:[#allocation8 + $0x210] sm:$0xff]  ;;  %v5353_v17 = vcombine.high %v1225_v53, %v1229_v19  ;;  %v5360_v5 = vcombine.low %v1225_v53, %v1229_v19 }
 0x104   :  { %v5350_v18 = vcombine.high %v1224_v9, %v1228_v7  ;;  %v5356_v63 = vcombine.low %v1224_v9, %v1228_v7 }
 0x105   :  { %2023 = vmatpush1.bf16.msra.mxu0 %v5320_v20  ;;  %7410 = vst [vmem:[#allocation111_spill] sm:$0xff] %v5353_v17  ;;  %v1237_v20 = vld [vmem:[#allocation8 + $0x278] sm:$0xff]  ;;  %7412 = vst [vmem:[#allocation113_spill] sm:$0xff] %v5360_v5 }
 0x106   :  { %2066 = vmatpush1.bf16.msra.mxu1 %v5324_v22  ;;  %2024 = vmatprep.subr.bf16.mxu0 %v5326_v25  ;;  %7409 = vst [vmem:[#allocation110_spill] sm:$0xff] %v5350_v18  ;;  %v1236_v25 = vld [vmem:[#allocation8 + $0x270] sm:$0xff]  ;;  %v1233_v22 = vld [vmem:[#allocation8 + $0x258] sm:$0xff]  ;;  %7411 = vst [vmem:[#allocation112_spill] sm:$0xff] %v5356_v63 }
 0x107   :  { %2067 = vmatprep.subr.bf16.mxu1 %v5329_v16  ;;  %v1232_v16 = vld [vmem:[#allocation8 + $0x250] sm:$0xff]  ;;  %v5365_v1 = vcombine.high %v1233_v22, %v1237_v20  ;;  %v5372_v19 = vcombine.low %v1233_v22, %v1237_v20 }
 0x108   :  { %v5362_v36 = vcombine.high %v1232_v16, %v1236_v25  ;;  %v5368_v7 = vcombine.low %v1232_v16, %v1236_v25 }
 0x109   :  { %2025 = vmatpush1.bf16.msra.mxu0 %v5332_v42  ;;  %7414 = vst [vmem:[#allocation115_spill] sm:$0xff] %v5365_v1  ;;  %v1245_v42 = vld [vmem:[#allocation8 + $0x2b8] sm:$0xff]  ;;  %7416 = vst [vmem:[#allocation117_spill] sm:$0xff] %v5372_v19 }
 0x10a   :  { %2068 = vmatpush1.bf16.msra.mxu1 %v5336_v12  ;;  %2026 = vmatprep.subr.bf16.mxu0 %v5338_v37  ;;  %7413 = vst [vmem:[#allocation114_spill] sm:$0xff] %v5362_v36  ;;  %v1244_v37 = vld [vmem:[#allocation8 + $0x2b0] sm:$0xff]  ;;  %v1241_v12 = vld [vmem:[#allocation8 + $0x298] sm:$0xff]  ;;  %7415 = vst [vmem:[#allocation116_spill] sm:$0xff] %v5368_v7 }
 0x10b   :  { %2069 = vmatprep.subr.bf16.mxu1 %v5341_v21  ;;  %v1240_v21 = vld [vmem:[#allocation8 + $0x290] sm:$0xff]  ;;  %v5377_v9 = vcombine.high %v1241_v12, %v1245_v42  ;;  %v5384_v20 = vcombine.low %v1241_v12, %v1245_v42 }
 0x10c   :  { %v5374_v53 = vcombine.high %v1240_v21, %v1244_v37  ;;  %v5380_v25 = vcombine.low %v1240_v21, %v1244_v37 }
 0x10d   :  { %2027 = vmatpush1.bf16.msra.mxu0 %v5344_v47  ;;  %7418 = vst [vmem:[#allocation119_spill] sm:$0xff] %v5377_v9  ;;  %v1253_v47 = vld [vmem:[#allocation8 + $0x2f8] sm:$0xff]  ;;  %7420 = vst [vmem:[#allocation121_spill] sm:$0xff] %v5384_v20 }
 0x10e   :  { %2070 = vmatpush1.bf16.msra.mxu1 %v5348_v52  ;;  %2028 = vmatprep.subr.bf16.mxu0 %v5350_v18  ;;  %7417 = vst [vmem:[#allocation118_spill] sm:$0xff] %v5374_v53  ;;  %v1252_v18 = vld [vmem:[#allocation8 + $0x2f0] sm:$0xff]  ;;  %v1249_v52 = vld [vmem:[#allocation8 + $0x2d8] sm:$0xff]  ;;  %7419 = vst [vmem:[#allocation120_spill] sm:$0xff] %v5380_v25 }
 0x10f   :  { %2071 = vmatprep.subr.bf16.mxu1 %v5353_v17  ;;  %v1248_v17 = vld [vmem:[#allocation8 + $0x2d0] sm:$0xff]  ;;  %v5389_v16 = vcombine.high %v1249_v52, %v1253_v47  ;;  %v5396_v42 = vcombine.low %v1249_v52, %v1253_v47 }
 0x110   :  { %v5386_v22 = vcombine.high %v1248_v17, %v1252_v18  ;;  %v5392_v37 = vcombine.low %v1248_v17, %v1252_v18 }
 0x111   :  { %2029 = vmatpush1.bf16.msra.mxu0 %v5356_v63  ;;  %7422 = vst [vmem:[#allocation123_spill] sm:$0xff] %v5389_v16  ;;  %v1261_v63 = vld [vmem:[#allocation8 + $0x338] sm:$0xff]  ;;  %7424 = vst [vmem:[#allocation125_spill] sm:$0xff] %v5396_v42 }
 0x112   :  { %2072 = vmatpush1.bf16.msra.mxu1 %v5360_v5  ;;  %2030 = vmatprep.subr.bf16.mxu0 %v5362_v36  ;;  %7421 = vst [vmem:[#allocation122_spill] sm:$0xff] %v5386_v22  ;;  %v1260_v36 = vld [vmem:[#allocation8 + $0x330] sm:$0xff]  ;;  %v1257_v5 = vld [vmem:[#allocation8 + $0x318] sm:$0xff]  ;;  %7423 = vst [vmem:[#allocation124_spill] sm:$0xff] %v5392_v37 }
 0x113   :  { %2073 = vmatprep.subr.bf16.mxu1 %v5365_v1  ;;  %v1256_v1 = vld [vmem:[#allocation8 + $0x310] sm:$0xff]  ;;  %v5401_v21 = vcombine.high %v1257_v5, %v1261_v63  ;;  %v5408_v47 = vcombine.low %v1257_v5, %v1261_v63 }
 0x114   :  { %v5398_v12 = vcombine.high %v1256_v1, %v1260_v36  ;;  %v5404_v18 = vcombine.low %v1256_v1, %v1260_v36 }
 0x115   :  { %2031 = vmatpush1.bf16.msra.mxu0 %v5368_v7  ;;  %7426 = vst [vmem:[#allocation127_spill] sm:$0xff] %v5401_v21  ;;  %v1269_v7 = vld [vmem:[#allocation8 + $0x378] sm:$0xff]  ;;  %7428 = vst [vmem:[#allocation129_spill] sm:$0xff] %v5408_v47 }
 0x116   :  { %2074 = vmatpush1.bf16.msra.mxu1 %v5372_v19  ;;  %2032 = vmatprep.subr.bf16.mxu0 %v5374_v53  ;;  %7425 = vst [vmem:[#allocation126_spill] sm:$0xff] %v5398_v12  ;;  %v1268_v53 = vld [vmem:[#allocation8 + $0x370] sm:$0xff]  ;;  %v1265_v19 = vld [vmem:[#allocation8 + $0x358] sm:$0xff]  ;;  %7427 = vst [vmem:[#allocation128_spill] sm:$0xff] %v5404_v18 }
 0x117   :  { %2075 = vmatprep.subr.bf16.mxu1 %v5377_v9  ;;  %v1264_v9 = vld [vmem:[#allocation8 + $0x350] sm:$0xff]  ;;  %v5413_v17 = vcombine.high %v1265_v19, %v1269_v7  ;;  %v5420_v63 = vcombine.low %v1265_v19, %v1269_v7 }
 0x118   :  { %v5410_v52 = vcombine.high %v1264_v9, %v1268_v53  ;;  %v5416_v36 = vcombine.low %v1264_v9, %v1268_v53 }
 0x119   :  { %2033 = vmatpush1.bf16.msra.mxu0 %v5380_v25  ;;  %7430 = vst [vmem:[#allocation131_spill] sm:$0xff] %v5413_v17  ;;  %v1277_v25 = vld [vmem:[#allocation8 + $0x3b8] sm:$0xff]  ;;  %7432 = vst [vmem:[#allocation133_spill] sm:$0xff] %v5420_v63 }
 0x11a   :  { %2076 = vmatpush1.bf16.msra.mxu1 %v5384_v20  ;;  %2034 = vmatprep.subr.bf16.mxu0 %v5386_v22  ;;  %7429 = vst [vmem:[#allocation130_spill] sm:$0xff] %v5410_v52  ;;  %v1276_v22 = vld [vmem:[#allocation8 + $0x3b0] sm:$0xff]  ;;  %v1273_v20 = vld [vmem:[#allocation8 + $0x398] sm:$0xff]  ;;  %7431 = vst [vmem:[#allocation132_spill] sm:$0xff] %v5416_v36 }
 0x11b   :  { %2077 = vmatprep.subr.bf16.mxu1 %v5389_v16  ;;  %v1272_v16 = vld [vmem:[#allocation8 + $0x390] sm:$0xff]  ;;  %v5425_v1 = vcombine.high %v1273_v20, %v1277_v25  ;;  %v5432_v7 = vcombine.low %v1273_v20, %v1277_v25  ;;  %v170_v25 = vlaneseq }
 0x11c   :  { %v5422_v5 = vcombine.high %v1272_v16, %v1276_v22  ;;  %v5428_v53 = vcombine.low %v1272_v16, %v1276_v22 }
 0x11d   :  { %2035 = vmatpush1.bf16.msra.mxu0 %v5392_v37  ;;  %7434 = vst [vmem:[#allocation135_spill] sm:$0xff] %v5425_v1  ;;  %v1285_v37 = vld [vmem:[#allocation8 + $0x3f8] sm:$0xff]  ;;  %7436 = vst [vmem:[#allocation137_spill] sm:$0xff] %v5432_v7 }
 0x11e   :  { %2078 = vmatpush1.bf16.msra.mxu1 %v5396_v42  ;;  %2036 = vmatprep.subr.bf16.mxu0 %v5398_v12  ;;  %7433 = vst [vmem:[#allocation134_spill] sm:$0xff] %v5422_v5  ;;  %v1284_v12 = vld [vmem:[#allocation8 + $0x3f0] sm:$0xff]  ;;  %v1281_v42 = vld [vmem:[#allocation8 + $0x3d8] sm:$0xff]  ;;  %7435 = vst [vmem:[#allocation136_spill] sm:$0xff] %v5428_v53 }
 0x11f   :  { %2079 = vmatprep.subr.bf16.mxu1 %v5401_v21  ;;  %v1280_v21 = vld [vmem:[#allocation8 + $0x3d0] sm:$0xff]  ;;  %v5437_v9 = vcombine.high %v1281_v42, %v1285_v37  ;;  %v5444_v22 = vcombine.low %v1281_v42, %v1285_v37  ;;  %v5476_v42 = vld [vmem:[%s6980_s2] sm:$0xff] }
 0x120   :  { %v5434_v19 = vcombine.high %v1280_v21, %v1284_v12 }
 0x121   :  { %2037 = vmatpush1.bf16.msra.mxu0 %v5404_v18  ;;  %7438 = vst [vmem:[#allocation139_spill] sm:$0xff] %v5437_v9  ;;  %7440 = vst [vmem:[#allocation141_spill] sm:$0xff] %v5444_v22 }
 0x122   :  { %2080 = vmatpush1.bf16.msra.mxu1 %v5408_v47  ;;  %2038 = vmatprep.subr.bf16.mxu0 %v5410_v52  ;;  %7437 = vst [vmem:[#allocation138_spill] sm:$0xff] %v5434_v19 }
 0x123   :  { %2081 = vmatprep.subr.bf16.mxu1 %v5413_v17  ;;  %v5440_v17 = vcombine.low %v1280_v21, %v1284_v12 }
 0x125   :  { %2039 = vmatpush1.bf16.msra.mxu0 %v5416_v36  ;;  %7439 = vst [vmem:[#allocation140_spill] sm:$0xff] %v5440_v17 }
 0x126   :  { %2082 = vmatpush1.bf16.msra.mxu1 %v5420_v63  ;;  %2040 = vmatprep.subr.bf16.mxu0 %v5422_v5 }
 0x127   :  { %2083 = vmatprep.subr.bf16.mxu1 %v5425_v1 }
 0x129   :  { %2041 = vmatpush1.bf16.msra.mxu0 %v5428_v53 }
 0x12a   :  { %2084 = vmatpush1.bf16.msra.mxu1 %v5432_v7  ;;  %2042 = vmatprep.subr.bf16.mxu0 %v5434_v19 }
 0x12b   :  { %2085 = vmatprep.subr.bf16.mxu1 %v5437_v9 }
 0x12d   :  { %2043 = vmatpush1.bf16.msra.mxu0 %v5440_v17 }
 0x12e   :  { %2086 = vmatpush1.bf16.msra.mxu1 %v5444_v22  ;;  %2202 = vmatprep.subr.bf16.mxu0 %v5007_v14 }
 0x12f   :  { %2245 = vmatprep.subr.bf16.mxu1 %v5009_v15 }
 0x130   :  { %2045 = vmatmul.mubr.bf16.vlgmr.msra.gmra.mrb[68].mxu0 %v7369_v59 }
 0x131   :  { %2088 = vmatmul.mubr.bf16.vlgmr.msra.gmra.mrb[68].mxu1 %v7369_v59  ;;  %2203 = vmatpush1.bf16.msra.mxu0 %v5035_v23  ;;  %v5462_v59 = vshrl.u32 %v170_v25, 7 }
 0x132   :  { %2246 = vmatpush1.bf16.msra.mxu1 %v5037_v24  ;;  %2204 = vmatprep.subr.bf16.mxu0 %v5039_v26 }
 0x133   :  { %2247 = vmatprep.subr.bf16.mxu1 %v5041_v27  ;;  %v180_v20 = vsub.s32 2, %v5462_v59  ;;  %v172_v16 = vsub.s32 0, %v5462_v59  ;;  %v184_v37 = vsub.s32 3, %v5462_v59  ;;  %v176_v12 = vsub.s32 1, %v5462_v59 }
 0x135   :  { %2205 = vmatpush1.bf16.msra.mxu0 %v5046_v32  ;;  %v5481_v21 = vrot.slane %v5476_v42, %v180_v20  ;;  %v5485_v25 = vrot.slane %v5476_v42, %v172_v16 }
 0x136   :  { %2248 = vmatpush1.bf16.msra.mxu1 %v5050_v33  ;;  %2206 = vmatprep.subr.bf16.mxu0 %v5052_v34 }
 0x137   :  { %2249 = vmatprep.subr.bf16.mxu1 %v5056_v35 }
 0x139   :  { %2207 = vmatpush1.bf16.msra.mxu0 %v5060_v39 }
 0x13a   :  { %2250 = vmatpush1.bf16.msra.mxu1 %v5064_v40  ;;  %2208 = vmatprep.subr.bf16.mxu0 %v5066_v41 }
 0x13b   :  { %2251 = vmatprep.subr.bf16.mxu1 %v5069_v43 }
 0x13d   :  { %2209 = vmatpush1.bf16.msra.mxu0 %v5074_v48  ;;  %v5493_v48 = vrot.slane %v5476_v42, %v176_v12 }
 0x13e   :  { %2252 = vmatpush1.bf16.msra.mxu1 %v5078_v49  ;;  %2210 = vmatprep.subr.bf16.mxu0 %v5080_v50  ;;  %v5488_v49 = vrot.slane %v5476_v42, %v184_v37 }
 0x13f   :  { %2253 = vmatprep.subr.bf16.mxu1 %v5084_v51 }
 0x141   :  { %2211 = vmatpush1.bf16.msra.mxu0 %v5088_v55 }
 0x142   :  { %2254 = vmatpush1.bf16.msra.mxu1 %v5092_v56  ;;  %2212 = vmatprep.subr.bf16.mxu0 %v5094_v57 }
 0x143   :  { %v612_v50 = vpop.f32.mrb[0].mxu0  ;;  %2255 = vmatprep.subr.bf16.mxu1 %v5097_v58  ;;  %v725_v51 = vpop.f32.mrb[0].mxu1 }
 0x144   :  { %v614_v20 = vpop.f32.mrb[1].mxu0  ;;  %v726_v55 = vadd.f32 %v725_v51, %v5481_v21  ;;  %v727_v16 = vpop.f32.mrb[1].mxu1  ;;  %v613_v37 = vadd.f32 %v612_v50, %v5485_v25 }
 0x145   :  { %v616_v43 = vpop.f32.mrb[2].mxu0  ;;  %2213 = vmatpush1.bf16.msra.mxu0 %v5102_v0  ;;  %v728_v57 = vadd.f32 %v727_v16, %v5488_v49  ;;  %v729_v40 = vpop.f32.mrb[2].mxu1  ;;  %v615_v12 = vadd.f32 %v614_v20, %v5493_v48 }
 0x146   :  { %v617_v56 = vadd.f32 %v616_v43, %v5485_v25  ;;  %v618_v41 = vpop.f32.mrb[3].mxu0  ;;  %2256 = vmatpush1.bf16.msra.mxu1 %v5106_v2  ;;  %2214 = vmatprep.subr.bf16.mxu0 %v5108_v3  ;;  %v730_v51 = vadd.f32 %v729_v40, %v5481_v21  ;;  %v731_v39 = vpop.f32.mrb[3].mxu1 }
 0x147   :  { %v619_v58 = vadd.f32 %v618_v41, %v5493_v48  ;;  %2257 = vmatprep.subr.bf16.mxu1 %v5112_v4  ;;  %v732_v43 = vadd.f32 %v731_v39, %v5488_v49 }
 0x148   :  { %v5507_v50 = vpack.c.bf16 %v617_v56, %v613_v37  ;;  %v5512_v16 = vpack.c.bf16 %v730_v51, %v726_v55 }
 0x149   :  { %v5510_v0 = vpack.c.bf16 %v619_v58, %v615_v12  ;;  %2215 = vmatpush1.bf16.msra.mxu0 %v5116_v8  ;;  %v5515_v3 = vpack.c.bf16 %v732_v43, %v728_v57 }
 0x14a   :  { %2258 = vmatpush1.bf16.msra.mxu1 %v5120_v10  ;;  %2216 = vmatprep.subr.bf16.mxu0 %v5122_v11 }
 0x14b   :  { %v622_v40 = vpop.f32.mrb[4].mxu0  ;;  %2259 = vmatprep.subr.bf16.mxu1 %v5125_v13 }
 0x14c   :  { %v623_v41 = vadd.f32 %v622_v40, %v5485_v25  ;;  %v624_v56 = vpop.f32.mrb[5].mxu0  ;;  %v735_v20 = vpop.f32.mrb[4].mxu1 }
 0x14d   :  { %v625_v39 = vadd.f32 %v624_v56, %v5493_v48  ;;  %v626_v58 = vpop.f32.mrb[6].mxu0  ;;  %v736_v55 = vadd.f32 %v735_v20, %v5481_v21  ;;  %v737_v37 = vpop.f32.mrb[5].mxu1  ;;  %2217 = vmatpush1.bf16.msra.mxu0 %v5130_v28 }
 0x14e   :  { %v627_v57 = vadd.f32 %v626_v58, %v5485_v25  ;;  %v628_v12 = vpop.f32.mrb[7].mxu0  ;;  %v738_v51 = vadd.f32 %v737_v37, %v5488_v49  ;;  %v739_v43 = vpop.f32.mrb[6].mxu1  ;;  %2260 = vmatpush1.bf16.msra.mxu1 %v5134_v29  ;;  %2218 = vmatprep.subr.bf16.mxu0 %v5136_v30 }
 0x14f   :  { %v629_v40 = vadd.f32 %v628_v12, %v5493_v48  ;;  %v740_v56 = vadd.f32 %v739_v43, %v5481_v21  ;;  %v741_v13 = vpop.f32.mrb[7].mxu1  ;;  %2261 = vmatprep.subr.bf16.mxu1 %v5140_v31 }
 0x150   :  { %v5531_v20 = vpack.c.bf16 %v627_v57, %v623_v41  ;;  %v742_v28 = vadd.f32 %v741_v13, %v5488_v49 }
 0x151   :  { %v5534_v58 = vpack.c.bf16 %v629_v40, %v625_v39  ;;  %v5536_v11 = vpack.c.bf16 %v740_v56, %v736_v55  ;;  %2219 = vmatpush1.bf16.msra.mxu0 %v5144_v38 }
 0x152   :  { %7441 = vst [vmem:[#allocation142_spill] sm:$0xff] %v5531_v20  ;;  %v5539_v37 = vpack.c.bf16 %v742_v28, %v738_v51  ;;  %2262 = vmatpush1.bf16.msra.mxu1 %v5148_v44  ;;  %2220 = vmatprep.subr.bf16.mxu0 %v5150_v45 }
 0x153   :  { %7442 = vst [vmem:[#allocation143_spill] sm:$0xff] %v5534_v58  ;;  %7443 = vst [vmem:[#allocation144_spill] sm:$0xff] %v5536_v11  ;;  %v632_v12 = vpop.f32.mrb[8].mxu0  ;;  %2263 = vmatprep.subr.bf16.mxu1 %v5153_v46 }
 0x154   :  { %7444 = vst [vmem:[#allocation145_spill] sm:$0xff] %v5539_v37  ;;  %v633_v41 = vadd.f32 %v632_v12, %v5485_v25  ;;  %v634_v57 = vpop.f32.mrb[9].mxu0  ;;  %v745_v43 = vpop.f32.mrb[8].mxu1 }
 0x155   :  { %v635_v13 = vadd.f32 %v634_v57, %v5493_v48  ;;  %v636_v39 = vpop.f32.mrb[10].mxu0  ;;  %v746_v55 = vadd.f32 %v745_v43, %v5481_v21  ;;  %v747_v40 = vpop.f32.mrb[9].mxu1  ;;  %2221 = vmatpush1.bf16.msra.mxu0 %v5158_v54 }
 0x156   :  { %v637_v28 = vadd.f32 %v636_v39, %v5485_v25  ;;  %v638_v51 = vpop.f32.mrb[11].mxu0  ;;  %v748_v56 = vadd.f32 %v747_v40, %v5488_v49  ;;  %v749_v37 = vpop.f32.mrb[10].mxu1  ;;  %2264 = vmatpush1.bf16.msra.mxu1 %v5162_v60  ;;  %2222 = vmatprep.subr.bf16.mxu0 %v5164_v61  ;;  %v7449_v61 = vld [vmem:[#allocation57_spill] sm:$0xff]  ;;  %v7451_v60 = vld [vmem:[#allocation59_spill] sm:$0xff] }
 0x157   :  { %v639_v12 = vadd.f32 %v638_v51, %v5493_v48  ;;  %v750_v57 = vadd.f32 %v749_v37, %v5481_v21  ;;  %v751_v58 = vpop.f32.mrb[11].mxu1  ;;  %2265 = vmatprep.subr.bf16.mxu1 %v5168_v62  ;;  %v7450_v51 = vld [vmem:[#allocation58_spill] sm:$0xff]  ;;  %v7463_v62 = vld [vmem:[#allocation67_spill] sm:$0xff] }
 0x158   :  { %v5555_v43 = vpack.c.bf16 %v637_v28, %v633_v41  ;;  %v752_v11 = vadd.f32 %v751_v58, %v5488_v49 }
 0x159   :  { %v5558_v39 = vpack.c.bf16 %v639_v12, %v635_v13  ;;  %v5560_v20 = vpack.c.bf16 %v750_v57, %v746_v55  ;;  %2223 = vmatpush1.bf16.msra.mxu0 %v5172_v6  ;;  %v7452_v57 = vld [vmem:[#allocation60_spill] sm:$0xff] }
 0x15a   :  { %7445 = vst [vmem:[#allocation146_spill] sm:$0xff] %v5555_v43  ;;  %v5563_v40 = vpack.c.bf16 %v752_v11, %v748_v56  ;;  %2266 = vmatpush1.bf16.msra.mxu1 %v7449_v61  ;;  %2224 = vmatprep.subr.bf16.mxu0 %v7450_v51  ;;  %v7455_v61 = vld [vmem:[#allocation63_spill] sm:$0xff] }
 0x15b   :  { %7446 = vst [vmem:[#allocation147_spill] sm:$0xff] %v5558_v39  ;;  %7447 = vst [vmem:[#allocation148_spill] sm:$0xff] %v5560_v20  ;;  %v642_v37 = vpop.f32.mrb[12].mxu0  ;;  %2267 = vmatprep.subr.bf16.mxu1 %v7451_v60  ;;  %v7453_v20 = vld [vmem:[#allocation61_spill] sm:$0xff]  ;;  %v7454_v60 = vld [vmem:[#allocation62_spill] sm:$0xff] }
 0x15c   :  { %7448 = vst [vmem:[#allocation149_spill] sm:$0xff] %v5563_v40  ;;  %v643_v41 = vadd.f32 %v642_v37, %v5485_v25  ;;  %v644_v28 = vpop.f32.mrb[13].mxu0  ;;  %v755_v43 = vpop.f32.mrb[12].mxu1 }
 0x15d   :  { %v645_v58 = vadd.f32 %v644_v28, %v5493_v48  ;;  %v646_v13 = vpop.f32.mrb[14].mxu0  ;;  %v756_v55 = vadd.f32 %v755_v43, %v5481_v21  ;;  %v757_v12 = vpop.f32.mrb[13].mxu1  ;;  %2225 = vmatpush1.bf16.msra.mxu0 %v7452_v57 }
 0x15e   :  { %v647_v11 = vadd.f32 %v646_v13, %v5485_v25  ;;  %v648_v56 = vpop.f32.mrb[15].mxu0  ;;  %v758_v40 = vadd.f32 %v757_v12, %v5488_v49  ;;  %v759_v39 = vpop.f32.mrb[14].mxu1  ;;  %2268 = vmatpush1.bf16.msra.mxu1 %v7453_v20  ;;  %2226 = vmatprep.subr.bf16.mxu0 %v7454_v60  ;;  %v7459_v12 = vld [vmem:[#allocation64_spill] sm:$0xff]  ;;  %v7461_v60 = vld [vmem:[#allocation65_spill] sm:$0xff] }
 0x15f   :  { %v649_v37 = vadd.f32 %v648_v56, %v5493_v48  ;;  %v760_v28 = vadd.f32 %v759_v39, %v5481_v21  ;;  %v761_v51 = vpop.f32.mrb[15].mxu1  ;;  %2269 = vmatprep.subr.bf16.mxu1 %v7455_v61  ;;  %v7462_v56 = vld [vmem:[#allocation66_spill] sm:$0xff]  ;;  %v7475_v61 = vld [vmem:[#allocation75_spill] sm:$0xff] }
 0x160   :  { %v5579_v43 = vpack.c.bf16 %v647_v11, %v643_v41  ;;  %v762_v57 = vadd.f32 %v761_v51, %v5488_v49 }
 0x161   :  { %v5582_v13 = vpack.c.bf16 %v649_v37, %v645_v58  ;;  %v5584_v6 = vpack.c.bf16 %v760_v28, %v756_v55  ;;  %2227 = vmatpush1.bf16.msra.mxu0 %v7459_v12  ;;  %v7464_v28 = vld [vmem:[#allocation68_spill] sm:$0xff] }
 0x162   :  { %7456 = vst [vmem:[#allocation150_spill] sm:$0xff] %v5579_v43  ;;  %v5587_v20 = vpack.c.bf16 %v762_v57, %v758_v40  ;;  %2270 = vmatpush1.bf16.msra.mxu1 %v7461_v60  ;;  %2228 = vmatprep.subr.bf16.mxu0 %v7462_v56  ;;  %v7467_v60 = vld [vmem:[#allocation71_spill] sm:$0xff] }
 0x163   :  { %7457 = vst [vmem:[#allocation151_spill] sm:$0xff] %v5582_v13  ;;  %7458 = vst [vmem:[#allocation152_spill] sm:$0xff] %v5584_v6  ;;  %v652_v39 = vpop.f32.mrb[16].mxu0  ;;  %2271 = vmatprep.subr.bf16.mxu1 %v7463_v62  ;;  %v7465_v6 = vld [vmem:[#allocation69_spill] sm:$0xff]  ;;  %v7466_v62 = vld [vmem:[#allocation70_spill] sm:$0xff] }
 0x164   :  { %7460 = vst [vmem:[#allocation153_spill] sm:$0xff] %v5587_v20  ;;  %v653_v41 = vadd.f32 %v652_v39, %v5485_v25  ;;  %v654_v11 = vpop.f32.mrb[17].mxu0  ;;  %v765_v43 = vpop.f32.mrb[16].mxu1 }
 0x165   :  { %v655_v51 = vadd.f32 %v654_v11, %v5493_v48  ;;  %v656_v58 = vpop.f32.mrb[18].mxu0  ;;  %v766_v55 = vadd.f32 %v765_v43, %v5481_v21  ;;  %v767_v37 = vpop.f32.mrb[17].mxu1  ;;  %2229 = vmatpush1.bf16.msra.mxu0 %v7464_v28 }
 0x166   :  { %v657_v40 = vadd.f32 %v656_v58, %v5485_v25  ;;  %v658_v57 = vpop.f32.mrb[19].mxu0  ;;  %v768_v20 = vadd.f32 %v767_v37, %v5488_v49  ;;  %v769_v13 = vpop.f32.mrb[18].mxu1  ;;  %2272 = vmatpush1.bf16.msra.mxu1 %v7465_v6  ;;  %2230 = vmatprep.subr.bf16.mxu0 %v7466_v62  ;;  %v7471_v37 = vld [vmem:[#allocation72_spill] sm:$0xff]  ;;  %v7473_v62 = vld [vmem:[#allocation73_spill] sm:$0xff] }
 0x167   :  { %v659_v39 = vadd.f32 %v658_v57, %v5493_v48  ;;  %v770_v11 = vadd.f32 %v769_v13, %v5481_v21  ;;  %v771_v56 = vpop.f32.mrb[19].mxu1  ;;  %2273 = vmatprep.subr.bf16.mxu1 %v7467_v60  ;;  %v7474_v57 = vld [vmem:[#allocation74_spill] sm:$0xff] }
 0x168   :  { %v5603_v43 = vpack.c.bf16 %v657_v40, %v653_v41  ;;  %v772_v28 = vadd.f32 %v771_v56, %v5488_v49 }
 0x169   :  { %v5606_v58 = vpack.c.bf16 %v659_v39, %v655_v51  ;;  %v5608_v12 = vpack.c.bf16 %v770_v11, %v766_v55  ;;  %2231 = vmatpush1.bf16.msra.mxu0 %v7471_v37  ;;  %v7476_v11 = vld [vmem:[#allocation76_spill] sm:$0xff] }
 0x16a   :  { %7468 = vst [vmem:[#allocation154_spill] sm:$0xff] %v5603_v43  ;;  %v5611_v6 = vpack.c.bf16 %v772_v28, %v768_v20  ;;  %2274 = vmatpush1.bf16.msra.mxu1 %v7473_v62  ;;  %2232 = vmatprep.subr.bf16.mxu0 %v7474_v57  ;;  %v7479_v62 = vld [vmem:[#allocation79_spill] sm:$0xff] }
 0x16b   :  { %7469 = vst [vmem:[#allocation155_spill] sm:$0xff] %v5606_v58  ;;  %7470 = vst [vmem:[#allocation156_spill] sm:$0xff] %v5608_v12  ;;  %v662_v13 = vpop.f32.mrb[20].mxu0  ;;  %2275 = vmatprep.subr.bf16.mxu1 %v7475_v61  ;;  %v7477_v12 = vld [vmem:[#allocation77_spill] sm:$0xff]  ;;  %v7478_v61 = vld [vmem:[#allocation78_spill] sm:$0xff] }
 0x16c   :  { %7472 = vst [vmem:[#allocation157_spill] sm:$0xff] %v5611_v6  ;;  %v663_v41 = vadd.f32 %v662_v13, %v5485_v25  ;;  %v664_v40 = vpop.f32.mrb[21].mxu0  ;;  %v775_v43 = vpop.f32.mrb[20].mxu1 }
 0x16d   :  { %v665_v56 = vadd.f32 %v664_v40, %v5493_v48  ;;  %v666_v51 = vpop.f32.mrb[22].mxu0  ;;  %v776_v55 = vadd.f32 %v775_v43, %v5481_v21  ;;  %v777_v39 = vpop.f32.mrb[21].mxu1  ;;  %2233 = vmatpush1.bf16.msra.mxu0 %v7476_v11 }
 0x16e   :  { %v667_v20 = vadd.f32 %v666_v51, %v5485_v25  ;;  %v668_v28 = vpop.f32.mrb[23].mxu0  ;;  %v778_v6 = vadd.f32 %v777_v39, %v5488_v49  ;;  %v779_v58 = vpop.f32.mrb[22].mxu1  ;;  %2276 = vmatpush1.bf16.msra.mxu1 %v7477_v12  ;;  %2288 = vmatprep.subr.bf16.mxu0 %v7478_v61 }
 0x16f   :  { %v669_v13 = vadd.f32 %v668_v28, %v5493_v48  ;;  %v780_v40 = vadd.f32 %v779_v58, %v5481_v21  ;;  %v781_v57 = vpop.f32.mrb[23].mxu1  ;;  %2331 = vmatprep.subr.bf16.mxu1 %v7479_v62 }
 0x170   :  { %v5627_v43 = vpack.c.bf16 %v667_v20, %v663_v41  ;;  %v782_v11 = vadd.f32 %v781_v57, %v5488_v49 }
 0x171   :  { %v5630_v51 = vpack.c.bf16 %v669_v13, %v665_v56  ;;  %v5632_v37 = vpack.c.bf16 %v780_v40, %v776_v55 }
 0x172   :  { %7480 = vst [vmem:[#allocation158_spill] sm:$0xff] %v5627_v43  ;;  %v5634_v39 = vpack.c.bf16 %v782_v11, %v778_v6 }
 0x173   :  { %7481 = vst [vmem:[#allocation159_spill] sm:$0xff] %v5630_v51  ;;  %7482 = vst [vmem:[#allocation160_spill] sm:$0xff] %v5632_v37  ;;  %v672_v12 = vpop.f32.mrb[24].mxu0 }
 0x174   :  { %7483 = vst [vmem:[#allocation161_spill] sm:$0xff] %v5634_v39  ;;  %v673_v61 = vadd.f32 %v672_v12, %v5485_v25  ;;  %v674_v60 = vpop.f32.mrb[25].mxu0  ;;  %v785_v28 = vpop.f32.mrb[24].mxu1 }
 0x175   :  { %v675_v58 = vadd.f32 %v674_v60, %v5493_v48  ;;  %v676_v54 = vpop.f32.mrb[26].mxu0  ;;  %v786_v62 = vadd.f32 %v785_v28, %v5481_v21  ;;  %v787_v41 = vpop.f32.mrb[25].mxu1 }
 0x176   :  { %v677_v20 = vadd.f32 %v676_v54, %v5485_v25  ;;  %v678_v57 = vpop.f32.mrb[27].mxu0  ;;  %v788_v56 = vadd.f32 %v787_v41, %v5488_v49  ;;  %v789_v55 = vpop.f32.mrb[26].mxu1 }
 0x177   :  { %v679_v6 = vadd.f32 %v678_v57, %v5493_v48  ;;  %v790_v11 = vadd.f32 %v789_v55, %v5481_v21  ;;  %v791_v13 = vpop.f32.mrb[27].mxu1  ;;  %v188_v57 = vsub.s32 4, %v5462_v59 }
 0x178   :  { %v5643_v12 = vpack.c.bf16 %v677_v20, %v673_v61  ;;  %v792_v40 = vadd.f32 %v791_v13, %v5488_v49 }
 0x179   :  { %v5646_v60 = vpack.c.bf16 %v679_v6, %v675_v58  ;;  %v5648_v39 = vpack.c.bf16 %v790_v11, %v786_v62  ;;  %v192_v58 = vsub.s32 5, %v5462_v59  ;;  %v196_v62 = vsub.s32 6, %v5462_v59 }
 0x17a   :  { %7484 = vst [vmem:[#allocation162_spill] sm:$0xff] %v5643_v12  ;;  %v5650_v28 = vpack.c.bf16 %v792_v40, %v788_v56  ;;  %v200_v40 = vsub.s32 7, %v5462_v59 }
 0x17b   :  { %7485 = vst [vmem:[#allocation163_spill] sm:$0xff] %v5646_v60  ;;  %7486 = vst [vmem:[#allocation164_spill] sm:$0xff] %v5648_v39  ;;  %v682_v54 = vpop.f32.mrb[28].mxu0  ;;  %v5667_v39 = vrot.slane %v5476_v42, %v188_v57  ;;  %v5677_v59 = vrot.slane %v5476_v42, %v196_v62 }
 0x17c   :  { %7487 = vst [vmem:[#allocation165_spill] sm:$0xff] %v5650_v28  ;;  %v683_v51 = vadd.f32 %v682_v54, %v5485_v25  ;;  %v684_v41 = vpop.f32.mrb[29].mxu0  ;;  %v795_v37 = vpop.f32.mrb[28].mxu1 }
 0x17d   :  { %v685_v55 = vadd.f32 %v684_v41, %v5493_v48  ;;  %v686_v43 = vpop.f32.mrb[30].mxu0  ;;  %v796_v61 = vadd.f32 %v795_v37, %v5481_v21  ;;  %v797_v20 = vpop.f32.mrb[29].mxu1 }
 0x17e   :  { %v687_v56 = vadd.f32 %v686_v43, %v5485_v25  ;;  %v688_v6 = vpop.f32.mrb[31].mxu0  ;;  %v798_v11 = vadd.f32 %v797_v20, %v5488_v49  ;;  %v799_v13 = vpop.f32.mrb[30].mxu1  ;;  %v5674_v43 = vrot.slane %v5476_v42, %v192_v58 }
 0x17f   :  { %v689_v54 = vadd.f32 %v688_v6, %v5493_v48  ;;  %v800_v41 = vadd.f32 %v799_v13, %v5481_v21  ;;  %v801_v28 = vpop.f32.mrb[31].mxu1  ;;  %v5682_v21 = vrot.slane %v5476_v42, %v200_v40 }
 0x180   :  { %v5663_v60 = vpack.c.bf16 %v687_v56, %v683_v51  ;;  %v802_v37 = vadd.f32 %v801_v28, %v5488_v49 }
 0x181   :  { %v5669_v12 = vpack.c.bf16 %v689_v54, %v685_v55  ;;  %v5671_v25 = vpack.c.bf16 %v800_v41, %v796_v61 }
 0x182   :  { %7488 = vst [vmem:[#allocation166_spill] sm:$0xff] %v5663_v60  ;;  %v5679_v48 = vpack.c.bf16 %v802_v37, %v798_v11 }
 0x183   :  { %7489 = vst [vmem:[#allocation167_spill] sm:$0xff] %v5669_v12  ;;  %7490 = vst [vmem:[#allocation168_spill] sm:$0xff] %v5671_v25  ;;  %v838_v51 = vpop.f32.mrb[32].mxu0 }
 0x184   :  { %7491 = vst [vmem:[#allocation169_spill] sm:$0xff] %v5679_v48  ;;  %v839_v49 = vadd.f32 %v838_v51, %v5667_v39  ;;  %v840_v28 = vpop.f32.mrb[33].mxu0  ;;  %v951_v57 = vpop.f32.mrb[32].mxu1 }
 0x185   :  { %v841_v55 = vadd.f32 %v840_v28, %v5674_v43  ;;  %v842_v61 = vpop.f32.mrb[34].mxu0  ;;  %v952_v20 = vadd.f32 %v951_v57, %v5677_v59  ;;  %v953_v58 = vpop.f32.mrb[33].mxu1 }
 0x186   :  { %v843_v56 = vadd.f32 %v842_v61, %v5667_v39  ;;  %v844_v62 = vpop.f32.mrb[35].mxu0  ;;  %v954_v6 = vadd.f32 %v953_v58, %v5682_v21  ;;  %v955_v11 = vpop.f32.mrb[34].mxu1 }
 0x187   :  { %v845_v42 = vadd.f32 %v844_v62, %v5674_v43  ;;  %v956_v13 = vadd.f32 %v955_v11, %v5677_v59  ;;  %v957_v40 = vpop.f32.mrb[35].mxu1 }
 0x188   :  { %v5691_v54 = vpack.c.bf16 %v843_v56, %v839_v49  ;;  %v958_v41 = vadd.f32 %v957_v40, %v5682_v21 }
 0x189   :  { %v5694_v37 = vpack.c.bf16 %v845_v42, %v841_v55  ;;  %v5696_v51 = vpack.c.bf16 %v956_v13, %v952_v20 }
 0x18a   :  { %7492 = vst [vmem:[#allocation170_spill] sm:$0xff] %v5691_v54  ;;  %v5698_v28 = vpack.c.bf16 %v958_v41, %v954_v6 }
 0x18b   :  { %7493 = vst [vmem:[#allocation171_spill] sm:$0xff] %v5694_v37  ;;  %7494 = vst [vmem:[#allocation172_spill] sm:$0xff] %v5696_v51  ;;  %v848_v57 = vpop.f32.mrb[36].mxu0 }
 0x18c   :  { %7495 = vst [vmem:[#allocation173_spill] sm:$0xff] %v5698_v28  ;;  %v849_v61 = vadd.f32 %v848_v57, %v5667_v39  ;;  %v850_v58 = vpop.f32.mrb[37].mxu0  ;;  %v961_v48 = vpop.f32.mrb[36].mxu1 }
 0x18d   :  { %v851_v62 = vadd.f32 %v850_v58, %v5674_v43  ;;  %v852_v12 = vpop.f32.mrb[38].mxu0  ;;  %v962_v11 = vadd.f32 %v961_v48, %v5677_v59  ;;  %v963_v49 = vpop.f32.mrb[37].mxu1 }
 0x18e   :  { %v853_v56 = vadd.f32 %v852_v12, %v5667_v39  ;;  %v854_v40 = vpop.f32.mrb[39].mxu0  ;;  %v964_v55 = vadd.f32 %v963_v49, %v5682_v21  ;;  %v965_v20 = vpop.f32.mrb[38].mxu1 }
 0x18f   :  { %v855_v6 = vadd.f32 %v854_v40, %v5674_v43  ;;  %v966_v42 = vadd.f32 %v965_v20, %v5677_v59  ;;  %v967_v13 = vpop.f32.mrb[39].mxu1 }
 0x190   :  { %v5707_v41 = vpack.c.bf16 %v853_v56, %v849_v61  ;;  %v968_v57 = vadd.f32 %v967_v13, %v5682_v21 }
 0x191   :  { %v5710_v58 = vpack.c.bf16 %v855_v6, %v851_v62  ;;  %v5712_v28 = vpack.c.bf16 %v966_v42, %v962_v11 }
 0x192   :  { %7496 = vst [vmem:[#allocation174_spill] sm:$0xff] %v5707_v41  ;;  %v5714_v48 = vpack.c.bf16 %v968_v57, %v964_v55 }
 0x193   :  { %7497 = vst [vmem:[#allocation175_spill] sm:$0xff] %v5710_v58  ;;  %7498 = vst [vmem:[#allocation176_spill] sm:$0xff] %v5712_v28  ;;  %v858_v12 = vpop.f32.mrb[40].mxu0 }
 0x194   :  { %7499 = vst [vmem:[#allocation177_spill] sm:$0xff] %v5714_v48  ;;  %v859_v37 = vadd.f32 %v858_v12, %v5667_v39  ;;  %v860_v49 = vpop.f32.mrb[41].mxu0  ;;  %v971_v51 = vpop.f32.mrb[40].mxu1 }
 0x195   :  { %v861_v40 = vadd.f32 %v860_v49, %v5674_v43  ;;  %v862_v54 = vpop.f32.mrb[42].mxu0  ;;  %v972_v20 = vadd.f32 %v971_v51, %v5677_v59  ;;  %v973_v61 = vpop.f32.mrb[41].mxu1 }
 0x196   :  { %v863_v56 = vadd.f32 %v862_v54, %v5667_v39  ;;  %v864_v13 = vpop.f32.mrb[43].mxu0  ;;  %v974_v62 = vadd.f32 %v973_v61, %v5682_v21  ;;  %v975_v11 = vpop.f32.mrb[42].mxu1 }
 0x197   :  { %v865_v55 = vadd.f32 %v864_v13, %v5674_v43  ;;  %v976_v6 = vadd.f32 %v975_v11, %v5677_v59  ;;  %v977_v42 = vpop.f32.mrb[43].mxu1 }
 0x198   :  { %v5723_v57 = vpack.c.bf16 %v863_v56, %v859_v37  ;;  %v978_v12 = vadd.f32 %v977_v42, %v5682_v21 }
 0x199   :  { %v5726_v49 = vpack.c.bf16 %v865_v55, %v861_v40  ;;  %v5728_v25 = vpack.c.bf16 %v976_v6, %v972_v20 }
 0x19a   :  { %7500 = vst [vmem:[#allocation178_spill] sm:$0xff] %v5723_v57  ;;  %v5730_v51 = vpack.c.bf16 %v978_v12, %v974_v62 }
 0x19b   :  { %7501 = vst [vmem:[#allocation179_spill] sm:$0xff] %v5726_v49  ;;  %7502 = vst [vmem:[#allocation180_spill] sm:$0xff] %v5728_v25  ;;  %v868_v54 = vpop.f32.mrb[44].mxu0 }
 0x19c   :  { %7503 = vst [vmem:[#allocation181_spill] sm:$0xff] %v5730_v51  ;;  %v869_v60 = vadd.f32 %v868_v54, %v5667_v39  ;;  %v870_v61 = vpop.f32.mrb[45].mxu0  ;;  %v981_v48 = vpop.f32.mrb[44].mxu1 }
 0x19d   :  { %v871_v13 = vadd.f32 %v870_v61, %v5674_v43  ;;  %v872_v58 = vpop.f32.mrb[46].mxu0  ;;  %v982_v11 = vadd.f32 %v981_v48, %v5677_v59  ;;  %v983_v37 = vpop.f32.mrb[45].mxu1 }
 0x19e   :  { %v873_v56 = vadd.f32 %v872_v58, %v5667_v39  ;;  %v874_v42 = vpop.f32.mrb[47].mxu0  ;;  %v984_v40 = vadd.f32 %v983_v37, %v5682_v21  ;;  %v985_v20 = vpop.f32.mrb[46].mxu1 }
 0x19f   :  { %v875_v62 = vadd.f32 %v874_v42, %v5674_v43  ;;  %v986_v55 = vadd.f32 %v985_v20, %v5677_v59  ;;  %v987_v6 = vpop.f32.mrb[47].mxu1 }
 0x1a0   :  { %v5739_v12 = vpack.c.bf16 %v873_v56, %v869_v60  ;;  %v988_v54 = vadd.f32 %v987_v6, %v5682_v21 }
 0x1a1   :  { %v5742_v61 = vpack.c.bf16 %v875_v62, %v871_v13  ;;  %v5744_v28 = vpack.c.bf16 %v986_v55, %v982_v11 }
 0x1a2   :  { %7504 = vst [vmem:[#allocation182_spill] sm:$0xff] %v5739_v12  ;;  %v5746_v48 = vpack.c.bf16 %v988_v54, %v984_v40 }
 0x1a3   :  { %7505 = vst [vmem:[#allocation183_spill] sm:$0xff] %v5742_v61  ;;  %7506 = vst [vmem:[#allocation184_spill] sm:$0xff] %v5744_v28  ;;  %v878_v58 = vpop.f32.mrb[48].mxu0 }
 0x1a4   :  { %7507 = vst [vmem:[#allocation185_spill] sm:$0xff] %v5746_v48  ;;  %v879_v41 = vadd.f32 %v878_v58, %v5667_v39  ;;  %v880_v37 = vpop.f32.mrb[49].mxu0  ;;  %v991_v51 = vpop.f32.mrb[48].mxu1 }
 0x1a5   :  { %v881_v42 = vadd.f32 %v880_v37, %v5674_v43  ;;  %v882_v49 = vpop.f32.mrb[50].mxu0  ;;  %v992_v20 = vadd.f32 %v991_v51, %v5677_v59  ;;  %v993_v60 = vpop.f32.mrb[49].mxu1 }
 0x1a6   :  { %v883_v56 = vadd.f32 %v882_v49, %v5667_v39  ;;  %v884_v6 = vpop.f32.mrb[51].mxu0  ;;  %v994_v13 = vadd.f32 %v993_v60, %v5682_v21  ;;  %v995_v11 = vpop.f32.mrb[50].mxu1 }
 0x1a7   :  { %v885_v40 = vadd.f32 %v884_v6, %v5674_v43  ;;  %v996_v62 = vadd.f32 %v995_v11, %v5677_v59  ;;  %v997_v55 = vpop.f32.mrb[51].mxu1 }
 0x1a8   :  { %v5755_v54 = vpack.c.bf16 %v883_v56, %v879_v41  ;;  %v998_v58 = vadd.f32 %v997_v55, %v5682_v21 }
 0x1a9   :  { %v5758_v37 = vpack.c.bf16 %v885_v40, %v881_v42  ;;  %v5760_v25 = vpack.c.bf16 %v996_v62, %v992_v20 }
 0x1aa   :  { %7508 = vst [vmem:[#allocation186_spill] sm:$0xff] %v5755_v54  ;;  %v5762_v51 = vpack.c.bf16 %v998_v58, %v994_v13 }
 0x1ab   :  { %7509 = vst [vmem:[#allocation187_spill] sm:$0xff] %v5758_v37  ;;  %7510 = vst [vmem:[#allocation188_spill] sm:$0xff] %v5760_v25  ;;  %v888_v49 = vpop.f32.mrb[52].mxu0 }
 0x1ac   :  { %7511 = vst [vmem:[#allocation189_spill] sm:$0xff] %v5762_v51  ;;  %v889_v57 = vadd.f32 %v888_v49, %v5667_v39  ;;  %v890_v60 = vpop.f32.mrb[53].mxu0  ;;  %v1001_v48 = vpop.f32.mrb[52].mxu1 }
 0x1ad   :  { %v891_v6 = vadd.f32 %v890_v60, %v5674_v43  ;;  %v892_v61 = vpop.f32.mrb[54].mxu0  ;;  %v1002_v11 = vadd.f32 %v1001_v48, %v5677_v59  ;;  %v1003_v41 = vpop.f32.mrb[53].mxu1 }
 0x1ae   :  { %v893_v56 = vadd.f32 %v892_v61, %v5667_v39  ;;  %v894_v55 = vpop.f32.mrb[55].mxu0  ;;  %v1004_v42 = vadd.f32 %v1003_v41, %v5682_v21  ;;  %v1005_v20 = vpop.f32.mrb[54].mxu1 }
 0x1af   :  { %v895_v13 = vadd.f32 %v894_v55, %v5674_v43  ;;  %v1006_v40 = vadd.f32 %v1005_v20, %v5677_v59  ;;  %v1007_v62 = vpop.f32.mrb[55].mxu1 }
 0x1b0   :  { %v5771_v58 = vpack.c.bf16 %v893_v56, %v889_v57  ;;  %v1008_v49 = vadd.f32 %v1007_v62, %v5682_v21 }
 0x1b1   :  { %v5774_v60 = vpack.c.bf16 %v895_v13, %v891_v6  ;;  %v5776_v28 = vpack.c.bf16 %v1006_v40, %v1002_v11 }
 0x1b2   :  { %7512 = vst [vmem:[#allocation190_spill] sm:$0xff] %v5771_v58  ;;  %v5778_v48 = vpack.c.bf16 %v1008_v49, %v1004_v42 }
 0x1b3   :  { %7513 = vst [vmem:[#allocation191_spill] sm:$0xff] %v5774_v60  ;;  %7514 = vst [vmem:[#allocation192_spill] sm:$0xff] %v5776_v28  ;;  %v898_v61 = vpop.f32.mrb[56].mxu0 }
 0x1b4   :  { %7515 = vst [vmem:[#allocation193_spill] sm:$0xff] %v5778_v48  ;;  %v899_v12 = vadd.f32 %v898_v61, %v5667_v39  ;;  %v900_v41 = vpop.f32.mrb[57].mxu0  ;;  %v1011_v51 = vpop.f32.mrb[56].mxu1 }
 0x1b5   :  { %v901_v55 = vadd.f32 %v900_v41, %v5674_v43  ;;  %v902_v37 = vpop.f32.mrb[58].mxu0  ;;  %v1012_v20 = vadd.f32 %v1011_v51, %v5677_v59  ;;  %v1013_v57 = vpop.f32.mrb[57].mxu1 }
 0x1b6   :  { %v903_v56 = vadd.f32 %v902_v37, %v5667_v39  ;;  %v904_v62 = vpop.f32.mrb[59].mxu0  ;;  %v1014_v6 = vadd.f32 %v1013_v57, %v5682_v21  ;;  %v1015_v11 = vpop.f32.mrb[58].mxu1 }
 0x1b7   :  { %v905_v42 = vadd.f32 %v904_v62, %v5674_v43  ;;  %v1016_v13 = vadd.f32 %v1015_v11, %v5677_v59  ;;  %v1017_v40 = vpop.f32.mrb[59].mxu1 }
 0x1b8   :  { %v5787_v49 = vpack.c.bf16 %v903_v56, %v899_v12  ;;  %v1018_v61 = vadd.f32 %v1017_v40, %v5682_v21 }
 0x1b9   :  { %v5790_v41 = vpack.c.bf16 %v905_v42, %v901_v55  ;;  %v5792_v25 = vpack.c.bf16 %v1016_v13, %v1012_v20 }
 0x1ba   :  { %7516 = vst [vmem:[#allocation194_spill] sm:$0xff] %v5787_v49  ;;  %v5794_v51 = vpack.c.bf16 %v1018_v61, %v1014_v6 }
 0x1bb   :  { %7517 = vst [vmem:[#allocation195_spill] sm:$0xff] %v5790_v41  ;;  %7518 = vst [vmem:[#allocation196_spill] sm:$0xff] %v5792_v25  ;;  %v908_v37 = vpop.f32.mrb[60].mxu0 }
 0x1bc   :  { %7519 = vst [vmem:[#allocation197_spill] sm:$0xff] %v5794_v51  ;;  %v910_v54 = vpop.f32.mrb[61].mxu0  ;;  %v1021_v48 = vpop.f32.mrb[60].mxu1  ;;  %v909_v11 = vadd.f32 %v908_v37, %v5667_v39 }
 0x1bd   :  { %v912_v57 = vpop.f32.mrb[62].mxu0  ;;  %v1022_v60 = vadd.f32 %v1021_v48, %v5677_v59  ;;  %v1023_v62 = vpop.f32.mrb[61].mxu1  ;;  %v911_v20 = vadd.f32 %v910_v54, %v5674_v43  ;;  %v2107_v54 = vunpack.c.l.bf16 %v5512_v16 }
 0x1be   :  { %v913_v12 = vadd.f32 %v912_v57, %v5667_v39  ;;  %v914_v56 = vpop.f32.mrb[63].mxu0  ;;  %v1024_v40 = vadd.f32 %v1023_v62, %v5682_v21  ;;  %v1025_v55 = vpop.f32.mrb[62].mxu1  ;;  %v2105_v57 = vunpack.c.l.bf16 %v5507_v50 }
 0x1bf   :  { %v915_v6 = vadd.f32 %v914_v56, %v5674_v43  ;;  %v1026_v42 = vadd.f32 %v1025_v55, %v5677_v59  ;;  %v1027_v13 = vpop.f32.mrb[63].mxu1  ;;  %v2106_v43 = vunpack.c.l.bf16 %v5510_v0 }
 0x1c0   :  { %v5803_v61 = vpack.c.bf16 %v913_v12, %v909_v11  ;;  %v1028_v48 = vadd.f32 %v1027_v13, %v5682_v21  ;;  %v2108_v11 = vunpack.c.l.bf16 %v5515_v3  ;;  %v2109_v21 = vunpack.c.h.bf16 %v5507_v50 }
 0x1c1   :  { %v5806_v28 = vpack.c.bf16 %v915_v6, %v911_v20  ;;  %v5808_v37 = vpack.c.bf16 %v1026_v42, %v1022_v60  ;;  %v2110_v42 = vunpack.c.h.bf16 %v5510_v0 }
 0x1c2   :  { %v5810_v39 = vpack.c.bf16 %v1028_v48, %v1024_v40  ;;  %v2111_v40 = vunpack.c.h.bf16 %v5512_v16 }
 0x1c3   :  { %v1960_v62 = vpop.f32.mrb[64].mxu0 }
 0x1c4   :  { %v2113_v56 = vadd.f32 %v2105_v57, %v1960_v62  ;;  %v2003_v59 = vpop.f32.mrb[64].mxu1  ;;  %v1962_v55 = vpop.f32.mrb[65].mxu0  ;;  %v2112_v57 = vunpack.c.h.bf16 %v5515_v3 }
 0x1c5   :  { %v2115_v12 = vadd.f32 %v2107_v54, %v2003_v59  ;;  %v2114_v20 = vadd.f32 %v2106_v43, %v1962_v55  ;;  %v2005_v60 = vpop.f32.mrb[65].mxu1  ;;  %v1964_v6 = vpop.f32.mrb[66].mxu0 }
 0x1c6   :  { %v5819_v13 = vadd.f32 %v2108_v11, %v2005_v60  ;;  %v2117_v48 = vadd.f32 %v2109_v21, %v1964_v6  ;;  %v2007_v58 = vpop.f32.mrb[66].mxu1  ;;  %v1966_v51 = vpop.f32.mrb[67].mxu0 }
 0x1c7   :  { %v2119_v62 = vadd.f32 %v2111_v40, %v2007_v58  ;;  %v2118_v41 = vadd.f32 %v2110_v42, %v1966_v51  ;;  %v2009_v25 = vpop.f32.mrb[67].mxu1 }
 0x1c8   :  { %v2144_v49 = vpack.c.bf16 %v2117_v48, %v2113_v56  ;;  %v5822_v50 = vadd.f32 %v2112_v57, %v2009_v25  ;;  %v2130_v57 = vunpack.c.l.bf16 %v5808_v37 }
 0x1c9   :  { %v2146_v54 = vpack.c.bf16 %v2119_v62, %v2115_v12  ;;  %v2145_v43 = vpack.c.bf16 %v2118_v41, %v2114_v20  ;;  %v2129_v62 = vunpack.c.l.bf16 %v5806_v28 }
 0x1ca   :  { %v2148_v59 = vmul.bf16 1056980736, %v2144_v49  ;;  %v2147_v16 = vpack.c.bf16 %v5822_v50, %v5819_v13  ;;  %v2128_v13 = vunpack.c.l.bf16 %v5803_v61 }
 0x1cb   :  { %v2152_v0 = vmul.bf16 1056980736, %v2145_v43 }
 0x1cc   :  { %4601 = vtanh.bf16 %v2148_v59  ;;  %v2131_v59 = vunpack.c.l.bf16 %v5810_v39 }
 0x1cd   :  { %4603 = vtanh.bf16 %v2152_v0  ;;  %v2132_v0 = vunpack.c.h.bf16 %v5803_v61 }
 0x1ce   :  { %4605 = vtanh.bf16 %v2146_v54 }
 0x1d7   :  { %v4602_v55 = vpop.eup %4601 }
 0x1d8   :  { %v4604_v11 = vpop.eup %4603  ;;  %v2150_v21 = vmul.bf16 1056980736, %v4602_v55 }
 0x1d9   :  { %v2154_v3 = vmul.bf16 1056980736, %v4604_v11  ;;  %v4606_v51 = vpop.eup %4605 }
 0x1da   :  { %v2151_v58 = vadd.bf16 1056980736, %v2150_v21 }
 0x1db   :  { %v2155_v60 = vadd.bf16 1056980736, %v2154_v3 }
 0x1dc   :  { %v2165_v56 = vmul.bf16 %v4606_v51, %v2151_v58  ;;  %v2134_v58 = vunpack.c.h.bf16 %v5808_v37  ;;  %v2133_v51 = vunpack.c.h.bf16 %v5806_v28 }
 0x1dd   :  { %v2161_v25 = vunpack.c.l.bf16 %v2155_v60  ;;  %v2162_v6 = vunpack.c.h.bf16 %v2155_v60 }
 0x1de   :  { %v2166_v12 = vunpack.c.l.bf16 %v2165_v56  ;;  %v2167_v41 = vunpack.c.h.bf16 %v2165_v56 }
 0x1df   :  { %v2163_v49 = vmul.f32 0.0, %v2161_v25  ;;  %v2164_v20 = vmul.f32 0.0, %v2162_v6 }
 0x1e1   :  { %v5826_v40 = vadd.f32 %v2166_v12, %v2163_v49  ;;  %v5828_v42 = vadd.f32 %v2167_v41, %v2164_v20  ;;  %v2135_v12 = vunpack.c.h.bf16 %v5810_v39 }
 0x203   :  { %v2046_v48 = vpop.f32.mrb[68].mxu0 }
 0x204   :  { %v2136_v50 = vadd.f32 %v2128_v13, %v2046_v48  ;;  %v2089_v54 = vpop.f32.mrb[68].mxu1  ;;  %v2048_v43 = vpop.f32.mrb[69].mxu0 }
 0x205   :  { %v2138_v55 = vadd.f32 %v2130_v57, %v2089_v54  ;;  %v2137_v11 = vadd.f32 %v2129_v62, %v2048_v43  ;;  %v2091_v21 = vpop.f32.mrb[69].mxu1  ;;  %v2050_v3 = vpop.f32.mrb[70].mxu0 }
 0x206   :  { %v2139_v60 = vadd.f32 %v2131_v59, %v2091_v21  ;;  %v2140_v56 = vadd.f32 %v2132_v0, %v2050_v3  ;;  %v2093_v25 = vpop.f32.mrb[70].mxu1  ;;  %v2052_v6 = vpop.f32.mrb[71].mxu0  ;;  %v2157_v3 = vmul.bf16 1056980736, %v2147_v16 }
 0x207   :  { %v2142_v41 = vadd.f32 %v2134_v58, %v2093_v25  ;;  %v2141_v49 = vadd.f32 %v2133_v51, %v2052_v6  ;;  %v2095_v20 = vpop.f32.mrb[71].mxu1 }
 0x208   :  { %v2173_v13 = vpack.c.bf16 %v2140_v56, %v2136_v50  ;;  %v2143_v48 = vadd.f32 %v2135_v12, %v2095_v20  ;;  %v2170_v12 = vpack.c.bf16 %v5828_v42, %v5826_v40 }
 0x209   :  { %v2175_v61 = vpack.c.bf16 %v2142_v41, %v2138_v55  ;;  %v2174_v57 = vpack.c.bf16 %v2141_v49, %v2137_v11 }
 0x20a   :  { %v2177_v62 = vmul.bf16 1056980736, %v2173_v13  ;;  %v2176_v54 = vpack.c.bf16 %v2143_v48, %v2139_v60 }
 0x20b   :  { %v2181_v43 = vmul.bf16 1056980736, %v2174_v57 }
 0x20c   :  { %4607 = vtanh.bf16 %v2177_v62  ;;  %v2186_v21 = vmul.bf16 1056980736, %v2176_v54 }
 0x20d   :  { %4609 = vtanh.bf16 %v2181_v43 }
 0x20e   :  { %4611 = vtanh.bf16 %v2175_v61 }
 0x20f   :  { %4613 = vtanh.bf16 %v2186_v21  ;;  %v7522_v21 = vld [vmem:[#allocation82_spill] sm:$0xff] }
 0x210   :  { %4615 = vtanh.bf16 %v2157_v3  ;;  %v7523_v3 = vld [vmem:[#allocation83_spill] sm:$0xff] }
 0x211   :  { %4617 = vtanh.bf16 %v2170_v12  ;;  %v7534_v12 = vld [vmem:[#allocation94_spill] sm:$0xff] }
 0x217   :  { %v4608_v28 = vpop.eup %4607 }
 0x218   :  { %v4610_v37 = vpop.eup %4609  ;;  %v2179_v59 = vmul.bf16 1056980736, %v4608_v28 }
 0x219   :  { %v2183_v0 = vmul.bf16 1056980736, %v4610_v37  ;;  %v4612_v58 = vpop.eup %4611 }
 0x21a   :  { %v2180_v39 = vadd.bf16 1056980736, %v2179_v59  ;;  %v4614_v20 = vpop.eup %4613  ;;  %v7520_v59 = vld [vmem:[#allocation80_spill] sm:$0xff] }
 0x21b   :  { %v2184_v51 = vadd.bf16 1056980736, %v2183_v0  ;;  %v4616_v13 = vpop.eup %4615  ;;  %v2188_v48 = vmul.bf16 1056980736, %v4614_v20  ;;  %v7521_v0 = vld [vmem:[#allocation81_spill] sm:$0xff]  ;;  %v7536_v20 = vld [vmem:[#allocation96_spill] sm:$0xff] }
 0x21c   :  { %v2194_v25 = vmul.bf16 %v4612_v58, %v2180_v39  ;;  %v2159_v61 = vmul.bf16 1056980736, %v4616_v13  ;;  %v4618_v57 = vpop.eup %4617  ;;  %v7524_v39 = vld [vmem:[#allocation84_spill] sm:$0xff]  ;;  %v7525_v58 = vld [vmem:[#allocation85_spill] sm:$0xff] }
 0x21d   :  { %v2190_v50 = vunpack.c.l.bf16 %v2184_v51  ;;  %v2191_v56 = vunpack.c.h.bf16 %v2184_v51  ;;  %v2189_v62 = vadd.bf16 1056980736, %v2188_v48  ;;  %v7526_v51 = vld [vmem:[#allocation86_spill] sm:$0xff]  ;;  %v7537_v13 = vld [vmem:[#allocation97_spill] sm:$0xff] }
 0x21e   :  { %v2195_v55 = vunpack.c.l.bf16 %v2194_v25  ;;  %v2196_v11 = vunpack.c.h.bf16 %v2194_v25  ;;  %v2160_v43 = vadd.bf16 1056980736, %v2159_v61  ;;  %v7527_v25 = vld [vmem:[#allocation87_spill] sm:$0xff]  ;;  %v7538_v48 = vld [vmem:[#allocation98_spill] sm:$0xff] }
 0x21f   :  { %v2192_v60 = vmul.f32 0.0, %v2190_v50  ;;  %v2193_v6 = vmul.f32 0.0, %v2191_v56  ;;  %v7528_v50 = vld [vmem:[#allocation88_spill] sm:$0xff]  ;;  %v7529_v56 = vld [vmem:[#allocation89_spill] sm:$0xff]  ;;  %v7539_v61 = vld [vmem:[#allocation99_spill] sm:$0xff] }
 0x220   :  { %v5846_v37 = vmul.bf16 %v4618_v57, %v2160_v43  ;;  %v7540_v57 = vld [vmem:[#allocation100_spill] sm:$0xff]  ;;  %v7543_v43 = vld [vmem:[#allocation103_spill] sm:$0xff] }
 0x221   :  { %v5840_v41 = vadd.f32 %v2195_v55, %v2192_v60  ;;  %v5842_v49 = vadd.f32 %v2196_v11, %v2193_v6  ;;  %v7530_v55 = vld [vmem:[#allocation90_spill] sm:$0xff]  ;;  %v7531_v11 = vld [vmem:[#allocation91_spill] sm:$0xff]  ;;  %v7532_v60 = vld [vmem:[#allocation92_spill] sm:$0xff] }
 0x222   :  { %v7533_v6 = vld [vmem:[#allocation93_spill] sm:$0xff] }
 0x223   :  { %v2199_v16 = vpack.c.bf16 %v5842_v49, %v5840_v41 }
 0x225   :  { %4619 = vtanh.bf16 %v2199_v16  ;;  %v7535_v16 = vld [vmem:[#allocation95_spill] sm:$0xff] }
 0x230   :  { %v4620_v54 = vpop.eup %4619 }
 0x231   :  { %v2201_v28 = vmul.bf16 %v4620_v54, %v2189_v62  ;;  %v7541_v62 = vld [vmem:[#allocation101_spill] sm:$0xff]  ;;  %v7542_v54 = vld [vmem:[#allocation102_spill] sm:$0xff] }
 0x233   :  { %2234 = vmatprep.mubr.bf16.mxu0 %v2201_v28  ;;  %2277 = vmatprep.mubr.bf16.mxu1 %v2201_v28 }
 0x234   :  { %2235 = vmatmul.mubr.bf16.vlgmr.msra.gmra.mrb[72].mxu0 %v5846_v37  ;;  %2278 = vmatmul.mubr.bf16.vlgmr.msra.gmra.mrb[72].mxu1 %v5846_v37 }
 0x235   :  { %2289 = vmatpush1.bf16.msra.mxu0 %v7520_v59  ;;  %2332 = vmatpush1.bf16.msra.mxu1 %v7521_v0 }
 0x236   :  { %2320 = vmatprep.mubr.bf16.mxu0 %v2201_v28  ;;  %2363 = vmatprep.mubr.bf16.mxu1 %v2201_v28  ;;  %v7544_v28 = vld [vmem:[#allocation104_spill] sm:$0xff] }
 0x237   :  { %2290 = vmatprep.subr.bf16.mxu0 %v7522_v21  ;;  %2333 = vmatprep.subr.bf16.mxu1 %v7523_v3 }
 0x239   :  { %2291 = vmatpush1.bf16.msra.mxu0 %v7524_v39  ;;  %2334 = vmatpush1.bf16.msra.mxu1 %v7525_v58 }
 0x23a   :  { %2292 = vmatprep.subr.bf16.mxu0 %v7526_v51  ;;  %2335 = vmatprep.subr.bf16.mxu1 %v7527_v25 }
 0x23d   :  { %2293 = vmatpush1.bf16.msra.mxu0 %v7528_v50  ;;  %2336 = vmatpush1.bf16.msra.mxu1 %v7529_v56 }
 0x23e   :  { %2294 = vmatprep.subr.bf16.mxu0 %v7530_v55  ;;  %2337 = vmatprep.subr.bf16.mxu1 %v7531_v11 }
 0x241   :  { %2295 = vmatpush1.bf16.msra.mxu0 %v7532_v60  ;;  %2338 = vmatpush1.bf16.msra.mxu1 %v7533_v6 }
 0x242   :  { %2296 = vmatprep.subr.bf16.mxu0 %v7534_v12  ;;  %2339 = vmatprep.subr.bf16.mxu1 %v7535_v16  ;;  %v7545_v12 = vld [vmem:[#allocation105_spill] sm:$0xff]  ;;  %v7546_v16 = vld [vmem:[#allocation106_spill] sm:$0xff] }
 0x245   :  { %2297 = vmatpush1.bf16.msra.mxu0 %v7536_v20  ;;  %2340 = vmatpush1.bf16.msra.mxu1 %v7537_v13  ;;  %v7547_v20 = vld [vmem:[#allocation107_spill] sm:$0xff]  ;;  %v7548_v13 = vld [vmem:[#allocation108_spill] sm:$0xff] }
 0x246   :  { %2298 = vmatprep.subr.bf16.mxu0 %v7538_v48  ;;  %2341 = vmatprep.subr.bf16.mxu1 %v7539_v61  ;;  %v7549_v48 = vld [vmem:[#allocation109_spill] sm:$0xff]  ;;  %v7550_v61 = vld [vmem:[#allocation110_spill] sm:$0xff] }
 0x249   :  { %2299 = vmatpush1.bf16.msra.mxu0 %v7540_v57  ;;  %2342 = vmatpush1.bf16.msra.mxu1 %v7541_v62  ;;  %v7551_v57 = vld [vmem:[#allocation111_spill] sm:$0xff]  ;;  %v7552_v62 = vld [vmem:[#allocation112_spill] sm:$0xff] }
 0x24a   :  { %2300 = vmatprep.subr.bf16.mxu0 %v7542_v54  ;;  %2343 = vmatprep.subr.bf16.mxu1 %v7543_v43  ;;  %v7553_v54 = vld [vmem:[#allocation113_spill] sm:$0xff]  ;;  %v7554_v43 = vld [vmem:[#allocation114_spill] sm:$0xff] }
 0x24d   :  { %2301 = vmatpush1.bf16.msra.mxu0 %v7544_v28  ;;  %2344 = vmatpush1.bf16.msra.mxu1 %v7545_v12  ;;  %v7555_v28 = vld [vmem:[#allocation115_spill] sm:$0xff]  ;;  %v7556_v12 = vld [vmem:[#allocation116_spill] sm:$0xff] }
 0x24e   :  { %2302 = vmatprep.subr.bf16.mxu0 %v7546_v16  ;;  %2345 = vmatprep.subr.bf16.mxu1 %v7547_v20  ;;  %v7557_v16 = vld [vmem:[#allocation117_spill] sm:$0xff]  ;;  %v7558_v20 = vld [vmem:[#allocation118_spill] sm:$0xff] }
 0x251   :  { %2303 = vmatpush1.bf16.msra.mxu0 %v7548_v13  ;;  %2346 = vmatpush1.bf16.msra.mxu1 %v7549_v48  ;;  %v7559_v13 = vld [vmem:[#allocation119_spill] sm:$0xff]  ;;  %v7560_v48 = vld [vmem:[#allocation120_spill] sm:$0xff] }
 0x252   :  { %2304 = vmatprep.subr.bf16.mxu0 %v7550_v61  ;;  %2347 = vmatprep.subr.bf16.mxu1 %v7551_v57  ;;  %v7561_v61 = vld [vmem:[#allocation121_spill] sm:$0xff]  ;;  %v7562_v57 = vld [vmem:[#allocation122_spill] sm:$0xff] }
 0x255   :  { %2305 = vmatpush1.bf16.msra.mxu0 %v7552_v62  ;;  %2348 = vmatpush1.bf16.msra.mxu1 %v7553_v54  ;;  %v7563_v62 = vld [vmem:[#allocation123_spill] sm:$0xff]  ;;  %v7564_v54 = vld [vmem:[#allocation124_spill] sm:$0xff] }
 0x256   :  { %2306 = vmatprep.subr.bf16.mxu0 %v7554_v43  ;;  %2349 = vmatprep.subr.bf16.mxu1 %v7555_v28  ;;  %v7565_v43 = vld [vmem:[#allocation125_spill] sm:$0xff]  ;;  %v7566_v28 = vld [vmem:[#allocation126_spill] sm:$0xff] }
 0x259   :  { %2307 = vmatpush1.bf16.msra.mxu0 %v7556_v12  ;;  %2350 = vmatpush1.bf16.msra.mxu1 %v7557_v16  ;;  %v7567_v12 = vld [vmem:[#allocation127_spill] sm:$0xff] }
 0x25a   :  { %2308 = vmatprep.subr.bf16.mxu0 %v7558_v20  ;;  %2351 = vmatprep.subr.bf16.mxu1 %v7559_v13 }
 0x25d   :  { %2309 = vmatpush1.bf16.msra.mxu0 %v7560_v48  ;;  %2352 = vmatpush1.bf16.msra.mxu1 %v7561_v61  ;;  %v7568_v48 = vld [vmem:[#allocation131_spill] sm:$0xff] }
 0x25e   :  { %2310 = vmatprep.subr.bf16.mxu0 %v7562_v57  ;;  %2353 = vmatprep.subr.bf16.mxu1 %v7563_v62 }
 0x261   :  { %2311 = vmatpush1.bf16.msra.mxu0 %v7564_v54  ;;  %2354 = vmatpush1.bf16.msra.mxu1 %v7565_v43 }
 0x262   :  { %2312 = vmatprep.subr.bf16.mxu0 %v7566_v28  ;;  %2355 = vmatprep.subr.bf16.mxu1 %v7567_v12 }
 0x265   :  { %2313 = vmatpush1.bf16.msra.mxu0 %v5404_v18  ;;  %2356 = vmatpush1.bf16.msra.mxu1 %v5408_v47 }
 0x266   :  { %2314 = vmatprep.subr.bf16.mxu0 %v5410_v52  ;;  %2357 = vmatprep.subr.bf16.mxu1 %v7568_v48 }
 0x269   :  { %2315 = vmatpush1.bf16.msra.mxu0 %v5416_v36  ;;  %2358 = vmatpush1.bf16.msra.mxu1 %v5420_v63 }
 0x26a   :  { %2316 = vmatprep.subr.bf16.mxu0 %v5422_v5  ;;  %2359 = vmatprep.subr.bf16.mxu1 %v5425_v1 }
 0x26d   :  { %2317 = vmatpush1.bf16.msra.mxu0 %v5428_v53  ;;  %2360 = vmatpush1.bf16.msra.mxu1 %v5432_v7 }
 0x26e   :  { %2318 = vmatprep.subr.bf16.mxu0 %v5434_v19  ;;  %2361 = vmatprep.subr.bf16.mxu1 %v5437_v9 }
 0x271   :  { %2319 = vmatpush1.bf16.msra.mxu0 %v5440_v17  ;;  %2362 = vmatpush1.bf16.msra.mxu1 %v5444_v22 }
 0x272   :  { %2478 = vmatprep.subr.bf16.mxu0 %v5007_v14  ;;  %2521 = vmatprep.subr.bf16.mxu1 %v5009_v15  ;;  %v7569_v15 = vld [vmem:[#allocation24_spill] sm:$0xff]  ;;  %v7570_v14 = vld [vmem:[#allocation25_spill] sm:$0xff] }
 0x274   :  { %2321 = vmatmul.mubr.bf16.vlgmr.msra.gmra.mrb[76].mxu0 %v5846_v37  ;;  %2364 = vmatmul.mubr.bf16.vlgmr.msra.gmra.mrb[76].mxu1 %v5846_v37  ;;  %v7571_v37 = vld [vmem:[#allocation26_spill] sm:$0xff] }
 0x275   :  { %2479 = vmatpush1.bf16.msra.mxu0 %v5035_v23  ;;  %2522 = vmatpush1.bf16.msra.mxu1 %v5037_v24  ;;  %v7572_v23 = vld [vmem:[#allocation27_spill] sm:$0xff]  ;;  %v7573_v24 = vld [vmem:[#allocation28_spill] sm:$0xff] }
 0x276   :  { %2480 = vmatprep.subr.bf16.mxu0 %v5039_v26  ;;  %2523 = vmatprep.subr.bf16.mxu1 %v5041_v27  ;;  %v7574_v26 = vld [vmem:[#allocation29_spill] sm:$0xff]  ;;  %v7575_v27 = vld [vmem:[#allocation30_spill] sm:$0xff] }
 0x279   :  { %2481 = vmatpush1.bf16.msra.mxu0 %v5046_v32  ;;  %2524 = vmatpush1.bf16.msra.mxu1 %v5050_v33  ;;  %v7576_v32 = vld [vmem:[#allocation31_spill] sm:$0xff]  ;;  %v7577_v33 = vld [vmem:[#allocation32_spill] sm:$0xff] }
 0x27a   :  { %2482 = vmatprep.subr.bf16.mxu0 %v5052_v34  ;;  %2525 = vmatprep.subr.bf16.mxu1 %v5056_v35  ;;  %v7578_v34 = vld [vmem:[#allocation33_spill] sm:$0xff]  ;;  %v7579_v35 = vld [vmem:[#allocation34_spill] sm:$0xff] }
 0x27d   :  { %2483 = vmatpush1.bf16.msra.mxu0 %v7569_v15  ;;  %2526 = vmatpush1.bf16.msra.mxu1 %v7570_v14  ;;  %v7580_v15 = vld [vmem:[#allocation35_spill] sm:$0xff]  ;;  %v7581_v14 = vld [vmem:[#allocation36_spill] sm:$0xff] }
 0x27e   :  { %2484 = vmatprep.subr.bf16.mxu0 %v7571_v37  ;;  %2527 = vmatprep.subr.bf16.mxu1 %v7572_v23  ;;  %v7582_v23 = vld [vmem:[#allocation38_spill] sm:$0xff] }
 0x281   :  { %2485 = vmatpush1.bf16.msra.mxu0 %v7573_v24  ;;  %2528 = vmatpush1.bf16.msra.mxu1 %v7574_v26 }
 0x282   :  { %2486 = vmatprep.subr.bf16.mxu0 %v7575_v27  ;;  %2529 = vmatprep.subr.bf16.mxu1 %v7576_v32  ;;  %v7583_v32 = vld [vmem:[#allocation42_spill] sm:$0xff] }
 0x285   :  { %2487 = vmatpush1.bf16.msra.mxu0 %v7577_v33  ;;  %2530 = vmatpush1.bf16.msra.mxu1 %v7578_v34  ;;  %v7584_v33 = vld [vmem:[#allocation43_spill] sm:$0xff]  ;;  %v7585_v34 = vld [vmem:[#allocation44_spill] sm:$0xff] }
 0x286   :  { %2488 = vmatprep.subr.bf16.mxu0 %v7579_v35  ;;  %2531 = vmatprep.subr.bf16.mxu1 %v7580_v15 }
 0x289   :  { %2489 = vmatpush1.bf16.msra.mxu0 %v7581_v14  ;;  %2532 = vmatpush1.bf16.msra.mxu1 %v5106_v2  ;;  %v7617_v2 = vld [vmem:[#allocation145_spill] sm:$0xff] }
 0x28a   :  { %2490 = vmatprep.subr.bf16.mxu0 %v7582_v23  ;;  %2533 = vmatprep.subr.bf16.mxu1 %v5112_v4  ;;  %v7616_v23 = vld [vmem:[#allocation143_spill] sm:$0xff]  ;;  %v2388_v37 = vunpack.c.h.bf16 %v7617_v2 }
 0x28b   :  { %v2386_v24 = vunpack.c.h.bf16 %v7616_v23 }
 0x28d   :  { %2491 = vmatpush1.bf16.msra.mxu0 %v5116_v8  ;;  %2534 = vmatpush1.bf16.msra.mxu1 %v5120_v10  ;;  %v7586_v10 = vld [vmem:[#allocation52_spill] sm:$0xff] }
 0x28e   :  { %2492 = vmatprep.subr.bf16.mxu0 %v7583_v32  ;;  %2535 = vmatprep.subr.bf16.mxu1 %v7584_v33  ;;  %v7587_v32 = vld [vmem:[#allocation53_spill] sm:$0xff]  ;;  %v7588_v33 = vld [vmem:[#allocation54_spill] sm:$0xff]  ;;  %v7615_v8 = vld [vmem:[#allocation144_spill] sm:$0xff] }
 0x291   :  { %2493 = vmatpush1.bf16.msra.mxu0 %v7585_v34  ;;  %2536 = vmatpush1.bf16.msra.mxu1 %v5134_v29  ;;  %v7589_v34 = vld [vmem:[#allocation55_spill] sm:$0xff]  ;;  %v7590_v29 = vld [vmem:[#allocation56_spill] sm:$0xff] }
 0x292   :  { %2494 = vmatprep.subr.bf16.mxu0 %v5136_v30  ;;  %2537 = vmatprep.subr.bf16.mxu1 %v5140_v31  ;;  %v7591_v30 = vld [vmem:[#allocation57_spill] sm:$0xff]  ;;  %v7592_v31 = vld [vmem:[#allocation58_spill] sm:$0xff] }
 0x295   :  { %2495 = vmatpush1.bf16.msra.mxu0 %v5144_v38  ;;  %2538 = vmatpush1.bf16.msra.mxu1 %v5148_v44  ;;  %v7593_v38 = vld [vmem:[#allocation59_spill] sm:$0xff]  ;;  %v7594_v44 = vld [vmem:[#allocation60_spill] sm:$0xff] }
 0x296   :  { %2496 = vmatprep.subr.bf16.mxu0 %v5150_v45  ;;  %2539 = vmatprep.subr.bf16.mxu1 %v5153_v46  ;;  %v7595_v45 = vld [vmem:[#allocation61_spill] sm:$0xff]  ;;  %v7596_v46 = vld [vmem:[#allocation62_spill] sm:$0xff] }
 0x299   :  { %2497 = vmatpush1.bf16.msra.mxu0 %v7586_v10  ;;  %2540 = vmatpush1.bf16.msra.mxu1 %v7587_v32  ;;  %v7597_v10 = vld [vmem:[#allocation63_spill] sm:$0xff]  ;;  %v7598_v32 = vld [vmem:[#allocation64_spill] sm:$0xff] }
 0x29a   :  { %2498 = vmatprep.subr.bf16.mxu0 %v7588_v33  ;;  %2541 = vmatprep.subr.bf16.mxu1 %v7589_v34  ;;  %v7599_v33 = vld [vmem:[#allocation65_spill] sm:$0xff]  ;;  %v7600_v34 = vld [vmem:[#allocation66_spill] sm:$0xff] }
 0x29d   :  { %2499 = vmatpush1.bf16.msra.mxu0 %v7590_v29  ;;  %2542 = vmatpush1.bf16.msra.mxu1 %v7591_v30  ;;  %v7601_v29 = vld [vmem:[#allocation67_spill] sm:$0xff]  ;;  %v7602_v30 = vld [vmem:[#allocation68_spill] sm:$0xff] }
 0x29e   :  { %2500 = vmatprep.subr.bf16.mxu0 %v7592_v31  ;;  %2543 = vmatprep.subr.bf16.mxu1 %v7593_v38  ;;  %v7603_v31 = vld [vmem:[#allocation69_spill] sm:$0xff]  ;;  %v7604_v38 = vld [vmem:[#allocation70_spill] sm:$0xff] }
 0x2a1   :  { %2501 = vmatpush1.bf16.msra.mxu0 %v7594_v44  ;;  %2544 = vmatpush1.bf16.msra.mxu1 %v7595_v45  ;;  %v7605_v44 = vld [vmem:[#allocation71_spill] sm:$0xff]  ;;  %v7606_v45 = vld [vmem:[#allocation72_spill] sm:$0xff] }
 0x2a2   :  { %2502 = vmatprep.subr.bf16.mxu0 %v7596_v46  ;;  %2545 = vmatprep.subr.bf16.mxu1 %v7597_v10  ;;  %v7607_v46 = vld [vmem:[#allocation73_spill] sm:$0xff]  ;;  %v7608_v10 = vld [vmem:[#allocation74_spill] sm:$0xff] }
 0x2a5   :  { %2503 = vmatpush1.bf16.msra.mxu0 %v7598_v32  ;;  %2546 = vmatpush1.bf16.msra.mxu1 %v7599_v33  ;;  %v7609_v32 = vld [vmem:[#allocation75_spill] sm:$0xff]  ;;  %v7610_v33 = vld [vmem:[#allocation76_spill] sm:$0xff] }
 0x2a6   :  { %2504 = vmatprep.subr.bf16.mxu0 %v7600_v34  ;;  %2547 = vmatprep.subr.bf16.mxu1 %v7601_v29  ;;  %v7611_v34 = vld [vmem:[#allocation77_spill] sm:$0xff]  ;;  %v7612_v29 = vld [vmem:[#allocation78_spill] sm:$0xff] }
 0x2a9   :  { %2505 = vmatpush1.bf16.msra.mxu0 %v7602_v30  ;;  %2548 = vmatpush1.bf16.msra.mxu1 %v7603_v31  ;;  %v7613_v30 = vld [vmem:[#allocation79_spill] sm:$0xff]  ;;  %v7614_v31 = vld [vmem:[#allocation142_spill] sm:$0xff] }
 0x2aa   :  { %2506 = vmatprep.subr.bf16.mxu0 %v7604_v38  ;;  %2549 = vmatprep.subr.bf16.mxu1 %v7605_v44  ;;  %v2381_v38 = vunpack.c.l.bf16 %v7614_v31  ;;  %v2383_v44 = vunpack.c.l.bf16 %v7615_v8 }
 0x2ad   :  { %2507 = vmatpush1.bf16.msra.mxu0 %v7606_v45  ;;  %2550 = vmatpush1.bf16.msra.mxu1 %v7607_v46  ;;  %v2382_v46 = vunpack.c.l.bf16 %v7616_v23 }
 0x2ae   :  { %2508 = vmatprep.subr.bf16.mxu0 %v7608_v10  ;;  %2551 = vmatprep.subr.bf16.mxu1 %v7609_v32  ;;  %v2384_v10 = vunpack.c.l.bf16 %v7617_v2 }
 0x2b1   :  { %2509 = vmatpush1.bf16.msra.mxu0 %v7610_v33  ;;  %2552 = vmatpush1.bf16.msra.mxu1 %v7611_v34  ;;  %v2385_v34 = vunpack.c.h.bf16 %v7614_v31 }
 0x2b2   :  { %2564 = vmatprep.subr.bf16.mxu0 %v7612_v29  ;;  %2607 = vmatprep.subr.bf16.mxu1 %v7613_v30  ;;  %v2387_v29 = vunpack.c.h.bf16 %v7615_v8 }
 0x307   :  { %v2236_v4 = vpop.f32.mrb[72].mxu0  ;;  %v2279_v45 = vpop.f32.mrb[72].mxu1 }
 0x308   :  { %v2389_v14 = vadd.f32 %v2381_v38, %v2236_v4  ;;  %v2391_v32 = vadd.f32 %v2383_v44, %v2279_v45  ;;  %v2238_v15 = vpop.f32.mrb[73].mxu0  ;;  %v2281_v33 = vpop.f32.mrb[73].mxu1 }
 0x309   :  { %v2390_v35 = vadd.f32 %v2382_v46, %v2238_v15  ;;  %v5986_v30 = vadd.f32 %v2384_v10, %v2281_v33  ;;  %v2240_v27 = vpop.f32.mrb[74].mxu0  ;;  %v2283_v26 = vpop.f32.mrb[74].mxu1 }
 0x30a   :  { %v2393_v22 = vadd.f32 %v2385_v34, %v2240_v27  ;;  %v2395_v17 = vadd.f32 %v2387_v29, %v2283_v26  ;;  %v2242_v9 = vpop.f32.mrb[75].mxu0  ;;  %v2285_v4 = vpop.f32.mrb[75].mxu1 }
 0x30b   :  { %v2394_v38 = vadd.f32 %v2386_v24, %v2242_v9  ;;  %v5990_v44 = vadd.f32 %v2388_v37, %v2285_v4  ;;  %v7619_v4 = vld [vmem:[#allocation196_spill] sm:$0xff] }
 0x30c   :  { %v2420_v45 = vpack.c.bf16 %v2393_v22, %v2389_v14  ;;  %v2422_v31 = vpack.c.bf16 %v2395_v17, %v2391_v32  ;;  %v7618_v22 = vld [vmem:[#allocation194_spill] sm:$0xff] }
 0x30d   :  { %v2421_v19 = vpack.c.bf16 %v2394_v38, %v2390_v35  ;;  %v2423_v15 = vpack.c.bf16 %v5990_v44, %v5986_v30  ;;  %v2404_v37 = vunpack.c.l.bf16 %v7618_v22  ;;  %v2406_v38 = vunpack.c.l.bf16 %v7619_v4 }
 0x30e   :  { %v2424_v33 = vmul.bf16 1056980736, %v2420_v45 }
 0x30f   :  { %v2428_v8 = vmul.bf16 1056980736, %v2421_v19 }
 0x310   :  { %4621 = vtanh.bf16 %v2424_v33 }
 0x311   :  { %4623 = vtanh.bf16 %v2428_v8  ;;  %v7621_v8 = vld [vmem:[#allocation197_spill] sm:$0xff] }
 0x312   :  { %4625 = vtanh.bf16 %v2422_v31  ;;  %v7620_v31 = vld [vmem:[#allocation195_spill] sm:$0xff] }
 0x313   :  { %v2405_v33 = vunpack.c.l.bf16 %v7620_v31 }
 0x31b   :  { %v4622_v23 = vpop.eup %4621 }
 0x31c   :  { %v4624_v2 = vpop.eup %4623  ;;  %v2426_v27 = vmul.bf16 1056980736, %v4622_v23  ;;  %v2407_v23 = vunpack.c.l.bf16 %v7621_v8 }
 0x31d   :  { %v2430_v26 = vmul.bf16 1056980736, %v4624_v2  ;;  %v4626_v10 = vpop.eup %4625 }
 0x31e   :  { %v2427_v34 = vadd.bf16 1056980736, %v2426_v27 }
 0x31f   :  { %v2431_v24 = vadd.bf16 1056980736, %v2430_v26 }
 0x320   :  { %v2441_v29 = vmul.bf16 %v4626_v10, %v2427_v34  ;;  %v2410_v34 = vunpack.c.h.bf16 %v7619_v4 }
 0x321   :  { %v2437_v46 = vunpack.c.l.bf16 %v2431_v24  ;;  %v2438_v14 = vunpack.c.h.bf16 %v2431_v24 }
 0x322   :  { %v2442_v32 = vunpack.c.l.bf16 %v2441_v29  ;;  %v2443_v35 = vunpack.c.h.bf16 %v2441_v29 }
 0x323   :  { %v2439_v17 = vmul.f32 %v2437_v46, %v5826_v40  ;;  %v2440_v30 = vmul.f32 %v2438_v14, %v5828_v42  ;;  %v2408_v42 = vunpack.c.h.bf16 %v7618_v22  ;;  %v2409_v14 = vunpack.c.h.bf16 %v7620_v31 }
 0x325   :  { %v5996_v19 = vadd.f32 %v2442_v32, %v2439_v17  ;;  %v5998_v9 = vadd.f32 %v2443_v35, %v2440_v30  ;;  %v2411_v32 = vunpack.c.h.bf16 %v7621_v8 }
 0x347   :  { %v2322_v44 = vpop.f32.mrb[76].mxu0  ;;  %v2365_v45 = vpop.f32.mrb[76].mxu1 }
 0x348   :  { %v2412_v2 = vadd.f32 %v2404_v37, %v2322_v44  ;;  %v2414_v27 = vadd.f32 %v2406_v38, %v2365_v45  ;;  %v2324_v26 = vpop.f32.mrb[77].mxu0  ;;  %v2367_v40 = vpop.f32.mrb[77].mxu1 }
 0x349   :  { %v2413_v10 = vadd.f32 %v2405_v33, %v2324_v26  ;;  %v2415_v24 = vadd.f32 %v2407_v23, %v2367_v40  ;;  %v2326_v29 = vpop.f32.mrb[78].mxu0  ;;  %v2369_v46 = vpop.f32.mrb[78].mxu1  ;;  %v2433_v40 = vmul.bf16 1056980736, %v2423_v15 }
 0x34a   :  { %v2416_v35 = vadd.f32 %v2408_v42, %v2326_v29  ;;  %v2418_v17 = vadd.f32 %v2410_v34, %v2369_v46  ;;  %v2328_v30 = vpop.f32.mrb[79].mxu0  ;;  %v2371_v7 = vpop.f32.mrb[79].mxu1 }
 0x34b   :  { %v2417_v37 = vadd.f32 %v2409_v14, %v2328_v30  ;;  %v2419_v38 = vadd.f32 %v2411_v32, %v2371_v7 }
 0x34c   :  { %v2449_v44 = vpack.c.bf16 %v2416_v35, %v2412_v2  ;;  %v2451_v45 = vpack.c.bf16 %v2418_v17, %v2414_v27 }
 0x34d   :  { %v2450_v53 = vpack.c.bf16 %v2417_v37, %v2413_v10  ;;  %v2452_v22 = vpack.c.bf16 %v2419_v38, %v2415_v24  ;;  %v2446_v24 = vpack.c.bf16 %v5998_v9, %v5996_v19 }
 0x34e   :  { %v2453_v1 = vmul.bf16 1056980736, %v2449_v44 }
 0x34f   :  { %v2457_v4 = vmul.bf16 1056980736, %v2450_v53  ;;  %v2462_v8 = vmul.bf16 1056980736, %v2452_v22 }
 0x350   :  { %4627 = vtanh.bf16 %v2453_v1 }
 0x351   :  { %4629 = vtanh.bf16 %v2457_v4  ;;  %v7622_v4 = vld [vmem:[#allocation94_spill] sm:$0xff] }
 0x352   :  { %4631 = vtanh.bf16 %v2451_v45 }
 0x353   :  { %4633 = vtanh.bf16 %v2462_v8  ;;  %v7627_v8 = vld [vmem:[#allocation99_spill] sm:$0xff] }
 0x354   :  { %4635 = vtanh.bf16 %v2433_v40  ;;  %v7628_v40 = vld [vmem:[#allocation100_spill] sm:$0xff] }
 0x355   :  { %4637 = vtanh.bf16 %v2446_v24  ;;  %v7639_v24 = vld [vmem:[#allocation111_spill] sm:$0xff] }
 0x35b   :  { %v4628_v33 = vpop.eup %4627 }
 0x35c   :  { %v4630_v23 = vpop.eup %4629  ;;  %v2455_v31 = vmul.bf16 1056980736, %v4628_v33  ;;  %v7623_v33 = vld [vmem:[#allocation95_spill] sm:$0xff] }
 0x35d   :  { %v2459_v26 = vmul.bf16 1056980736, %v4630_v23  ;;  %v4632_v34 = vpop.eup %4631  ;;  %v7624_v23 = vld [vmem:[#allocation96_spill] sm:$0xff] }
 0x35e   :  { %v2456_v42 = vadd.bf16 1056980736, %v2455_v31  ;;  %v4634_v35 = vpop.eup %4633  ;;  %v7625_v31 = vld [vmem:[#allocation97_spill] sm:$0xff] }
 0x35f   :  { %v2460_v29 = vadd.bf16 1056980736, %v2459_v26  ;;  %v4636_v17 = vpop.eup %4635  ;;  %v2464_v30 = vmul.bf16 1056980736, %v4634_v35  ;;  %v7626_v26 = vld [vmem:[#allocation98_spill] sm:$0xff]  ;;  %v7641_v35 = vld [vmem:[#allocation113_spill] sm:$0xff] }
 0x360   :  { %v2470_v46 = vmul.bf16 %v4632_v34, %v2456_v42  ;;  %v2435_v37 = vmul.bf16 1056980736, %v4636_v17  ;;  %v4638_v38 = vpop.eup %4637  ;;  %v7629_v42 = vld [vmem:[#allocation101_spill] sm:$0xff]  ;;  %v7630_v34 = vld [vmem:[#allocation102_spill] sm:$0xff] }
 0x361   :  { %v2466_v7 = vunpack.c.l.bf16 %v2460_v29  ;;  %v2467_v2 = vunpack.c.h.bf16 %v2460_v29  ;;  %v7631_v29 = vld [vmem:[#allocation103_spill] sm:$0xff]  ;;  %v7642_v17 = vld [vmem:[#allocation114_spill] sm:$0xff] }
 0x362   :  { %v2471_v27 = vunpack.c.l.bf16 %v2470_v46  ;;  %v2472_v10 = vunpack.c.h.bf16 %v2470_v46  ;;  %v7632_v46 = vld [vmem:[#allocation104_spill] sm:$0xff] }
 0x363   :  { %v2468_v1 = vmul.f32 %v2466_v7, %v5840_v41  ;;  %v2469_v53 = vmul.f32 %v2467_v2, %v5842_v49  ;;  %v2465_v41 = vadd.bf16 1056980736, %v2464_v30  ;;  %v2436_v49 = vadd.bf16 1056980736, %v2435_v37  ;;  %v7633_v7 = vld [vmem:[#allocation105_spill] sm:$0xff]  ;;  %v7634_v2 = vld [vmem:[#allocation106_spill] sm:$0xff] }
 0x364   :  { %v7643_v30 = vld [vmem:[#allocation115_spill] sm:$0xff]  ;;  %v7644_v37 = vld [vmem:[#allocation116_spill] sm:$0xff] }
 0x365   :  { %v6012_v14 = vadd.f32 %v2471_v27, %v2468_v1  ;;  %v6014_v15 = vadd.f32 %v2472_v10, %v2469_v53  ;;  %v6018_v22 = vmul.bf16 %v4638_v38, %v2436_v49  ;;  %v7635_v27 = vld [vmem:[#allocation107_spill] sm:$0xff]  ;;  %v7636_v10 = vld [vmem:[#allocation108_spill] sm:$0xff]  ;;  %v7637_v1 = vld [vmem:[#allocation109_spill] sm:$0xff] }
 0x366   :  { %v7638_v53 = vld [vmem:[#allocation110_spill] sm:$0xff]  ;;  %v7645_v38 = vld [vmem:[#allocation120_spill] sm:$0xff]  ;;  %v7648_v49 = vld [vmem:[#allocation137_spill] sm:$0xff] }
 0x367   :  { %v2475_v32 = vpack.c.bf16 %v6014_v15, %v6012_v14 }
 0x369   :  { %4639 = vtanh.bf16 %v2475_v32  ;;  %v7640_v32 = vld [vmem:[#allocation112_spill] sm:$0xff] }
 0x374   :  { %v4640_v44 = vpop.eup %4639 }
 0x375   :  { %v2477_v45 = vmul.bf16 %v4640_v44, %v2465_v41  ;;  %v7646_v41 = vld [vmem:[#allocation135_spill] sm:$0xff]  ;;  %v7647_v44 = vld [vmem:[#allocation136_spill] sm:$0xff] }
 0x377   :  { %2510 = vmatprep.mubr.bf16.mxu0 %v2477_v45  ;;  %2553 = vmatprep.mubr.bf16.mxu1 %v2477_v45 }
 0x378   :  { %2511 = vmatmul.mubr.bf16.vlgmr.msra.gmra.mrb[80].mxu0 %v6018_v22  ;;  %2554 = vmatmul.mubr.bf16.vlgmr.msra.gmra.mrb[80].mxu1 %v6018_v22 }
 0x379   :  { %2565 = vmatpush1.bf16.msra.mxu0 %v7520_v59  ;;  %2608 = vmatpush1.bf16.msra.mxu1 %v7521_v0 }
 0x37a   :  { %2596 = vmatprep.mubr.bf16.mxu0 %v2477_v45  ;;  %2639 = vmatprep.mubr.bf16.mxu1 %v2477_v45  ;;  %v7649_v45 = vld [vmem:[#allocation138_spill] sm:$0xff] }
 0x37b   :  { %2566 = vmatprep.subr.bf16.mxu0 %v7522_v21  ;;  %2609 = vmatprep.subr.bf16.mxu1 %v7523_v3 }
 0x37d   :  { %2567 = vmatpush1.bf16.msra.mxu0 %v7524_v39  ;;  %2610 = vmatpush1.bf16.msra.mxu1 %v7525_v58 }
 0x37e   :  { %2568 = vmatprep.subr.bf16.mxu0 %v7526_v51  ;;  %2611 = vmatprep.subr.bf16.mxu1 %v7527_v25 }
 0x381   :  { %2569 = vmatpush1.bf16.msra.mxu0 %v7528_v50  ;;  %2612 = vmatpush1.bf16.msra.mxu1 %v7529_v56 }
 0x382   :  { %2570 = vmatprep.subr.bf16.mxu0 %v7530_v55  ;;  %2613 = vmatprep.subr.bf16.mxu1 %v7531_v11 }
 0x385   :  { %2571 = vmatpush1.bf16.msra.mxu0 %v7532_v60  ;;  %2614 = vmatpush1.bf16.msra.mxu1 %v7533_v6 }
 0x386   :  { %2572 = vmatprep.subr.bf16.mxu0 %v7622_v4  ;;  %2615 = vmatprep.subr.bf16.mxu1 %v7623_v33 }
 0x389   :  { %2573 = vmatpush1.bf16.msra.mxu0 %v7624_v23  ;;  %2616 = vmatpush1.bf16.msra.mxu1 %v7625_v31 }
 0x38a   :  { %2574 = vmatprep.subr.bf16.mxu0 %v7626_v26  ;;  %2617 = vmatprep.subr.bf16.mxu1 %v7627_v8 }
 0x38d   :  { %2575 = vmatpush1.bf16.msra.mxu0 %v7628_v40  ;;  %2618 = vmatpush1.bf16.msra.mxu1 %v7629_v42 }
 0x38e   :  { %2576 = vmatprep.subr.bf16.mxu0 %v7630_v34  ;;  %2619 = vmatprep.subr.bf16.mxu1 %v7631_v29 }
 0x391   :  { %2577 = vmatpush1.bf16.msra.mxu0 %v7632_v46  ;;  %2620 = vmatpush1.bf16.msra.mxu1 %v7633_v7 }
 0x392   :  { %2578 = vmatprep.subr.bf16.mxu0 %v7634_v2  ;;  %2621 = vmatprep.subr.bf16.mxu1 %v7635_v27 }
 0x395   :  { %2579 = vmatpush1.bf16.msra.mxu0 %v7636_v10  ;;  %2622 = vmatpush1.bf16.msra.mxu1 %v7637_v1 }
 0x396   :  { %2580 = vmatprep.subr.bf16.mxu0 %v7638_v53  ;;  %2623 = vmatprep.subr.bf16.mxu1 %v7639_v24 }
 0x399   :  { %2581 = vmatpush1.bf16.msra.mxu0 %v7640_v32  ;;  %2624 = vmatpush1.bf16.msra.mxu1 %v7641_v35 }
 0x39a   :  { %2582 = vmatprep.subr.bf16.mxu0 %v7642_v17  ;;  %2625 = vmatprep.subr.bf16.mxu1 %v7643_v30 }
 0x39d   :  { %2583 = vmatpush1.bf16.msra.mxu0 %v7644_v37  ;;  %2626 = vmatpush1.bf16.msra.mxu1 %v7557_v16 }
 0x39e   :  { %2584 = vmatprep.subr.bf16.mxu0 %v7558_v20  ;;  %2627 = vmatprep.subr.bf16.mxu1 %v7559_v13 }
 0x3a1   :  { %2585 = vmatpush1.bf16.msra.mxu0 %v7645_v38  ;;  %2628 = vmatpush1.bf16.msra.mxu1 %v7561_v61 }
 0x3a2   :  { %2586 = vmatprep.subr.bf16.mxu0 %v7562_v57  ;;  %2629 = vmatprep.subr.bf16.mxu1 %v7563_v62 }
 0x3a5   :  { %2587 = vmatpush1.bf16.msra.mxu0 %v7564_v54  ;;  %2630 = vmatpush1.bf16.msra.mxu1 %v7565_v43  ;;  %v7722_v43 = vld [vmem:[#allocation149_spill] sm:$0xff] }
 0x3a6   :  { %2588 = vmatprep.subr.bf16.mxu0 %v7566_v28  ;;  %2631 = vmatprep.subr.bf16.mxu1 %v7567_v12  ;;  %v7721_v28 = vld [vmem:[#allocation147_spill] sm:$0xff]  ;;  %v2664_v20 = vunpack.c.h.bf16 %v7722_v43 }
 0x3a7   :  { %v2662_v13 = vunpack.c.h.bf16 %v7721_v28 }
 0x3a9   :  { %2589 = vmatpush1.bf16.msra.mxu0 %v5404_v18  ;;  %2632 = vmatpush1.bf16.msra.mxu1 %v5408_v47  ;;  %v7650_v18 = vld [vmem:[#allocation139_spill] sm:$0xff]  ;;  %v7651_v47 = vld [vmem:[#allocation140_spill] sm:$0xff] }
 0x3aa   :  { %2590 = vmatprep.subr.bf16.mxu0 %v5410_v52  ;;  %2633 = vmatprep.subr.bf16.mxu1 %v7568_v48  ;;  %v7652_v52 = vld [vmem:[#allocation141_spill] sm:$0xff]  ;;  %v7653_v48 = vld [vmem:[#allocation14_spill] sm:$0xff] }
 0x3ad   :  { %2591 = vmatpush1.bf16.msra.mxu0 %v5416_v36  ;;  %2634 = vmatpush1.bf16.msra.mxu1 %v5420_v63  ;;  %v7654_v36 = vld [vmem:[#allocation15_spill] sm:$0xff]  ;;  %v7720_v63 = vld [vmem:[#allocation148_spill] sm:$0xff] }
 0x3ae   :  { %2592 = vmatprep.subr.bf16.mxu0 %v5422_v5  ;;  %2635 = vmatprep.subr.bf16.mxu1 %v7646_v41  ;;  %v7655_v41 = vld [vmem:[#allocation16_spill] sm:$0xff]  ;;  %v7664_v5 = vld [vmem:[#allocation25_spill] sm:$0xff] }
 0x3b1   :  { %2593 = vmatpush1.bf16.msra.mxu0 %v7647_v44  ;;  %2636 = vmatpush1.bf16.msra.mxu1 %v7648_v49  ;;  %v7656_v44 = vld [vmem:[#allocation17_spill] sm:$0xff]  ;;  %v7657_v49 = vld [vmem:[#allocation18_spill] sm:$0xff] }
 0x3b2   :  { %2594 = vmatprep.subr.bf16.mxu0 %v7649_v45  ;;  %2637 = vmatprep.subr.bf16.mxu1 %v7650_v18  ;;  %v7658_v45 = vld [vmem:[#allocation19_spill] sm:$0xff]  ;;  %v7659_v18 = vld [vmem:[#allocation20_spill] sm:$0xff] }
 0x3b5   :  { %2595 = vmatpush1.bf16.msra.mxu0 %v7651_v47  ;;  %2638 = vmatpush1.bf16.msra.mxu1 %v7652_v52  ;;  %v7660_v47 = vld [vmem:[#allocation21_spill] sm:$0xff]  ;;  %v7661_v52 = vld [vmem:[#allocation22_spill] sm:$0xff] }
 0x3b6   :  { %2754 = vmatprep.subr.bf16.mxu0 %v7653_v48  ;;  %2797 = vmatprep.subr.bf16.mxu1 %v7654_v36  ;;  %v7662_v48 = vld [vmem:[#allocation23_spill] sm:$0xff]  ;;  %v7663_v36 = vld [vmem:[#allocation24_spill] sm:$0xff] }
 0x3b8   :  { %2597 = vmatmul.mubr.bf16.vlgmr.msra.gmra.mrb[84].mxu0 %v6018_v22  ;;  %2640 = vmatmul.mubr.bf16.vlgmr.msra.gmra.mrb[84].mxu1 %v6018_v22  ;;  %v7665_v22 = vld [vmem:[#allocation26_spill] sm:$0xff] }
 0x3b9   :  { %2755 = vmatpush1.bf16.msra.mxu0 %v7655_v41  ;;  %2798 = vmatpush1.bf16.msra.mxu1 %v7656_v44  ;;  %v7666_v41 = vld [vmem:[#allocation27_spill] sm:$0xff]  ;;  %v7667_v44 = vld [vmem:[#allocation28_spill] sm:$0xff] }
 0x3ba   :  { %2756 = vmatprep.subr.bf16.mxu0 %v7657_v49  ;;  %2799 = vmatprep.subr.bf16.mxu1 %v7658_v45  ;;  %v7668_v49 = vld [vmem:[#allocation29_spill] sm:$0xff]  ;;  %v7669_v45 = vld [vmem:[#allocation30_spill] sm:$0xff] }
 0x3bd   :  { %2757 = vmatpush1.bf16.msra.mxu0 %v7659_v18  ;;  %2800 = vmatpush1.bf16.msra.mxu1 %v7660_v47  ;;  %v7670_v18 = vld [vmem:[#allocation31_spill] sm:$0xff]  ;;  %v7671_v47 = vld [vmem:[#allocation32_spill] sm:$0xff] }
 0x3be   :  { %2758 = vmatprep.subr.bf16.mxu0 %v7661_v52  ;;  %2801 = vmatprep.subr.bf16.mxu1 %v7662_v48  ;;  %v7672_v52 = vld [vmem:[#allocation33_spill] sm:$0xff]  ;;  %v7673_v48 = vld [vmem:[#allocation34_spill] sm:$0xff] }
 0x3c1   :  { %2759 = vmatpush1.bf16.msra.mxu0 %v7663_v36  ;;  %2802 = vmatpush1.bf16.msra.mxu1 %v7664_v5  ;;  %v7674_v36 = vld [vmem:[#allocation35_spill] sm:$0xff]  ;;  %v7675_v5 = vld [vmem:[#allocation36_spill] sm:$0xff] }
 0x3c2   :  { %2760 = vmatprep.subr.bf16.mxu0 %v7665_v22  ;;  %2803 = vmatprep.subr.bf16.mxu1 %v7666_v41  ;;  %v7676_v22 = vld [vmem:[#allocation37_spill] sm:$0xff]  ;;  %v7677_v41 = vld [vmem:[#allocation38_spill] sm:$0xff] }
 0x3c5   :  { %2761 = vmatpush1.bf16.msra.mxu0 %v7667_v44  ;;  %2804 = vmatpush1.bf16.msra.mxu1 %v7668_v49  ;;  %v7678_v44 = vld [vmem:[#allocation39_spill] sm:$0xff]  ;;  %v7679_v49 = vld [vmem:[#allocation40_spill] sm:$0xff] }
 0x3c6   :  { %2762 = vmatprep.subr.bf16.mxu0 %v7669_v45  ;;  %2805 = vmatprep.subr.bf16.mxu1 %v7670_v18  ;;  %v7680_v45 = vld [vmem:[#allocation41_spill] sm:$0xff]  ;;  %v7681_v18 = vld [vmem:[#allocation42_spill] sm:$0xff] }
 0x3c9   :  { %2763 = vmatpush1.bf16.msra.mxu0 %v7671_v47  ;;  %2806 = vmatpush1.bf16.msra.mxu1 %v7672_v52  ;;  %v7682_v47 = vld [vmem:[#allocation43_spill] sm:$0xff]  ;;  %v7683_v52 = vld [vmem:[#allocation44_spill] sm:$0xff] }
 0x3ca   :  { %2764 = vmatprep.subr.bf16.mxu0 %v7673_v48  ;;  %2807 = vmatprep.subr.bf16.mxu1 %v7674_v36  ;;  %v7684_v48 = vld [vmem:[#allocation45_spill] sm:$0xff]  ;;  %v7685_v36 = vld [vmem:[#allocation46_spill] sm:$0xff] }
 0x3cd   :  { %2765 = vmatpush1.bf16.msra.mxu0 %v7675_v5  ;;  %2808 = vmatpush1.bf16.msra.mxu1 %v7676_v22  ;;  %v7686_v5 = vld [vmem:[#allocation47_spill] sm:$0xff]  ;;  %v7687_v22 = vld [vmem:[#allocation48_spill] sm:$0xff] }
 0x3ce   :  { %2766 = vmatprep.subr.bf16.mxu0 %v7677_v41  ;;  %2809 = vmatprep.subr.bf16.mxu1 %v7678_v44  ;;  %v7688_v41 = vld [vmem:[#allocation49_spill] sm:$0xff]  ;;  %v7689_v44 = vld [vmem:[#allocation50_spill] sm:$0xff] }
 0x3d1   :  { %2767 = vmatpush1.bf16.msra.mxu0 %v7679_v49  ;;  %2810 = vmatpush1.bf16.msra.mxu1 %v7680_v45  ;;  %v7690_v49 = vld [vmem:[#allocation51_spill] sm:$0xff]  ;;  %v7691_v45 = vld [vmem:[#allocation52_spill] sm:$0xff] }
 0x3d2   :  { %2768 = vmatprep.subr.bf16.mxu0 %v7681_v18  ;;  %2811 = vmatprep.subr.bf16.mxu1 %v7682_v47  ;;  %v7692_v18 = vld [vmem:[#allocation53_spill] sm:$0xff]  ;;  %v7693_v47 = vld [vmem:[#allocation54_spill] sm:$0xff] }
 0x3d5   :  { %2769 = vmatpush1.bf16.msra.mxu0 %v7683_v52  ;;  %2812 = vmatpush1.bf16.msra.mxu1 %v7684_v48  ;;  %v7694_v52 = vld [vmem:[#allocation55_spill] sm:$0xff]  ;;  %v7695_v48 = vld [vmem:[#allocation56_spill] sm:$0xff] }
 0x3d6   :  { %2770 = vmatprep.subr.bf16.mxu0 %v7685_v36  ;;  %2813 = vmatprep.subr.bf16.mxu1 %v7686_v5  ;;  %v7696_v36 = vld [vmem:[#allocation57_spill] sm:$0xff]  ;;  %v7697_v5 = vld [vmem:[#allocation58_spill] sm:$0xff] }
 0x3d9   :  { %2771 = vmatpush1.bf16.msra.mxu0 %v7687_v22  ;;  %2814 = vmatpush1.bf16.msra.mxu1 %v7688_v41  ;;  %v7698_v22 = vld [vmem:[#allocation59_spill] sm:$0xff]  ;;  %v7699_v41 = vld [vmem:[#allocation60_spill] sm:$0xff] }
 0x3da   :  { %2772 = vmatprep.subr.bf16.mxu0 %v7689_v44  ;;  %2815 = vmatprep.subr.bf16.mxu1 %v7690_v49  ;;  %v7700_v44 = vld [vmem:[#allocation61_spill] sm:$0xff]  ;;  %v7701_v49 = vld [vmem:[#allocation62_spill] sm:$0xff] }
 0x3dd   :  { %2773 = vmatpush1.bf16.msra.mxu0 %v7691_v45  ;;  %2816 = vmatpush1.bf16.msra.mxu1 %v7692_v18  ;;  %v7702_v45 = vld [vmem:[#allocation63_spill] sm:$0xff]  ;;  %v7703_v18 = vld [vmem:[#allocation64_spill] sm:$0xff] }
 0x3de   :  { %2774 = vmatprep.subr.bf16.mxu0 %v7693_v47  ;;  %2817 = vmatprep.subr.bf16.mxu1 %v7694_v52  ;;  %v7704_v47 = vld [vmem:[#allocation65_spill] sm:$0xff]  ;;  %v7705_v52 = vld [vmem:[#allocation66_spill] sm:$0xff] }
 0x3e1   :  { %2775 = vmatpush1.bf16.msra.mxu0 %v7695_v48  ;;  %2818 = vmatpush1.bf16.msra.mxu1 %v7696_v36  ;;  %v7706_v48 = vld [vmem:[#allocation67_spill] sm:$0xff]  ;;  %v7707_v36 = vld [vmem:[#allocation68_spill] sm:$0xff] }
 0x3e2   :  { %2776 = vmatprep.subr.bf16.mxu0 %v7697_v5  ;;  %2819 = vmatprep.subr.bf16.mxu1 %v7698_v22  ;;  %v7708_v5 = vld [vmem:[#allocation69_spill] sm:$0xff]  ;;  %v7709_v22 = vld [vmem:[#allocation70_spill] sm:$0xff] }
 0x3e5   :  { %2777 = vmatpush1.bf16.msra.mxu0 %v7699_v41  ;;  %2820 = vmatpush1.bf16.msra.mxu1 %v7700_v44  ;;  %v7710_v41 = vld [vmem:[#allocation71_spill] sm:$0xff]  ;;  %v7711_v44 = vld [vmem:[#allocation72_spill] sm:$0xff] }
 0x3e6   :  { %2778 = vmatprep.subr.bf16.mxu0 %v7701_v49  ;;  %2821 = vmatprep.subr.bf16.mxu1 %v7702_v45  ;;  %v7712_v49 = vld [vmem:[#allocation73_spill] sm:$0xff]  ;;  %v7713_v45 = vld [vmem:[#allocation74_spill] sm:$0xff] }
 0x3e9   :  { %2779 = vmatpush1.bf16.msra.mxu0 %v7703_v18  ;;  %2822 = vmatpush1.bf16.msra.mxu1 %v7704_v47  ;;  %v7714_v18 = vld [vmem:[#allocation75_spill] sm:$0xff]  ;;  %v7715_v47 = vld [vmem:[#allocation76_spill] sm:$0xff] }
 0x3ea   :  { %2780 = vmatprep.subr.bf16.mxu0 %v7705_v52  ;;  %2823 = vmatprep.subr.bf16.mxu1 %v7706_v48  ;;  %v7716_v52 = vld [vmem:[#allocation77_spill] sm:$0xff]  ;;  %v7717_v48 = vld [vmem:[#allocation78_spill] sm:$0xff] }
 0x3ed   :  { %2781 = vmatpush1.bf16.msra.mxu0 %v7707_v36  ;;  %2824 = vmatpush1.bf16.msra.mxu1 %v7708_v5  ;;  %v7718_v36 = vld [vmem:[#allocation79_spill] sm:$0xff]  ;;  %v7719_v5 = vld [vmem:[#allocation146_spill] sm:$0xff] }
 0x3ee   :  { %2782 = vmatprep.subr.bf16.mxu0 %v7709_v22  ;;  %2825 = vmatprep.subr.bf16.mxu1 %v7710_v41  ;;  %v2657_v22 = vunpack.c.l.bf16 %v7719_v5  ;;  %v2659_v41 = vunpack.c.l.bf16 %v7720_v63 }
 0x3f1   :  { %2783 = vmatpush1.bf16.msra.mxu0 %v7711_v44  ;;  %2826 = vmatpush1.bf16.msra.mxu1 %v7712_v49  ;;  %v2658_v49 = vunpack.c.l.bf16 %v7721_v28 }
 0x3f2   :  { %2784 = vmatprep.subr.bf16.mxu0 %v7713_v45  ;;  %2827 = vmatprep.subr.bf16.mxu1 %v7714_v18  ;;  %v2660_v45 = vunpack.c.l.bf16 %v7722_v43 }
 0x3f5   :  { %2785 = vmatpush1.bf16.msra.mxu0 %v7715_v47  ;;  %2828 = vmatpush1.bf16.msra.mxu1 %v7716_v52  ;;  %v2661_v52 = vunpack.c.h.bf16 %v7719_v5 }
 0x3f6   :  { %2840 = vmatprep.subr.bf16.mxu0 %v7717_v48  ;;  %2883 = vmatprep.subr.bf16.mxu1 %v7718_v36  ;;  %v2663_v48 = vunpack.c.h.bf16 %v7720_v63 }
 0x44b   :  { %v2512_v12 = vpop.f32.mrb[80].mxu0  ;;  %v2555_v44 = vpop.f32.mrb[80].mxu1 }
 0x44c   :  { %v2665_v54 = vadd.f32 %v2657_v22, %v2512_v12  ;;  %v2667_v18 = vadd.f32 %v2659_v41, %v2555_v44  ;;  %v2514_v62 = vpop.f32.mrb[81].mxu0  ;;  %v2557_v47 = vpop.f32.mrb[81].mxu1 }
 0x44d   :  { %v2666_v57 = vadd.f32 %v2658_v49, %v2514_v62  ;;  %v6158_v36 = vadd.f32 %v2660_v45, %v2557_v47  ;;  %v2516_v61 = vpop.f32.mrb[82].mxu0  ;;  %v2559_v38 = vpop.f32.mrb[82].mxu1  ;;  %v7723_v49 = vld [vmem:[#allocation190_spill] sm:$0xff] }
 0x44e   :  { %v2669_v16 = vadd.f32 %v2661_v52, %v2516_v61  ;;  %v2671_v37 = vadd.f32 %v2663_v48, %v2559_v38  ;;  %v2518_v30 = vpop.f32.mrb[83].mxu0  ;;  %v2561_v12 = vpop.f32.mrb[83].mxu1  ;;  %v2680_v45 = vunpack.c.l.bf16 %v7723_v49 }
 0x44f   :  { %v2670_v41 = vadd.f32 %v2662_v13, %v2518_v30  ;;  %v6162_v44 = vadd.f32 %v2664_v20, %v2561_v12  ;;  %v7724_v12 = vld [vmem:[#allocation192_spill] sm:$0xff] }
 0x450   :  { %v2696_v22 = vpack.c.bf16 %v2669_v16, %v2665_v54  ;;  %v2698_v5 = vpack.c.bf16 %v2671_v37, %v2667_v18 }
 0x451   :  { %v2697_v17 = vpack.c.bf16 %v2670_v41, %v2666_v57  ;;  %v2699_v47 = vpack.c.bf16 %v6162_v44, %v6158_v36  ;;  %v2682_v41 = vunpack.c.l.bf16 %v7724_v12 }
 0x452   :  { %v2700_v63 = vmul.bf16 1056980736, %v2696_v22 }
 0x453   :  { %v2704_v62 = vmul.bf16 1056980736, %v2697_v17 }
 0x454   :  { %4641 = vtanh.bf16 %v2700_v63 }
 0x455   :  { %4643 = vtanh.bf16 %v2704_v62  ;;  %v7726_v62 = vld [vmem:[#allocation193_spill] sm:$0xff] }
 0x456   :  { %4645 = vtanh.bf16 %v2698_v5  ;;  %v7725_v5 = vld [vmem:[#allocation191_spill] sm:$0xff] }
 0x457   :  { %v2681_v63 = vunpack.c.l.bf16 %v7725_v5 }
 0x45f   :  { %v4642_v28 = vpop.eup %4641 }
 0x460   :  { %v4644_v43 = vpop.eup %4643  ;;  %v2702_v52 = vmul.bf16 1056980736, %v4642_v28  ;;  %v2683_v28 = vunpack.c.l.bf16 %v7726_v62 }
 0x461   :  { %v2706_v48 = vmul.bf16 1056980736, %v4644_v43  ;;  %v4646_v38 = vpop.eup %4645 }
 0x462   :  { %v2703_v61 = vadd.bf16 1056980736, %v2702_v52 }
 0x463   :  { %v2707_v13 = vadd.bf16 1056980736, %v2706_v48 }
 0x464   :  { %v2717_v20 = vmul.bf16 %v4646_v38, %v2703_v61  ;;  %v2686_v61 = vunpack.c.h.bf16 %v7724_v12 }
 0x465   :  { %v2713_v30 = vunpack.c.l.bf16 %v2707_v13  ;;  %v2714_v16 = vunpack.c.h.bf16 %v2707_v13 }
 0x466   :  { %v2718_v18 = vunpack.c.l.bf16 %v2717_v20  ;;  %v2719_v57 = vunpack.c.h.bf16 %v2717_v20 }
 0x467   :  { %v2715_v54 = vmul.f32 %v2713_v30, %v5996_v19  ;;  %v2716_v36 = vmul.f32 %v2714_v16, %v5998_v9  ;;  %v2684_v9 = vunpack.c.h.bf16 %v7723_v49  ;;  %v2685_v16 = vunpack.c.h.bf16 %v7725_v5 }
 0x469   :  { %v6168_v17 = vadd.f32 %v2718_v18, %v2715_v54  ;;  %v6170_v37 = vadd.f32 %v2719_v57, %v2716_v36  ;;  %v2687_v18 = vunpack.c.h.bf16 %v7726_v62 }
 0x48b   :  { %v2598_v44 = vpop.f32.mrb[84].mxu0  ;;  %v2641_v22 = vpop.f32.mrb[84].mxu1 }
 0x48c   :  { %v2688_v43 = vadd.f32 %v2680_v45, %v2598_v44  ;;  %v2690_v52 = vadd.f32 %v2682_v41, %v2641_v22  ;;  %v2600_v48 = vpop.f32.mrb[85].mxu0  ;;  %v2643_v19 = vpop.f32.mrb[85].mxu1 }
 0x48d   :  { %v2689_v38 = vadd.f32 %v2681_v63, %v2600_v48  ;;  %v2691_v13 = vadd.f32 %v2683_v28, %v2643_v19  ;;  %v2602_v20 = vpop.f32.mrb[86].mxu0  ;;  %v2645_v30 = vpop.f32.mrb[86].mxu1  ;;  %v2709_v19 = vmul.bf16 1056980736, %v2699_v47 }
 0x48e   :  { %v2692_v57 = vadd.f32 %v2684_v9, %v2602_v20  ;;  %v2694_v54 = vadd.f32 %v2686_v61, %v2645_v30  ;;  %v2604_v36 = vpop.f32.mrb[87].mxu0  ;;  %v2647_v35 = vpop.f32.mrb[87].mxu1 }
 0x48f   :  { %v2693_v45 = vadd.f32 %v2685_v16, %v2604_v36  ;;  %v2695_v41 = vadd.f32 %v2687_v18, %v2647_v35 }
 0x490   :  { %v2725_v44 = vpack.c.bf16 %v2692_v57, %v2688_v43  ;;  %v2727_v22 = vpack.c.bf16 %v2694_v54, %v2690_v52 }
 0x491   :  { %v2726_v32 = vpack.c.bf16 %v2693_v45, %v2689_v38  ;;  %v2728_v49 = vpack.c.bf16 %v2695_v41, %v2691_v13  ;;  %v2722_v13 = vpack.c.bf16 %v6170_v37, %v6168_v17 }
 0x492   :  { %v2729_v24 = vmul.bf16 1056980736, %v2725_v44 }
 0x493   :  { %v2733_v12 = vmul.bf16 1056980736, %v2726_v32  ;;  %v2738_v62 = vmul.bf16 1056980736, %v2728_v49 }
 0x494   :  { %4647 = vtanh.bf16 %v2729_v24 }
 0x495   :  { %4649 = vtanh.bf16 %v2733_v12  ;;  %v7727_v12 = vld [vmem:[#allocation111_spill] sm:$0xff] }
 0x496   :  { %4651 = vtanh.bf16 %v2727_v22 }
 0x497   :  { %4653 = vtanh.bf16 %v2738_v62  ;;  %v7732_v62 = vld [vmem:[#allocation116_spill] sm:$0xff] }
 0x498   :  { %4655 = vtanh.bf16 %v2709_v19  ;;  %v7733_v19 = vld [vmem:[#allocation117_spill] sm:$0xff] }
 0x499   :  { %4657 = vtanh.bf16 %v2722_v13  ;;  %v7744_v13 = vld [vmem:[#allocation128_spill] sm:$0xff] }
 0x49f   :  { %v4648_v63 = vpop.eup %4647 }
 0x4a0   :  { %v4650_v28 = vpop.eup %4649  ;;  %v2731_v5 = vmul.bf16 1056980736, %v4648_v63  ;;  %v7728_v63 = vld [vmem:[#allocation112_spill] sm:$0xff] }
 0x4a1   :  { %v2735_v48 = vmul.bf16 1056980736, %v4650_v28  ;;  %v4652_v61 = vpop.eup %4651  ;;  %v7729_v28 = vld [vmem:[#allocation113_spill] sm:$0xff] }
 0x4a2   :  { %v2732_v9 = vadd.bf16 1056980736, %v2731_v5  ;;  %v4654_v57 = vpop.eup %4653  ;;  %v7730_v5 = vld [vmem:[#allocation114_spill] sm:$0xff] }
 0x4a3   :  { %v2736_v20 = vadd.bf16 1056980736, %v2735_v48  ;;  %v4656_v54 = vpop.eup %4655  ;;  %v2740_v36 = vmul.bf16 1056980736, %v4654_v57  ;;  %v7731_v48 = vld [vmem:[#allocation115_spill] sm:$0xff]  ;;  %v7746_v57 = vld [vmem:[#allocation130_spill] sm:$0xff] }
 0x4a4   :  { %v2746_v30 = vmul.bf16 %v4652_v61, %v2732_v9  ;;  %v2711_v45 = vmul.bf16 1056980736, %v4656_v54  ;;  %v4658_v41 = vpop.eup %4657  ;;  %v7734_v9 = vld [vmem:[#allocation118_spill] sm:$0xff]  ;;  %v7735_v61 = vld [vmem:[#allocation119_spill] sm:$0xff] }
 0x4a5   :  { %v2742_v35 = vunpack.c.l.bf16 %v2736_v20  ;;  %v2743_v43 = vunpack.c.h.bf16 %v2736_v20  ;;  %v7736_v20 = vld [vmem:[#allocation120_spill] sm:$0xff]  ;;  %v7747_v54 = vld [vmem:[#allocation131_spill] sm:$0xff] }
 0x4a6   :  { %v2747_v52 = vunpack.c.l.bf16 %v2746_v30  ;;  %v2748_v38 = vunpack.c.h.bf16 %v2746_v30  ;;  %v7737_v30 = vld [vmem:[#allocation121_spill] sm:$0xff] }
 0x4a7   :  { %v2744_v24 = vmul.f32 %v2742_v35, %v6012_v14  ;;  %v2745_v32 = vmul.f32 %v2743_v43, %v6014_v15  ;;  %v2741_v14 = vadd.bf16 1056980736, %v2740_v36  ;;  %v2712_v15 = vadd.bf16 1056980736, %v2711_v45  ;;  %v7738_v35 = vld [vmem:[#allocation122_spill] sm:$0xff]  ;;  %v7739_v43 = vld [vmem:[#allocation123_spill] sm:$0xff] }
 0x4a8   :  { %v7748_v36 = vld [vmem:[#allocation132_spill] sm:$0xff]  ;;  %v7749_v45 = vld [vmem:[#allocation133_spill] sm:$0xff] }
 0x4a9   :  { %v6184_v16 = vadd.f32 %v2747_v52, %v2744_v24  ;;  %v6186_v47 = vadd.f32 %v2748_v38, %v2745_v32  ;;  %v6190_v49 = vmul.bf16 %v4658_v41, %v2712_v15  ;;  %v7740_v52 = vld [vmem:[#allocation124_spill] sm:$0xff]  ;;  %v7741_v38 = vld [vmem:[#allocation125_spill] sm:$0xff]  ;;  %v7742_v24 = vld [vmem:[#allocation126_spill] sm:$0xff] }
 0x4aa   :  { %v7743_v32 = vld [vmem:[#allocation127_spill] sm:$0xff]  ;;  %v7750_v41 = vld [vmem:[#allocation134_spill] sm:$0xff]  ;;  %v7753_v15 = vld [vmem:[#allocation137_spill] sm:$0xff] }
 0x4ab   :  { %v2751_v18 = vpack.c.bf16 %v6186_v47, %v6184_v16 }
 0x4ad   :  { %4659 = vtanh.bf16 %v2751_v18  ;;  %v7745_v18 = vld [vmem:[#allocation129_spill] sm:$0xff] }
 0x4b8   :  { %v4660_v44 = vpop.eup %4659 }
 0x4b9   :  { %v2753_v22 = vmul.bf16 %v4660_v44, %v2741_v14  ;;  %v7751_v14 = vld [vmem:[#allocation135_spill] sm:$0xff]  ;;  %v7752_v44 = vld [vmem:[#allocation136_spill] sm:$0xff] }
 0x4bb   :  { %2786 = vmatprep.mubr.bf16.mxu0 %v2753_v22  ;;  %2829 = vmatprep.mubr.bf16.mxu1 %v2753_v22 }
 0x4bc   :  { %2787 = vmatmul.mubr.bf16.vlgmr.msra.gmra.mrb[88].mxu0 %v6190_v49  ;;  %2830 = vmatmul.mubr.bf16.vlgmr.msra.gmra.mrb[88].mxu1 %v6190_v49 }
 0x4bd   :  { %2841 = vmatpush1.bf16.msra.mxu0 %v7520_v59  ;;  %2884 = vmatpush1.bf16.msra.mxu1 %v7521_v0 }
 0x4be   :  { %2872 = vmatprep.mubr.bf16.mxu0 %v2753_v22  ;;  %2915 = vmatprep.mubr.bf16.mxu1 %v2753_v22  ;;  %v7754_v22 = vld [vmem:[#allocation138_spill] sm:$0xff] }
 0x4bf   :  { %2842 = vmatprep.subr.bf16.mxu0 %v7522_v21  ;;  %2885 = vmatprep.subr.bf16.mxu1 %v7523_v3 }
 0x4c1   :  { %2843 = vmatpush1.bf16.msra.mxu0 %v7524_v39  ;;  %2886 = vmatpush1.bf16.msra.mxu1 %v7525_v58 }
 0x4c2   :  { %2844 = vmatprep.subr.bf16.mxu0 %v7526_v51  ;;  %2887 = vmatprep.subr.bf16.mxu1 %v7527_v25 }
 0x4c5   :  { %2845 = vmatpush1.bf16.msra.mxu0 %v7528_v50  ;;  %2888 = vmatpush1.bf16.msra.mxu1 %v7529_v56 }
 0x4c6   :  { %2846 = vmatprep.subr.bf16.mxu0 %v7530_v55  ;;  %2889 = vmatprep.subr.bf16.mxu1 %v7531_v11 }
 0x4c9   :  { %2847 = vmatpush1.bf16.msra.mxu0 %v7532_v60  ;;  %2890 = vmatpush1.bf16.msra.mxu1 %v7533_v6 }
 0x4ca   :  { %2848 = vmatprep.subr.bf16.mxu0 %v7622_v4  ;;  %2891 = vmatprep.subr.bf16.mxu1 %v7623_v33 }
 0x4cd   :  { %2849 = vmatpush1.bf16.msra.mxu0 %v7624_v23  ;;  %2892 = vmatpush1.bf16.msra.mxu1 %v7625_v31 }
 0x4ce   :  { %2850 = vmatprep.subr.bf16.mxu0 %v7626_v26  ;;  %2893 = vmatprep.subr.bf16.mxu1 %v7627_v8 }
 0x4d1   :  { %2851 = vmatpush1.bf16.msra.mxu0 %v7628_v40  ;;  %2894 = vmatpush1.bf16.msra.mxu1 %v7629_v42 }
 0x4d2   :  { %2852 = vmatprep.subr.bf16.mxu0 %v7630_v34  ;;  %2895 = vmatprep.subr.bf16.mxu1 %v7631_v29 }
 0x4d5   :  { %2853 = vmatpush1.bf16.msra.mxu0 %v7632_v46  ;;  %2896 = vmatpush1.bf16.msra.mxu1 %v7633_v7 }
 0x4d6   :  { %2854 = vmatprep.subr.bf16.mxu0 %v7634_v2  ;;  %2897 = vmatprep.subr.bf16.mxu1 %v7635_v27 }
 0x4d9   :  { %2855 = vmatpush1.bf16.msra.mxu0 %v7636_v10  ;;  %2898 = vmatpush1.bf16.msra.mxu1 %v7637_v1 }
 0x4da   :  { %2856 = vmatprep.subr.bf16.mxu0 %v7638_v53  ;;  %2899 = vmatprep.subr.bf16.mxu1 %v7727_v12 }
 0x4dd   :  { %2857 = vmatpush1.bf16.msra.mxu0 %v7728_v63  ;;  %2900 = vmatpush1.bf16.msra.mxu1 %v7729_v28 }
 0x4de   :  { %2858 = vmatprep.subr.bf16.mxu0 %v7730_v5  ;;  %2901 = vmatprep.subr.bf16.mxu1 %v7731_v48 }
 0x4e1   :  { %2859 = vmatpush1.bf16.msra.mxu0 %v7732_v62  ;;  %2902 = vmatpush1.bf16.msra.mxu1 %v7733_v19 }
 0x4e2   :  { %2860 = vmatprep.subr.bf16.mxu0 %v7734_v9  ;;  %2903 = vmatprep.subr.bf16.mxu1 %v7735_v61 }
 0x4e5   :  { %2861 = vmatpush1.bf16.msra.mxu0 %v7736_v20  ;;  %2904 = vmatpush1.bf16.msra.mxu1 %v7737_v30 }
 0x4e6   :  { %2862 = vmatprep.subr.bf16.mxu0 %v7738_v35  ;;  %2905 = vmatprep.subr.bf16.mxu1 %v7739_v43 }
 0x4e9   :  { %2863 = vmatpush1.bf16.msra.mxu0 %v7740_v52  ;;  %2906 = vmatpush1.bf16.msra.mxu1 %v7741_v38  ;;  %v7827_v38 = vld [vmem:[#allocation153_spill] sm:$0xff] }
 0x4ea   :  { %2864 = vmatprep.subr.bf16.mxu0 %v7742_v24  ;;  %2907 = vmatprep.subr.bf16.mxu1 %v7743_v32  ;;  %v7826_v24 = vld [vmem:[#allocation151_spill] sm:$0xff]  ;;  %v2940_v9 = vunpack.c.h.bf16 %v7827_v38 }
 0x4eb   :  { %v2938_v61 = vunpack.c.h.bf16 %v7826_v24 }
 0x4ed   :  { %2865 = vmatpush1.bf16.msra.mxu0 %v7744_v13  ;;  %2908 = vmatpush1.bf16.msra.mxu1 %v7745_v18  ;;  %v7755_v13 = vld [vmem:[#allocation139_spill] sm:$0xff]  ;;  %v7756_v18 = vld [vmem:[#allocation140_spill] sm:$0xff] }
 0x4ee   :  { %2866 = vmatprep.subr.bf16.mxu0 %v7746_v57  ;;  %2909 = vmatprep.subr.bf16.mxu1 %v7747_v54  ;;  %v7757_v57 = vld [vmem:[#allocation141_spill] sm:$0xff]  ;;  %v7758_v54 = vld [vmem:[#allocation14_spill] sm:$0xff] }
 0x4f1   :  { %2867 = vmatpush1.bf16.msra.mxu0 %v7748_v36  ;;  %2910 = vmatpush1.bf16.msra.mxu1 %v7749_v45  ;;  %v7759_v36 = vld [vmem:[#allocation15_spill] sm:$0xff]  ;;  %v7825_v45 = vld [vmem:[#allocation152_spill] sm:$0xff] }
 0x4f2   :  { %2868 = vmatprep.subr.bf16.mxu0 %v7750_v41  ;;  %2911 = vmatprep.subr.bf16.mxu1 %v7751_v14  ;;  %v7760_v14 = vld [vmem:[#allocation16_spill] sm:$0xff]  ;;  %v7769_v41 = vld [vmem:[#allocation25_spill] sm:$0xff] }
 0x4f5   :  { %2869 = vmatpush1.bf16.msra.mxu0 %v7752_v44  ;;  %2912 = vmatpush1.bf16.msra.mxu1 %v7753_v15  ;;  %v7761_v44 = vld [vmem:[#allocation17_spill] sm:$0xff]  ;;  %v7762_v15 = vld [vmem:[#allocation18_spill] sm:$0xff] }
 0x4f6   :  { %2870 = vmatprep.subr.bf16.mxu0 %v7754_v22  ;;  %2913 = vmatprep.subr.bf16.mxu1 %v7755_v13  ;;  %v7763_v22 = vld [vmem:[#allocation19_spill] sm:$0xff]  ;;  %v7764_v13 = vld [vmem:[#allocation20_spill] sm:$0xff] }
 0x4f9   :  { %2871 = vmatpush1.bf16.msra.mxu0 %v7756_v18  ;;  %2914 = vmatpush1.bf16.msra.mxu1 %v7757_v57  ;;  %v7765_v18 = vld [vmem:[#allocation21_spill] sm:$0xff]  ;;  %v7766_v57 = vld [vmem:[#allocation22_spill] sm:$0xff] }
 0x4fa   :  { %3030 = vmatprep.subr.bf16.mxu0 %v7758_v54  ;;  %3073 = vmatprep.subr.bf16.mxu1 %v7759_v36  ;;  %v7767_v54 = vld [vmem:[#allocation23_spill] sm:$0xff]  ;;  %v7768_v36 = vld [vmem:[#allocation24_spill] sm:$0xff] }
 0x4fc   :  { %2873 = vmatmul.mubr.bf16.vlgmr.msra.gmra.mrb[92].mxu0 %v6190_v49  ;;  %2916 = vmatmul.mubr.bf16.vlgmr.msra.gmra.mrb[92].mxu1 %v6190_v49  ;;  %v7770_v49 = vld [vmem:[#allocation26_spill] sm:$0xff] }
 0x4fd   :  { %3031 = vmatpush1.bf16.msra.mxu0 %v7760_v14  ;;  %3074 = vmatpush1.bf16.msra.mxu1 %v7761_v44  ;;  %v7771_v14 = vld [vmem:[#allocation27_spill] sm:$0xff]  ;;  %v7772_v44 = vld [vmem:[#allocation28_spill] sm:$0xff] }
 0x4fe   :  { %3032 = vmatprep.subr.bf16.mxu0 %v7762_v15  ;;  %3075 = vmatprep.subr.bf16.mxu1 %v7763_v22  ;;  %v7773_v15 = vld [vmem:[#allocation29_spill] sm:$0xff]  ;;  %v7774_v22 = vld [vmem:[#allocation30_spill] sm:$0xff] }
 0x501   :  { %3033 = vmatpush1.bf16.msra.mxu0 %v7764_v13  ;;  %3076 = vmatpush1.bf16.msra.mxu1 %v7765_v18  ;;  %v7775_v13 = vld [vmem:[#allocation31_spill] sm:$0xff]  ;;  %v7776_v18 = vld [vmem:[#allocation32_spill] sm:$0xff] }
 0x502   :  { %3034 = vmatprep.subr.bf16.mxu0 %v7766_v57  ;;  %3077 = vmatprep.subr.bf16.mxu1 %v7767_v54  ;;  %v7777_v57 = vld [vmem:[#allocation33_spill] sm:$0xff]  ;;  %v7778_v54 = vld [vmem:[#allocation34_spill] sm:$0xff] }
 0x505   :  { %3035 = vmatpush1.bf16.msra.mxu0 %v7768_v36  ;;  %3078 = vmatpush1.bf16.msra.mxu1 %v7769_v41  ;;  %v7779_v36 = vld [vmem:[#allocation35_spill] sm:$0xff]  ;;  %v7780_v41 = vld [vmem:[#allocation36_spill] sm:$0xff] }
 0x506   :  { %3036 = vmatprep.subr.bf16.mxu0 %v7770_v49  ;;  %3079 = vmatprep.subr.bf16.mxu1 %v7771_v14  ;;  %v7781_v49 = vld [vmem:[#allocation37_spill] sm:$0xff]  ;;  %v7782_v14 = vld [vmem:[#allocation38_spill] sm:$0xff] }
 0x509   :  { %3037 = vmatpush1.bf16.msra.mxu0 %v7772_v44  ;;  %3080 = vmatpush1.bf16.msra.mxu1 %v7773_v15  ;;  %v7783_v44 = vld [vmem:[#allocation39_spill] sm:$0xff]  ;;  %v7784_v15 = vld [vmem:[#allocation40_spill] sm:$0xff] }
 0x50a   :  { %3038 = vmatprep.subr.bf16.mxu0 %v7774_v22  ;;  %3081 = vmatprep.subr.bf16.mxu1 %v7775_v13  ;;  %v7785_v22 = vld [vmem:[#allocation41_spill] sm:$0xff]  ;;  %v7786_v13 = vld [vmem:[#allocation42_spill] sm:$0xff] }
 0x50d   :  { %3039 = vmatpush1.bf16.msra.mxu0 %v7776_v18  ;;  %3082 = vmatpush1.bf16.msra.mxu1 %v7777_v57  ;;  %v7787_v18 = vld [vmem:[#allocation43_spill] sm:$0xff]  ;;  %v7788_v57 = vld [vmem:[#allocation44_spill] sm:$0xff] }
 0x50e   :  { %3040 = vmatprep.subr.bf16.mxu0 %v7778_v54  ;;  %3083 = vmatprep.subr.bf16.mxu1 %v7779_v36  ;;  %v7789_v54 = vld [vmem:[#allocation45_spill] sm:$0xff]  ;;  %v7790_v36 = vld [vmem:[#allocation46_spill] sm:$0xff] }
 0x511   :  { %3041 = vmatpush1.bf16.msra.mxu0 %v7780_v41  ;;  %3084 = vmatpush1.bf16.msra.mxu1 %v7781_v49  ;;  %v7791_v41 = vld [vmem:[#allocation47_spill] sm:$0xff]  ;;  %v7792_v49 = vld [vmem:[#allocation48_spill] sm:$0xff] }
 0x512   :  { %3042 = vmatprep.subr.bf16.mxu0 %v7782_v14  ;;  %3085 = vmatprep.subr.bf16.mxu1 %v7783_v44  ;;  %v7793_v14 = vld [vmem:[#allocation49_spill] sm:$0xff]  ;;  %v7794_v44 = vld [vmem:[#allocation50_spill] sm:$0xff] }
 0x515   :  { %3043 = vmatpush1.bf16.msra.mxu0 %v7784_v15  ;;  %3086 = vmatpush1.bf16.msra.mxu1 %v7785_v22  ;;  %v7795_v15 = vld [vmem:[#allocation51_spill] sm:$0xff]  ;;  %v7796_v22 = vld [vmem:[#allocation52_spill] sm:$0xff] }
 0x516   :  { %3044 = vmatprep.subr.bf16.mxu0 %v7786_v13  ;;  %3087 = vmatprep.subr.bf16.mxu1 %v7787_v18  ;;  %v7797_v13 = vld [vmem:[#allocation53_spill] sm:$0xff]  ;;  %v7798_v18 = vld [vmem:[#allocation54_spill] sm:$0xff] }
 0x519   :  { %3045 = vmatpush1.bf16.msra.mxu0 %v7788_v57  ;;  %3088 = vmatpush1.bf16.msra.mxu1 %v7789_v54  ;;  %v7799_v57 = vld [vmem:[#allocation55_spill] sm:$0xff]  ;;  %v7800_v54 = vld [vmem:[#allocation56_spill] sm:$0xff] }
 0x51a   :  { %3046 = vmatprep.subr.bf16.mxu0 %v7790_v36  ;;  %3089 = vmatprep.subr.bf16.mxu1 %v7791_v41  ;;  %v7801_v36 = vld [vmem:[#allocation57_spill] sm:$0xff]  ;;  %v7802_v41 = vld [vmem:[#allocation58_spill] sm:$0xff] }
 0x51d   :  { %3047 = vmatpush1.bf16.msra.mxu0 %v7792_v49  ;;  %3090 = vmatpush1.bf16.msra.mxu1 %v7793_v14  ;;  %v7803_v49 = vld [vmem:[#allocation59_spill] sm:$0xff]  ;;  %v7804_v14 = vld [vmem:[#allocation60_spill] sm:$0xff] }
 0x51e   :  { %3048 = vmatprep.subr.bf16.mxu0 %v7794_v44  ;;  %3091 = vmatprep.subr.bf16.mxu1 %v7795_v15  ;;  %v7805_v44 = vld [vmem:[#allocation61_spill] sm:$0xff]  ;;  %v7806_v15 = vld [vmem:[#allocation62_spill] sm:$0xff] }
 0x521   :  { %3049 = vmatpush1.bf16.msra.mxu0 %v7796_v22  ;;  %3092 = vmatpush1.bf16.msra.mxu1 %v7797_v13  ;;  %v7807_v22 = vld [vmem:[#allocation63_spill] sm:$0xff]  ;;  %v7808_v13 = vld [vmem:[#allocation64_spill] sm:$0xff] }
 0x522   :  { %3050 = vmatprep.subr.bf16.mxu0 %v7798_v18  ;;  %3093 = vmatprep.subr.bf16.mxu1 %v7799_v57  ;;  %v7809_v18 = vld [vmem:[#allocation65_spill] sm:$0xff]  ;;  %v7810_v57 = vld [vmem:[#allocation66_spill] sm:$0xff] }
 0x525   :  { %3051 = vmatpush1.bf16.msra.mxu0 %v7800_v54  ;;  %3094 = vmatpush1.bf16.msra.mxu1 %v7801_v36  ;;  %v7811_v54 = vld [vmem:[#allocation67_spill] sm:$0xff]  ;;  %v7812_v36 = vld [vmem:[#allocation68_spill] sm:$0xff] }
 0x526   :  { %3052 = vmatprep.subr.bf16.mxu0 %v7802_v41  ;;  %3095 = vmatprep.subr.bf16.mxu1 %v7803_v49  ;;  %v7813_v41 = vld [vmem:[#allocation69_spill] sm:$0xff]  ;;  %v7814_v49 = vld [vmem:[#allocation70_spill] sm:$0xff] }
 0x529   :  { %3053 = vmatpush1.bf16.msra.mxu0 %v7804_v14  ;;  %3096 = vmatpush1.bf16.msra.mxu1 %v7805_v44  ;;  %v7815_v14 = vld [vmem:[#allocation71_spill] sm:$0xff]  ;;  %v7816_v44 = vld [vmem:[#allocation72_spill] sm:$0xff] }
 0x52a   :  { %3054 = vmatprep.subr.bf16.mxu0 %v7806_v15  ;;  %3097 = vmatprep.subr.bf16.mxu1 %v7807_v22  ;;  %v7817_v15 = vld [vmem:[#allocation73_spill] sm:$0xff]  ;;  %v7818_v22 = vld [vmem:[#allocation74_spill] sm:$0xff] }
 0x52d   :  { %3055 = vmatpush1.bf16.msra.mxu0 %v7808_v13  ;;  %3098 = vmatpush1.bf16.msra.mxu1 %v7809_v18  ;;  %v7819_v13 = vld [vmem:[#allocation75_spill] sm:$0xff]  ;;  %v7820_v18 = vld [vmem:[#allocation76_spill] sm:$0xff] }
 0x52e   :  { %3056 = vmatprep.subr.bf16.mxu0 %v7810_v57  ;;  %3099 = vmatprep.subr.bf16.mxu1 %v7811_v54  ;;  %v7821_v57 = vld [vmem:[#allocation77_spill] sm:$0xff]  ;;  %v7822_v54 = vld [vmem:[#allocation78_spill] sm:$0xff] }
 0x531   :  { %3057 = vmatpush1.bf16.msra.mxu0 %v7812_v36  ;;  %3100 = vmatpush1.bf16.msra.mxu1 %v7813_v41  ;;  %v7823_v36 = vld [vmem:[#allocation79_spill] sm:$0xff]  ;;  %v7824_v41 = vld [vmem:[#allocation150_spill] sm:$0xff] }
 0x532   :  { %3058 = vmatprep.subr.bf16.mxu0 %v7814_v49  ;;  %3101 = vmatprep.subr.bf16.mxu1 %v7815_v14  ;;  %v2933_v49 = vunpack.c.l.bf16 %v7824_v41  ;;  %v2935_v14 = vunpack.c.l.bf16 %v7825_v45 }
 0x535   :  { %3059 = vmatpush1.bf16.msra.mxu0 %v7816_v44  ;;  %3102 = vmatpush1.bf16.msra.mxu1 %v7817_v15  ;;  %v2934_v15 = vunpack.c.l.bf16 %v7826_v24 }
 0x536   :  { %3060 = vmatprep.subr.bf16.mxu0 %v7818_v22  ;;  %3103 = vmatprep.subr.bf16.mxu1 %v7819_v13  ;;  %v2936_v22 = vunpack.c.l.bf16 %v7827_v38 }
 0x539   :  { %3061 = vmatpush1.bf16.msra.mxu0 %v7820_v18  ;;  %3104 = vmatpush1.bf16.msra.mxu1 %v7821_v57  ;;  %v2937_v57 = vunpack.c.h.bf16 %v7824_v41 }
 0x53a   :  { %3116 = vmatprep.subr.bf16.mxu0 %v7822_v54  ;;  %3159 = vmatprep.subr.bf16.mxu1 %v7823_v36  ;;  %v2939_v54 = vunpack.c.h.bf16 %v7825_v45 }
 0x58f   :  { %v2788_v32 = vpop.f32.mrb[88].mxu0  ;;  %v2831_v44 = vpop.f32.mrb[88].mxu1 }
 0x590   :  { %v2941_v52 = vadd.f32 %v2933_v49, %v2788_v32  ;;  %v2943_v13 = vadd.f32 %v2935_v14, %v2831_v44  ;;  %v2790_v43 = vpop.f32.mrb[89].mxu0  ;;  %v2833_v18 = vpop.f32.mrb[89].mxu1 }
 0x591   :  { %v2942_v35 = vadd.f32 %v2934_v15, %v2790_v43  ;;  %v6330_v36 = vadd.f32 %v2936_v22, %v2833_v18  ;;  %v2792_v30 = vpop.f32.mrb[90].mxu0  ;;  %v2835_v20 = vpop.f32.mrb[90].mxu1  ;;  %v7828_v15 = vld [vmem:[#allocation186_spill] sm:$0xff] }
 0x592   :  { %v2945_v19 = vadd.f32 %v2937_v57, %v2792_v30  ;;  %v2947_v62 = vadd.f32 %v2939_v54, %v2835_v20  ;;  %v2794_v48 = vpop.f32.mrb[91].mxu0  ;;  %v2837_v32 = vpop.f32.mrb[91].mxu1  ;;  %v2956_v22 = vunpack.c.l.bf16 %v7828_v15 }
 0x593   :  { %v2946_v14 = vadd.f32 %v2938_v61, %v2794_v48  ;;  %v6334_v44 = vadd.f32 %v2940_v9, %v2837_v32  ;;  %v7829_v32 = vld [vmem:[#allocation188_spill] sm:$0xff] }
 0x594   :  { %v2972_v49 = vpack.c.bf16 %v2945_v19, %v2941_v52  ;;  %v2974_v41 = vpack.c.bf16 %v2947_v62, %v2943_v13 }
 0x595   :  { %v2973_v5 = vpack.c.bf16 %v2946_v14, %v2942_v35  ;;  %v2975_v43 = vpack.c.bf16 %v6334_v44, %v6330_v36  ;;  %v2958_v14 = vunpack.c.l.bf16 %v7829_v32 }
 0x596   :  { %v2976_v18 = vmul.bf16 1056980736, %v2972_v49 }
 0x597   :  { %v2980_v45 = vmul.bf16 1056980736, %v2973_v5 }
 0x598   :  { %4661 = vtanh.bf16 %v2976_v18 }
 0x599   :  { %4663 = vtanh.bf16 %v2980_v45  ;;  %v7831_v45 = vld [vmem:[#allocation189_spill] sm:$0xff] }
 0x59a   :  { %4665 = vtanh.bf16 %v2974_v41  ;;  %v7830_v41 = vld [vmem:[#allocation187_spill] sm:$0xff] }
 0x59b   :  { %v2957_v18 = vunpack.c.l.bf16 %v7830_v41 }
 0x5a3   :  { %v4662_v24 = vpop.eup %4661 }
 0x5a4   :  { %v4664_v38 = vpop.eup %4663  ;;  %v2978_v30 = vmul.bf16 1056980736, %v4662_v24  ;;  %v2959_v24 = vunpack.c.l.bf16 %v7831_v45 }
 0x5a5   :  { %v2982_v20 = vmul.bf16 1056980736, %v4664_v38  ;;  %v4666_v54 = vpop.eup %4665 }
 0x5a6   :  { %v2979_v57 = vadd.bf16 1056980736, %v2978_v30 }
 0x5a7   :  { %v2983_v48 = vadd.bf16 1056980736, %v2982_v20 }
 0x5a8   :  { %v2993_v9 = vmul.bf16 %v4666_v54, %v2979_v57  ;;  %v2962_v57 = vunpack.c.h.bf16 %v7829_v32 }
 0x5a9   :  { %v2989_v61 = vunpack.c.l.bf16 %v2983_v48  ;;  %v2990_v19 = vunpack.c.h.bf16 %v2983_v48 }
 0x5aa   :  { %v2994_v62 = vunpack.c.l.bf16 %v2993_v9  ;;  %v2995_v35 = vunpack.c.h.bf16 %v2993_v9 }
 0x5ab   :  { %v2991_v52 = vmul.f32 %v2989_v61, %v6168_v17  ;;  %v2992_v13 = vmul.f32 %v2990_v19, %v6170_v37  ;;  %v2960_v37 = vunpack.c.h.bf16 %v7828_v15  ;;  %v2961_v19 = vunpack.c.h.bf16 %v7830_v41 }
 0x5ad   :  { %v6340_v5 = vadd.f32 %v2994_v62, %v2991_v52  ;;  %v6342_v36 = vadd.f32 %v2995_v35, %v2992_v13  ;;  %v2963_v62 = vunpack.c.h.bf16 %v7831_v45 }
 0x5cf   :  { %v2874_v44 = vpop.f32.mrb[92].mxu0  ;;  %v2917_v49 = vpop.f32.mrb[92].mxu1 }
 0x5d0   :  { %v2964_v38 = vadd.f32 %v2956_v22, %v2874_v44  ;;  %v2966_v30 = vadd.f32 %v2958_v14, %v2917_v49  ;;  %v2876_v20 = vpop.f32.mrb[93].mxu0  ;;  %v2919_v17 = vpop.f32.mrb[93].mxu1 }
 0x5d1   :  { %v2965_v54 = vadd.f32 %v2957_v18, %v2876_v20  ;;  %v2967_v48 = vadd.f32 %v2959_v24, %v2919_v17  ;;  %v2878_v9 = vpop.f32.mrb[94].mxu0  ;;  %v2921_v61 = vpop.f32.mrb[94].mxu1  ;;  %v2985_v17 = vmul.bf16 1056980736, %v2975_v43 }
 0x5d2   :  { %v2968_v35 = vadd.f32 %v2960_v37, %v2878_v9  ;;  %v2970_v52 = vadd.f32 %v2962_v57, %v2921_v61  ;;  %v2880_v13 = vpop.f32.mrb[95].mxu0  ;;  %v2923_v28 = vpop.f32.mrb[95].mxu1 }
 0x5d3   :  { %v2969_v22 = vadd.f32 %v2961_v19, %v2880_v13  ;;  %v2971_v14 = vadd.f32 %v2963_v62, %v2923_v28 }
 0x5d4   :  { %v3001_v44 = vpack.c.bf16 %v2968_v35, %v2964_v38  ;;  %v3003_v49 = vpack.c.bf16 %v2970_v52, %v2966_v30 }
 0x5d5   :  { %v3002_v63 = vpack.c.bf16 %v2969_v22, %v2965_v54  ;;  %v3004_v15 = vpack.c.bf16 %v2971_v14, %v2967_v48  ;;  %v2998_v48 = vpack.c.bf16 %v6342_v36, %v6340_v5 }
 0x5d6   :  { %v3005_v12 = vmul.bf16 1056980736, %v3001_v44 }
 0x5d7   :  { %v3009_v32 = vmul.bf16 1056980736, %v3002_v63  ;;  %v3014_v45 = vmul.bf16 1056980736, %v3004_v15 }
 0x5d8   :  { %4667 = vtanh.bf16 %v3005_v12 }
 0x5d9   :  { %4669 = vtanh.bf16 %v3009_v32  ;;  %v7832_v32 = vld [vmem:[#allocation111_spill] sm:$0xff] }
 0x5da   :  { %4671 = vtanh.bf16 %v3003_v49 }
 0x5db   :  { %4673 = vtanh.bf16 %v3014_v45  ;;  %v7837_v45 = vld [vmem:[#allocation116_spill] sm:$0xff] }
 0x5dc   :  { %4675 = vtanh.bf16 %v2985_v17  ;;  %v7838_v17 = vld [vmem:[#allocation117_spill] sm:$0xff] }
 0x5dd   :  { %4677 = vtanh.bf16 %v2998_v48  ;;  %v7849_v48 = vld [vmem:[#allocation128_spill] sm:$0xff] }
 0x5e3   :  { %v4668_v18 = vpop.eup %4667 }
 0x5e4   :  { %v4670_v24 = vpop.eup %4669  ;;  %v3007_v41 = vmul.bf16 1056980736, %v4668_v18  ;;  %v7833_v18 = vld [vmem:[#allocation112_spill] sm:$0xff] }
 0x5e5   :  { %v3011_v20 = vmul.bf16 1056980736, %v4670_v24  ;;  %v4672_v57 = vpop.eup %4671  ;;  %v7834_v24 = vld [vmem:[#allocation113_spill] sm:$0xff] }
 0x5e6   :  { %v3008_v37 = vadd.bf16 1056980736, %v3007_v41  ;;  %v4674_v35 = vpop.eup %4673  ;;  %v7835_v41 = vld [vmem:[#allocation114_spill] sm:$0xff] }
 0x5e7   :  { %v3012_v9 = vadd.bf16 1056980736, %v3011_v20  ;;  %v4676_v52 = vpop.eup %4675  ;;  %v3016_v13 = vmul.bf16 1056980736, %v4674_v35  ;;  %v7836_v20 = vld [vmem:[#allocation115_spill] sm:$0xff]  ;;  %v7851_v35 = vld [vmem:[#allocation130_spill] sm:$0xff] }
 0x5e8   :  { %v3022_v61 = vmul.bf16 %v4672_v57, %v3008_v37  ;;  %v2987_v22 = vmul.bf16 1056980736, %v4676_v52  ;;  %v4678_v14 = vpop.eup %4677  ;;  %v7839_v37 = vld [vmem:[#allocation118_spill] sm:$0xff]  ;;  %v7840_v57 = vld [vmem:[#allocation119_spill] sm:$0xff] }
 0x5e9   :  { %v3018_v28 = vunpack.c.l.bf16 %v3012_v9  ;;  %v3019_v38 = vunpack.c.h.bf16 %v3012_v9  ;;  %v7841_v9 = vld [vmem:[#allocation120_spill] sm:$0xff]  ;;  %v7852_v52 = vld [vmem:[#allocation131_spill] sm:$0xff] }
 0x5ea   :  { %v3023_v30 = vunpack.c.l.bf16 %v3022_v61  ;;  %v3024_v54 = vunpack.c.h.bf16 %v3022_v61  ;;  %v7842_v61 = vld [vmem:[#allocation121_spill] sm:$0xff] }
 0x5eb   :  { %v3020_v12 = vmul.f32 %v3018_v28, %v6184_v16  ;;  %v3021_v63 = vmul.f32 %v3019_v38, %v6186_v47  ;;  %v3017_v16 = vadd.bf16 1056980736, %v3016_v13  ;;  %v2988_v47 = vadd.bf16 1056980736, %v2987_v22  ;;  %v7843_v28 = vld [vmem:[#allocation122_spill] sm:$0xff]  ;;  %v7844_v38 = vld [vmem:[#allocation123_spill] sm:$0xff] }
 0x5ec   :  { %v7853_v13 = vld [vmem:[#allocation132_spill] sm:$0xff]  ;;  %v7854_v22 = vld [vmem:[#allocation133_spill] sm:$0xff] }
 0x5ed   :  { %v6356_v19 = vadd.f32 %v3023_v30, %v3020_v12  ;;  %v6358_v43 = vadd.f32 %v3024_v54, %v3021_v63  ;;  %v6362_v15 = vmul.bf16 %v4678_v14, %v2988_v47  ;;  %v7845_v30 = vld [vmem:[#allocation124_spill] sm:$0xff]  ;;  %v7846_v54 = vld [vmem:[#allocation125_spill] sm:$0xff]  ;;  %v7847_v12 = vld [vmem:[#allocation126_spill] sm:$0xff] }
 0x5ee   :  { %v7848_v63 = vld [vmem:[#allocation127_spill] sm:$0xff]  ;;  %v7855_v14 = vld [vmem:[#allocation134_spill] sm:$0xff]  ;;  %v7858_v47 = vld [vmem:[#allocation137_spill] sm:$0xff] }
 0x5ef   :  { %v3027_v62 = vpack.c.bf16 %v6358_v43, %v6356_v19 }
 0x5f1   :  { %4679 = vtanh.bf16 %v3027_v62  ;;  %v7850_v62 = vld [vmem:[#allocation129_spill] sm:$0xff] }
 0x5fc   :  { %v4680_v44 = vpop.eup %4679 }
 0x5fd   :  { %v3029_v49 = vmul.bf16 %v4680_v44, %v3017_v16  ;;  %v7856_v16 = vld [vmem:[#allocation135_spill] sm:$0xff]  ;;  %v7857_v44 = vld [vmem:[#allocation136_spill] sm:$0xff] }
 0x5ff   :  { %3062 = vmatprep.mubr.bf16.mxu0 %v3029_v49  ;;  %3105 = vmatprep.mubr.bf16.mxu1 %v3029_v49 }
 0x600   :  { %3063 = vmatmul.mubr.bf16.vlgmr.msra.gmra.mrb[96].mxu0 %v6362_v15  ;;  %3106 = vmatmul.mubr.bf16.vlgmr.msra.gmra.mrb[96].mxu1 %v6362_v15 }
 0x601   :  { %3117 = vmatpush1.bf16.msra.mxu0 %v7520_v59  ;;  %3160 = vmatpush1.bf16.msra.mxu1 %v7521_v0 }
 0x602   :  { %3148 = vmatprep.mubr.bf16.mxu0 %v3029_v49  ;;  %3191 = vmatprep.mubr.bf16.mxu1 %v3029_v49  ;;  %v7859_v49 = vld [vmem:[#allocation138_spill] sm:$0xff] }
 0x603   :  { %3118 = vmatprep.subr.bf16.mxu0 %v7522_v21  ;;  %3161 = vmatprep.subr.bf16.mxu1 %v7523_v3 }
 0x605   :  { %3119 = vmatpush1.bf16.msra.mxu0 %v7524_v39  ;;  %3162 = vmatpush1.bf16.msra.mxu1 %v7525_v58 }
 0x606   :  { %3120 = vmatprep.subr.bf16.mxu0 %v7526_v51  ;;  %3163 = vmatprep.subr.bf16.mxu1 %v7527_v25 }
 0x609   :  { %3121 = vmatpush1.bf16.msra.mxu0 %v7528_v50  ;;  %3164 = vmatpush1.bf16.msra.mxu1 %v7529_v56 }
 0x60a   :  { %3122 = vmatprep.subr.bf16.mxu0 %v7530_v55  ;;  %3165 = vmatprep.subr.bf16.mxu1 %v7531_v11 }
 0x60d   :  { %3123 = vmatpush1.bf16.msra.mxu0 %v7532_v60  ;;  %3166 = vmatpush1.bf16.msra.mxu1 %v7533_v6 }
 0x60e   :  { %3124 = vmatprep.subr.bf16.mxu0 %v7622_v4  ;;  %3167 = vmatprep.subr.bf16.mxu1 %v7623_v33 }
 0x611   :  { %3125 = vmatpush1.bf16.msra.mxu0 %v7624_v23  ;;  %3168 = vmatpush1.bf16.msra.mxu1 %v7625_v31 }
 0x612   :  { %3126 = vmatprep.subr.bf16.mxu0 %v7626_v26  ;;  %3169 = vmatprep.subr.bf16.mxu1 %v7627_v8 }
 0x615   :  { %3127 = vmatpush1.bf16.msra.mxu0 %v7628_v40  ;;  %3170 = vmatpush1.bf16.msra.mxu1 %v7629_v42 }
 0x616   :  { %3128 = vmatprep.subr.bf16.mxu0 %v7630_v34  ;;  %3171 = vmatprep.subr.bf16.mxu1 %v7631_v29 }
 0x619   :  { %3129 = vmatpush1.bf16.msra.mxu0 %v7632_v46  ;;  %3172 = vmatpush1.bf16.msra.mxu1 %v7633_v7 }
 0x61a   :  { %3130 = vmatprep.subr.bf16.mxu0 %v7634_v2  ;;  %3173 = vmatprep.subr.bf16.mxu1 %v7635_v27 }
 0x61d   :  { %3131 = vmatpush1.bf16.msra.mxu0 %v7636_v10  ;;  %3174 = vmatpush1.bf16.msra.mxu1 %v7637_v1 }
 0x61e   :  { %3132 = vmatprep.subr.bf16.mxu0 %v7638_v53  ;;  %3175 = vmatprep.subr.bf16.mxu1 %v7832_v32 }
 0x621   :  { %3133 = vmatpush1.bf16.msra.mxu0 %v7833_v18  ;;  %3176 = vmatpush1.bf16.msra.mxu1 %v7834_v24 }
 0x622   :  { %3134 = vmatprep.subr.bf16.mxu0 %v7835_v41  ;;  %3177 = vmatprep.subr.bf16.mxu1 %v7836_v20 }
 0x625   :  { %3135 = vmatpush1.bf16.msra.mxu0 %v7837_v45  ;;  %3178 = vmatpush1.bf16.msra.mxu1 %v7838_v17 }
 0x626   :  { %3136 = vmatprep.subr.bf16.mxu0 %v7839_v37  ;;  %3179 = vmatprep.subr.bf16.mxu1 %v7840_v57 }
 0x629   :  { %3137 = vmatpush1.bf16.msra.mxu0 %v7841_v9  ;;  %3180 = vmatpush1.bf16.msra.mxu1 %v7842_v61 }
 0x62a   :  { %3138 = vmatprep.subr.bf16.mxu0 %v7843_v28  ;;  %3181 = vmatprep.subr.bf16.mxu1 %v7844_v38 }
 0x62d   :  { %3139 = vmatpush1.bf16.msra.mxu0 %v7845_v30  ;;  %3182 = vmatpush1.bf16.msra.mxu1 %v7846_v54  ;;  %v7932_v54 = vld [vmem:[#allocation157_spill] sm:$0xff] }
 0x62e   :  { %3140 = vmatprep.subr.bf16.mxu0 %v7847_v12  ;;  %3183 = vmatprep.subr.bf16.mxu1 %v7848_v63  ;;  %v7931_v12 = vld [vmem:[#allocation155_spill] sm:$0xff]  ;;  %v3213_v37 = vunpack.c.h.bf16 %v7932_v54 }
 0x62f   :  { %v3211_v57 = vunpack.c.h.bf16 %v7931_v12 }
 0x631   :  { %3141 = vmatpush1.bf16.msra.mxu0 %v7849_v48  ;;  %3184 = vmatpush1.bf16.msra.mxu1 %v7850_v62  ;;  %v7860_v48 = vld [vmem:[#allocation139_spill] sm:$0xff]  ;;  %v7861_v62 = vld [vmem:[#allocation140_spill] sm:$0xff] }
 0x632   :  { %3142 = vmatprep.subr.bf16.mxu0 %v7851_v35  ;;  %3185 = vmatprep.subr.bf16.mxu1 %v7852_v52  ;;  %v7862_v35 = vld [vmem:[#allocation141_spill] sm:$0xff]  ;;  %v7863_v52 = vld [vmem:[#allocation14_spill] sm:$0xff] }
 0x635   :  { %3143 = vmatpush1.bf16.msra.mxu0 %v7853_v13  ;;  %3186 = vmatpush1.bf16.msra.mxu1 %v7854_v22  ;;  %v7864_v13 = vld [vmem:[#allocation15_spill] sm:$0xff]  ;;  %v7930_v22 = vld [vmem:[#allocation156_spill] sm:$0xff] }
 0x636   :  { %3144 = vmatprep.subr.bf16.mxu0 %v7855_v14  ;;  %3187 = vmatprep.subr.bf16.mxu1 %v7856_v16  ;;  %v7865_v16 = vld [vmem:[#allocation16_spill] sm:$0xff]  ;;  %v7874_v14 = vld [vmem:[#allocation25_spill] sm:$0xff] }
 0x639   :  { %3145 = vmatpush1.bf16.msra.mxu0 %v7857_v44  ;;  %3188 = vmatpush1.bf16.msra.mxu1 %v7858_v47  ;;  %v7866_v44 = vld [vmem:[#allocation17_spill] sm:$0xff]  ;;  %v7867_v47 = vld [vmem:[#allocation18_spill] sm:$0xff] }
 0x63a   :  { %3146 = vmatprep.subr.bf16.mxu0 %v7859_v49  ;;  %3189 = vmatprep.subr.bf16.mxu1 %v7860_v48  ;;  %v7868_v49 = vld [vmem:[#allocation19_spill] sm:$0xff]  ;;  %v7869_v48 = vld [vmem:[#allocation20_spill] sm:$0xff] }
 0x63d   :  { %3147 = vmatpush1.bf16.msra.mxu0 %v7861_v62  ;;  %3190 = vmatpush1.bf16.msra.mxu1 %v7862_v35  ;;  %v7870_v62 = vld [vmem:[#allocation21_spill] sm:$0xff]  ;;  %v7871_v35 = vld [vmem:[#allocation22_spill] sm:$0xff] }
 0x63e   :  { %3300 = vmatprep.subr.bf16.mxu0 %v7863_v52  ;;  %3343 = vmatprep.subr.bf16.mxu1 %v7864_v13  ;;  %v7872_v52 = vld [vmem:[#allocation23_spill] sm:$0xff]  ;;  %v7873_v13 = vld [vmem:[#allocation24_spill] sm:$0xff] }
 0x640   :  { %3149 = vmatmul.mubr.bf16.vlgmr.msra.gmra.mrb[100].mxu0 %v6362_v15  ;;  %3192 = vmatmul.mubr.bf16.vlgmr.msra.gmra.mrb[100].mxu1 %v6362_v15  ;;  %v7875_v15 = vld [vmem:[#allocation26_spill] sm:$0xff] }
 0x641   :  { %3301 = vmatpush1.bf16.msra.mxu0 %v7865_v16  ;;  %3344 = vmatpush1.bf16.msra.mxu1 %v7866_v44  ;;  %v7876_v16 = vld [vmem:[#allocation27_spill] sm:$0xff]  ;;  %v7877_v44 = vld [vmem:[#allocation28_spill] sm:$0xff] }
 0x642   :  { %3302 = vmatprep.subr.bf16.mxu0 %v7867_v47  ;;  %3345 = vmatprep.subr.bf16.mxu1 %v7868_v49  ;;  %v7878_v47 = vld [vmem:[#allocation29_spill] sm:$0xff]  ;;  %v7879_v49 = vld [vmem:[#allocation30_spill] sm:$0xff] }
 0x645   :  { %3303 = vmatpush1.bf16.msra.mxu0 %v7869_v48  ;;  %3346 = vmatpush1.bf16.msra.mxu1 %v7870_v62  ;;  %v7880_v48 = vld [vmem:[#allocation31_spill] sm:$0xff]  ;;  %v7881_v62 = vld [vmem:[#allocation32_spill] sm:$0xff] }
 0x646   :  { %3304 = vmatprep.subr.bf16.mxu0 %v7871_v35  ;;  %3347 = vmatprep.subr.bf16.mxu1 %v7872_v52  ;;  %v7882_v35 = vld [vmem:[#allocation33_spill] sm:$0xff]  ;;  %v7883_v52 = vld [vmem:[#allocation34_spill] sm:$0xff] }
 0x649   :  { %3305 = vmatpush1.bf16.msra.mxu0 %v7873_v13  ;;  %3348 = vmatpush1.bf16.msra.mxu1 %v7874_v14  ;;  %v7884_v13 = vld [vmem:[#allocation35_spill] sm:$0xff]  ;;  %v7885_v14 = vld [vmem:[#allocation36_spill] sm:$0xff] }
 0x64a   :  { %3306 = vmatprep.subr.bf16.mxu0 %v7875_v15  ;;  %3349 = vmatprep.subr.bf16.mxu1 %v7876_v16  ;;  %v7886_v15 = vld [vmem:[#allocation37_spill] sm:$0xff]  ;;  %v7887_v16 = vld [vmem:[#allocation38_spill] sm:$0xff] }
 0x64d   :  { %3307 = vmatpush1.bf16.msra.mxu0 %v7877_v44  ;;  %3350 = vmatpush1.bf16.msra.mxu1 %v7878_v47  ;;  %v7888_v44 = vld [vmem:[#allocation39_spill] sm:$0xff]  ;;  %v7889_v47 = vld [vmem:[#allocation40_spill] sm:$0xff] }
 0x64e   :  { %3308 = vmatprep.subr.bf16.mxu0 %v7879_v49  ;;  %3351 = vmatprep.subr.bf16.mxu1 %v7880_v48  ;;  %v7890_v49 = vld [vmem:[#allocation41_spill] sm:$0xff]  ;;  %v7891_v48 = vld [vmem:[#allocation42_spill] sm:$0xff] }
 0x651   :  { %3309 = vmatpush1.bf16.msra.mxu0 %v7881_v62  ;;  %3352 = vmatpush1.bf16.msra.mxu1 %v7882_v35  ;;  %v7892_v62 = vld [vmem:[#allocation43_spill] sm:$0xff]  ;;  %v7893_v35 = vld [vmem:[#allocation44_spill] sm:$0xff] }
 0x652   :  { %3310 = vmatprep.subr.bf16.mxu0 %v7883_v52  ;;  %3353 = vmatprep.subr.bf16.mxu1 %v7884_v13  ;;  %v7894_v52 = vld [vmem:[#allocation45_spill] sm:$0xff]  ;;  %v7895_v13 = vld [vmem:[#allocation46_spill] sm:$0xff] }
 0x655   :  { %3311 = vmatpush1.bf16.msra.mxu0 %v7885_v14  ;;  %3354 = vmatpush1.bf16.msra.mxu1 %v7886_v15  ;;  %v7896_v14 = vld [vmem:[#allocation47_spill] sm:$0xff]  ;;  %v7897_v15 = vld [vmem:[#allocation48_spill] sm:$0xff] }
 0x656   :  { %3312 = vmatprep.subr.bf16.mxu0 %v7887_v16  ;;  %3355 = vmatprep.subr.bf16.mxu1 %v7888_v44  ;;  %v7898_v16 = vld [vmem:[#allocation49_spill] sm:$0xff]  ;;  %v7899_v44 = vld [vmem:[#allocation50_spill] sm:$0xff] }
 0x659   :  { %3313 = vmatpush1.bf16.msra.mxu0 %v7889_v47  ;;  %3356 = vmatpush1.bf16.msra.mxu1 %v7890_v49  ;;  %v7900_v47 = vld [vmem:[#allocation51_spill] sm:$0xff]  ;;  %v7901_v49 = vld [vmem:[#allocation52_spill] sm:$0xff] }
 0x65a   :  { %3314 = vmatprep.subr.bf16.mxu0 %v7891_v48  ;;  %3357 = vmatprep.subr.bf16.mxu1 %v7892_v62  ;;  %v7902_v48 = vld [vmem:[#allocation53_spill] sm:$0xff]  ;;  %v7903_v62 = vld [vmem:[#allocation54_spill] sm:$0xff] }
 0x65d   :  { %3315 = vmatpush1.bf16.msra.mxu0 %v7893_v35  ;;  %3358 = vmatpush1.bf16.msra.mxu1 %v7894_v52  ;;  %v7904_v35 = vld [vmem:[#allocation55_spill] sm:$0xff]  ;;  %v7905_v52 = vld [vmem:[#allocation56_spill] sm:$0xff] }
 0x65e   :  { %3316 = vmatprep.subr.bf16.mxu0 %v7895_v13  ;;  %3359 = vmatprep.subr.bf16.mxu1 %v7896_v14  ;;  %v7906_v13 = vld [vmem:[#allocation57_spill] sm:$0xff]  ;;  %v7907_v14 = vld [vmem:[#allocation58_spill] sm:$0xff] }
 0x661   :  { %3317 = vmatpush1.bf16.msra.mxu0 %v7897_v15  ;;  %3360 = vmatpush1.bf16.msra.mxu1 %v7898_v16  ;;  %v7908_v15 = vld [vmem:[#allocation59_spill] sm:$0xff]  ;;  %v7909_v16 = vld [vmem:[#allocation60_spill] sm:$0xff] }
 0x662   :  { %3318 = vmatprep.subr.bf16.mxu0 %v7899_v44  ;;  %3361 = vmatprep.subr.bf16.mxu1 %v7900_v47  ;;  %v7910_v44 = vld [vmem:[#allocation61_spill] sm:$0xff]  ;;  %v7911_v47 = vld [vmem:[#allocation62_spill] sm:$0xff] }
 0x665   :  { %3319 = vmatpush1.bf16.msra.mxu0 %v7901_v49  ;;  %3362 = vmatpush1.bf16.msra.mxu1 %v7902_v48  ;;  %v7912_v49 = vld [vmem:[#allocation63_spill] sm:$0xff]  ;;  %v7913_v48 = vld [vmem:[#allocation64_spill] sm:$0xff] }
 0x666   :  { %3320 = vmatprep.subr.bf16.mxu0 %v7903_v62  ;;  %3363 = vmatprep.subr.bf16.mxu1 %v7904_v35  ;;  %v7914_v62 = vld [vmem:[#allocation65_spill] sm:$0xff]  ;;  %v7915_v35 = vld [vmem:[#allocation66_spill] sm:$0xff] }
 0x669   :  { %3321 = vmatpush1.bf16.msra.mxu0 %v7905_v52  ;;  %3364 = vmatpush1.bf16.msra.mxu1 %v7906_v13  ;;  %v7916_v52 = vld [vmem:[#allocation67_spill] sm:$0xff]  ;;  %v7917_v13 = vld [vmem:[#allocation68_spill] sm:$0xff] }
 0x66a   :  { %3322 = vmatprep.subr.bf16.mxu0 %v7907_v14  ;;  %3365 = vmatprep.subr.bf16.mxu1 %v7908_v15  ;;  %v7918_v14 = vld [vmem:[#allocation69_spill] sm:$0xff]  ;;  %v7919_v15 = vld [vmem:[#allocation70_spill] sm:$0xff] }
 0x66d   :  { %3323 = vmatpush1.bf16.msra.mxu0 %v7909_v16  ;;  %3366 = vmatpush1.bf16.msra.mxu1 %v7910_v44  ;;  %v7920_v16 = vld [vmem:[#allocation71_spill] sm:$0xff]  ;;  %v7921_v44 = vld [vmem:[#allocation72_spill] sm:$0xff] }
 0x66e   :  { %3324 = vmatprep.subr.bf16.mxu0 %v7911_v47  ;;  %3367 = vmatprep.subr.bf16.mxu1 %v7912_v49  ;;  %v7922_v47 = vld [vmem:[#allocation73_spill] sm:$0xff]  ;;  %v7923_v49 = vld [vmem:[#allocation74_spill] sm:$0xff] }
 0x671   :  { %3325 = vmatpush1.bf16.msra.mxu0 %v7913_v48  ;;  %3368 = vmatpush1.bf16.msra.mxu1 %v7914_v62  ;;  %v7924_v48 = vld [vmem:[#allocation75_spill] sm:$0xff]  ;;  %v7925_v62 = vld [vmem:[#allocation76_spill] sm:$0xff] }
 0x672   :  { %3326 = vmatprep.subr.bf16.mxu0 %v7915_v35  ;;  %3369 = vmatprep.subr.bf16.mxu1 %v7916_v52  ;;  %v7926_v35 = vld [vmem:[#allocation77_spill] sm:$0xff]  ;;  %v7927_v52 = vld [vmem:[#allocation78_spill] sm:$0xff] }
 0x675   :  { %3327 = vmatpush1.bf16.msra.mxu0 %v7917_v13  ;;  %3370 = vmatpush1.bf16.msra.mxu1 %v7918_v14  ;;  %v7928_v13 = vld [vmem:[#allocation79_spill] sm:$0xff]  ;;  %v7929_v14 = vld [vmem:[#allocation154_spill] sm:$0xff] }
 0x676   :  { %3328 = vmatprep.subr.bf16.mxu0 %v7919_v15  ;;  %3371 = vmatprep.subr.bf16.mxu1 %v7920_v16  ;;  %v3206_v15 = vunpack.c.l.bf16 %v7929_v14  ;;  %v3208_v16 = vunpack.c.l.bf16 %v7930_v22 }
 0x679   :  { %3329 = vmatpush1.bf16.msra.mxu0 %v7921_v44  ;;  %3372 = vmatpush1.bf16.msra.mxu1 %v7922_v47  ;;  %v3207_v47 = vunpack.c.l.bf16 %v7931_v12 }
 0x67a   :  { %3330 = vmatprep.subr.bf16.mxu0 %v7923_v49  ;;  %3373 = vmatprep.subr.bf16.mxu1 %v7924_v48  ;;  %v3209_v49 = vunpack.c.l.bf16 %v7932_v54 }
 0x67d   :  { %3331 = vmatpush1.bf16.msra.mxu0 %v7925_v62  ;;  %3374 = vmatpush1.bf16.msra.mxu1 %v7926_v35  ;;  %v3210_v35 = vunpack.c.h.bf16 %v7929_v14 }
 0x67e   :  { %3386 = vmatprep.subr.bf16.mxu0 %v7927_v52  ;;  %3429 = vmatprep.subr.bf16.mxu1 %v7928_v13  ;;  %v3212_v52 = vunpack.c.h.bf16 %v7930_v22 }
 0x6d3   :  { %v3064_v63 = vpop.f32.mrb[96].mxu0  ;;  %v3107_v44 = vpop.f32.mrb[96].mxu1 }
 0x6d4   :  { %v3214_v30 = vadd.f32 %v3206_v15, %v3064_v63  ;;  %v3216_v48 = vadd.f32 %v3208_v16, %v3107_v44  ;;  %v3066_v38 = vpop.f32.mrb[97].mxu0  ;;  %v3109_v62 = vpop.f32.mrb[97].mxu1 }
 0x6d5   :  { %v3215_v28 = vadd.f32 %v3207_v47, %v3066_v38  ;;  %v6502_v13 = vadd.f32 %v3209_v49, %v3109_v62  ;;  %v3068_v61 = vpop.f32.mrb[98].mxu0  ;;  %v3111_v9 = vpop.f32.mrb[98].mxu1  ;;  %v7933_v47 = vld [vmem:[#allocation182_spill] sm:$0xff] }
 0x6d6   :  { %v3218_v17 = vadd.f32 %v3210_v35, %v3068_v61  ;;  %v3220_v45 = vadd.f32 %v3212_v52, %v3111_v9  ;;  %v3070_v20 = vpop.f32.mrb[99].mxu0  ;;  %v3113_v63 = vpop.f32.mrb[99].mxu1  ;;  %v3226_v49 = vunpack.c.l.bf16 %v7933_v47 }
 0x6d7   :  { %v3219_v16 = vadd.f32 %v3211_v57, %v3070_v20  ;;  %v6506_v44 = vadd.f32 %v3213_v37, %v3113_v63  ;;  %v7934_v63 = vld [vmem:[#allocation184_spill] sm:$0xff] }
 0x6d8   :  { %v3242_v15 = vpack.c.bf16 %v3218_v17, %v3214_v30  ;;  %v3244_v14 = vpack.c.bf16 %v3220_v45, %v3216_v48 }
 0x6d9   :  { %v3243_v41 = vpack.c.bf16 %v3219_v16, %v3215_v28  ;;  %v3245_v38 = vpack.c.bf16 %v6506_v44, %v6502_v13  ;;  %v3228_v16 = vunpack.c.l.bf16 %v7934_v63 }
 0x6da   :  { %v3246_v62 = vmul.bf16 1056980736, %v3242_v15 }
 0x6db   :  { %v3250_v22 = vmul.bf16 1056980736, %v3243_v41 }
 0x6dc   :  { %4681 = vtanh.bf16 %v3246_v62 }
 0x6dd   :  { %4683 = vtanh.bf16 %v3250_v22  ;;  %v7936_v22 = vld [vmem:[#allocation185_spill] sm:$0xff] }
 0x6de   :  { %4685 = vtanh.bf16 %v3244_v14  ;;  %v7935_v14 = vld [vmem:[#allocation183_spill] sm:$0xff] }
 0x6df   :  { %v3227_v62 = vunpack.c.l.bf16 %v7935_v14 }
 0x6e7   :  { %v4682_v12 = vpop.eup %4681 }
 0x6e8   :  { %v4684_v54 = vpop.eup %4683  ;;  %v3248_v61 = vmul.bf16 1056980736, %v4682_v12  ;;  %v3229_v12 = vunpack.c.l.bf16 %v7936_v22 }
 0x6e9   :  { %v3252_v9 = vmul.bf16 1056980736, %v4684_v54  ;;  %v4686_v52 = vpop.eup %4685 }
 0x6ea   :  { %v3249_v35 = vadd.bf16 1056980736, %v3248_v61 }
 0x6eb   :  { %v3253_v20 = vadd.bf16 1056980736, %v3252_v9 }
 0x6ec   :  { %v3263_v37 = vmul.bf16 %v4686_v52, %v3249_v35  ;;  %v3232_v35 = vunpack.c.h.bf16 %v7934_v63 }
 0x6ed   :  { %v3259_v57 = vunpack.c.l.bf16 %v3253_v20  ;;  %v3260_v17 = vunpack.c.h.bf16 %v3253_v20 }
 0x6ee   :  { %v3264_v45 = vunpack.c.l.bf16 %v3263_v37  ;;  %v3265_v28 = vunpack.c.h.bf16 %v3263_v37 }
 0x6ef   :  { %v3261_v30 = vmul.f32 %v3259_v57, %v6340_v5  ;;  %v3262_v48 = vmul.f32 %v3260_v17, %v6342_v36  ;;  %v3230_v36 = vunpack.c.h.bf16 %v7933_v47  ;;  %v3231_v17 = vunpack.c.h.bf16 %v7935_v14 }
 0x6f1   :  { %v6512_v41 = vadd.f32 %v3264_v45, %v3261_v30  ;;  %v6514_v13 = vadd.f32 %v3265_v28, %v3262_v48  ;;  %v3233_v45 = vunpack.c.h.bf16 %v7936_v22 }
 0x713   :  { %v3150_v44 = vpop.f32.mrb[100].mxu0  ;;  %v3193_v15 = vpop.f32.mrb[100].mxu1 }
 0x714   :  { %v3234_v54 = vadd.f32 %v3226_v49, %v3150_v44  ;;  %v3236_v61 = vadd.f32 %v3228_v16, %v3193_v15  ;;  %v3152_v9 = vpop.f32.mrb[101].mxu0  ;;  %v3195_v5 = vpop.f32.mrb[101].mxu1 }
 0x715   :  { %v3235_v52 = vadd.f32 %v3227_v62, %v3152_v9  ;;  %v3237_v20 = vadd.f32 %v3229_v12, %v3195_v5  ;;  %v3154_v37 = vpop.f32.mrb[102].mxu0  ;;  %v3197_v57 = vpop.f32.mrb[102].mxu1  ;;  %v3255_v5 = vmul.bf16 1056980736, %v3245_v38 }
 0x716   :  { %v3238_v28 = vadd.f32 %v3230_v36, %v3154_v37  ;;  %v3240_v30 = vadd.f32 %v3232_v35, %v3197_v57  ;;  %v3156_v48 = vpop.f32.mrb[103].mxu0  ;;  %v3199_v24 = vpop.f32.mrb[103].mxu1 }
 0x717   :  { %v3239_v49 = vadd.f32 %v3231_v17, %v3156_v48  ;;  %v3241_v16 = vadd.f32 %v3233_v45, %v3199_v24 }
 0x718   :  { %v3271_v44 = vpack.c.bf16 %v3238_v28, %v3234_v54  ;;  %v3273_v15 = vpack.c.bf16 %v3240_v30, %v3236_v61 }
 0x719   :  { %v3272_v18 = vpack.c.bf16 %v3239_v49, %v3235_v52  ;;  %v3274_v47 = vpack.c.bf16 %v3241_v16, %v3237_v20  ;;  %v3268_v20 = vpack.c.bf16 %v6514_v13, %v6512_v41 }
 0x71a   :  { %v3275_v32 = vmul.bf16 1056980736, %v3271_v44 }
 0x71b   :  { %v3279_v63 = vmul.bf16 1056980736, %v3272_v18  ;;  %v3284_v22 = vmul.bf16 1056980736, %v3274_v47 }
 0x71c   :  { %4687 = vtanh.bf16 %v3275_v32 }
 0x71d   :  { %4689 = vtanh.bf16 %v3279_v63  ;;  %v7937_v63 = vld [vmem:[#allocation111_spill] sm:$0xff] }
 0x71e   :  { %4691 = vtanh.bf16 %v3273_v15 }
 0x71f   :  { %4693 = vtanh.bf16 %v3284_v22  ;;  %v7942_v22 = vld [vmem:[#allocation116_spill] sm:$0xff] }
 0x720   :  { %4695 = vtanh.bf16 %v3255_v5  ;;  %v7943_v5 = vld [vmem:[#allocation117_spill] sm:$0xff] }
 0x721   :  { %4697 = vtanh.bf16 %v3268_v20  ;;  %v7954_v20 = vld [vmem:[#allocation128_spill] sm:$0xff] }
 0x727   :  { %v4688_v62 = vpop.eup %4687 }
 0x728   :  { %v4690_v12 = vpop.eup %4689  ;;  %v3277_v14 = vmul.bf16 1056980736, %v4688_v62  ;;  %v7938_v62 = vld [vmem:[#allocation112_spill] sm:$0xff] }
 0x729   :  { %v3281_v9 = vmul.bf16 1056980736, %v4690_v12  ;;  %v4692_v35 = vpop.eup %4691  ;;  %v7939_v12 = vld [vmem:[#allocation113_spill] sm:$0xff] }
 0x72a   :  { %v3278_v36 = vadd.bf16 1056980736, %v3277_v14  ;;  %v4694_v28 = vpop.eup %4693  ;;  %v7940_v14 = vld [vmem:[#allocation114_spill] sm:$0xff] }
 0x72b   :  { %v3282_v37 = vadd.bf16 1056980736, %v3281_v9  ;;  %v4696_v30 = vpop.eup %4695  ;;  %v3286_v48 = vmul.bf16 1056980736, %v4694_v28  ;;  %v7941_v9 = vld [vmem:[#allocation115_spill] sm:$0xff]  ;;  %v7956_v28 = vld [vmem:[#allocation130_spill] sm:$0xff] }
 0x72c   :  { %v3292_v57 = vmul.bf16 %v4692_v35, %v3278_v36  ;;  %v3257_v49 = vmul.bf16 1056980736, %v4696_v30  ;;  %v4698_v16 = vpop.eup %4697  ;;  %v7944_v36 = vld [vmem:[#allocation118_spill] sm:$0xff]  ;;  %v7945_v35 = vld [vmem:[#allocation119_spill] sm:$0xff] }
 0x72d   :  { %v3288_v24 = vunpack.c.l.bf16 %v3282_v37  ;;  %v3289_v54 = vunpack.c.h.bf16 %v3282_v37  ;;  %v7946_v37 = vld [vmem:[#allocation120_spill] sm:$0xff]  ;;  %v7957_v30 = vld [vmem:[#allocation131_spill] sm:$0xff] }
 0x72e   :  { %v3293_v61 = vunpack.c.l.bf16 %v3292_v57  ;;  %v3294_v52 = vunpack.c.h.bf16 %v3292_v57  ;;  %v7947_v57 = vld [vmem:[#allocation121_spill] sm:$0xff] }
 0x72f   :  { %v3290_v32 = vmul.f32 %v3288_v24, %v6356_v19  ;;  %v3291_v18 = vmul.f32 %v3289_v54, %v6358_v43  ;;  %v3287_v19 = vadd.bf16 1056980736, %v3286_v48  ;;  %v3258_v43 = vadd.bf16 1056980736, %v3257_v49  ;;  %v7948_v24 = vld [vmem:[#allocation122_spill] sm:$0xff]  ;;  %v7949_v54 = vld [vmem:[#allocation123_spill] sm:$0xff] }
 0x730   :  { %v7958_v48 = vld [vmem:[#allocation132_spill] sm:$0xff]  ;;  %v7959_v49 = vld [vmem:[#allocation133_spill] sm:$0xff] }
 0x731   :  { %v6528_v17 = vadd.f32 %v3293_v61, %v3290_v32  ;;  %v6530_v38 = vadd.f32 %v3294_v52, %v3291_v18  ;;  %v6534_v47 = vmul.bf16 %v4698_v16, %v3258_v43  ;;  %v7950_v61 = vld [vmem:[#allocation124_spill] sm:$0xff]  ;;  %v7951_v52 = vld [vmem:[#allocation125_spill] sm:$0xff]  ;;  %v7952_v32 = vld [vmem:[#allocation126_spill] sm:$0xff] }
 0x732   :  { %v7953_v18 = vld [vmem:[#allocation127_spill] sm:$0xff]  ;;  %v7960_v16 = vld [vmem:[#allocation134_spill] sm:$0xff]  ;;  %v7963_v43 = vld [vmem:[#allocation137_spill] sm:$0xff] }
 0x733   :  { %v3297_v45 = vpack.c.bf16 %v6530_v38, %v6528_v17 }
 0x735   :  { %4699 = vtanh.bf16 %v3297_v45  ;;  %v7955_v45 = vld [vmem:[#allocation129_spill] sm:$0xff] }
 0x740   :  { %v4700_v44 = vpop.eup %4699 }
 0x741   :  { %v3299_v15 = vmul.bf16 %v4700_v44, %v3287_v19  ;;  %v7961_v19 = vld [vmem:[#allocation135_spill] sm:$0xff]  ;;  %v7962_v44 = vld [vmem:[#allocation136_spill] sm:$0xff] }
 0x743   :  { %3332 = vmatprep.mubr.bf16.mxu0 %v3299_v15  ;;  %3375 = vmatprep.mubr.bf16.mxu1 %v3299_v15 }
 0x744   :  { %3333 = vmatmul.mubr.bf16.vlgmr.msra.gmra.mrb[104].mxu0 %v6534_v47  ;;  %3376 = vmatmul.mubr.bf16.vlgmr.msra.gmra.mrb[104].mxu1 %v6534_v47 }
 0x745   :  { %3387 = vmatpush1.bf16.msra.mxu0 %v7520_v59  ;;  %3430 = vmatpush1.bf16.msra.mxu1 %v7521_v0 }
 0x746   :  { %3418 = vmatprep.mubr.bf16.mxu0 %v3299_v15  ;;  %3461 = vmatprep.mubr.bf16.mxu1 %v3299_v15  ;;  %v7964_v15 = vld [vmem:[#allocation138_spill] sm:$0xff] }
 0x747   :  { %3388 = vmatprep.subr.bf16.mxu0 %v7522_v21  ;;  %3431 = vmatprep.subr.bf16.mxu1 %v7523_v3 }
 0x749   :  { %3389 = vmatpush1.bf16.msra.mxu0 %v7524_v39  ;;  %3432 = vmatpush1.bf16.msra.mxu1 %v7525_v58 }
 0x74a   :  { %3390 = vmatprep.subr.bf16.mxu0 %v7526_v51  ;;  %3433 = vmatprep.subr.bf16.mxu1 %v7527_v25 }
 0x74d   :  { %3391 = vmatpush1.bf16.msra.mxu0 %v7528_v50  ;;  %3434 = vmatpush1.bf16.msra.mxu1 %v7529_v56 }
 0x74e   :  { %3392 = vmatprep.subr.bf16.mxu0 %v7530_v55  ;;  %3435 = vmatprep.subr.bf16.mxu1 %v7531_v11 }
 0x751   :  { %3393 = vmatpush1.bf16.msra.mxu0 %v7532_v60  ;;  %3436 = vmatpush1.bf16.msra.mxu1 %v7533_v6 }
 0x752   :  { %3394 = vmatprep.subr.bf16.mxu0 %v7622_v4  ;;  %3437 = vmatprep.subr.bf16.mxu1 %v7623_v33 }
 0x755   :  { %3395 = vmatpush1.bf16.msra.mxu0 %v7624_v23  ;;  %3438 = vmatpush1.bf16.msra.mxu1 %v7625_v31 }
 0x756   :  { %3396 = vmatprep.subr.bf16.mxu0 %v7626_v26  ;;  %3439 = vmatprep.subr.bf16.mxu1 %v7627_v8 }
 0x759   :  { %3397 = vmatpush1.bf16.msra.mxu0 %v7628_v40  ;;  %3440 = vmatpush1.bf16.msra.mxu1 %v7629_v42 }
 0x75a   :  { %3398 = vmatprep.subr.bf16.mxu0 %v7630_v34  ;;  %3441 = vmatprep.subr.bf16.mxu1 %v7631_v29 }
 0x75d   :  { %3399 = vmatpush1.bf16.msra.mxu0 %v7632_v46  ;;  %3442 = vmatpush1.bf16.msra.mxu1 %v7633_v7 }
 0x75e   :  { %3400 = vmatprep.subr.bf16.mxu0 %v7634_v2  ;;  %3443 = vmatprep.subr.bf16.mxu1 %v7635_v27 }
 0x761   :  { %3401 = vmatpush1.bf16.msra.mxu0 %v7636_v10  ;;  %3444 = vmatpush1.bf16.msra.mxu1 %v7637_v1 }
 0x762   :  { %3402 = vmatprep.subr.bf16.mxu0 %v7638_v53  ;;  %3445 = vmatprep.subr.bf16.mxu1 %v7937_v63 }
 0x765   :  { %3403 = vmatpush1.bf16.msra.mxu0 %v7938_v62  ;;  %3446 = vmatpush1.bf16.msra.mxu1 %v7939_v12 }
 0x766   :  { %3404 = vmatprep.subr.bf16.mxu0 %v7940_v14  ;;  %3447 = vmatprep.subr.bf16.mxu1 %v7941_v9 }
 0x769   :  { %3405 = vmatpush1.bf16.msra.mxu0 %v7942_v22  ;;  %3448 = vmatpush1.bf16.msra.mxu1 %v7943_v5 }
 0x76a   :  { %3406 = vmatprep.subr.bf16.mxu0 %v7944_v36  ;;  %3449 = vmatprep.subr.bf16.mxu1 %v7945_v35 }
 0x76d   :  { %3407 = vmatpush1.bf16.msra.mxu0 %v7946_v37  ;;  %3450 = vmatpush1.bf16.msra.mxu1 %v7947_v57 }
 0x76e   :  { %3408 = vmatprep.subr.bf16.mxu0 %v7948_v24  ;;  %3451 = vmatprep.subr.bf16.mxu1 %v7949_v54 }
 0x771   :  { %3409 = vmatpush1.bf16.msra.mxu0 %v7950_v61  ;;  %3452 = vmatpush1.bf16.msra.mxu1 %v7951_v52  ;;  %v8037_v52 = vld [vmem:[#allocation161_spill] sm:$0xff] }
 0x772   :  { %3410 = vmatprep.subr.bf16.mxu0 %v7952_v32  ;;  %3453 = vmatprep.subr.bf16.mxu1 %v7953_v18  ;;  %v8036_v32 = vld [vmem:[#allocation159_spill] sm:$0xff]  ;;  %v3483_v36 = vunpack.c.h.bf16 %v8037_v52 }
 0x773   :  { %v3481_v35 = vunpack.c.h.bf16 %v8036_v32 }
 0x775   :  { %3411 = vmatpush1.bf16.msra.mxu0 %v7954_v20  ;;  %3454 = vmatpush1.bf16.msra.mxu1 %v7955_v45  ;;  %v7965_v20 = vld [vmem:[#allocation139_spill] sm:$0xff]  ;;  %v7966_v45 = vld [vmem:[#allocation140_spill] sm:$0xff] }
 0x776   :  { %3412 = vmatprep.subr.bf16.mxu0 %v7956_v28  ;;  %3455 = vmatprep.subr.bf16.mxu1 %v7957_v30  ;;  %v7967_v28 = vld [vmem:[#allocation141_spill] sm:$0xff]  ;;  %v7968_v30 = vld [vmem:[#allocation14_spill] sm:$0xff] }
 0x779   :  { %3413 = vmatpush1.bf16.msra.mxu0 %v7958_v48  ;;  %3456 = vmatpush1.bf16.msra.mxu1 %v7959_v49  ;;  %v7969_v48 = vld [vmem:[#allocation15_spill] sm:$0xff]  ;;  %v8035_v49 = vld [vmem:[#allocation160_spill] sm:$0xff] }
 0x77a   :  { %3414 = vmatprep.subr.bf16.mxu0 %v7960_v16  ;;  %3457 = vmatprep.subr.bf16.mxu1 %v7961_v19  ;;  %v7970_v19 = vld [vmem:[#allocation16_spill] sm:$0xff]  ;;  %v7979_v16 = vld [vmem:[#allocation25_spill] sm:$0xff] }
 0x77d   :  { %3415 = vmatpush1.bf16.msra.mxu0 %v7962_v44  ;;  %3458 = vmatpush1.bf16.msra.mxu1 %v7963_v43  ;;  %v7971_v44 = vld [vmem:[#allocation17_spill] sm:$0xff]  ;;  %v7972_v43 = vld [vmem:[#allocation18_spill] sm:$0xff] }
 0x77e   :  { %3416 = vmatprep.subr.bf16.mxu0 %v7964_v15  ;;  %3459 = vmatprep.subr.bf16.mxu1 %v7965_v20  ;;  %v7973_v15 = vld [vmem:[#allocation19_spill] sm:$0xff]  ;;  %v7974_v20 = vld [vmem:[#allocation20_spill] sm:$0xff] }
 0x781   :  { %3417 = vmatpush1.bf16.msra.mxu0 %v7966_v45  ;;  %3460 = vmatpush1.bf16.msra.mxu1 %v7967_v28  ;;  %v7975_v45 = vld [vmem:[#allocation21_spill] sm:$0xff]  ;;  %v7976_v28 = vld [vmem:[#allocation22_spill] sm:$0xff] }
 0x782   :  { %3570 = vmatprep.subr.bf16.mxu0 %v7968_v30  ;;  %3613 = vmatprep.subr.bf16.mxu1 %v7969_v48  ;;  %v7977_v30 = vld [vmem:[#allocation23_spill] sm:$0xff]  ;;  %v7978_v48 = vld [vmem:[#allocation24_spill] sm:$0xff] }
 0x784   :  { %3419 = vmatmul.mubr.bf16.vlgmr.msra.gmra.mrb[108].mxu0 %v6534_v47  ;;  %3462 = vmatmul.mubr.bf16.vlgmr.msra.gmra.mrb[108].mxu1 %v6534_v47  ;;  %v7980_v47 = vld [vmem:[#allocation26_spill] sm:$0xff] }
 0x785   :  { %3571 = vmatpush1.bf16.msra.mxu0 %v7970_v19  ;;  %3614 = vmatpush1.bf16.msra.mxu1 %v7971_v44  ;;  %v7981_v19 = vld [vmem:[#allocation27_spill] sm:$0xff]  ;;  %v7982_v44 = vld [vmem:[#allocation28_spill] sm:$0xff] }
 0x786   :  { %3572 = vmatprep.subr.bf16.mxu0 %v7972_v43  ;;  %3615 = vmatprep.subr.bf16.mxu1 %v7973_v15  ;;  %v7983_v43 = vld [vmem:[#allocation29_spill] sm:$0xff]  ;;  %v7984_v15 = vld [vmem:[#allocation30_spill] sm:$0xff] }
 0x789   :  { %3573 = vmatpush1.bf16.msra.mxu0 %v7974_v20  ;;  %3616 = vmatpush1.bf16.msra.mxu1 %v7975_v45  ;;  %v7985_v20 = vld [vmem:[#allocation31_spill] sm:$0xff]  ;;  %v7986_v45 = vld [vmem:[#allocation32_spill] sm:$0xff] }
 0x78a   :  { %3574 = vmatprep.subr.bf16.mxu0 %v7976_v28  ;;  %3617 = vmatprep.subr.bf16.mxu1 %v7977_v30  ;;  %v7987_v28 = vld [vmem:[#allocation33_spill] sm:$0xff]  ;;  %v7988_v30 = vld [vmem:[#allocation34_spill] sm:$0xff] }
 0x78d   :  { %3575 = vmatpush1.bf16.msra.mxu0 %v7978_v48  ;;  %3618 = vmatpush1.bf16.msra.mxu1 %v7979_v16  ;;  %v7989_v48 = vld [vmem:[#allocation35_spill] sm:$0xff]  ;;  %v7990_v16 = vld [vmem:[#allocation36_spill] sm:$0xff] }
 0x78e   :  { %3576 = vmatprep.subr.bf16.mxu0 %v7980_v47  ;;  %3619 = vmatprep.subr.bf16.mxu1 %v7981_v19  ;;  %v7991_v47 = vld [vmem:[#allocation37_spill] sm:$0xff]  ;;  %v7992_v19 = vld [vmem:[#allocation38_spill] sm:$0xff] }
 0x791   :  { %3577 = vmatpush1.bf16.msra.mxu0 %v7982_v44  ;;  %3620 = vmatpush1.bf16.msra.mxu1 %v7983_v43  ;;  %v7993_v44 = vld [vmem:[#allocation39_spill] sm:$0xff]  ;;  %v7994_v43 = vld [vmem:[#allocation40_spill] sm:$0xff] }
 0x792   :  { %3578 = vmatprep.subr.bf16.mxu0 %v7984_v15  ;;  %3621 = vmatprep.subr.bf16.mxu1 %v7985_v20  ;;  %v7995_v15 = vld [vmem:[#allocation41_spill] sm:$0xff]  ;;  %v7996_v20 = vld [vmem:[#allocation42_spill] sm:$0xff] }
 0x795   :  { %3579 = vmatpush1.bf16.msra.mxu0 %v7986_v45  ;;  %3622 = vmatpush1.bf16.msra.mxu1 %v7987_v28  ;;  %v7997_v45 = vld [vmem:[#allocation43_spill] sm:$0xff]  ;;  %v7998_v28 = vld [vmem:[#allocation44_spill] sm:$0xff] }
 0x796   :  { %3580 = vmatprep.subr.bf16.mxu0 %v7988_v30  ;;  %3623 = vmatprep.subr.bf16.mxu1 %v7989_v48  ;;  %v7999_v30 = vld [vmem:[#allocation45_spill] sm:$0xff]  ;;  %v8000_v48 = vld [vmem:[#allocation46_spill] sm:$0xff] }
 0x799   :  { %3581 = vmatpush1.bf16.msra.mxu0 %v7990_v16  ;;  %3624 = vmatpush1.bf16.msra.mxu1 %v7991_v47  ;;  %v8001_v16 = vld [vmem:[#allocation47_spill] sm:$0xff]  ;;  %v8002_v47 = vld [vmem:[#allocation48_spill] sm:$0xff] }
 0x79a   :  { %3582 = vmatprep.subr.bf16.mxu0 %v7992_v19  ;;  %3625 = vmatprep.subr.bf16.mxu1 %v7993_v44  ;;  %v8003_v19 = vld [vmem:[#allocation49_spill] sm:$0xff]  ;;  %v8004_v44 = vld [vmem:[#allocation50_spill] sm:$0xff] }
 0x79d   :  { %3583 = vmatpush1.bf16.msra.mxu0 %v7994_v43  ;;  %3626 = vmatpush1.bf16.msra.mxu1 %v7995_v15  ;;  %v8005_v43 = vld [vmem:[#allocation51_spill] sm:$0xff]  ;;  %v8006_v15 = vld [vmem:[#allocation52_spill] sm:$0xff] }
 0x79e   :  { %3584 = vmatprep.subr.bf16.mxu0 %v7996_v20  ;;  %3627 = vmatprep.subr.bf16.mxu1 %v7997_v45  ;;  %v8007_v20 = vld [vmem:[#allocation53_spill] sm:$0xff]  ;;  %v8008_v45 = vld [vmem:[#allocation54_spill] sm:$0xff] }
 0x7a1   :  { %3585 = vmatpush1.bf16.msra.mxu0 %v7998_v28  ;;  %3628 = vmatpush1.bf16.msra.mxu1 %v7999_v30  ;;  %v8009_v28 = vld [vmem:[#allocation55_spill] sm:$0xff]  ;;  %v8010_v30 = vld [vmem:[#allocation56_spill] sm:$0xff] }
 0x7a2   :  { %3586 = vmatprep.subr.bf16.mxu0 %v8000_v48  ;;  %3629 = vmatprep.subr.bf16.mxu1 %v8001_v16  ;;  %v8011_v48 = vld [vmem:[#allocation57_spill] sm:$0xff]  ;;  %v8012_v16 = vld [vmem:[#allocation58_spill] sm:$0xff] }
 0x7a5   :  { %3587 = vmatpush1.bf16.msra.mxu0 %v8002_v47  ;;  %3630 = vmatpush1.bf16.msra.mxu1 %v8003_v19  ;;  %v8013_v47 = vld [vmem:[#allocation59_spill] sm:$0xff]  ;;  %v8014_v19 = vld [vmem:[#allocation60_spill] sm:$0xff] }
 0x7a6   :  { %3588 = vmatprep.subr.bf16.mxu0 %v8004_v44  ;;  %3631 = vmatprep.subr.bf16.mxu1 %v8005_v43  ;;  %v8015_v44 = vld [vmem:[#allocation61_spill] sm:$0xff]  ;;  %v8016_v43 = vld [vmem:[#allocation62_spill] sm:$0xff] }
 0x7a9   :  { %3589 = vmatpush1.bf16.msra.mxu0 %v8006_v15  ;;  %3632 = vmatpush1.bf16.msra.mxu1 %v8007_v20  ;;  %v8017_v15 = vld [vmem:[#allocation63_spill] sm:$0xff]  ;;  %v8018_v20 = vld [vmem:[#allocation64_spill] sm:$0xff] }
 0x7aa   :  { %3590 = vmatprep.subr.bf16.mxu0 %v8008_v45  ;;  %3633 = vmatprep.subr.bf16.mxu1 %v8009_v28  ;;  %v8019_v45 = vld [vmem:[#allocation65_spill] sm:$0xff]  ;;  %v8020_v28 = vld [vmem:[#allocation66_spill] sm:$0xff] }
 0x7ad   :  { %3591 = vmatpush1.bf16.msra.mxu0 %v8010_v30  ;;  %3634 = vmatpush1.bf16.msra.mxu1 %v8011_v48  ;;  %v8021_v30 = vld [vmem:[#allocation67_spill] sm:$0xff]  ;;  %v8022_v48 = vld [vmem:[#allocation68_spill] sm:$0xff] }
 0x7ae   :  { %3592 = vmatprep.subr.bf16.mxu0 %v8012_v16  ;;  %3635 = vmatprep.subr.bf16.mxu1 %v8013_v47  ;;  %v8023_v16 = vld [vmem:[#allocation69_spill] sm:$0xff]  ;;  %v8024_v47 = vld [vmem:[#allocation70_spill] sm:$0xff] }
 0x7b1   :  { %3593 = vmatpush1.bf16.msra.mxu0 %v8014_v19  ;;  %3636 = vmatpush1.bf16.msra.mxu1 %v8015_v44  ;;  %v8025_v19 = vld [vmem:[#allocation71_spill] sm:$0xff]  ;;  %v8026_v44 = vld [vmem:[#allocation72_spill] sm:$0xff] }
 0x7b2   :  { %3594 = vmatprep.subr.bf16.mxu0 %v8016_v43  ;;  %3637 = vmatprep.subr.bf16.mxu1 %v8017_v15  ;;  %v8027_v43 = vld [vmem:[#allocation73_spill] sm:$0xff]  ;;  %v8028_v15 = vld [vmem:[#allocation74_spill] sm:$0xff] }
 0x7b5   :  { %3595 = vmatpush1.bf16.msra.mxu0 %v8018_v20  ;;  %3638 = vmatpush1.bf16.msra.mxu1 %v8019_v45  ;;  %v8029_v20 = vld [vmem:[#allocation75_spill] sm:$0xff]  ;;  %v8030_v45 = vld [vmem:[#allocation76_spill] sm:$0xff] }
 0x7b6   :  { %3596 = vmatprep.subr.bf16.mxu0 %v8020_v28  ;;  %3639 = vmatprep.subr.bf16.mxu1 %v8021_v30  ;;  %v8031_v28 = vld [vmem:[#allocation77_spill] sm:$0xff]  ;;  %v8032_v30 = vld [vmem:[#allocation78_spill] sm:$0xff] }
 0x7b9   :  { %3597 = vmatpush1.bf16.msra.mxu0 %v8022_v48  ;;  %3640 = vmatpush1.bf16.msra.mxu1 %v8023_v16  ;;  %v8033_v48 = vld [vmem:[#allocation79_spill] sm:$0xff]  ;;  %v8034_v16 = vld [vmem:[#allocation158_spill] sm:$0xff] }
 0x7ba   :  { %3598 = vmatprep.subr.bf16.mxu0 %v8024_v47  ;;  %3641 = vmatprep.subr.bf16.mxu1 %v8025_v19  ;;  %v3476_v47 = vunpack.c.l.bf16 %v8034_v16  ;;  %v3478_v19 = vunpack.c.l.bf16 %v8035_v49 }
 0x7bd   :  { %3599 = vmatpush1.bf16.msra.mxu0 %v8026_v44  ;;  %3642 = vmatpush1.bf16.msra.mxu1 %v8027_v43  ;;  %v3477_v43 = vunpack.c.l.bf16 %v8036_v32 }
 0x7be   :  { %3600 = vmatprep.subr.bf16.mxu0 %v8028_v15  ;;  %3643 = vmatprep.subr.bf16.mxu1 %v8029_v20  ;;  %v3479_v15 = vunpack.c.l.bf16 %v8037_v52 }
 0x7c1   :  { %3601 = vmatpush1.bf16.msra.mxu0 %v8030_v45  ;;  %3644 = vmatpush1.bf16.msra.mxu1 %v8031_v28  ;;  %v3480_v28 = vunpack.c.h.bf16 %v8034_v16 }
 0x7c2   :  { %3656 = vmatprep.subr.bf16.mxu0 %v8032_v30  ;;  %3699 = vmatprep.subr.bf16.mxu1 %v8033_v48  ;;  %v3482_v30 = vunpack.c.h.bf16 %v8035_v49 }
 0x817   :  { %v3334_v18 = vpop.f32.mrb[104].mxu0  ;;  %v3377_v44 = vpop.f32.mrb[104].mxu1 }
 0x818   :  { %v3484_v61 = vadd.f32 %v3476_v47, %v3334_v18  ;;  %v3486_v20 = vadd.f32 %v3478_v19, %v3377_v44  ;;  %v3336_v54 = vpop.f32.mrb[105].mxu0  ;;  %v3379_v45 = vpop.f32.mrb[105].mxu1 }
 0x819   :  { %v3485_v24 = vadd.f32 %v3477_v43, %v3336_v54  ;;  %v6674_v48 = vadd.f32 %v3479_v15, %v3379_v45  ;;  %v3338_v57 = vpop.f32.mrb[106].mxu0  ;;  %v3381_v37 = vpop.f32.mrb[106].mxu1  ;;  %v8038_v43 = vld [vmem:[#allocation178_spill] sm:$0xff] }
 0x81a   :  { %v3488_v5 = vadd.f32 %v3480_v28, %v3338_v57  ;;  %v3490_v22 = vadd.f32 %v3482_v30, %v3381_v37  ;;  %v3340_v9 = vpop.f32.mrb[107].mxu0  ;;  %v3383_v18 = vpop.f32.mrb[107].mxu1  ;;  %v3496_v15 = vunpack.c.l.bf16 %v8038_v43 }
 0x81b   :  { %v3489_v19 = vadd.f32 %v3481_v35, %v3340_v9  ;;  %v6678_v44 = vadd.f32 %v3483_v36, %v3383_v18  ;;  %v8039_v18 = vld [vmem:[#allocation180_spill] sm:$0xff] }
 0x81c   :  { %v3512_v47 = vpack.c.bf16 %v3488_v5, %v3484_v61  ;;  %v3514_v16 = vpack.c.bf16 %v3490_v22, %v3486_v20 }
 0x81d   :  { %v3513_v14 = vpack.c.bf16 %v3489_v19, %v3485_v24  ;;  %v3515_v54 = vpack.c.bf16 %v6678_v44, %v6674_v48  ;;  %v3498_v19 = vunpack.c.l.bf16 %v8039_v18 }
 0x81e   :  { %v3516_v45 = vmul.bf16 1056980736, %v3512_v47 }
 0x81f   :  { %v3520_v49 = vmul.bf16 1056980736, %v3513_v14 }
 0x820   :  { %4701 = vtanh.bf16 %v3516_v45 }
 0x821   :  { %4703 = vtanh.bf16 %v3520_v49  ;;  %v8041_v49 = vld [vmem:[#allocation181_spill] sm:$0xff] }
 0x822   :  { %4705 = vtanh.bf16 %v3514_v16  ;;  %v8040_v16 = vld [vmem:[#allocation179_spill] sm:$0xff] }
 0x823   :  { %v3497_v45 = vunpack.c.l.bf16 %v8040_v16 }
 0x82b   :  { %v4702_v32 = vpop.eup %4701 }
 0x82c   :  { %v4704_v52 = vpop.eup %4703  ;;  %v3518_v57 = vmul.bf16 1056980736, %v4702_v32  ;;  %v3499_v32 = vunpack.c.l.bf16 %v8041_v49 }
 0x82d   :  { %v3522_v37 = vmul.bf16 1056980736, %v4704_v52  ;;  %v4706_v30 = vpop.eup %4705 }
 0x82e   :  { %v3519_v28 = vadd.bf16 1056980736, %v3518_v57 }
 0x82f   :  { %v3523_v9 = vadd.bf16 1056980736, %v3522_v37 }
 0x830   :  { %v3533_v36 = vmul.bf16 %v4706_v30, %v3519_v28  ;;  %v3502_v28 = vunpack.c.h.bf16 %v8039_v18 }
 0x831   :  { %v3529_v35 = vunpack.c.l.bf16 %v3523_v9  ;;  %v3530_v5 = vunpack.c.h.bf16 %v3523_v9 }
 0x832   :  { %v3534_v22 = vunpack.c.l.bf16 %v3533_v36  ;;  %v3535_v24 = vunpack.c.h.bf16 %v3533_v36 }
 0x833   :  { %v3531_v61 = vmul.f32 %v3529_v35, %v6512_v41  ;;  %v3532_v20 = vmul.f32 %v3530_v5, %v6514_v13  ;;  %v3500_v13 = vunpack.c.h.bf16 %v8038_v43  ;;  %v3501_v5 = vunpack.c.h.bf16 %v8040_v16 }
 0x835   :  { %v6684_v14 = vadd.f32 %v3534_v22, %v3531_v61  ;;  %v6686_v48 = vadd.f32 %v3535_v24, %v3532_v20  ;;  %v3503_v22 = vunpack.c.h.bf16 %v8041_v49 }
 0x857   :  { %v3420_v44 = vpop.f32.mrb[108].mxu0  ;;  %v3463_v47 = vpop.f32.mrb[108].mxu1 }
 0x858   :  { %v3504_v52 = vadd.f32 %v3496_v15, %v3420_v44  ;;  %v3506_v57 = vadd.f32 %v3498_v19, %v3463_v47  ;;  %v3422_v37 = vpop.f32.mrb[109].mxu0  ;;  %v3465_v41 = vpop.f32.mrb[109].mxu1 }
 0x859   :  { %v3505_v30 = vadd.f32 %v3497_v45, %v3422_v37  ;;  %v3507_v9 = vadd.f32 %v3499_v32, %v3465_v41  ;;  %v3424_v36 = vpop.f32.mrb[110].mxu0  ;;  %v3467_v35 = vpop.f32.mrb[110].mxu1  ;;  %v3525_v41 = vmul.bf16 1056980736, %v3515_v54 }
 0x85a   :  { %v3508_v24 = vadd.f32 %v3500_v13, %v3424_v36  ;;  %v3510_v61 = vadd.f32 %v3502_v28, %v3467_v35  ;;  %v3426_v20 = vpop.f32.mrb[111].mxu0  ;;  %v3469_v12 = vpop.f32.mrb[111].mxu1 }
 0x85b   :  { %v3509_v15 = vadd.f32 %v3501_v5, %v3426_v20  ;;  %v3511_v19 = vadd.f32 %v3503_v22, %v3469_v12 }
 0x85c   :  { %v3541_v44 = vpack.c.bf16 %v3508_v24, %v3504_v52  ;;  %v3543_v47 = vpack.c.bf16 %v3510_v61, %v3506_v57 }
 0x85d   :  { %v3542_v62 = vpack.c.bf16 %v3509_v15, %v3505_v30  ;;  %v3544_v43 = vpack.c.bf16 %v3511_v19, %v3507_v9  ;;  %v3538_v9 = vpack.c.bf16 %v6686_v48, %v6684_v14 }
 0x85e   :  { %v3545_v63 = vmul.bf16 1056980736, %v3541_v44 }
 0x85f   :  { %v3549_v18 = vmul.bf16 1056980736, %v3542_v62  ;;  %v3554_v49 = vmul.bf16 1056980736, %v3544_v43 }
 0x860   :  { %4707 = vtanh.bf16 %v3545_v63 }
 0x861   :  { %4709 = vtanh.bf16 %v3549_v18  ;;  %v8042_v18 = vld [vmem:[#allocation111_spill] sm:$0xff] }
 0x862   :  { %4711 = vtanh.bf16 %v3543_v47 }
 0x863   :  { %4713 = vtanh.bf16 %v3554_v49  ;;  %v8047_v49 = vld [vmem:[#allocation116_spill] sm:$0xff] }
 0x864   :  { %4715 = vtanh.bf16 %v3525_v41  ;;  %v8048_v41 = vld [vmem:[#allocation117_spill] sm:$0xff] }
 0x865   :  { %4717 = vtanh.bf16 %v3538_v9  ;;  %v8059_v9 = vld [vmem:[#allocation128_spill] sm:$0xff] }
 0x86b   :  { %v4708_v45 = vpop.eup %4707 }
 0x86c   :  { %v4710_v32 = vpop.eup %4709  ;;  %v3547_v16 = vmul.bf16 1056980736, %v4708_v45  ;;  %v8043_v45 = vld [vmem:[#allocation112_spill] sm:$0xff] }
 0x86d   :  { %v3551_v37 = vmul.bf16 1056980736, %v4710_v32  ;;  %v4712_v28 = vpop.eup %4711  ;;  %v8044_v32 = vld [vmem:[#allocation113_spill] sm:$0xff] }
 0x86e   :  { %v3548_v13 = vadd.bf16 1056980736, %v3547_v16  ;;  %v4714_v24 = vpop.eup %4713  ;;  %v8045_v16 = vld [vmem:[#allocation114_spill] sm:$0xff] }
 0x86f   :  { %v3552_v36 = vadd.bf16 1056980736, %v3551_v37  ;;  %v4716_v61 = vpop.eup %4715  ;;  %v3556_v20 = vmul.bf16 1056980736, %v4714_v24  ;;  %v8046_v37 = vld [vmem:[#allocation115_spill] sm:$0xff]  ;;  %v8061_v24 = vld [vmem:[#allocation130_spill] sm:$0xff] }
 0x870   :  { %v3562_v35 = vmul.bf16 %v4712_v28, %v3548_v13  ;;  %v3527_v15 = vmul.bf16 1056980736, %v4716_v61  ;;  %v4718_v19 = vpop.eup %4717  ;;  %v8049_v13 = vld [vmem:[#allocation118_spill] sm:$0xff]  ;;  %v8050_v28 = vld [vmem:[#allocation119_spill] sm:$0xff] }
 0x871   :  { %v3558_v12 = vunpack.c.l.bf16 %v3552_v36  ;;  %v3559_v52 = vunpack.c.h.bf16 %v3552_v36  ;;  %v8051_v36 = vld [vmem:[#allocation120_spill] sm:$0xff]  ;;  %v8062_v61 = vld [vmem:[#allocation131_spill] sm:$0xff] }
 0x872   :  { %v3563_v57 = vunpack.c.l.bf16 %v3562_v35  ;;  %v3564_v30 = vunpack.c.h.bf16 %v3562_v35  ;;  %v8052_v35 = vld [vmem:[#allocation121_spill] sm:$0xff] }
 0x873   :  { %v3560_v63 = vmul.f32 %v3558_v12, %v6528_v17  ;;  %v3561_v62 = vmul.f32 %v3559_v52, %v6530_v38  ;;  %v3557_v17 = vadd.bf16 1056980736, %v3556_v20  ;;  %v3528_v38 = vadd.bf16 1056980736, %v3527_v15  ;;  %v8053_v12 = vld [vmem:[#allocation122_spill] sm:$0xff]  ;;  %v8054_v52 = vld [vmem:[#allocation123_spill] sm:$0xff] }
 0x874   :  { %v8063_v20 = vld [vmem:[#allocation132_spill] sm:$0xff]  ;;  %v8064_v15 = vld [vmem:[#allocation133_spill] sm:$0xff] }
 0x875   :  { %v6700_v5 = vadd.f32 %v3563_v57, %v3560_v63  ;;  %v6702_v54 = vadd.f32 %v3564_v30, %v3561_v62  ;;  %v6706_v43 = vmul.bf16 %v4718_v19, %v3528_v38  ;;  %v8055_v57 = vld [vmem:[#allocation124_spill] sm:$0xff]  ;;  %v8056_v30 = vld [vmem:[#allocation125_spill] sm:$0xff]  ;;  %v8057_v63 = vld [vmem:[#allocation126_spill] sm:$0xff] }
 0x876   :  { %v8058_v62 = vld [vmem:[#allocation127_spill] sm:$0xff]  ;;  %v8065_v19 = vld [vmem:[#allocation134_spill] sm:$0xff]  ;;  %v8068_v38 = vld [vmem:[#allocation137_spill] sm:$0xff] }
 0x877   :  { %v3567_v22 = vpack.c.bf16 %v6702_v54, %v6700_v5 }
 0x879   :  { %4719 = vtanh.bf16 %v3567_v22  ;;  %v8060_v22 = vld [vmem:[#allocation129_spill] sm:$0xff] }
 0x884   :  { %v4720_v44 = vpop.eup %4719 }
 0x885   :  { %v3569_v47 = vmul.bf16 %v4720_v44, %v3557_v17  ;;  %v8066_v17 = vld [vmem:[#allocation135_spill] sm:$0xff]  ;;  %v8067_v44 = vld [vmem:[#allocation136_spill] sm:$0xff] }
 0x887   :  { %3602 = vmatprep.mubr.bf16.mxu0 %v3569_v47  ;;  %3645 = vmatprep.mubr.bf16.mxu1 %v3569_v47 }
 0x888   :  { %3603 = vmatmul.mubr.bf16.vlgmr.msra.gmra.mrb[112].mxu0 %v6706_v43  ;;  %3646 = vmatmul.mubr.bf16.vlgmr.msra.gmra.mrb[112].mxu1 %v6706_v43 }
 0x889   :  { %3657 = vmatpush1.bf16.msra.mxu0 %v7520_v59  ;;  %3700 = vmatpush1.bf16.msra.mxu1 %v7521_v0 }
 0x88a   :  { %3688 = vmatprep.mubr.bf16.mxu0 %v3569_v47  ;;  %3731 = vmatprep.mubr.bf16.mxu1 %v3569_v47  ;;  %v8069_v47 = vld [vmem:[#allocation138_spill] sm:$0xff] }
 0x88b   :  { %3658 = vmatprep.subr.bf16.mxu0 %v7522_v21  ;;  %3701 = vmatprep.subr.bf16.mxu1 %v7523_v3 }
 0x88d   :  { %3659 = vmatpush1.bf16.msra.mxu0 %v7524_v39  ;;  %3702 = vmatpush1.bf16.msra.mxu1 %v7525_v58 }
 0x88e   :  { %3660 = vmatprep.subr.bf16.mxu0 %v7526_v51  ;;  %3703 = vmatprep.subr.bf16.mxu1 %v7527_v25 }
 0x891   :  { %3661 = vmatpush1.bf16.msra.mxu0 %v7528_v50  ;;  %3704 = vmatpush1.bf16.msra.mxu1 %v7529_v56 }
 0x892   :  { %3662 = vmatprep.subr.bf16.mxu0 %v7530_v55  ;;  %3705 = vmatprep.subr.bf16.mxu1 %v7531_v11 }
 0x895   :  { %3663 = vmatpush1.bf16.msra.mxu0 %v7532_v60  ;;  %3706 = vmatpush1.bf16.msra.mxu1 %v7533_v6 }
 0x896   :  { %3664 = vmatprep.subr.bf16.mxu0 %v7622_v4  ;;  %3707 = vmatprep.subr.bf16.mxu1 %v7623_v33 }
 0x899   :  { %3665 = vmatpush1.bf16.msra.mxu0 %v7624_v23  ;;  %3708 = vmatpush1.bf16.msra.mxu1 %v7625_v31 }
 0x89a   :  { %3666 = vmatprep.subr.bf16.mxu0 %v7626_v26  ;;  %3709 = vmatprep.subr.bf16.mxu1 %v7627_v8 }
 0x89d   :  { %3667 = vmatpush1.bf16.msra.mxu0 %v7628_v40  ;;  %3710 = vmatpush1.bf16.msra.mxu1 %v7629_v42 }
 0x89e   :  { %3668 = vmatprep.subr.bf16.mxu0 %v7630_v34  ;;  %3711 = vmatprep.subr.bf16.mxu1 %v7631_v29 }
 0x8a1   :  { %3669 = vmatpush1.bf16.msra.mxu0 %v7632_v46  ;;  %3712 = vmatpush1.bf16.msra.mxu1 %v7633_v7 }
 0x8a2   :  { %3670 = vmatprep.subr.bf16.mxu0 %v7634_v2  ;;  %3713 = vmatprep.subr.bf16.mxu1 %v7635_v27 }
 0x8a5   :  { %3671 = vmatpush1.bf16.msra.mxu0 %v7636_v10  ;;  %3714 = vmatpush1.bf16.msra.mxu1 %v7637_v1 }
 0x8a6   :  { %3672 = vmatprep.subr.bf16.mxu0 %v7638_v53  ;;  %3715 = vmatprep.subr.bf16.mxu1 %v8042_v18 }
 0x8a9   :  { %3673 = vmatpush1.bf16.msra.mxu0 %v8043_v45  ;;  %3716 = vmatpush1.bf16.msra.mxu1 %v8044_v32 }
 0x8aa   :  { %3674 = vmatprep.subr.bf16.mxu0 %v8045_v16  ;;  %3717 = vmatprep.subr.bf16.mxu1 %v8046_v37 }
 0x8ad   :  { %3675 = vmatpush1.bf16.msra.mxu0 %v8047_v49  ;;  %3718 = vmatpush1.bf16.msra.mxu1 %v8048_v41 }
 0x8ae   :  { %3676 = vmatprep.subr.bf16.mxu0 %v8049_v13  ;;  %3719 = vmatprep.subr.bf16.mxu1 %v8050_v28 }
 0x8b1   :  { %3677 = vmatpush1.bf16.msra.mxu0 %v8051_v36  ;;  %3720 = vmatpush1.bf16.msra.mxu1 %v8052_v35 }
 0x8b2   :  { %3678 = vmatprep.subr.bf16.mxu0 %v8053_v12  ;;  %3721 = vmatprep.subr.bf16.mxu1 %v8054_v52 }
 0x8b5   :  { %3679 = vmatpush1.bf16.msra.mxu0 %v8055_v57  ;;  %3722 = vmatpush1.bf16.msra.mxu1 %v8056_v30  ;;  %v8142_v30 = vld [vmem:[#allocation165_spill] sm:$0xff] }
 0x8b6   :  { %3680 = vmatprep.subr.bf16.mxu0 %v8057_v63  ;;  %3723 = vmatprep.subr.bf16.mxu1 %v8058_v62  ;;  %v8141_v63 = vld [vmem:[#allocation163_spill] sm:$0xff]  ;;  %v3753_v13 = vunpack.c.h.bf16 %v8142_v30 }
 0x8b7   :  { %v3751_v28 = vunpack.c.h.bf16 %v8141_v63 }
 0x8b9   :  { %3681 = vmatpush1.bf16.msra.mxu0 %v8059_v9  ;;  %3724 = vmatpush1.bf16.msra.mxu1 %v8060_v22  ;;  %v8070_v9 = vld [vmem:[#allocation139_spill] sm:$0xff]  ;;  %v8071_v22 = vld [vmem:[#allocation140_spill] sm:$0xff] }
 0x8ba   :  { %3682 = vmatprep.subr.bf16.mxu0 %v8061_v24  ;;  %3725 = vmatprep.subr.bf16.mxu1 %v8062_v61  ;;  %v8072_v24 = vld [vmem:[#allocation141_spill] sm:$0xff]  ;;  %v8073_v61 = vld [vmem:[#allocation14_spill] sm:$0xff] }
 0x8bd   :  { %3683 = vmatpush1.bf16.msra.mxu0 %v8063_v20  ;;  %3726 = vmatpush1.bf16.msra.mxu1 %v8064_v15  ;;  %v8074_v20 = vld [vmem:[#allocation15_spill] sm:$0xff]  ;;  %v8140_v15 = vld [vmem:[#allocation164_spill] sm:$0xff] }
 0x8be   :  { %3684 = vmatprep.subr.bf16.mxu0 %v8065_v19  ;;  %3727 = vmatprep.subr.bf16.mxu1 %v8066_v17  ;;  %v8075_v17 = vld [vmem:[#allocation16_spill] sm:$0xff]  ;;  %v8084_v19 = vld [vmem:[#allocation25_spill] sm:$0xff] }
 0x8c1   :  { %3685 = vmatpush1.bf16.msra.mxu0 %v8067_v44  ;;  %3728 = vmatpush1.bf16.msra.mxu1 %v8068_v38  ;;  %v8076_v44 = vld [vmem:[#allocation17_spill] sm:$0xff]  ;;  %v8077_v38 = vld [vmem:[#allocation18_spill] sm:$0xff] }
 0x8c2   :  { %3686 = vmatprep.subr.bf16.mxu0 %v8069_v47  ;;  %3729 = vmatprep.subr.bf16.mxu1 %v8070_v9  ;;  %v8078_v47 = vld [vmem:[#allocation19_spill] sm:$0xff]  ;;  %v8079_v9 = vld [vmem:[#allocation20_spill] sm:$0xff] }
 0x8c5   :  { %3687 = vmatpush1.bf16.msra.mxu0 %v8071_v22  ;;  %3730 = vmatpush1.bf16.msra.mxu1 %v8072_v24  ;;  %v8080_v22 = vld [vmem:[#allocation21_spill] sm:$0xff]  ;;  %v8081_v24 = vld [vmem:[#allocation22_spill] sm:$0xff] }
 0x8c6   :  { %3840 = vmatprep.subr.bf16.mxu0 %v8073_v61  ;;  %3883 = vmatprep.subr.bf16.mxu1 %v8074_v20  ;;  %v8082_v61 = vld [vmem:[#allocation23_spill] sm:$0xff]  ;;  %v8083_v20 = vld [vmem:[#allocation24_spill] sm:$0xff] }
 0x8c8   :  { %3689 = vmatmul.mubr.bf16.vlgmr.msra.gmra.mrb[116].mxu0 %v6706_v43  ;;  %3732 = vmatmul.mubr.bf16.vlgmr.msra.gmra.mrb[116].mxu1 %v6706_v43  ;;  %v8085_v43 = vld [vmem:[#allocation26_spill] sm:$0xff] }
 0x8c9   :  { %3841 = vmatpush1.bf16.msra.mxu0 %v8075_v17  ;;  %3884 = vmatpush1.bf16.msra.mxu1 %v8076_v44  ;;  %v8086_v17 = vld [vmem:[#allocation27_spill] sm:$0xff]  ;;  %v8087_v44 = vld [vmem:[#allocation28_spill] sm:$0xff] }
 0x8ca   :  { %3842 = vmatprep.subr.bf16.mxu0 %v8077_v38  ;;  %3885 = vmatprep.subr.bf16.mxu1 %v8078_v47  ;;  %v8088_v38 = vld [vmem:[#allocation29_spill] sm:$0xff]  ;;  %v8089_v47 = vld [vmem:[#allocation30_spill] sm:$0xff] }
 0x8cd   :  { %3843 = vmatpush1.bf16.msra.mxu0 %v8079_v9  ;;  %3886 = vmatpush1.bf16.msra.mxu1 %v8080_v22  ;;  %v8090_v9 = vld [vmem:[#allocation31_spill] sm:$0xff]  ;;  %v8091_v22 = vld [vmem:[#allocation32_spill] sm:$0xff] }
 0x8ce   :  { %3844 = vmatprep.subr.bf16.mxu0 %v8081_v24  ;;  %3887 = vmatprep.subr.bf16.mxu1 %v8082_v61  ;;  %v8092_v24 = vld [vmem:[#allocation33_spill] sm:$0xff]  ;;  %v8093_v61 = vld [vmem:[#allocation34_spill] sm:$0xff] }
 0x8d1   :  { %3845 = vmatpush1.bf16.msra.mxu0 %v8083_v20  ;;  %3888 = vmatpush1.bf16.msra.mxu1 %v8084_v19  ;;  %v8094_v20 = vld [vmem:[#allocation35_spill] sm:$0xff]  ;;  %v8095_v19 = vld [vmem:[#allocation36_spill] sm:$0xff] }
 0x8d2   :  { %3846 = vmatprep.subr.bf16.mxu0 %v8085_v43  ;;  %3889 = vmatprep.subr.bf16.mxu1 %v8086_v17  ;;  %v8096_v43 = vld [vmem:[#allocation37_spill] sm:$0xff]  ;;  %v8097_v17 = vld [vmem:[#allocation38_spill] sm:$0xff] }
 0x8d5   :  { %3847 = vmatpush1.bf16.msra.mxu0 %v8087_v44  ;;  %3890 = vmatpush1.bf16.msra.mxu1 %v8088_v38  ;;  %v8098_v44 = vld [vmem:[#allocation39_spill] sm:$0xff]  ;;  %v8099_v38 = vld [vmem:[#allocation40_spill] sm:$0xff] }
 0x8d6   :  { %3848 = vmatprep.subr.bf16.mxu0 %v8089_v47  ;;  %3891 = vmatprep.subr.bf16.mxu1 %v8090_v9  ;;  %v8100_v47 = vld [vmem:[#allocation41_spill] sm:$0xff]  ;;  %v8101_v9 = vld [vmem:[#allocation42_spill] sm:$0xff] }
 0x8d9   :  { %3849 = vmatpush1.bf16.msra.mxu0 %v8091_v22  ;;  %3892 = vmatpush1.bf16.msra.mxu1 %v8092_v24  ;;  %v8102_v22 = vld [vmem:[#allocation43_spill] sm:$0xff]  ;;  %v8103_v24 = vld [vmem:[#allocation44_spill] sm:$0xff] }
 0x8da   :  { %3850 = vmatprep.subr.bf16.mxu0 %v8093_v61  ;;  %3893 = vmatprep.subr.bf16.mxu1 %v8094_v20  ;;  %v8104_v61 = vld [vmem:[#allocation45_spill] sm:$0xff]  ;;  %v8105_v20 = vld [vmem:[#allocation46_spill] sm:$0xff] }
 0x8dd   :  { %3851 = vmatpush1.bf16.msra.mxu0 %v8095_v19  ;;  %3894 = vmatpush1.bf16.msra.mxu1 %v8096_v43  ;;  %v8106_v19 = vld [vmem:[#allocation47_spill] sm:$0xff]  ;;  %v8107_v43 = vld [vmem:[#allocation48_spill] sm:$0xff] }
 0x8de   :  { %3852 = vmatprep.subr.bf16.mxu0 %v8097_v17  ;;  %3895 = vmatprep.subr.bf16.mxu1 %v8098_v44  ;;  %v8108_v17 = vld [vmem:[#allocation49_spill] sm:$0xff]  ;;  %v8109_v44 = vld [vmem:[#allocation50_spill] sm:$0xff] }
 0x8e1   :  { %3853 = vmatpush1.bf16.msra.mxu0 %v8099_v38  ;;  %3896 = vmatpush1.bf16.msra.mxu1 %v8100_v47  ;;  %v8110_v38 = vld [vmem:[#allocation51_spill] sm:$0xff]  ;;  %v8111_v47 = vld [vmem:[#allocation52_spill] sm:$0xff] }
 0x8e2   :  { %3854 = vmatprep.subr.bf16.mxu0 %v8101_v9  ;;  %3897 = vmatprep.subr.bf16.mxu1 %v8102_v22  ;;  %v8112_v9 = vld [vmem:[#allocation53_spill] sm:$0xff]  ;;  %v8113_v22 = vld [vmem:[#allocation54_spill] sm:$0xff] }
 0x8e5   :  { %3855 = vmatpush1.bf16.msra.mxu0 %v8103_v24  ;;  %3898 = vmatpush1.bf16.msra.mxu1 %v8104_v61  ;;  %v8114_v24 = vld [vmem:[#allocation55_spill] sm:$0xff]  ;;  %v8115_v61 = vld [vmem:[#allocation56_spill] sm:$0xff] }
 0x8e6   :  { %3856 = vmatprep.subr.bf16.mxu0 %v8105_v20  ;;  %3899 = vmatprep.subr.bf16.mxu1 %v8106_v19  ;;  %v8116_v20 = vld [vmem:[#allocation57_spill] sm:$0xff]  ;;  %v8117_v19 = vld [vmem:[#allocation58_spill] sm:$0xff] }
 0x8e9   :  { %3857 = vmatpush1.bf16.msra.mxu0 %v8107_v43  ;;  %3900 = vmatpush1.bf16.msra.mxu1 %v8108_v17  ;;  %v8118_v43 = vld [vmem:[#allocation59_spill] sm:$0xff]  ;;  %v8119_v17 = vld [vmem:[#allocation60_spill] sm:$0xff] }
 0x8ea   :  { %3858 = vmatprep.subr.bf16.mxu0 %v8109_v44  ;;  %3901 = vmatprep.subr.bf16.mxu1 %v8110_v38  ;;  %v8120_v44 = vld [vmem:[#allocation61_spill] sm:$0xff]  ;;  %v8121_v38 = vld [vmem:[#allocation62_spill] sm:$0xff] }
 0x8ed   :  { %3859 = vmatpush1.bf16.msra.mxu0 %v8111_v47  ;;  %3902 = vmatpush1.bf16.msra.mxu1 %v8112_v9  ;;  %v8122_v47 = vld [vmem:[#allocation63_spill] sm:$0xff]  ;;  %v8123_v9 = vld [vmem:[#allocation64_spill] sm:$0xff] }
 0x8ee   :  { %3860 = vmatprep.subr.bf16.mxu0 %v8113_v22  ;;  %3903 = vmatprep.subr.bf16.mxu1 %v8114_v24  ;;  %v8124_v22 = vld [vmem:[#allocation65_spill] sm:$0xff]  ;;  %v8125_v24 = vld [vmem:[#allocation66_spill] sm:$0xff] }
 0x8f1   :  { %3861 = vmatpush1.bf16.msra.mxu0 %v8115_v61  ;;  %3904 = vmatpush1.bf16.msra.mxu1 %v8116_v20  ;;  %v8126_v61 = vld [vmem:[#allocation67_spill] sm:$0xff]  ;;  %v8127_v20 = vld [vmem:[#allocation68_spill] sm:$0xff] }
 0x8f2   :  { %3862 = vmatprep.subr.bf16.mxu0 %v8117_v19  ;;  %3905 = vmatprep.subr.bf16.mxu1 %v8118_v43  ;;  %v8128_v19 = vld [vmem:[#allocation69_spill] sm:$0xff]  ;;  %v8129_v43 = vld [vmem:[#allocation70_spill] sm:$0xff] }
 0x8f5   :  { %3863 = vmatpush1.bf16.msra.mxu0 %v8119_v17  ;;  %3906 = vmatpush1.bf16.msra.mxu1 %v8120_v44  ;;  %v8130_v17 = vld [vmem:[#allocation71_spill] sm:$0xff]  ;;  %v8131_v44 = vld [vmem:[#allocation72_spill] sm:$0xff] }
 0x8f6   :  { %3864 = vmatprep.subr.bf16.mxu0 %v8121_v38  ;;  %3907 = vmatprep.subr.bf16.mxu1 %v8122_v47  ;;  %v8132_v38 = vld [vmem:[#allocation73_spill] sm:$0xff]  ;;  %v8133_v47 = vld [vmem:[#allocation74_spill] sm:$0xff] }
 0x8f9   :  { %3865 = vmatpush1.bf16.msra.mxu0 %v8123_v9  ;;  %3908 = vmatpush1.bf16.msra.mxu1 %v8124_v22  ;;  %v8134_v9 = vld [vmem:[#allocation75_spill] sm:$0xff]  ;;  %v8135_v22 = vld [vmem:[#allocation76_spill] sm:$0xff] }
 0x8fa   :  { %3866 = vmatprep.subr.bf16.mxu0 %v8125_v24  ;;  %3909 = vmatprep.subr.bf16.mxu1 %v8126_v61  ;;  %v8136_v24 = vld [vmem:[#allocation77_spill] sm:$0xff]  ;;  %v8137_v61 = vld [vmem:[#allocation78_spill] sm:$0xff] }
 0x8fd   :  { %3867 = vmatpush1.bf16.msra.mxu0 %v8127_v20  ;;  %3910 = vmatpush1.bf16.msra.mxu1 %v8128_v19  ;;  %v8138_v20 = vld [vmem:[#allocation79_spill] sm:$0xff]  ;;  %v8139_v19 = vld [vmem:[#allocation162_spill] sm:$0xff] }
 0x8fe   :  { %3868 = vmatprep.subr.bf16.mxu0 %v8129_v43  ;;  %3911 = vmatprep.subr.bf16.mxu1 %v8130_v17  ;;  %v3746_v43 = vunpack.c.l.bf16 %v8139_v19  ;;  %v3748_v17 = vunpack.c.l.bf16 %v8140_v15 }
 0x901   :  { %3869 = vmatpush1.bf16.msra.mxu0 %v8131_v44  ;;  %3912 = vmatpush1.bf16.msra.mxu1 %v8132_v38  ;;  %v3747_v38 = vunpack.c.l.bf16 %v8141_v63 }
 0x902   :  { %3870 = vmatprep.subr.bf16.mxu0 %v8133_v47  ;;  %3913 = vmatprep.subr.bf16.mxu1 %v8134_v9  ;;  %v3749_v47 = vunpack.c.l.bf16 %v8142_v30 }
 0x905   :  { %3871 = vmatpush1.bf16.msra.mxu0 %v8135_v22  ;;  %3914 = vmatpush1.bf16.msra.mxu1 %v8136_v24  ;;  %v3750_v24 = vunpack.c.h.bf16 %v8139_v19 }
 0x906   :  { %3926 = vmatprep.subr.bf16.mxu0 %v8137_v61  ;;  %3969 = vmatprep.subr.bf16.mxu1 %v8138_v20  ;;  %v3752_v61 = vunpack.c.h.bf16 %v8140_v15 }
 0x95b   :  { %v3604_v62 = vpop.f32.mrb[112].mxu0  ;;  %v3647_v44 = vpop.f32.mrb[112].mxu1 }
 0x95c   :  { %v3754_v57 = vadd.f32 %v3746_v43, %v3604_v62  ;;  %v3756_v9 = vadd.f32 %v3748_v17, %v3647_v44  ;;  %v3606_v52 = vpop.f32.mrb[113].mxu0  ;;  %v3649_v22 = vpop.f32.mrb[113].mxu1 }
 0x95d   :  { %v3755_v12 = vadd.f32 %v3747_v38, %v3606_v52  ;;  %v6846_v20 = vadd.f32 %v3749_v47, %v3649_v22  ;;  %v3608_v35 = vpop.f32.mrb[114].mxu0  ;;  %v3651_v36 = vpop.f32.mrb[114].mxu1 }
 0x95e   :  { %v3758_v41 = vadd.f32 %v3750_v24, %v3608_v35  ;;  %v3760_v49 = vadd.f32 %v3752_v61, %v3651_v36  ;;  %v3610_v37 = vpop.f32.mrb[115].mxu0  ;;  %v3653_v62 = vpop.f32.mrb[115].mxu1  ;;  %v8143_v61 = vld [vmem:[#allocation174_spill] sm:$0xff] }
 0x95f   :  { %v3759_v43 = vadd.f32 %v3751_v28, %v3610_v37  ;;  %v6850_v17 = vadd.f32 %v3753_v13, %v3653_v62  ;;  %v8144_v62 = vld [vmem:[#allocation176_spill] sm:$0xff] }
 0x960   :  { %v3782_v44 = vpack.c.bf16 %v3758_v41, %v3754_v57  ;;  %v3784_v19 = vpack.c.bf16 %v3760_v49, %v3756_v9 }
 0x961   :  { %v3783_v16 = vpack.c.bf16 %v3759_v43, %v3755_v12  ;;  %v3785_v52 = vpack.c.bf16 %v6850_v17, %v6846_v20  ;;  %v3766_v20 = vunpack.c.l.bf16 %v8143_v61  ;;  %v3768_v43 = vunpack.c.l.bf16 %v8144_v62 }
 0x962   :  { %v3786_v15 = vmul.bf16 1056980736, %v3782_v44 }
 0x963   :  { %v3790_v38 = vmul.bf16 1056980736, %v3783_v16 }
 0x964   :  { %4721 = vtanh.bf16 %v3786_v15 }
 0x965   :  { %4723 = vtanh.bf16 %v3790_v38  ;;  %v8146_v38 = vld [vmem:[#allocation177_spill] sm:$0xff] }
 0x966   :  { %4725 = vtanh.bf16 %v3784_v19  ;;  %v8145_v19 = vld [vmem:[#allocation175_spill] sm:$0xff] }
 0x967   :  { %v3767_v15 = vunpack.c.l.bf16 %v8145_v19 }
 0x96f   :  { %v4722_v63 = vpop.eup %4721 }
 0x970   :  { %v4724_v30 = vpop.eup %4723  ;;  %v3788_v35 = vmul.bf16 1056980736, %v4722_v63  ;;  %v3769_v63 = vunpack.c.l.bf16 %v8146_v38 }
 0x971   :  { %v3792_v36 = vmul.bf16 1056980736, %v4724_v30  ;;  %v4726_v22 = vpop.eup %4725 }
 0x972   :  { %v3789_v47 = vadd.bf16 1056980736, %v3788_v35 }
 0x973   :  { %v3793_v37 = vadd.bf16 1056980736, %v3792_v36 }
 0x974   :  { %v3803_v13 = vmul.bf16 %v4726_v22, %v3789_v47  ;;  %v3772_v47 = vunpack.c.h.bf16 %v8144_v62 }
 0x975   :  { %v3799_v28 = vunpack.c.l.bf16 %v3793_v37  ;;  %v3800_v41 = vunpack.c.h.bf16 %v3793_v37 }
 0x976   :  { %v3804_v49 = vunpack.c.l.bf16 %v3803_v13  ;;  %v3805_v12 = vunpack.c.h.bf16 %v3803_v13 }
 0x977   :  { %v3801_v57 = vmul.f32 %v3799_v28, %v6684_v14  ;;  %v3802_v9 = vmul.f32 %v3800_v41, %v6686_v48  ;;  %v3770_v48 = vunpack.c.h.bf16 %v8143_v61  ;;  %v3771_v41 = vunpack.c.h.bf16 %v8145_v19 }
 0x979   :  { %v6856_v16 = vadd.f32 %v3804_v49, %v3801_v57  ;;  %v6858_v24 = vadd.f32 %v3805_v12, %v3802_v9  ;;  %v3773_v49 = vunpack.c.h.bf16 %v8146_v38 }
 0x99b   :  { %v3690_v17 = vpop.f32.mrb[116].mxu0  ;;  %v3733_v44 = vpop.f32.mrb[116].mxu1 }
 0x99c   :  { %v3774_v30 = vadd.f32 %v3766_v20, %v3690_v17  ;;  %v3776_v35 = vadd.f32 %v3768_v43, %v3733_v44  ;;  %v3692_v36 = vpop.f32.mrb[117].mxu0  ;;  %v3735_v14 = vpop.f32.mrb[117].mxu1 }
 0x99d   :  { %v3775_v22 = vadd.f32 %v3767_v15, %v3692_v36  ;;  %v3777_v37 = vadd.f32 %v3769_v63, %v3735_v14  ;;  %v3694_v13 = vpop.f32.mrb[118].mxu0  ;;  %v3737_v28 = vpop.f32.mrb[118].mxu1  ;;  %v3795_v14 = vmul.bf16 1056980736, %v3785_v52 }
 0x99e   :  { %v3778_v12 = vadd.f32 %v3770_v48, %v3694_v13  ;;  %v3780_v57 = vadd.f32 %v3772_v47, %v3737_v28  ;;  %v3696_v9 = vpop.f32.mrb[119].mxu0  ;;  %v3739_v32 = vpop.f32.mrb[119].mxu1 }
 0x99f   :  { %v3779_v20 = vadd.f32 %v3771_v41, %v3696_v9  ;;  %v3781_v43 = vadd.f32 %v3773_v49, %v3739_v32 }
 0x9a0   :  { %v3811_v17 = vpack.c.bf16 %v3778_v12, %v3774_v30  ;;  %v3813_v44 = vpack.c.bf16 %v3780_v57, %v3776_v35 }
 0x9a1   :  { %v3812_v45 = vpack.c.bf16 %v3779_v20, %v3775_v22  ;;  %v3814_v61 = vpack.c.bf16 %v3781_v43, %v3777_v37  ;;  %v3808_v37 = vpack.c.bf16 %v6858_v24, %v6856_v16 }
 0x9a2   :  { %v3815_v18 = vmul.bf16 1056980736, %v3811_v17 }
 0x9a3   :  { %v3819_v62 = vmul.bf16 1056980736, %v3812_v45  ;;  %v3824_v38 = vmul.bf16 1056980736, %v3814_v61 }
 0x9a4   :  { %4727 = vtanh.bf16 %v3815_v18 }
 0x9a5   :  { %4729 = vtanh.bf16 %v3819_v62  ;;  %v4585_v62 = vld [vmem:[#allocation9 + $0x40] sm:$0xff]  }
 0x9a6   :  { %4731 = vtanh.bf16 %v3813_v44 }
 0x9a7   :  { %4733 = vtanh.bf16 %v3824_v38  ;;  %v4590_v38 = vld [vmem:[#allocation9 + $0x10] sm:$0xff]  }
 0x9a8   :  { %4735 = vtanh.bf16 %v3795_v14  ;;  %v4591_v14 = vld [vmem:[#allocation9 + $0x58] sm:$0xff]  }
 0x9a9   :  { %4737 = vtanh.bf16 %v3808_v37 }
 0x9af   :  { %v4728_v15 = vpop.eup %4727 }
 0x9b0   :  { %v4730_v63 = vpop.eup %4729  ;;  %v3817_v19 = vmul.bf16 1056980736, %v4728_v15  ;;  %v4586_v15 = vld [vmem:[#allocation9] sm:$0xff]  }
 0x9b1   :  { %v3821_v36 = vmul.bf16 1056980736, %v4730_v63  ;;  %v4732_v47 = vpop.eup %4731  ;;  %v4587_v63 = vld [vmem:[#allocation9 + $0x48] sm:$0xff]  }
 0x9b2   :  { %v3818_v48 = vadd.bf16 1056980736, %v3817_v19  ;;  %v4734_v12 = vpop.eup %4733  ;;  %v4588_v19 = vld [vmem:[#allocation9 + $0x8] sm:$0xff]  }
 0x9b3   :  { %v3822_v13 = vadd.bf16 1056980736, %v3821_v36  ;;  %v4736_v57 = vpop.eup %4735  ;;  %v3826_v9 = vmul.bf16 1056980736, %v4734_v12  ;;  %v4589_v36 = vld [vmem:[#allocation9 + $0x50] sm:$0xff]  }
 0x9b4   :  { %v3832_v28 = vmul.bf16 %v4732_v47, %v3818_v48  ;;  %v3797_v20 = vmul.bf16 1056980736, %v4736_v57  ;;  %v4738_v43 = vpop.eup %4737  ;;  %v4592_v48 = vld [vmem:[#allocation9 + $0x18] sm:$0xff]   ;;  %v4593_v47 = vld [vmem:[#allocation9 + $0x60] sm:$0xff]  }
 0x9b5   :  { %v3828_v32 = vunpack.c.l.bf16 %v3822_v13  ;;  %v3829_v30 = vunpack.c.h.bf16 %v3822_v13  ;;  %v4594_v13 = vld [vmem:[#allocation9 + $0x20] sm:$0xff]  }
 0x9b6   :  { %v3833_v35 = vunpack.c.l.bf16 %v3832_v28  ;;  %v3834_v22 = vunpack.c.h.bf16 %v3832_v28  ;;  %v4595_v28 = vld [vmem:[#allocation9 + $0x68] sm:$0xff]  }
 0x9b7   :  { %v3830_v18 = vmul.f32 %v3828_v32, %v6700_v5  ;;  %v3831_v45 = vmul.f32 %v3829_v30, %v6702_v54  ;;  %v3827_v5 = vadd.bf16 1056980736, %v3826_v9  ;;  %v3798_v54 = vadd.bf16 1056980736, %v3797_v20  ;;  %v4596_v32 = vld [vmem:[#allocation9 + $0x28] sm:$0xff]   ;;  %v4597_v30 = vld [vmem:[#allocation9 + $0x70] sm:$0xff]  }
 0x9b8   :  { %v8180_v20 = vld [vmem:[#allocation167_spill] sm:$0xff] }
 0x9b9   :  { %v6872_v41 = vadd.f32 %v3833_v35, %v3830_v18  ;;  %v6874_v52 = vadd.f32 %v3834_v22, %v3831_v45  ;;  %v6878_v61 = vmul.bf16 %v4738_v43, %v3798_v54  ;;  %v4598_v35 = vld [vmem:[#allocation9 + $0x30] sm:$0xff]   ;;  %v4599_v22 = vld [vmem:[#allocation9 + $0x78] sm:$0xff]   ;;  %v8178_v45 = vld [vmem:[#allocation166_spill] sm:$0xff]  ;;  %v4017_v43 = vunpack.c.l.bf16 %v8180_v20 }
 0x9ba   :  { %v4600_v18 = vld [vmem:[#allocation9 + $0x38] sm:$0xff]   ;;  %v4016_v37 = vunpack.c.l.bf16 %v8178_v45 }
 0x9bb   :  { %v3837_v49 = vpack.c.bf16 %v6874_v52, %v6872_v41 }
 0x9bd   :  { %4739 = vtanh.bf16 %v3837_v49  ;;  %v8179_v49 = vld [vmem:[#allocation168_spill] sm:$0xff] }
 0x9be   :  { %v4018_v12 = vunpack.c.l.bf16 %v8179_v49 }
 0x9c8   :  { %v4740_v17 = vpop.eup %4739 }
 0x9c9   :  { %v3839_v44 = vmul.bf16 %v4740_v17, %v3827_v5  ;;  %v8181_v5 = vld [vmem:[#allocation169_spill] sm:$0xff] }
 0x9ca   :  { %v4019_v17 = vunpack.c.l.bf16 %v8181_v5 }
 0x9cb   :  { %3872 = vmatprep.mubr.bf16.mxu0 %v3839_v44  ;;  %3915 = vmatprep.mubr.bf16.mxu1 %v3839_v44 }
 0x9cc   :  { %3873 = vmatmul.mubr.bf16.vlgmr.msra.gmra.mrb[120].mxu0 %v6878_v61  ;;  %3916 = vmatmul.mubr.bf16.vlgmr.msra.gmra.mrb[120].mxu1 %v6878_v61 }
 0x9cd   :  { %3927 = vmatpush1.bf16.msra.mxu0 %v7520_v59  ;;  %3970 = vmatpush1.bf16.msra.mxu1 %v7521_v0  ;;  %v8147_v59 = vld [vmem:[#allocation111_spill] sm:$0xff]  ;;  %v8148_v0 = vld [vmem:[#allocation112_spill] sm:$0xff] }
 0x9ce   :  { %3958 = vmatprep.mubr.bf16.mxu0 %v3839_v44  ;;  %4001 = vmatprep.mubr.bf16.mxu1 %v3839_v44 }
 0x9cf   :  { %3928 = vmatprep.subr.bf16.mxu0 %v7522_v21  ;;  %3971 = vmatprep.subr.bf16.mxu1 %v7523_v3  ;;  %v8149_v21 = vld [vmem:[#allocation113_spill] sm:$0xff]  ;;  %v8150_v3 = vld [vmem:[#allocation114_spill] sm:$0xff] }
 0x9d1   :  { %3929 = vmatpush1.bf16.msra.mxu0 %v7524_v39  ;;  %3972 = vmatpush1.bf16.msra.mxu1 %v7525_v58  ;;  %v8151_v39 = vld [vmem:[#allocation115_spill] sm:$0xff]  ;;  %v8152_v58 = vld [vmem:[#allocation116_spill] sm:$0xff] }
 0x9d2   :  { %3930 = vmatprep.subr.bf16.mxu0 %v7526_v51  ;;  %3973 = vmatprep.subr.bf16.mxu1 %v7527_v25  ;;  %v8153_v51 = vld [vmem:[#allocation117_spill] sm:$0xff]  ;;  %v8154_v25 = vld [vmem:[#allocation118_spill] sm:$0xff] }
 0x9d5   :  { %3931 = vmatpush1.bf16.msra.mxu0 %v7528_v50  ;;  %3974 = vmatpush1.bf16.msra.mxu1 %v7529_v56  ;;  %v8155_v50 = vld [vmem:[#allocation119_spill] sm:$0xff]  ;;  %v8156_v56 = vld [vmem:[#allocation120_spill] sm:$0xff] }
 0x9d6   :  { %3932 = vmatprep.subr.bf16.mxu0 %v7530_v55  ;;  %3975 = vmatprep.subr.bf16.mxu1 %v7531_v11  ;;  %v8157_v55 = vld [vmem:[#allocation121_spill] sm:$0xff]  ;;  %v8158_v11 = vld [vmem:[#allocation122_spill] sm:$0xff] }
 0x9d9   :  { %3933 = vmatpush1.bf16.msra.mxu0 %v7532_v60  ;;  %3976 = vmatpush1.bf16.msra.mxu1 %v7533_v6  ;;  %v8159_v60 = vld [vmem:[#allocation123_spill] sm:$0xff]  ;;  %v8160_v6 = vld [vmem:[#allocation124_spill] sm:$0xff] }
 0x9da   :  { %3934 = vmatprep.subr.bf16.mxu0 %v7622_v4  ;;  %3977 = vmatprep.subr.bf16.mxu1 %v7623_v33  ;;  %v8161_v4 = vld [vmem:[#allocation125_spill] sm:$0xff]  ;;  %v8162_v33 = vld [vmem:[#allocation126_spill] sm:$0xff] }
 0x9dd   :  { %3935 = vmatpush1.bf16.msra.mxu0 %v7624_v23  ;;  %3978 = vmatpush1.bf16.msra.mxu1 %v7625_v31  ;;  %v8163_v23 = vld [vmem:[#allocation127_spill] sm:$0xff]  ;;  %v8164_v31 = vld [vmem:[#allocation128_spill] sm:$0xff] }
 0x9de   :  { %3936 = vmatprep.subr.bf16.mxu0 %v7626_v26  ;;  %3979 = vmatprep.subr.bf16.mxu1 %v7627_v8  ;;  %v8165_v26 = vld [vmem:[#allocation129_spill] sm:$0xff]  ;;  %v8166_v8 = vld [vmem:[#allocation130_spill] sm:$0xff] }
 0x9e1   :  { %3937 = vmatpush1.bf16.msra.mxu0 %v7628_v40  ;;  %3980 = vmatpush1.bf16.msra.mxu1 %v7629_v42  ;;  %v8167_v40 = vld [vmem:[#allocation131_spill] sm:$0xff]  ;;  %v8168_v42 = vld [vmem:[#allocation132_spill] sm:$0xff] }
 0x9e2   :  { %3938 = vmatprep.subr.bf16.mxu0 %v7630_v34  ;;  %3981 = vmatprep.subr.bf16.mxu1 %v7631_v29  ;;  %v8169_v34 = vld [vmem:[#allocation133_spill] sm:$0xff]  ;;  %v8170_v29 = vld [vmem:[#allocation134_spill] sm:$0xff] }
 0x9e5   :  { %3939 = vmatpush1.bf16.msra.mxu0 %v7632_v46  ;;  %3982 = vmatpush1.bf16.msra.mxu1 %v7633_v7  ;;  %v8171_v46 = vld [vmem:[#allocation135_spill] sm:$0xff]  ;;  %v8172_v7 = vld [vmem:[#allocation136_spill] sm:$0xff] }
 0x9e6   :  { %3940 = vmatprep.subr.bf16.mxu0 %v7634_v2  ;;  %3983 = vmatprep.subr.bf16.mxu1 %v7635_v27  ;;  %v8173_v2 = vld [vmem:[#allocation137_spill] sm:$0xff]  ;;  %v8174_v27 = vld [vmem:[#allocation138_spill] sm:$0xff] }
 0x9e9   :  { %3941 = vmatpush1.bf16.msra.mxu0 %v7636_v10  ;;  %3984 = vmatpush1.bf16.msra.mxu1 %v7637_v1  ;;  %v8175_v10 = vld [vmem:[#allocation139_spill] sm:$0xff]  ;;  %v8176_v1 = vld [vmem:[#allocation140_spill] sm:$0xff] }
 0x9ea   :  { %3942 = vmatprep.subr.bf16.mxu0 %v7638_v53  ;;  %3985 = vmatprep.subr.bf16.mxu1 %v8147_v59  ;;  %v8177_v53 = vld [vmem:[#allocation141_spill] sm:$0xff] }
 0x9ed   :  { %3943 = vmatpush1.bf16.msra.mxu0 %v8148_v0  ;;  %3986 = vmatpush1.bf16.msra.mxu1 %v8149_v21  ;;  %v4020_v0 = vunpack.c.h.bf16 %v8178_v45  ;;  %v4022_v21 = vunpack.c.h.bf16 %v8179_v49 }
 0x9ee   :  { %3944 = vmatprep.subr.bf16.mxu0 %v8150_v3  ;;  %3987 = vmatprep.subr.bf16.mxu1 %v8151_v39 }
 0x9f1   :  { %3945 = vmatpush1.bf16.msra.mxu0 %v8152_v58  ;;  %3988 = vmatpush1.bf16.msra.mxu1 %v8153_v51 }
 0x9f2   :  { %3946 = vmatprep.subr.bf16.mxu0 %v8154_v25  ;;  %3989 = vmatprep.subr.bf16.mxu1 %v8155_v50  ;;  %v4021_v25 = vunpack.c.h.bf16 %v8180_v20  ;;  %v4023_v50 = vunpack.c.h.bf16 %v8181_v5 }
 0x9f5   :  { %3947 = vmatpush1.bf16.msra.mxu0 %v8156_v56  ;;  %3990 = vmatpush1.bf16.msra.mxu1 %v8157_v55 }
 0x9f6   :  { %3948 = vmatprep.subr.bf16.mxu0 %v8158_v11  ;;  %3991 = vmatprep.subr.bf16.mxu1 %v8159_v60 }
 0x9f9   :  { %3949 = vmatpush1.bf16.msra.mxu0 %v8160_v6  ;;  %3992 = vmatpush1.bf16.msra.mxu1 %v8161_v4 }
 0x9fa   :  { %3950 = vmatprep.subr.bf16.mxu0 %v8162_v33  ;;  %3993 = vmatprep.subr.bf16.mxu1 %v8163_v23 }
 0x9fd   :  { %3951 = vmatpush1.bf16.msra.mxu0 %v8164_v31  ;;  %3994 = vmatpush1.bf16.msra.mxu1 %v8165_v26 }
 0x9fe   :  { %3952 = vmatprep.subr.bf16.mxu0 %v8166_v8  ;;  %3995 = vmatprep.subr.bf16.mxu1 %v8167_v40 }
 0xa01   :  { %3953 = vmatpush1.bf16.msra.mxu0 %v8168_v42  ;;  %3996 = vmatpush1.bf16.msra.mxu1 %v8169_v34 }
 0xa02   :  { %3954 = vmatprep.subr.bf16.mxu0 %v8170_v29  ;;  %3997 = vmatprep.subr.bf16.mxu1 %v8171_v46 }
 0xa05   :  { %3955 = vmatpush1.bf16.msra.mxu0 %v8172_v7  ;;  %3998 = vmatpush1.bf16.msra.mxu1 %v8173_v2 }
 0xa06   :  { %3956 = vmatprep.subr.bf16.mxu0 %v8174_v27  ;;  %3999 = vmatprep.subr.bf16.mxu1 %v8175_v10 }
 0xa09   :  { %3957 = vmatpush1.bf16.msra.mxu0 %v8176_v1  ;;  %4000 = vmatpush1.bf16.msra.mxu1 %v8177_v53 }
 0xa0a   :  { %4546 = vmatprep.subr.bf16.mxu0 %v4585_v62 }
 0xa0c   :  { %3959 = vmatmul.mubr.bf16.vlgmr.msra.gmra.mrb[124].mxu0 %v6878_v61  ;;  %4002 = vmatmul.mubr.bf16.vlgmr.msra.gmra.mrb[124].mxu1 %v6878_v61 }
 0xa0d   :  { %4547 = vmatpush3.bf16.msra.mxu0 %v4586_v15 }
 0xa0e   :  { %4548 = vmatprep.subr.bf16.mxu0 %v4587_v63 }
 0xa11   :  { %4549 = vmatpush3.bf16.msra.mxu0 %v4588_v19 }
 0xa12   :  { %4550 = vmatprep.subr.bf16.mxu0 %v4589_v36 }
 0xa15   :  { %4551 = vmatpush3.bf16.msra.mxu0 %v4590_v38 }
 0xa16   :  { %4552 = vmatprep.subr.bf16.mxu0 %v4591_v14 }
 0xa19   :  { %4553 = vmatpush3.bf16.msra.mxu0 %v4592_v48 }
 0xa1a   :  { %4554 = vmatprep.subr.bf16.mxu0 %v4593_v47 }
 0xa1d   :  { %4555 = vmatpush3.bf16.msra.mxu0 %v4594_v13 }
 0xa1e   :  { %4556 = vmatprep.subr.bf16.mxu0 %v4595_v28 }
 0xa21   :  { %4557 = vmatpush3.bf16.msra.mxu0 %v4596_v32 }
 0xa22   :  { %4558 = vmatprep.subr.bf16.mxu0 %v4597_v30 }
 0xa25   :  { %4559 = vmatpush3.bf16.msra.mxu0 %v4598_v35  ;;  %v8182_v35 = vld [vmem:[#allocation170_spill] sm:$0xff] }
 0xa26   :  { %4560 = vmatprep.subr.bf16.mxu0 %v4599_v22  ;;  %v4036_v22 = vunpack.c.l.bf16 %v8182_v35 }
 0xa29   :  { %4561 = vmatpush3.bf16.msra.mxu0 %v4600_v18  ;;  %v8183_v18 = vld [vmem:[#allocation172_spill] sm:$0xff] }
 0xa2a   :  { %v4038_v45 = vunpack.c.l.bf16 %v8183_v18 }
 0xa9f   :  { %v3874_v57 = vpop.f32.mrb[120].mxu0  ;;  %v3917_v9 = vpop.f32.mrb[120].mxu1 }
 0xaa0   :  { %v4024_v54 = vadd.f32 %v4016_v37, %v3874_v57  ;;  %v4026_v44 = vadd.f32 %v4018_v12, %v3917_v9  ;;  %v3876_v61 = vpop.f32.mrb[121].mxu0  ;;  %v3919_v59 = vpop.f32.mrb[121].mxu1  ;;  %v8184_v12 = vld [vmem:[#allocation171_spill] sm:$0xff] }
 0xaa1   :  { %v4025_v3 = vadd.f32 %v4017_v43, %v3876_v61  ;;  %v4027_v39 = vadd.f32 %v4019_v17, %v3919_v59  ;;  %v3878_v58 = vpop.f32.mrb[122].mxu0  ;;  %v3921_v51 = vpop.f32.mrb[122].mxu1  ;;  %v4037_v57 = vunpack.c.l.bf16 %v8184_v12  ;;  %v4040_v17 = vunpack.c.h.bf16 %v8182_v35 }
 0xaa2   :  { %v4028_v56 = vadd.f32 %v4020_v0, %v3878_v58  ;;  %v4030_v55 = vadd.f32 %v4022_v21, %v3921_v51  ;;  %v3880_v11 = vpop.f32.mrb[123].mxu0  ;;  %v3923_v60 = vpop.f32.mrb[123].mxu1  ;;  %v4041_v21 = vunpack.c.h.bf16 %v8184_v12 }
 0xaa3   :  { %v4029_v6 = vadd.f32 %v4021_v25, %v3880_v11  ;;  %v4031_v4 = vadd.f32 %v4023_v50, %v3923_v60 }
 0xaa4   :  { %v4052_v33 = vpack.c.bf16 %v4028_v56, %v4024_v54  ;;  %v4054_v23 = vpack.c.bf16 %v4030_v55, %v4026_v44  ;;  %v4042_v54 = vunpack.c.h.bf16 %v8183_v18  ;;  %v4544_v18 = vld [vmem:[%s6984_s6] ss:$0 sm:$0xff] }
 0xaa5   :  { %v4053_v31 = vpack.c.bf16 %v4029_v6, %v4025_v3  ;;  %v4055_v26 = vpack.c.bf16 %v4031_v4, %v4027_v39 }
 0xaa6   :  { %v4056_v8 = vmul.bf16 1056980736, %v4052_v33 }
 0xaa7   :  { %v4060_v40 = vmul.bf16 1056980736, %v4053_v31  ;;  %v4065_v7 = vmul.bf16 1056980736, %v4055_v26 }
 0xaa8   :  { %4741 = vtanh.bf16 %v4056_v8 }
 0xaa9   :  { %4743 = vtanh.bf16 %v4060_v40 }
 0xaaa   :  { %4745 = vtanh.bf16 %v4054_v23 }
 0xaab   :  { %4747 = vtanh.bf16 %v4065_v7 }
 0xab3   :  { %v4742_v42 = vpop.eup %4741 }
 0xab4   :  { %v4744_v34 = vpop.eup %4743  ;;  %v4058_v29 = vmul.bf16 1056980736, %v4742_v42 }
 0xab5   :  { %v4062_v46 = vmul.bf16 1056980736, %v4744_v34  ;;  %v4746_v27 = vpop.eup %4745 }
 0xab6   :  { %v4059_v2 = vadd.bf16 1056980736, %v4058_v29  ;;  %v4748_v47 = vpop.eup %4747 }
 0xab7   :  { %v4063_v10 = vadd.bf16 1056980736, %v4062_v46  ;;  %v4067_v13 = vmul.bf16 1056980736, %v4748_v47 }
 0xab8   :  { %v4073_v1 = vmul.bf16 %v4746_v27, %v4059_v2 }
 0xab9   :  { %v4069_v53 = vunpack.c.l.bf16 %v4063_v10  ;;  %v4070_v62 = vunpack.c.h.bf16 %v4063_v10  ;;  %v4068_v28 = vadd.bf16 1056980736, %v4067_v13 }
 0xaba   :  { %v4074_v15 = vunpack.c.l.bf16 %v4073_v1  ;;  %v4075_v63 = vunpack.c.h.bf16 %v4073_v1 }
 0xabb   :  { %v4071_v19 = vmul.f32 %v4069_v53, %v6856_v16  ;;  %v4072_v36 = vmul.f32 %v4070_v62, %v6858_v24  ;;  %v8185_v16 = vld [vmem:[#allocation173_spill] sm:$0xff] }
 0xabc   :  { %v4039_v9 = vunpack.c.l.bf16 %v8185_v16  ;;  %v4043_v3 = vunpack.c.h.bf16 %v8185_v16 }
 0xabd   :  { %v4076_v38 = vadd.f32 %v4074_v15, %v4071_v19  ;;  %v4077_v14 = vadd.f32 %v4075_v63, %v4072_v36 }
 0xabf   :  { %v4078_v48 = vpack.c.bf16 %v4077_v14, %v4076_v38 }
 0xac1   :  { %4749 = vtanh.bf16 %v4078_v48 }
 0xacc   :  { %v4750_v32 = vpop.eup %4749 }
 0xacd   :  { %v4080_v30 = vmul.bf16 %v4750_v32, %v4068_v28  ;;  %v4527_v28 = vld [vmem:[%s6983_s5] ss:$0 sm:$0xff] }
 0xadf   :  { %v3960_v37 = vpop.f32.mrb[124].mxu0  ;;  %v4003_v49 = vpop.f32.mrb[124].mxu1 }
 0xae0   :  { %v4044_v24 = vadd.f32 %v4036_v22, %v3960_v37  ;;  %v4046_v20 = vadd.f32 %v4038_v45, %v4003_v49  ;;  %v3962_v43 = vpop.f32.mrb[125].mxu0  ;;  %v4005_v5 = vpop.f32.mrb[125].mxu1 }
 0xae1   :  { %v4045_v44 = vadd.f32 %v4037_v57, %v3962_v43  ;;  %v4047_v61 = vadd.f32 %v4039_v9, %v4005_v5  ;;  %v3964_v59 = vpop.f32.mrb[126].mxu0  ;;  %v4007_v0 = vpop.f32.mrb[126].mxu1  ;;  %v4545_v57 = vld [vmem:[#allocation3] ss:$0 sm:$0xff] }
 0xae2   :  { %v4048_v39 = vadd.f32 %v4040_v17, %v3964_v59  ;;  %v4050_v58 = vadd.f32 %v4042_v54, %v4007_v0  ;;  %v3966_v51 = vpop.f32.mrb[127].mxu0  ;;  %v4009_v25 = vpop.f32.mrb[127].mxu1 }
 0xae3   :  { %v4049_v50 = vadd.f32 %v4041_v21, %v3966_v51  ;;  %v4051_v56 = vadd.f32 %v4043_v3, %v4009_v25 }
 0xae4   :  { %v4081_v55 = vpack.c.bf16 %v4048_v39, %v4044_v24  ;;  %v4083_v11 = vpack.c.bf16 %v4050_v58, %v4046_v20 }
 0xae5   :  { %v4082_v60 = vpack.c.bf16 %v4049_v50, %v4045_v44  ;;  %v4084_v6 = vpack.c.bf16 %v4051_v56, %v4047_v61 }
 0xae6   :  { %v4085_v4 = vmul.bf16 1056980736, %v4081_v55 }
 0xae7   :  { %v4089_v33 = vmul.bf16 1056980736, %v4082_v60  ;;  %v4094_v40 = vmul.bf16 1056980736, %v4084_v6 }
 0xae8   :  { %4751 = vtanh.bf16 %v4085_v4 }
 0xae9   :  { %4753 = vtanh.bf16 %v4089_v33 }
 0xaea   :  { %4755 = vtanh.bf16 %v4083_v11 }
 0xaeb   :  { %4757 = vtanh.bf16 %v4094_v40 }
 0xaf3   :  { %v4752_v23 = vpop.eup %4751 }
 0xaf4   :  { %v4754_v31 = vpop.eup %4753  ;;  %v4087_v26 = vmul.bf16 1056980736, %v4752_v23 }
 0xaf5   :  { %v4091_v8 = vmul.bf16 1056980736, %v4754_v31  ;;  %v4756_v34 = vpop.eup %4755 }
 0xaf6   :  { %v4088_v42 = vadd.bf16 1056980736, %v4087_v26  ;;  %v4758_v19 = vpop.eup %4757 }
 0xaf7   :  { %v4092_v29 = vadd.bf16 1056980736, %v4091_v8  ;;  %v4096_v36 = vmul.bf16 1056980736, %v4758_v19 }
 0xaf8   :  { %v4102_v46 = vmul.bf16 %v4756_v34, %v4088_v42 }
 0xaf9   :  { %v4098_v7 = vunpack.c.l.bf16 %v4092_v29  ;;  %v4099_v2 = vunpack.c.h.bf16 %v4092_v29  ;;  %v4097_v38 = vadd.bf16 1056980736, %v4096_v36 }
 0xafa   :  { %v4103_v27 = vunpack.c.l.bf16 %v4102_v46  ;;  %v4104_v10 = vunpack.c.h.bf16 %v4102_v46 }
 0xafb   :  { %v4100_v1 = vmul.f32 %v4098_v7, %v6872_v41  ;;  %v4101_v53 = vmul.f32 %v4099_v2, %v6874_v52 }
 0xafd   :  { %v4105_v62 = vadd.f32 %v4103_v27, %v4100_v1  ;;  %v4106_v15 = vadd.f32 %v4104_v10, %v4101_v53 }
 0xaff   :  { %v4107_v63 = vpack.c.bf16 %v4106_v15, %v4105_v62 }
 0xb01   :  { %4759 = vtanh.bf16 %v4107_v63 }
 0xb0c   :  { %v4760_v14 = vpop.eup %4759 }
 0xb0d   :  { %v4109_v48 = vmul.bf16 %v4760_v14, %v4097_v38 }
 0xb0f   :  { %4277 = vmatprep.mubr.bf16.mxu0 %v4109_v48 }
 0xb10   :  { %4278 = vmatmul.mubr.bf16.vlgmr.msra.gmra.mrb[128].mxu0 %v4080_v30 }
 0xbe3   :  { %v4562_v47 = vpop.f32.mrb[128].mxu0 }
 0xbe4   :  { %v4563_v13 = vpop.f32.mrb[129].mxu0 }
 0xbe5   :  { %v4564_v41 = vadd.f32 %v4563_v13, %v4562_v47  ;;  %v4565_v32 = vpop.f32.mrb[130].mxu0 }
 0xbe6   :  { %v4566_v52 = vpop.f32.mrb[131].mxu0 }
 0xbe7   :  { %v4567_v35 = vadd.f32 %v4566_v52, %v4565_v32  ;;  %v4280_v22 = vadd.f32 %v4564_v41, %v4527_v28 }
 0xbe9   :  { %v4283_v45 = vadd.f32 %v4567_v35, %v4527_v28  ;;  %v4286_v37 = vmax.f32 %v4280_v22, 0.0 }
 0xbeb   :  { %v4287_v49 = vmax.f32 %v4283_v45, 0.0  ;;  %v4295_v12 = vmul.f32 %v4544_v18, %v4286_v37 }
 0xbed   :  { %4297 = vadd.xlane.f32.xlu0 %v4295_v12  ;;  %v4296_v30 = vmul.f32 %v4544_v18, %v4287_v49 }
 0xbf1   :  { %4299 = vadd.xlane.f32.xlu0 %v4296_v30 }
 0xc7a   :  { %v4298_v16 = vpop.xlane.xlu0 %4297 }
 0xc7b   :  { %v4308_v9 = vadd.f32 %v4545_v57, %v4298_v16 }
 0xc7d   :  { %4311 = vst.msk [vmem:[%s6986_s8] sm:$0xff] %vm4310_vm0, %v4308_v9 }
 0xc7e   :  { %v4300_v24 = vpop.xlane.xlu0 %4299 }
 0xc7f   :  { %v4309_v20 = vadd.f32 %v4545_v57, %v4300_v24 }
 0xc81   :  { %4312 = vst.msk [vmem:[%s6986_s8 + $0x8] sm:$0xff] %vm4310_vm0, %v4309_v20 }
 0xc82   :  { %4317 = vsyncpa [#allocation5], 1 }
 0xc83   :  { %4318 = vsyncpa [#allocation7], 1 }
 0xc84   :  { %4319 = vsyncpa [#allocation10], 1 }

</bundles_post_ra>
